<compile_context>
chip_gen: v5e
topology: v5e:2x2
jax: 0.10.0
libtpu: 0.0.40
codegen_flags: <defaults>
</compile_context>

<pallas_src>
import functools

import numpy as np
import jax
import jax.numpy as jnp
from jax.experimental import pallas as pl
from jax.experimental.pallas import tpu as pltpu

NEG_SLOPE = 0.01   # nn.LeakyReLU default negative_slope
BN_EPS = 1e-5      # nn.BatchNorm2d default eps
NUM_MODULES = 3    # group_conv chains three Res2NetBottleneck2 blocks


def _group_conv_kernel(W, w_p, scales,
                       x_ref, masks_ref,
                       w2_ref, g2_ref, b2_ref,
                       w3_ref, g3_ref, b3_ref,
                       wf_ref, gf_ref, bfb_ref,
                       o_ref):
    """Whole group_conv forward on a single grid point.

    Activations are (C_p, P) with P = N*H*W on the lane axis (lane-dense) and
    channels padded to the 8-sublane granule (C_p = scales * w_p).
    """
    f32 = jnp.float32
    bf16 = jnp.bfloat16
    P = x_ref.shape[1]

    def leaky(v):
        # max(v, a*v): mul+max (2 VALU ops) instead of cmp+mul+select.
        return jnp.maximum(v, NEG_SLOPE * v)

    def bn(v, gamma, beta):
        # Training-mode BatchNorm applied as a single per-channel scale+bias:
        #   var = E[v^2] - mean^2 ; scale = gamma * rsqrt(var+eps)  (EUP)
        mean = jnp.mean(v, axis=1, keepdims=True)
        var = jnp.mean(v * v, axis=1, keepdims=True) - mean * mean
        scale = gamma * jax.lax.rsqrt(var + BN_EPS)
        bias = beta - mean * scale
        return v * scale + bias

    # Border masks hoisted out of all module/branch/tap loops: loaded exactly
    # once (already broadcast to (w_p, P) wrapper-side), reused 3x3 times.
    mask_b = [masks_ref[t] for t in range(9)]

    def conv3x3(inp, m, s):
        # 3x3 SAME conv: roll+mask the INPUT per tap, stack on the sublane
        # axis, and contract all 9 taps in ONE MXU push (K = 9*w_p).
        taps = []
        for t in range(9):
            dy, dx = t // 3 - 1, t % 3 - 1
            delta = dy * W + dx                                  # shift in flat N*H*W
            if delta == 0:
                taps.append(inp)                                 # center tap, no mask
            else:
                rolled = pltpu.roll(inp, shift=(-delta) % P, axis=1)
                taps.append(rolled * mask_b[t])                  # zero padded borders
        stacked = jnp.concatenate(taps, axis=0).astype(bf16)     # (9*w_p, P)
        return jnp.dot(w2_ref[m, s - 1], stacked,
                       preferred_element_type=f32)               # (w_p, P) f32

    def bottleneck(x_cur, m):
        # Res2NetBottleneck2 (skip=False). Branch outputs are stacked on the
        # sublane axis so conv3 (1x1) is a single (C_p,C_p)x(C_p,P) matmul.
        ys = [x_cur[0:w_p, :]]                                   # identity chunk
        y_prev = None
        for s in range(1, scales):
            inp = x_cur[s * w_p:(s + 1) * w_p, :]
            if s >= 2:
                inp = inp + y_prev                               # hierarchical residual
            acc = conv3x3(inp, m, s)
            y_s = leaky(bn(acc, g2_ref[m, s - 1], b2_ref[m, s - 1]))
            ys.append(y_s)
            y_prev = y_s
        y_stack = jnp.concatenate(ys, axis=0).astype(bf16)       # (C_p, P)
        out = jnp.dot(w3_ref[m], y_stack, preferred_element_type=f32)
        out = bn(out, g3_ref[m], b3_ref[m])
        return leaky(out + x_cur)

    x0 = x_ref[...].astype(f32)
    y1 = bottleneck(x0, 0)
    y2 = bottleneck(y1, 1)
    y3 = bottleneck(y2, 2)

    # Fuse stage: cat(y1,y2,y3) on the sublane axis -> ONE (C_p,3C_p) MXU push.
    # The conv bias is omitted: a per-channel constant added immediately before
    # a training-mode BN is exactly cancelled by the mean subtraction.
    y_all = jnp.concatenate([y1, y2, y3], axis=0).astype(bf16)   # (3*C_p, P)
    z = jnp.dot(wf_ref[...], y_all, preferred_element_type=f32)
    z = bn(z, gf_ref[...], bfb_ref[...])
    o_ref[...] = leaky(x0 + z).astype(o_ref.dtype)               # full-width store


def _make_shift_masks(N, H, W, w_p):
    """(9, w_p, P) float32: masks[t, :, p] == 1 iff 3x3 tap t=(dy,dx) at flat
    position p stays inside the (zero-padded) HxW image.  Pre-broadcast to
    w_p sublanes so the kernel never re-broadcasts."""
    P = N * H * W
    p = np.arange(P)
    hh = (p // W) % H
    ww = p % W
    masks = np.zeros((9, w_p, P), np.float32)
    for t in range(9):
        dy, dx = t // 3 - 1, t % 3 - 1
        valid = ((hh + dy >= 0) & (hh + dy < H) &
                 (ww + dx >= 0) & (ww + dx < W))
        masks[t] = valid.astype(np.float32)[None, :]
    return jnp.asarray(masks)


def _pack_params(params, C, scales, w_p):
    """Re-layout canonical parameters for the lane-dense, channel-padded,
    bf16-operand kernel.  Real channel c of branch s lives at padded row
    s*w_p + (c % w); padded rows carry zero weights / zero BN affine."""
    n = NUM_MODULES
    w = C // scales
    C_p = scales * w_p
    pad_idx = np.concatenate([np.arange(s * w_p, s * w_p + w) for s in range(scales)])

    # conv2: (n, s-1, kh, kw, cin, cout) HWIO -> (n, s-1, w_p, 9*w_p) with
    # columns grouped [tap][cin]; one matmul per branch covers all 9 taps.
    w2 = np.asarray(params["w2"], np.float32)
    w2 = np.transpose(w2, (0, 1, 5, 2, 3, 4)).reshape(n, scales - 1, w, 9, w)
    w2k = np.zeros((n, scales - 1, w_p, 9, w_p), np.float32)
    w2k[:, :, :w, :, :w] = w2
    w2k = w2k.reshape(n, scales - 1, w_p, 9 * w_p)

    def pad_vec(v):                       # (..., C) -> (..., C_p, 1)
        v = np.asarray(v, np.float32)
        out = np.zeros(v.shape[:-1] + (C_p,), np.float32)
        out[..., pad_idx] = v
        return jnp.asarray(out[..., None])

    def pad_branch_vec(v):                # (..., w) -> (..., w_p, 1)
        v = np.asarray(v, np.float32)
        out = np.zeros(v.shape[:-1] + (w_p,), np.float32)
        out[..., :w] = v
        return jnp.asarray(out[..., None])

    # conv3: (n, cin, cout) -> (n, C_p(out), C_p(in)) padded+transposed.
    w3 = np.asarray(params["w3"], np.float32)
    w3T = np.transpose(w3, (0, 2, 1))
    w3k = np.zeros((n, C_p, C_p), np.float32)
    w3k[np.ix_(np.arange(n), pad_idx, pad_idx)] = w3T

    # fuse conv: (3C, C) -> (C_p(out), 3*C_p(in)) padded+transposed,
    # column index = module*C_p + padded_cin (matches the sublane stack order).
    wf = np.asarray(params["wf"], np.float32)
    wfT = wf.T.reshape(C, n, C)
    wfk = np.zeros((C_p, n, C_p), np.float32)
    wfk[np.ix_(pad_idx, np.arange(n), pad_idx)] = wfT
    wfk = wfk.reshape(C_p, n * C_p)

    return dict(
        w2=jnp.asarray(w2k, jnp.bfloat16),
        g2=pad_branch_vec(params["g2"]), b2=pad_branch_vec(params["b2"]),
        w3=jnp.asarray(w3k, jnp.bfloat16),
        g3=pad_vec(params["g3"]), b3=pad_vec(params["b3"]),
        wf=jnp.asarray(wfk, jnp.bfloat16),
        gf=pad_vec(params["gf"]), bfb=pad_vec(params["bfb"]),
        # NOTE: fuse-conv bias "bf" intentionally not packed (BN cancels it).
    )


def group_conv_forward(x_nchw, params, *, scales=4):
    """group_conv forward (attention=False) as one Pallas TPU kernel.

    x_nchw: (N, C, H, W) float32, matching the PyTorch module's input layout.
    """
    N, C, H, W = x_nchw.shape
    assert C % scales == 0, "Planes must be divisible by scales"
    w = C // scales
    w_p = -(-w // 8) * 8                  # branch width padded to the sublane granule
    C_p = scales * w_p
    P = N * H * W

    kp = _pack_params(params, C, scales, w_p)
    masks = _make_shift_masks(N, H, W, w_p)

    # Layout plumbing in the wrapper: channels -> sublanes, N*H*W -> lanes,
    # channel blocks zero-padded to w_p rows.
    x_t = jnp.transpose(x_nchw, (1, 0, 2, 3)).reshape(C, P)
    if w_p != w:
        x_t = jnp.pad(x_t.reshape(scales, w, P),
                      ((0, 0), (0, w_p - w), (0, 0))).reshape(C_p, P)

    # VMEM budget from actual bytes (inputs/outputs, masks, bf16 weights, live
    # f32 intermediates) + headroom, capped at v7x's 64 MiB physical VMEM/TC.
    act = C_p * P * 4
    weight_bytes = int((kp["w2"].size + kp["w3"].size + kp["wf"].size) * 2
                       + (kp["g2"].size + kp["b2"].size + kp["g3"].size
                          + kp["b3"].size + kp["gf"].size + kp["bfb"].size) * 4)
    est = 2 * act + 9 * w_p * P * 4 + 12 * act + weight_bytes + (8 << 20)
    vmem_bytes = int(min(est, 64 << 20))

    kernel = functools.partial(_group_conv_kernel, W, w_p, scales)
    vspec = pl.BlockSpec(memory_space=pltpu.MemorySpace.VMEM)
    out_p = pl.pallas_call(
        kernel,
        out_shape=jax.ShapeDtypeStruct((C_p, P), x_nchw.dtype),
        in_specs=[vspec] * 11,
        out_specs=vspec,
        compiler_params=pltpu.CompilerParams(vmem_limit_bytes=vmem_bytes),
    )(x_t, masks, kp["w2"], kp["g2"], kp["b2"], kp["w3"], kp["g3"], kp["b3"],
      kp["wf"], kp["gf"], kp["bfb"])

    out_t = out_p
    if w_p != w:
        out_t = out_p.reshape(scales, w_p, P)[:, :w, :].reshape(C, P)
    return out_t.reshape(C, N, H, W).transpose(1, 0, 2, 3)


def init_params(key, C, scales):
    w = C // scales
    n = NUM_MODULES
    ks = jax.random.split(key, 10)
    return {
        # per-module 3x3 conv weights, HWIO: (module, branch, kh, kw, cin, cout)
        "w2": 0.2 * jax.random.normal(ks[0], (n, scales - 1, 3, 3, w, w), jnp.float32),
        "g2": 1.0 + 0.1 * jax.random.normal(ks[1], (n, scales - 1, w), jnp.float32),
        "b2": 0.1 * jax.random.normal(ks[2], (n, scales - 1, w), jnp.float32),
        # per-module 1x1 conv3 weights: (module, cin, cout)
        "w3": 0.2 * jax.random.normal(ks[3], (n, C, C), jnp.float32),
        "g3": 1.0 + 0.1 * jax.random.normal(ks[4], (n, C), jnp.float32),
        "b3": 0.1 * jax.random.normal(ks[5], (n, C), jnp.float32),
        # fuse 1x1 conv (3*C -> C, with bias) + final BN affine params
        "wf": 0.2 * jax.random.normal(ks[6], (n * C, C), jnp.float32),
        "bf": 0.1 * jax.random.normal(ks[7], (C,), jnp.float32),
        "gf": 1.0 + 0.1 * jax.random.normal(ks[8], (C,), jnp.float32),
        "bfb": 0.1 * jax.random.normal(ks[9], (C,), jnp.float32),
    }


def reference(x_nhwc, params, *, scales=4):
    """Pure-JAX (XLA) reference of the same group_conv math, NHWC layout."""
    N, H, W, C = x_nhwc.shape
    w = C // scales

    def leaky(v):
        return jnp.where(v >= 0, v, NEG_SLOPE * v)

    def bn(v, g, b):
        m = jnp.mean(v, axis=(0, 1, 2), keepdims=True)
        var = jnp.mean((v - m) ** 2, axis=(0, 1, 2), keepdims=True)
        return (v - m) / jnp.sqrt(var + BN_EPS) * g + b

    def bottleneck(x, m):
        xs = [x[..., i * w:(i + 1) * w] for i in range(scales)]
        ys = [xs[0]]
        for s in range(1, scales):
            inp = xs[s] + (ys[-1] if s >= 2 else 0.0)
            c = jax.lax.conv_general_dilated(
                inp, params["w2"][m, s - 1], (1, 1), "SAME",
                dimension_numbers=("NHWC", "HWIO", "NHWC"))
            ys.append(leaky(bn(c, params["g2"][m, s - 1], params["b2"][m, s - 1])))
        out = jnp.concatenate(ys, axis=-1)
        out = jnp.einsum("nhwc,cd->nhwd", out, params["w3"][m])
        out = bn(out, params["g3"][m], params["b3"][m])
        return leaky(out + x)

    y1 = bottleneck(x_nhwc, 0)
    y2 = bottleneck(y1, 1)
    y3 = bottleneck(y2, 2)
    ycat = jnp.concatenate([y1, y2, y3], axis=-1)
    z = jnp.einsum("nhwc,cd->nhwd", ycat, params["wf"]) + params["bf"]
    z = bn(z, params["gf"], params["bfb"])
    return leaky(x_nhwc + z)


if __name__ == "__main__":
    def run_case(key, N, H, W, dim, scales):
        kx, kp = jax.random.split(key)
        x_nchw = jax.random.normal(kx, (N, dim, H, W), jnp.float32)
        params = init_params(kp, dim, scales)

        out = jax.block_until_ready(group_conv_forward(x_nchw, params, scales=scales))
        assert out.shape == (N, dim, H, W)

        ref_nhwc = reference(jnp.transpose(x_nchw, (0, 2, 3, 1)), params, scales=scales)
        ref = jax.block_until_ready(jnp.transpose(ref_nhwc, (0, 3, 1, 2)))

        # The kernel runs every matmul with bf16 operands (f32 accumulate);
        # the XLA reference uses its own f32 conv/einsum strategy.  ~13 chained
        # bf16 matmuls on O(1) activations give worst-element errors of a few
        # percent; structural bugs (wrong mask/roll/channel map) show up as O(1).
        err = float(jnp.max(jnp.abs(out - ref)))
        if not err < 0.15:
            raise AssertionError(f"mismatch: max abs err = {err}")
        return err

    key = jax.random.PRNGKey(0)
    k1, k2 = jax.random.split(key)
    # Main case: w = dim/scales = 8 (sublane-aligned), P = N*H*W = 512 lanes
    # (fills the 256-wide v6e/v7x MXU, unmasked full-width stores).
    run_case(k1, N=2, H=16, W=16, dim=32, scales=4)
    # Small case exercising the wrapper-side channel-padding path (w=4 -> 8).
    run_case(k2, N=2, H=8, W=8, dim=16, scales=4)
    print("KERNEL_OK")
</pallas_src>

<mosaic_0001>
module attributes {stable_mosaic.version = 11 : i64} {
  func.func @_group_conv_kernel(%arg0: memref<32x512xf32, #tpu.memory_space<vmem>>, %arg1: memref<9x8x512xf32, #tpu.memory_space<vmem>>, %arg2: memref<3x3x8x72xbf16, #tpu.memory_space<vmem>>, %arg3: memref<3x3x8x1xf32, #tpu.memory_space<vmem>>, %arg4: memref<3x3x8x1xf32, #tpu.memory_space<vmem>>, %arg5: memref<3x32x32xbf16, #tpu.memory_space<vmem>>, %arg6: memref<3x32x1xf32, #tpu.memory_space<vmem>>, %arg7: memref<3x32x1xf32, #tpu.memory_space<vmem>>, %arg8: memref<32x96xbf16, #tpu.memory_space<vmem>>, %arg9: memref<32x1xf32, #tpu.memory_space<vmem>>, %arg10: memref<32x1xf32, #tpu.memory_space<vmem>>, %arg11: memref<32x512xf32, #tpu.memory_space<vmem>>) attributes {dimension_semantics = [], scalar_prefetch = 0 : i64, scratch_operands = 0 : i64, tpu.core_type = #tpu.core_type<tc>} {
    %c0 = arith.constant 0 : index
    %c0_0 = arith.constant 0 : index
    %c0_1 = arith.constant 0 : index
    %0 = vector.load %arg1[%c0, %c0_0, %c0_1] : memref<9x8x512xf32, #tpu.memory_space<vmem>>, vector<1x8x512xf32>
    %1 = vector.shape_cast %0 : vector<1x8x512xf32> to vector<8x512xf32>
    %c1 = arith.constant 1 : index
    %c0_2 = arith.constant 0 : index
    %c0_3 = arith.constant 0 : index
    %2 = vector.load %arg1[%c1, %c0_2, %c0_3] : memref<9x8x512xf32, #tpu.memory_space<vmem>>, vector<1x8x512xf32>
    %3 = vector.shape_cast %2 : vector<1x8x512xf32> to vector<8x512xf32>
    %c2 = arith.constant 2 : index
    %c0_4 = arith.constant 0 : index
    %c0_5 = arith.constant 0 : index
    %4 = vector.load %arg1[%c2, %c0_4, %c0_5] : memref<9x8x512xf32, #tpu.memory_space<vmem>>, vector<1x8x512xf32>
    %5 = vector.shape_cast %4 : vector<1x8x512xf32> to vector<8x512xf32>
    %c3 = arith.constant 3 : index
    %c0_6 = arith.constant 0 : index
    %c0_7 = arith.constant 0 : index
    %6 = vector.load %arg1[%c3, %c0_6, %c0_7] : memref<9x8x512xf32, #tpu.memory_space<vmem>>, vector<1x8x512xf32>
    %7 = vector.shape_cast %6 : vector<1x8x512xf32> to vector<8x512xf32>
    %c5 = arith.constant 5 : index
    %c0_8 = arith.constant 0 : index
    %c0_9 = arith.constant 0 : index
    %8 = vector.load %arg1[%c5, %c0_8, %c0_9] : memref<9x8x512xf32, #tpu.memory_space<vmem>>, vector<1x8x512xf32>
    %9 = vector.shape_cast %8 : vector<1x8x512xf32> to vector<8x512xf32>
    %c6 = arith.constant 6 : index
    %c0_10 = arith.constant 0 : index
    %c0_11 = arith.constant 0 : index
    %10 = vector.load %arg1[%c6, %c0_10, %c0_11] : memref<9x8x512xf32, #tpu.memory_space<vmem>>, vector<1x8x512xf32>
    %11 = vector.shape_cast %10 : vector<1x8x512xf32> to vector<8x512xf32>
    %c7 = arith.constant 7 : index
    %c0_12 = arith.constant 0 : index
    %c0_13 = arith.constant 0 : index
    %12 = vector.load %arg1[%c7, %c0_12, %c0_13] : memref<9x8x512xf32, #tpu.memory_space<vmem>>, vector<1x8x512xf32>
    %13 = vector.shape_cast %12 : vector<1x8x512xf32> to vector<8x512xf32>
    %c8 = arith.constant 8 : index
    %c0_14 = arith.constant 0 : index
    %c0_15 = arith.constant 0 : index
    %14 = vector.load %arg1[%c8, %c0_14, %c0_15] : memref<9x8x512xf32, #tpu.memory_space<vmem>>, vector<1x8x512xf32>
    %15 = vector.shape_cast %14 : vector<1x8x512xf32> to vector<8x512xf32>
    %c0_16 = arith.constant 0 : index
    %c0_17 = arith.constant 0 : index
    %16 = vector.load %arg0[%c0_16, %c0_17] : memref<32x512xf32, #tpu.memory_space<vmem>>, vector<32x512xf32>
    %17 = vector.extract_strided_slice %16 {offsets = [0, 0], sizes = [8, 512], strides = [1, 1]} : vector<32x512xf32> to vector<8x512xf32>
    %18 = vector.extract_strided_slice %16 {offsets = [8, 0], sizes = [8, 512], strides = [1, 1]} : vector<32x512xf32> to vector<8x512xf32>
    %c17_i32 = arith.constant 17 : i32
    %19 = tpu.dynamic_rotate %18 by %c17_i32 dim 1 : vector<8x512xf32>, i32 -> vector<8x512xf32>
    %20 = arith.mulf %19, %1 : vector<8x512xf32>
    %c16_i32 = arith.constant 16 : i32
    %21 = tpu.dynamic_rotate %18 by %c16_i32 dim 1 : vector<8x512xf32>, i32 -> vector<8x512xf32>
    %22 = arith.mulf %21, %3 : vector<8x512xf32>
    %c15_i32 = arith.constant 15 : i32
    %23 = tpu.dynamic_rotate %18 by %c15_i32 dim 1 : vector<8x512xf32>, i32 -> vector<8x512xf32>
    %24 = arith.mulf %23, %5 : vector<8x512xf32>
    %c1_i32 = arith.constant 1 : i32
    %25 = tpu.dynamic_rotate %18 by %c1_i32 dim 1 : vector<8x512xf32>, i32 -> vector<8x512xf32>
    %26 = arith.mulf %25, %7 : vector<8x512xf32>
    %c511_i32 = arith.constant 511 : i32
    %27 = tpu.dynamic_rotate %18 by %c511_i32 dim 1 : vector<8x512xf32>, i32 -> vector<8x512xf32>
    %28 = arith.mulf %27, %9 : vector<8x512xf32>
    %c497_i32 = arith.constant 497 : i32
    %29 = tpu.dynamic_rotate %18 by %c497_i32 dim 1 : vector<8x512xf32>, i32 -> vector<8x512xf32>
    %30 = arith.mulf %29, %11 : vector<8x512xf32>
    %c496_i32 = arith.constant 496 : i32
    %31 = tpu.dynamic_rotate %18 by %c496_i32 dim 1 : vector<8x512xf32>, i32 -> vector<8x512xf32>
    %32 = arith.mulf %31, %13 : vector<8x512xf32>
    %c495_i32 = arith.constant 495 : i32
    %33 = tpu.dynamic_rotate %18 by %c495_i32 dim 1 : vector<8x512xf32>, i32 -> vector<8x512xf32>
    %34 = arith.mulf %33, %15 : vector<8x512xf32>
    %35 = tpu.concatenate %20, %22, %24, %26, %18, %28, %30, %32, %34 in 0 : vector<8x512xf32>, vector<8x512xf32>, vector<8x512xf32>, vector<8x512xf32>, vector<8x512xf32>, vector<8x512xf32>, vector<8x512xf32>, vector<8x512xf32>, vector<8x512xf32> -> vector<72x512xf32>
    %36 = arith.truncf %35 : vector<72x512xf32> to vector<72x512xbf16>
    %c0_18 = arith.constant 0 : index
    %c0_19 = arith.constant 0 : index
    %c0_20 = arith.constant 0 : index
    %c0_21 = arith.constant 0 : index
    %37 = vector.load %arg2[%c0_18, %c0_19, %c0_20, %c0_21] : memref<3x3x8x72xbf16, #tpu.memory_space<vmem>>, vector<1x1x8x72xbf16>
    %38 = vector.shape_cast %37 : vector<1x1x8x72xbf16> to vector<8x72xbf16>
    %cst = arith.constant dense<0.000000e+00> : vector<8x512xf32>
    %39 = tpu.matmul %38, %36, %cst {dimension_numbers = #tpu.dot_dimension_numbers<[1], [0], [0], [1], [0, 0, 1, 1], [], []>} : vector<8x72xbf16>, vector<72x512xbf16>, vector<8x512xf32> -> vector<8x512xf32>
    %c0_22 = arith.constant 0 : index
    %c0_23 = arith.constant 0 : index
    %c0_24 = arith.constant 0 : index
    %c0_25 = arith.constant 0 : index
    %40 = vector.load %arg3[%c0_22, %c0_23, %c0_24, %c0_25] : memref<3x3x8x1xf32, #tpu.memory_space<vmem>>, vector<1x1x8x1xf32>
    %41 = vector.shape_cast %40 : vector<1x1x8x1xf32> to vector<8x1xf32>
    %c0_26 = arith.constant 0 : index
    %c0_27 = arith.constant 0 : index
    %c0_28 = arith.constant 0 : index
    %c0_29 = arith.constant 0 : index
    %42 = vector.load %arg4[%c0_26, %c0_27, %c0_28, %c0_29] : memref<3x3x8x1xf32, #tpu.memory_space<vmem>>, vector<1x1x8x1xf32>
    %43 = vector.shape_cast %42 : vector<1x1x8x1xf32> to vector<8x1xf32>
    %cst_30 = arith.constant dense<0.000000e+00> : vector<8xf32>
    %44 = vector.multi_reduction <add>, %39, %cst_30 [1] : vector<8x512xf32> to vector<8xf32>
    %45 = vector.shape_cast %44 : vector<8xf32> to vector<8x1xf32>
    %cst_31 = arith.constant 5.120000e+02 : f32
    %46 = vector.broadcast %cst_31 : f32 to vector<8x1xf32>
    %47 = arith.divf %45, %46 : vector<8x1xf32>
    %48 = arith.mulf %39, %39 : vector<8x512xf32>
    %cst_32 = arith.constant dense<0.000000e+00> : vector<8xf32>
    %49 = vector.multi_reduction <add>, %48, %cst_32 [1] : vector<8x512xf32> to vector<8xf32>
    %50 = vector.shape_cast %49 : vector<8xf32> to vector<8x1xf32>
    %cst_33 = arith.constant 5.120000e+02 : f32
    %51 = vector.broadcast %cst_33 : f32 to vector<8x1xf32>
    %52 = arith.divf %50, %51 : vector<8x1xf32>
    %53 = arith.mulf %47, %47 : vector<8x1xf32>
    %54 = arith.subf %52, %53 : vector<8x1xf32>
    %cst_34 = arith.constant 9.99999974E-6 : f32
    %55 = vector.broadcast %cst_34 : f32 to vector<8x1xf32>
    %56 = arith.addf %54, %55 : vector<8x1xf32>
    %57 = math.rsqrt %56 : vector<8x1xf32>
    %58 = arith.mulf %41, %57 : vector<8x1xf32>
    %59 = arith.mulf %47, %58 : vector<8x1xf32>
    %60 = arith.subf %43, %59 : vector<8x1xf32>
    %61 = vector.broadcast %58 : vector<8x1xf32> to vector<8x512xf32>
    %62 = arith.mulf %39, %61 : vector<8x512xf32>
    %63 = vector.broadcast %60 : vector<8x1xf32> to vector<8x512xf32>
    %64 = arith.addf %62, %63 : vector<8x512xf32>
    %cst_35 = arith.constant 0.00999999977 : f32
    %65 = vector.broadcast %cst_35 : f32 to vector<8x512xf32>
    %66 = arith.mulf %65, %64 : vector<8x512xf32>
    %67 = arith.maximumf %64, %66 : vector<8x512xf32>
    %68 = vector.extract_strided_slice %16 {offsets = [16, 0], sizes = [8, 512], strides = [1, 1]} : vector<32x512xf32> to vector<8x512xf32>
    %69 = arith.addf %68, %67 : vector<8x512xf32>
    %c17_i32_36 = arith.constant 17 : i32
    %70 = tpu.dynamic_rotate %69 by %c17_i32_36 dim 1 : vector<8x512xf32>, i32 -> vector<8x512xf32>
    %71 = arith.mulf %70, %1 : vector<8x512xf32>
    %c16_i32_37 = arith.constant 16 : i32
    %72 = tpu.dynamic_rotate %69 by %c16_i32_37 dim 1 : vector<8x512xf32>, i32 -> vector<8x512xf32>
    %73 = arith.mulf %72, %3 : vector<8x512xf32>
    %c15_i32_38 = arith.constant 15 : i32
    %74 = tpu.dynamic_rotate %69 by %c15_i32_38 dim 1 : vector<8x512xf32>, i32 -> vector<8x512xf32>
    %75 = arith.mulf %74, %5 : vector<8x512xf32>
    %c1_i32_39 = arith.constant 1 : i32
    %76 = tpu.dynamic_rotate %69 by %c1_i32_39 dim 1 : vector<8x512xf32>, i32 -> vector<8x512xf32>
    %77 = arith.mulf %76, %7 : vector<8x512xf32>
    %c511_i32_40 = arith.constant 511 : i32
    %78 = tpu.dynamic_rotate %69 by %c511_i32_40 dim 1 : vector<8x512xf32>, i32 -> vector<8x512xf32>
    %79 = arith.mulf %78, %9 : vector<8x512xf32>
    %c497_i32_41 = arith.constant 497 : i32
    %80 = tpu.dynamic_rotate %69 by %c497_i32_41 dim 1 : vector<8x512xf32>, i32 -> vector<8x512xf32>
    %81 = arith.mulf %80, %11 : vector<8x512xf32>
    %c496_i32_42 = arith.constant 496 : i32
    %82 = tpu.dynamic_rotate %69 by %c496_i32_42 dim 1 : vector<8x512xf32>, i32 -> vector<8x512xf32>
    %83 = arith.mulf %82, %13 : vector<8x512xf32>
    %c495_i32_43 = arith.constant 495 : i32
    %84 = tpu.dynamic_rotate %69 by %c495_i32_43 dim 1 : vector<8x512xf32>, i32 -> vector<8x512xf32>
    %85 = arith.mulf %84, %15 : vector<8x512xf32>
    %86 = tpu.concatenate %71, %73, %75, %77, %69, %79, %81, %83, %85 in 0 : vector<8x512xf32>, vector<8x512xf32>, vector<8x512xf32>, vector<8x512xf32>, vector<8x512xf32>, vector<8x512xf32>, vector<8x512xf32>, vector<8x512xf32>, vector<8x512xf32> -> vector<72x512xf32>
    %87 = arith.truncf %86 : vector<72x512xf32> to vector<72x512xbf16>
    %c0_44 = arith.constant 0 : index
    %c1_45 = arith.constant 1 : index
    %c0_46 = arith.constant 0 : index
    %c0_47 = arith.constant 0 : index
    %88 = vector.load %arg2[%c0_44, %c1_45, %c0_46, %c0_47] : memref<3x3x8x72xbf16, #tpu.memory_space<vmem>>, vector<1x1x8x72xbf16>
    %89 = vector.shape_cast %88 : vector<1x1x8x72xbf16> to vector<8x72xbf16>
    %cst_48 = arith.constant dense<0.000000e+00> : vector<8x512xf32>
    %90 = tpu.matmul %89, %87, %cst_48 {dimension_numbers = #tpu.dot_dimension_numbers<[1], [0], [0], [1], [0, 0, 1, 1], [], []>} : vector<8x72xbf16>, vector<72x512xbf16>, vector<8x512xf32> -> vector<8x512xf32>
    %c0_49 = arith.constant 0 : index
    %c1_50 = arith.constant 1 : index
    %c0_51 = arith.constant 0 : index
    %c0_52 = arith.constant 0 : index
    %91 = vector.load %arg3[%c0_49, %c1_50, %c0_51, %c0_52] : memref<3x3x8x1xf32, #tpu.memory_space<vmem>>, vector<1x1x8x1xf32>
    %92 = vector.shape_cast %91 : vector<1x1x8x1xf32> to vector<8x1xf32>
    %c0_53 = arith.constant 0 : index
    %c1_54 = arith.constant 1 : index
    %c0_55 = arith.constant 0 : index
    %c0_56 = arith.constant 0 : index
    %93 = vector.load %arg4[%c0_53, %c1_54, %c0_55, %c0_56] : memref<3x3x8x1xf32, #tpu.memory_space<vmem>>, vector<1x1x8x1xf32>
    %94 = vector.shape_cast %93 : vector<1x1x8x1xf32> to vector<8x1xf32>
    %cst_57 = arith.constant dense<0.000000e+00> : vector<8xf32>
    %95 = vector.multi_reduction <add>, %90, %cst_57 [1] : vector<8x512xf32> to vector<8xf32>
    %96 = vector.shape_cast %95 : vector<8xf32> to vector<8x1xf32>
    %cst_58 = arith.constant 5.120000e+02 : f32
    %97 = vector.broadcast %cst_58 : f32 to vector<8x1xf32>
    %98 = arith.divf %96, %97 : vector<8x1xf32>
    %99 = arith.mulf %90, %90 : vector<8x512xf32>
    %cst_59 = arith.constant dense<0.000000e+00> : vector<8xf32>
    %100 = vector.multi_reduction <add>, %99, %cst_59 [1] : vector<8x512xf32> to vector<8xf32>
    %101 = vector.shape_cast %100 : vector<8xf32> to vector<8x1xf32>
    %cst_60 = arith.constant 5.120000e+02 : f32
    %102 = vector.broadcast %cst_60 : f32 to vector<8x1xf32>
    %103 = arith.divf %101, %102 : vector<8x1xf32>
    %104 = arith.mulf %98, %98 : vector<8x1xf32>
    %105 = arith.subf %103, %104 : vector<8x1xf32>
    %cst_61 = arith.constant 9.99999974E-6 : f32
    %106 = vector.broadcast %cst_61 : f32 to vector<8x1xf32>
    %107 = arith.addf %105, %106 : vector<8x1xf32>
    %108 = math.rsqrt %107 : vector<8x1xf32>
    %109 = arith.mulf %92, %108 : vector<8x1xf32>
    %110 = arith.mulf %98, %109 : vector<8x1xf32>
    %111 = arith.subf %94, %110 : vector<8x1xf32>
    %112 = vector.broadcast %109 : vector<8x1xf32> to vector<8x512xf32>
    %113 = arith.mulf %90, %112 : vector<8x512xf32>
    %114 = vector.broadcast %111 : vector<8x1xf32> to vector<8x512xf32>
    %115 = arith.addf %113, %114 : vector<8x512xf32>
    %cst_62 = arith.constant 0.00999999977 : f32
    %116 = vector.broadcast %cst_62 : f32 to vector<8x512xf32>
    %117 = arith.mulf %116, %115 : vector<8x512xf32>
    %118 = arith.maximumf %115, %117 : vector<8x512xf32>
    %119 = vector.extract_strided_slice %16 {offsets = [24, 0], sizes = [8, 512], strides = [1, 1]} : vector<32x512xf32> to vector<8x512xf32>
    %120 = arith.addf %119, %118 : vector<8x512xf32>
    %c17_i32_63 = arith.constant 17 : i32
    %121 = tpu.dynamic_rotate %120 by %c17_i32_63 dim 1 : vector<8x512xf32>, i32 -> vector<8x512xf32>
    %122 = arith.mulf %121, %1 : vector<8x512xf32>
    %c16_i32_64 = arith.constant 16 : i32
    %123 = tpu.dynamic_rotate %120 by %c16_i32_64 dim 1 : vector<8x512xf32>, i32 -> vector<8x512xf32>
    %124 = arith.mulf %123, %3 : vector<8x512xf32>
    %c15_i32_65 = arith.constant 15 : i32
    %125 = tpu.dynamic_rotate %120 by %c15_i32_65 dim 1 : vector<8x512xf32>, i32 -> vector<8x512xf32>
    %126 = arith.mulf %125, %5 : vector<8x512xf32>
    %c1_i32_66 = arith.constant 1 : i32
    %127 = tpu.dynamic_rotate %120 by %c1_i32_66 dim 1 : vector<8x512xf32>, i32 -> vector<8x512xf32>
    %128 = arith.mulf %127, %7 : vector<8x512xf32>
    %c511_i32_67 = arith.constant 511 : i32
    %129 = tpu.dynamic_rotate %120 by %c511_i32_67 dim 1 : vector<8x512xf32>, i32 -> vector<8x512xf32>
    %130 = arith.mulf %129, %9 : vector<8x512xf32>
    %c497_i32_68 = arith.constant 497 : i32
    %131 = tpu.dynamic_rotate %120 by %c497_i32_68 dim 1 : vector<8x512xf32>, i32 -> vector<8x512xf32>
    %132 = arith.mulf %131, %11 : vector<8x512xf32>
    %c496_i32_69 = arith.constant 496 : i32
    %133 = tpu.dynamic_rotate %120 by %c496_i32_69 dim 1 : vector<8x512xf32>, i32 -> vector<8x512xf32>
    %134 = arith.mulf %133, %13 : vector<8x512xf32>
    %c495_i32_70 = arith.constant 495 : i32
    %135 = tpu.dynamic_rotate %120 by %c495_i32_70 dim 1 : vector<8x512xf32>, i32 -> vector<8x512xf32>
    %136 = arith.mulf %135, %15 : vector<8x512xf32>
    %137 = tpu.concatenate %122, %124, %126, %128, %120, %130, %132, %134, %136 in 0 : vector<8x512xf32>, vector<8x512xf32>, vector<8x512xf32>, vector<8x512xf32>, vector<8x512xf32>, vector<8x512xf32>, vector<8x512xf32>, vector<8x512xf32>, vector<8x512xf32> -> vector<72x512xf32>
    %138 = arith.truncf %137 : vector<72x512xf32> to vector<72x512xbf16>
    %c0_71 = arith.constant 0 : index
    %c2_72 = arith.constant 2 : index
    %c0_73 = arith.constant 0 : index
    %c0_74 = arith.constant 0 : index
    %139 = vector.load %arg2[%c0_71, %c2_72, %c0_73, %c0_74] : memref<3x3x8x72xbf16, #tpu.memory_space<vmem>>, vector<1x1x8x72xbf16>
    %140 = vector.shape_cast %139 : vector<1x1x8x72xbf16> to vector<8x72xbf16>
    %cst_75 = arith.constant dense<0.000000e+00> : vector<8x512xf32>
    %141 = tpu.matmul %140, %138, %cst_75 {dimension_numbers = #tpu.dot_dimension_numbers<[1], [0], [0], [1], [0, 0, 1, 1], [], []>} : vector<8x72xbf16>, vector<72x512xbf16>, vector<8x512xf32> -> vector<8x512xf32>
    %c0_76 = arith.constant 0 : index
    %c2_77 = arith.constant 2 : index
    %c0_78 = arith.constant 0 : index
    %c0_79 = arith.constant 0 : index
    %142 = vector.load %arg3[%c0_76, %c2_77, %c0_78, %c0_79] : memref<3x3x8x1xf32, #tpu.memory_space<vmem>>, vector<1x1x8x1xf32>
    %143 = vector.shape_cast %142 : vector<1x1x8x1xf32> to vector<8x1xf32>
    %c0_80 = arith.constant 0 : index
    %c2_81 = arith.constant 2 : index
    %c0_82 = arith.constant 0 : index
    %c0_83 = arith.constant 0 : index
    %144 = vector.load %arg4[%c0_80, %c2_81, %c0_82, %c0_83] : memref<3x3x8x1xf32, #tpu.memory_space<vmem>>, vector<1x1x8x1xf32>
    %145 = vector.shape_cast %144 : vector<1x1x8x1xf32> to vector<8x1xf32>
    %cst_84 = arith.constant dense<0.000000e+00> : vector<8xf32>
    %146 = vector.multi_reduction <add>, %141, %cst_84 [1] : vector<8x512xf32> to vector<8xf32>
    %147 = vector.shape_cast %146 : vector<8xf32> to vector<8x1xf32>
    %cst_85 = arith.constant 5.120000e+02 : f32
    %148 = vector.broadcast %cst_85 : f32 to vector<8x1xf32>
    %149 = arith.divf %147, %148 : vector<8x1xf32>
    %150 = arith.mulf %141, %141 : vector<8x512xf32>
    %cst_86 = arith.constant dense<0.000000e+00> : vector<8xf32>
    %151 = vector.multi_reduction <add>, %150, %cst_86 [1] : vector<8x512xf32> to vector<8xf32>
    %152 = vector.shape_cast %151 : vector<8xf32> to vector<8x1xf32>
    %cst_87 = arith.constant 5.120000e+02 : f32
    %153 = vector.broadcast %cst_87 : f32 to vector<8x1xf32>
    %154 = arith.divf %152, %153 : vector<8x1xf32>
    %155 = arith.mulf %149, %149 : vector<8x1xf32>
    %156 = arith.subf %154, %155 : vector<8x1xf32>
    %cst_88 = arith.constant 9.99999974E-6 : f32
    %157 = vector.broadcast %cst_88 : f32 to vector<8x1xf32>
    %158 = arith.addf %156, %157 : vector<8x1xf32>
    %159 = math.rsqrt %158 : vector<8x1xf32>
    %160 = arith.mulf %143, %159 : vector<8x1xf32>
    %161 = arith.mulf %149, %160 : vector<8x1xf32>
    %162 = arith.subf %145, %161 : vector<8x1xf32>
    %163 = vector.broadcast %160 : vector<8x1xf32> to vector<8x512xf32>
    %164 = arith.mulf %141, %163 : vector<8x512xf32>
    %165 = vector.broadcast %162 : vector<8x1xf32> to vector<8x512xf32>
    %166 = arith.addf %164, %165 : vector<8x512xf32>
    %cst_89 = arith.constant 0.00999999977 : f32
    %167 = vector.broadcast %cst_89 : f32 to vector<8x512xf32>
    %168 = arith.mulf %167, %166 : vector<8x512xf32>
    %169 = arith.maximumf %166, %168 : vector<8x512xf32>
    %170 = tpu.concatenate %17, %67, %118, %169 in 0 : vector<8x512xf32>, vector<8x512xf32>, vector<8x512xf32>, vector<8x512xf32> -> vector<32x512xf32>
    %171 = arith.truncf %170 : vector<32x512xf32> to vector<32x512xbf16>
    %c0_90 = arith.constant 0 : index
    %c0_91 = arith.constant 0 : index
    %c0_92 = arith.constant 0 : index
    %172 = vector.load %arg5[%c0_90, %c0_91, %c0_92] : memref<3x32x32xbf16, #tpu.memory_space<vmem>>, vector<1x32x32xbf16>
    %173 = vector.shape_cast %172 : vector<1x32x32xbf16> to vector<32x32xbf16>
    %cst_93 = arith.constant dense<0.000000e+00> : vector<32x512xf32>
    %174 = tpu.matmul %173, %171, %cst_93 {dimension_numbers = #tpu.dot_dimension_numbers<[1], [0], [0], [1], [0, 0, 1, 1], [], []>} : vector<32x32xbf16>, vector<32x512xbf16>, vector<32x512xf32> -> vector<32x512xf32>
    %c0_94 = arith.constant 0 : index
    %c0_95 = arith.constant 0 : index
    %c0_96 = arith.constant 0 : index
    %175 = vector.load %arg6[%c0_94, %c0_95, %c0_96] : memref<3x32x1xf32, #tpu.memory_space<vmem>>, vector<1x32x1xf32>
    %176 = vector.shape_cast %175 : vector<1x32x1xf32> to vector<32x1xf32>
    %c0_97 = arith.constant 0 : index
    %c0_98 = arith.constant 0 : index
    %c0_99 = arith.constant 0 : index
    %177 = vector.load %arg7[%c0_97, %c0_98, %c0_99] : memref<3x32x1xf32, #tpu.memory_space<vmem>>, vector<1x32x1xf32>
    %178 = vector.shape_cast %177 : vector<1x32x1xf32> to vector<32x1xf32>
    %cst_100 = arith.constant dense<0.000000e+00> : vector<32xf32>
    %179 = vector.multi_reduction <add>, %174, %cst_100 [1] : vector<32x512xf32> to vector<32xf32>
    %180 = vector.shape_cast %179 : vector<32xf32> to vector<32x1xf32>
    %cst_101 = arith.constant 5.120000e+02 : f32
    %181 = vector.broadcast %cst_101 : f32 to vector<32x1xf32>
    %182 = arith.divf %180, %181 : vector<32x1xf32>
    %183 = arith.mulf %174, %174 : vector<32x512xf32>
    %cst_102 = arith.constant dense<0.000000e+00> : vector<32xf32>
    %184 = vector.multi_reduction <add>, %183, %cst_102 [1] : vector<32x512xf32> to vector<32xf32>
    %185 = vector.shape_cast %184 : vector<32xf32> to vector<32x1xf32>
    %cst_103 = arith.constant 5.120000e+02 : f32
    %186 = vector.broadcast %cst_103 : f32 to vector<32x1xf32>
    %187 = arith.divf %185, %186 : vector<32x1xf32>
    %188 = arith.mulf %182, %182 : vector<32x1xf32>
    %189 = arith.subf %187, %188 : vector<32x1xf32>
    %cst_104 = arith.constant 9.99999974E-6 : f32
    %190 = vector.broadcast %cst_104 : f32 to vector<32x1xf32>
    %191 = arith.addf %189, %190 : vector<32x1xf32>
    %192 = math.rsqrt %191 : vector<32x1xf32>
    %193 = arith.mulf %176, %192 : vector<32x1xf32>
    %194 = arith.mulf %182, %193 : vector<32x1xf32>
    %195 = arith.subf %178, %194 : vector<32x1xf32>
    %196 = vector.broadcast %193 : vector<32x1xf32> to vector<32x512xf32>
    %197 = arith.mulf %174, %196 : vector<32x512xf32>
    %198 = vector.broadcast %195 : vector<32x1xf32> to vector<32x512xf32>
    %199 = arith.addf %197, %198 : vector<32x512xf32>
    %200 = arith.addf %199, %16 : vector<32x512xf32>
    %cst_105 = arith.constant 0.00999999977 : f32
    %201 = vector.broadcast %cst_105 : f32 to vector<32x512xf32>
    %202 = arith.mulf %201, %200 : vector<32x512xf32>
    %203 = arith.maximumf %200, %202 : vector<32x512xf32>
    %204 = vector.extract_strided_slice %203 {offsets = [0, 0], sizes = [8, 512], strides = [1, 1]} : vector<32x512xf32> to vector<8x512xf32>
    %205 = vector.extract_strided_slice %203 {offsets = [8, 0], sizes = [8, 512], strides = [1, 1]} : vector<32x512xf32> to vector<8x512xf32>
    %c17_i32_106 = arith.constant 17 : i32
    %206 = tpu.dynamic_rotate %205 by %c17_i32_106 dim 1 : vector<8x512xf32>, i32 -> vector<8x512xf32>
    %207 = arith.mulf %206, %1 : vector<8x512xf32>
    %c16_i32_107 = arith.constant 16 : i32
    %208 = tpu.dynamic_rotate %205 by %c16_i32_107 dim 1 : vector<8x512xf32>, i32 -> vector<8x512xf32>
    %209 = arith.mulf %208, %3 : vector<8x512xf32>
    %c15_i32_108 = arith.constant 15 : i32
    %210 = tpu.dynamic_rotate %205 by %c15_i32_108 dim 1 : vector<8x512xf32>, i32 -> vector<8x512xf32>
    %211 = arith.mulf %210, %5 : vector<8x512xf32>
    %c1_i32_109 = arith.constant 1 : i32
    %212 = tpu.dynamic_rotate %205 by %c1_i32_109 dim 1 : vector<8x512xf32>, i32 -> vector<8x512xf32>
    %213 = arith.mulf %212, %7 : vector<8x512xf32>
    %c511_i32_110 = arith.constant 511 : i32
    %214 = tpu.dynamic_rotate %205 by %c511_i32_110 dim 1 : vector<8x512xf32>, i32 -> vector<8x512xf32>
    %215 = arith.mulf %214, %9 : vector<8x512xf32>
    %c497_i32_111 = arith.constant 497 : i32
    %216 = tpu.dynamic_rotate %205 by %c497_i32_111 dim 1 : vector<8x512xf32>, i32 -> vector<8x512xf32>
    %217 = arith.mulf %216, %11 : vector<8x512xf32>
    %c496_i32_112 = arith.constant 496 : i32
    %218 = tpu.dynamic_rotate %205 by %c496_i32_112 dim 1 : vector<8x512xf32>, i32 -> vector<8x512xf32>
    %219 = arith.mulf %218, %13 : vector<8x512xf32>
    %c495_i32_113 = arith.constant 495 : i32
    %220 = tpu.dynamic_rotate %205 by %c495_i32_113 dim 1 : vector<8x512xf32>, i32 -> vector<8x512xf32>
    %221 = arith.mulf %220, %15 : vector<8x512xf32>
    %222 = tpu.concatenate %207, %209, %211, %213, %205, %215, %217, %219, %221 in 0 : vector<8x512xf32>, vector<8x512xf32>, vector<8x512xf32>, vector<8x512xf32>, vector<8x512xf32>, vector<8x512xf32>, vector<8x512xf32>, vector<8x512xf32>, vector<8x512xf32> -> vector<72x512xf32>
    %223 = arith.truncf %222 : vector<72x512xf32> to vector<72x512xbf16>
    %c1_114 = arith.constant 1 : index
    %c0_115 = arith.constant 0 : index
    %c0_116 = arith.constant 0 : index
    %c0_117 = arith.constant 0 : index
    %224 = vector.load %arg2[%c1_114, %c0_115, %c0_116, %c0_117] : memref<3x3x8x72xbf16, #tpu.memory_space<vmem>>, vector<1x1x8x72xbf16>
    %225 = vector.shape_cast %224 : vector<1x1x8x72xbf16> to vector<8x72xbf16>
    %cst_118 = arith.constant dense<0.000000e+00> : vector<8x512xf32>
    %226 = tpu.matmul %225, %223, %cst_118 {dimension_numbers = #tpu.dot_dimension_numbers<[1], [0], [0], [1], [0, 0, 1, 1], [], []>} : vector<8x72xbf16>, vector<72x512xbf16>, vector<8x512xf32> -> vector<8x512xf32>
    %c1_119 = arith.constant 1 : index
    %c0_120 = arith.constant 0 : index
    %c0_121 = arith.constant 0 : index
    %c0_122 = arith.constant 0 : index
    %227 = vector.load %arg3[%c1_119, %c0_120, %c0_121, %c0_122] : memref<3x3x8x1xf32, #tpu.memory_space<vmem>>, vector<1x1x8x1xf32>
    %228 = vector.shape_cast %227 : vector<1x1x8x1xf32> to vector<8x1xf32>
    %c1_123 = arith.constant 1 : index
    %c0_124 = arith.constant 0 : index
    %c0_125 = arith.constant 0 : index
    %c0_126 = arith.constant 0 : index
    %229 = vector.load %arg4[%c1_123, %c0_124, %c0_125, %c0_126] : memref<3x3x8x1xf32, #tpu.memory_space<vmem>>, vector<1x1x8x1xf32>
    %230 = vector.shape_cast %229 : vector<1x1x8x1xf32> to vector<8x1xf32>
    %cst_127 = arith.constant dense<0.000000e+00> : vector<8xf32>
    %231 = vector.multi_reduction <add>, %226, %cst_127 [1] : vector<8x512xf32> to vector<8xf32>
    %232 = vector.shape_cast %231 : vector<8xf32> to vector<8x1xf32>
    %cst_128 = arith.constant 5.120000e+02 : f32
    %233 = vector.broadcast %cst_128 : f32 to vector<8x1xf32>
    %234 = arith.divf %232, %233 : vector<8x1xf32>
    %235 = arith.mulf %226, %226 : vector<8x512xf32>
    %cst_129 = arith.constant dense<0.000000e+00> : vector<8xf32>
    %236 = vector.multi_reduction <add>, %235, %cst_129 [1] : vector<8x512xf32> to vector<8xf32>
    %237 = vector.shape_cast %236 : vector<8xf32> to vector<8x1xf32>
    %cst_130 = arith.constant 5.120000e+02 : f32
    %238 = vector.broadcast %cst_130 : f32 to vector<8x1xf32>
    %239 = arith.divf %237, %238 : vector<8x1xf32>
    %240 = arith.mulf %234, %234 : vector<8x1xf32>
    %241 = arith.subf %239, %240 : vector<8x1xf32>
    %cst_131 = arith.constant 9.99999974E-6 : f32
    %242 = vector.broadcast %cst_131 : f32 to vector<8x1xf32>
    %243 = arith.addf %241, %242 : vector<8x1xf32>
    %244 = math.rsqrt %243 : vector<8x1xf32>
    %245 = arith.mulf %228, %244 : vector<8x1xf32>
    %246 = arith.mulf %234, %245 : vector<8x1xf32>
    %247 = arith.subf %230, %246 : vector<8x1xf32>
    %248 = vector.broadcast %245 : vector<8x1xf32> to vector<8x512xf32>
    %249 = arith.mulf %226, %248 : vector<8x512xf32>
    %250 = vector.broadcast %247 : vector<8x1xf32> to vector<8x512xf32>
    %251 = arith.addf %249, %250 : vector<8x512xf32>
    %cst_132 = arith.constant 0.00999999977 : f32
    %252 = vector.broadcast %cst_132 : f32 to vector<8x512xf32>
    %253 = arith.mulf %252, %251 : vector<8x512xf32>
    %254 = arith.maximumf %251, %253 : vector<8x512xf32>
    %255 = vector.extract_strided_slice %203 {offsets = [16, 0], sizes = [8, 512], strides = [1, 1]} : vector<32x512xf32> to vector<8x512xf32>
    %256 = arith.addf %255, %254 : vector<8x512xf32>
    %c17_i32_133 = arith.constant 17 : i32
    %257 = tpu.dynamic_rotate %256 by %c17_i32_133 dim 1 : vector<8x512xf32>, i32 -> vector<8x512xf32>
    %258 = arith.mulf %257, %1 : vector<8x512xf32>
    %c16_i32_134 = arith.constant 16 : i32
    %259 = tpu.dynamic_rotate %256 by %c16_i32_134 dim 1 : vector<8x512xf32>, i32 -> vector<8x512xf32>
    %260 = arith.mulf %259, %3 : vector<8x512xf32>
    %c15_i32_135 = arith.constant 15 : i32
    %261 = tpu.dynamic_rotate %256 by %c15_i32_135 dim 1 : vector<8x512xf32>, i32 -> vector<8x512xf32>
    %262 = arith.mulf %261, %5 : vector<8x512xf32>
    %c1_i32_136 = arith.constant 1 : i32
    %263 = tpu.dynamic_rotate %256 by %c1_i32_136 dim 1 : vector<8x512xf32>, i32 -> vector<8x512xf32>
    %264 = arith.mulf %263, %7 : vector<8x512xf32>
    %c511_i32_137 = arith.constant 511 : i32
    %265 = tpu.dynamic_rotate %256 by %c511_i32_137 dim 1 : vector<8x512xf32>, i32 -> vector<8x512xf32>
    %266 = arith.mulf %265, %9 : vector<8x512xf32>
    %c497_i32_138 = arith.constant 497 : i32
    %267 = tpu.dynamic_rotate %256 by %c497_i32_138 dim 1 : vector<8x512xf32>, i32 -> vector<8x512xf32>
    %268 = arith.mulf %267, %11 : vector<8x512xf32>
    %c496_i32_139 = arith.constant 496 : i32
    %269 = tpu.dynamic_rotate %256 by %c496_i32_139 dim 1 : vector<8x512xf32>, i32 -> vector<8x512xf32>
    %270 = arith.mulf %269, %13 : vector<8x512xf32>
    %c495_i32_140 = arith.constant 495 : i32
    %271 = tpu.dynamic_rotate %256 by %c495_i32_140 dim 1 : vector<8x512xf32>, i32 -> vector<8x512xf32>
    %272 = arith.mulf %271, %15 : vector<8x512xf32>
    %273 = tpu.concatenate %258, %260, %262, %264, %256, %266, %268, %270, %272 in 0 : vector<8x512xf32>, vector<8x512xf32>, vector<8x512xf32>, vector<8x512xf32>, vector<8x512xf32>, vector<8x512xf32>, vector<8x512xf32>, vector<8x512xf32>, vector<8x512xf32> -> vector<72x512xf32>
    %274 = arith.truncf %273 : vector<72x512xf32> to vector<72x512xbf16>
    %c1_141 = arith.constant 1 : index
    %c1_142 = arith.constant 1 : index
    %c0_143 = arith.constant 0 : index
    %c0_144 = arith.constant 0 : index
    %275 = vector.load %arg2[%c1_141, %c1_142, %c0_143, %c0_144] : memref<3x3x8x72xbf16, #tpu.memory_space<vmem>>, vector<1x1x8x72xbf16>
    %276 = vector.shape_cast %275 : vector<1x1x8x72xbf16> to vector<8x72xbf16>
    %cst_145 = arith.constant dense<0.000000e+00> : vector<8x512xf32>
    %277 = tpu.matmul %276, %274, %cst_145 {dimension_numbers = #tpu.dot_dimension_numbers<[1], [0], [0], [1], [0, 0, 1, 1], [], []>} : vector<8x72xbf16>, vector<72x512xbf16>, vector<8x512xf32> -> vector<8x512xf32>
    %c1_146 = arith.constant 1 : index
    %c1_147 = arith.constant 1 : index
    %c0_148 = arith.constant 0 : index
    %c0_149 = arith.constant 0 : index
    %278 = vector.load %arg3[%c1_146, %c1_147, %c0_148, %c0_149] : memref<3x3x8x1xf32, #tpu.memory_space<vmem>>, vector<1x1x8x1xf32>
    %279 = vector.shape_cast %278 : vector<1x1x8x1xf32> to vector<8x1xf32>
    %c1_150 = arith.constant 1 : index
    %c1_151 = arith.constant 1 : index
    %c0_152 = arith.constant 0 : index
    %c0_153 = arith.constant 0 : index
    %280 = vector.load %arg4[%c1_150, %c1_151, %c0_152, %c0_153] : memref<3x3x8x1xf32, #tpu.memory_space<vmem>>, vector<1x1x8x1xf32>
    %281 = vector.shape_cast %280 : vector<1x1x8x1xf32> to vector<8x1xf32>
    %cst_154 = arith.constant dense<0.000000e+00> : vector<8xf32>
    %282 = vector.multi_reduction <add>, %277, %cst_154 [1] : vector<8x512xf32> to vector<8xf32>
    %283 = vector.shape_cast %282 : vector<8xf32> to vector<8x1xf32>
    %cst_155 = arith.constant 5.120000e+02 : f32
    %284 = vector.broadcast %cst_155 : f32 to vector<8x1xf32>
    %285 = arith.divf %283, %284 : vector<8x1xf32>
    %286 = arith.mulf %277, %277 : vector<8x512xf32>
    %cst_156 = arith.constant dense<0.000000e+00> : vector<8xf32>
    %287 = vector.multi_reduction <add>, %286, %cst_156 [1] : vector<8x512xf32> to vector<8xf32>
    %288 = vector.shape_cast %287 : vector<8xf32> to vector<8x1xf32>
    %cst_157 = arith.constant 5.120000e+02 : f32
    %289 = vector.broadcast %cst_157 : f32 to vector<8x1xf32>
    %290 = arith.divf %288, %289 : vector<8x1xf32>
    %291 = arith.mulf %285, %285 : vector<8x1xf32>
    %292 = arith.subf %290, %291 : vector<8x1xf32>
    %cst_158 = arith.constant 9.99999974E-6 : f32
    %293 = vector.broadcast %cst_158 : f32 to vector<8x1xf32>
    %294 = arith.addf %292, %293 : vector<8x1xf32>
    %295 = math.rsqrt %294 : vector<8x1xf32>
    %296 = arith.mulf %279, %295 : vector<8x1xf32>
    %297 = arith.mulf %285, %296 : vector<8x1xf32>
    %298 = arith.subf %281, %297 : vector<8x1xf32>
    %299 = vector.broadcast %296 : vector<8x1xf32> to vector<8x512xf32>
    %300 = arith.mulf %277, %299 : vector<8x512xf32>
    %301 = vector.broadcast %298 : vector<8x1xf32> to vector<8x512xf32>
    %302 = arith.addf %300, %301 : vector<8x512xf32>
    %cst_159 = arith.constant 0.00999999977 : f32
    %303 = vector.broadcast %cst_159 : f32 to vector<8x512xf32>
    %304 = arith.mulf %303, %302 : vector<8x512xf32>
    %305 = arith.maximumf %302, %304 : vector<8x512xf32>
    %306 = vector.extract_strided_slice %203 {offsets = [24, 0], sizes = [8, 512], strides = [1, 1]} : vector<32x512xf32> to vector<8x512xf32>
    %307 = arith.addf %306, %305 : vector<8x512xf32>
    %c17_i32_160 = arith.constant 17 : i32
    %308 = tpu.dynamic_rotate %307 by %c17_i32_160 dim 1 : vector<8x512xf32>, i32 -> vector<8x512xf32>
    %309 = arith.mulf %308, %1 : vector<8x512xf32>
    %c16_i32_161 = arith.constant 16 : i32
    %310 = tpu.dynamic_rotate %307 by %c16_i32_161 dim 1 : vector<8x512xf32>, i32 -> vector<8x512xf32>
    %311 = arith.mulf %310, %3 : vector<8x512xf32>
    %c15_i32_162 = arith.constant 15 : i32
    %312 = tpu.dynamic_rotate %307 by %c15_i32_162 dim 1 : vector<8x512xf32>, i32 -> vector<8x512xf32>
    %313 = arith.mulf %312, %5 : vector<8x512xf32>
    %c1_i32_163 = arith.constant 1 : i32
    %314 = tpu.dynamic_rotate %307 by %c1_i32_163 dim 1 : vector<8x512xf32>, i32 -> vector<8x512xf32>
    %315 = arith.mulf %314, %7 : vector<8x512xf32>
    %c511_i32_164 = arith.constant 511 : i32
    %316 = tpu.dynamic_rotate %307 by %c511_i32_164 dim 1 : vector<8x512xf32>, i32 -> vector<8x512xf32>
    %317 = arith.mulf %316, %9 : vector<8x512xf32>
    %c497_i32_165 = arith.constant 497 : i32
    %318 = tpu.dynamic_rotate %307 by %c497_i32_165 dim 1 : vector<8x512xf32>, i32 -> vector<8x512xf32>
    %319 = arith.mulf %318, %11 : vector<8x512xf32>
    %c496_i32_166 = arith.constant 496 : i32
    %320 = tpu.dynamic_rotate %307 by %c496_i32_166 dim 1 : vector<8x512xf32>, i32 -> vector<8x512xf32>
    %321 = arith.mulf %320, %13 : vector<8x512xf32>
    %c495_i32_167 = arith.constant 495 : i32
    %322 = tpu.dynamic_rotate %307 by %c495_i32_167 dim 1 : vector<8x512xf32>, i32 -> vector<8x512xf32>
    %323 = arith.mulf %322, %15 : vector<8x512xf32>
    %324 = tpu.concatenate %309, %311, %313, %315, %307, %317, %319, %321, %323 in 0 : vector<8x512xf32>, vector<8x512xf32>, vector<8x512xf32>, vector<8x512xf32>, vector<8x512xf32>, vector<8x512xf32>, vector<8x512xf32>, vector<8x512xf32>, vector<8x512xf32> -> vector<72x512xf32>
    %325 = arith.truncf %324 : vector<72x512xf32> to vector<72x512xbf16>
    %c1_168 = arith.constant 1 : index
    %c2_169 = arith.constant 2 : index
    %c0_170 = arith.constant 0 : index
    %c0_171 = arith.constant 0 : index
    %326 = vector.load %arg2[%c1_168, %c2_169, %c0_170, %c0_171] : memref<3x3x8x72xbf16, #tpu.memory_space<vmem>>, vector<1x1x8x72xbf16>
    %327 = vector.shape_cast %326 : vector<1x1x8x72xbf16> to vector<8x72xbf16>
    %cst_172 = arith.constant dense<0.000000e+00> : vector<8x512xf32>
    %328 = tpu.matmul %327, %325, %cst_172 {dimension_numbers = #tpu.dot_dimension_numbers<[1], [0], [0], [1], [0, 0, 1, 1], [], []>} : vector<8x72xbf16>, vector<72x512xbf16>, vector<8x512xf32> -> vector<8x512xf32>
    %c1_173 = arith.constant 1 : index
    %c2_174 = arith.constant 2 : index
    %c0_175 = arith.constant 0 : index
    %c0_176 = arith.constant 0 : index
    %329 = vector.load %arg3[%c1_173, %c2_174, %c0_175, %c0_176] : memref<3x3x8x1xf32, #tpu.memory_space<vmem>>, vector<1x1x8x1xf32>
    %330 = vector.shape_cast %329 : vector<1x1x8x1xf32> to vector<8x1xf32>
    %c1_177 = arith.constant 1 : index
    %c2_178 = arith.constant 2 : index
    %c0_179 = arith.constant 0 : index
    %c0_180 = arith.constant 0 : index
    %331 = vector.load %arg4[%c1_177, %c2_178, %c0_179, %c0_180] : memref<3x3x8x1xf32, #tpu.memory_space<vmem>>, vector<1x1x8x1xf32>
    %332 = vector.shape_cast %331 : vector<1x1x8x1xf32> to vector<8x1xf32>
    %cst_181 = arith.constant dense<0.000000e+00> : vector<8xf32>
    %333 = vector.multi_reduction <add>, %328, %cst_181 [1] : vector<8x512xf32> to vector<8xf32>
    %334 = vector.shape_cast %333 : vector<8xf32> to vector<8x1xf32>
    %cst_182 = arith.constant 5.120000e+02 : f32
    %335 = vector.broadcast %cst_182 : f32 to vector<8x1xf32>
    %336 = arith.divf %334, %335 : vector<8x1xf32>
    %337 = arith.mulf %328, %328 : vector<8x512xf32>
    %cst_183 = arith.constant dense<0.000000e+00> : vector<8xf32>
    %338 = vector.multi_reduction <add>, %337, %cst_183 [1] : vector<8x512xf32> to vector<8xf32>
    %339 = vector.shape_cast %338 : vector<8xf32> to vector<8x1xf32>
    %cst_184 = arith.constant 5.120000e+02 : f32
    %340 = vector.broadcast %cst_184 : f32 to vector<8x1xf32>
    %341 = arith.divf %339, %340 : vector<8x1xf32>
    %342 = arith.mulf %336, %336 : vector<8x1xf32>
    %343 = arith.subf %341, %342 : vector<8x1xf32>
    %cst_185 = arith.constant 9.99999974E-6 : f32
    %344 = vector.broadcast %cst_185 : f32 to vector<8x1xf32>
    %345 = arith.addf %343, %344 : vector<8x1xf32>
    %346 = math.rsqrt %345 : vector<8x1xf32>
    %347 = arith.mulf %330, %346 : vector<8x1xf32>
    %348 = arith.mulf %336, %347 : vector<8x1xf32>
    %349 = arith.subf %332, %348 : vector<8x1xf32>
    %350 = vector.broadcast %347 : vector<8x1xf32> to vector<8x512xf32>
    %351 = arith.mulf %328, %350 : vector<8x512xf32>
    %352 = vector.broadcast %349 : vector<8x1xf32> to vector<8x512xf32>
    %353 = arith.addf %351, %352 : vector<8x512xf32>
    %cst_186 = arith.constant 0.00999999977 : f32
    %354 = vector.broadcast %cst_186 : f32 to vector<8x512xf32>
    %355 = arith.mulf %354, %353 : vector<8x512xf32>
    %356 = arith.maximumf %353, %355 : vector<8x512xf32>
    %357 = tpu.concatenate %204, %254, %305, %356 in 0 : vector<8x512xf32>, vector<8x512xf32>, vector<8x512xf32>, vector<8x512xf32> -> vector<32x512xf32>
    %358 = arith.truncf %357 : vector<32x512xf32> to vector<32x512xbf16>
    %c1_187 = arith.constant 1 : index
    %c0_188 = arith.constant 0 : index
    %c0_189 = arith.constant 0 : index
    %359 = vector.load %arg5[%c1_187, %c0_188, %c0_189] : memref<3x32x32xbf16, #tpu.memory_space<vmem>>, vector<1x32x32xbf16>
    %360 = vector.shape_cast %359 : vector<1x32x32xbf16> to vector<32x32xbf16>
    %cst_190 = arith.constant dense<0.000000e+00> : vector<32x512xf32>
    %361 = tpu.matmul %360, %358, %cst_190 {dimension_numbers = #tpu.dot_dimension_numbers<[1], [0], [0], [1], [0, 0, 1, 1], [], []>} : vector<32x32xbf16>, vector<32x512xbf16>, vector<32x512xf32> -> vector<32x512xf32>
    %c1_191 = arith.constant 1 : index
    %c0_192 = arith.constant 0 : index
    %c0_193 = arith.constant 0 : index
    %362 = vector.load %arg6[%c1_191, %c0_192, %c0_193] : memref<3x32x1xf32, #tpu.memory_space<vmem>>, vector<1x32x1xf32>
    %363 = vector.shape_cast %362 : vector<1x32x1xf32> to vector<32x1xf32>
    %c1_194 = arith.constant 1 : index
    %c0_195 = arith.constant 0 : index
    %c0_196 = arith.constant 0 : index
    %364 = vector.load %arg7[%c1_194, %c0_195, %c0_196] : memref<3x32x1xf32, #tpu.memory_space<vmem>>, vector<1x32x1xf32>
    %365 = vector.shape_cast %364 : vector<1x32x1xf32> to vector<32x1xf32>
    %cst_197 = arith.constant dense<0.000000e+00> : vector<32xf32>
    %366 = vector.multi_reduction <add>, %361, %cst_197 [1] : vector<32x512xf32> to vector<32xf32>
    %367 = vector.shape_cast %366 : vector<32xf32> to vector<32x1xf32>
    %cst_198 = arith.constant 5.120000e+02 : f32
    %368 = vector.broadcast %cst_198 : f32 to vector<32x1xf32>
    %369 = arith.divf %367, %368 : vector<32x1xf32>
    %370 = arith.mulf %361, %361 : vector<32x512xf32>
    %cst_199 = arith.constant dense<0.000000e+00> : vector<32xf32>
    %371 = vector.multi_reduction <add>, %370, %cst_199 [1] : vector<32x512xf32> to vector<32xf32>
    %372 = vector.shape_cast %371 : vector<32xf32> to vector<32x1xf32>
    %cst_200 = arith.constant 5.120000e+02 : f32
    %373 = vector.broadcast %cst_200 : f32 to vector<32x1xf32>
    %374 = arith.divf %372, %373 : vector<32x1xf32>
    %375 = arith.mulf %369, %369 : vector<32x1xf32>
    %376 = arith.subf %374, %375 : vector<32x1xf32>
    %cst_201 = arith.constant 9.99999974E-6 : f32
    %377 = vector.broadcast %cst_201 : f32 to vector<32x1xf32>
    %378 = arith.addf %376, %377 : vector<32x1xf32>
    %379 = math.rsqrt %378 : vector<32x1xf32>
    %380 = arith.mulf %363, %379 : vector<32x1xf32>
    %381 = arith.mulf %369, %380 : vector<32x1xf32>
    %382 = arith.subf %365, %381 : vector<32x1xf32>
    %383 = vector.broadcast %380 : vector<32x1xf32> to vector<32x512xf32>
    %384 = arith.mulf %361, %383 : vector<32x512xf32>
    %385 = vector.broadcast %382 : vector<32x1xf32> to vector<32x512xf32>
    %386 = arith.addf %384, %385 : vector<32x512xf32>
    %387 = arith.addf %386, %203 : vector<32x512xf32>
    %cst_202 = arith.constant 0.00999999977 : f32
    %388 = vector.broadcast %cst_202 : f32 to vector<32x512xf32>
    %389 = arith.mulf %388, %387 : vector<32x512xf32>
    %390 = arith.maximumf %387, %389 : vector<32x512xf32>
    %391 = vector.extract_strided_slice %390 {offsets = [0, 0], sizes = [8, 512], strides = [1, 1]} : vector<32x512xf32> to vector<8x512xf32>
    %392 = vector.extract_strided_slice %390 {offsets = [8, 0], sizes = [8, 512], strides = [1, 1]} : vector<32x512xf32> to vector<8x512xf32>
    %c17_i32_203 = arith.constant 17 : i32
    %393 = tpu.dynamic_rotate %392 by %c17_i32_203 dim 1 : vector<8x512xf32>, i32 -> vector<8x512xf32>
    %394 = arith.mulf %393, %1 : vector<8x512xf32>
    %c16_i32_204 = arith.constant 16 : i32
    %395 = tpu.dynamic_rotate %392 by %c16_i32_204 dim 1 : vector<8x512xf32>, i32 -> vector<8x512xf32>
    %396 = arith.mulf %395, %3 : vector<8x512xf32>
    %c15_i32_205 = arith.constant 15 : i32
    %397 = tpu.dynamic_rotate %392 by %c15_i32_205 dim 1 : vector<8x512xf32>, i32 -> vector<8x512xf32>
    %398 = arith.mulf %397, %5 : vector<8x512xf32>
    %c1_i32_206 = arith.constant 1 : i32
    %399 = tpu.dynamic_rotate %392 by %c1_i32_206 dim 1 : vector<8x512xf32>, i32 -> vector<8x512xf32>
    %400 = arith.mulf %399, %7 : vector<8x512xf32>
    %c511_i32_207 = arith.constant 511 : i32
    %401 = tpu.dynamic_rotate %392 by %c511_i32_207 dim 1 : vector<8x512xf32>, i32 -> vector<8x512xf32>
    %402 = arith.mulf %401, %9 : vector<8x512xf32>
    %c497_i32_208 = arith.constant 497 : i32
    %403 = tpu.dynamic_rotate %392 by %c497_i32_208 dim 1 : vector<8x512xf32>, i32 -> vector<8x512xf32>
    %404 = arith.mulf %403, %11 : vector<8x512xf32>
    %c496_i32_209 = arith.constant 496 : i32
    %405 = tpu.dynamic_rotate %392 by %c496_i32_209 dim 1 : vector<8x512xf32>, i32 -> vector<8x512xf32>
    %406 = arith.mulf %405, %13 : vector<8x512xf32>
    %c495_i32_210 = arith.constant 495 : i32
    %407 = tpu.dynamic_rotate %392 by %c495_i32_210 dim 1 : vector<8x512xf32>, i32 -> vector<8x512xf32>
    %408 = arith.mulf %407, %15 : vector<8x512xf32>
    %409 = tpu.concatenate %394, %396, %398, %400, %392, %402, %404, %406, %408 in 0 : vector<8x512xf32>, vector<8x512xf32>, vector<8x512xf32>, vector<8x512xf32>, vector<8x512xf32>, vector<8x512xf32>, vector<8x512xf32>, vector<8x512xf32>, vector<8x512xf32> -> vector<72x512xf32>
    %410 = arith.truncf %409 : vector<72x512xf32> to vector<72x512xbf16>
    %c2_211 = arith.constant 2 : index
    %c0_212 = arith.constant 0 : index
    %c0_213 = arith.constant 0 : index
    %c0_214 = arith.constant 0 : index
    %411 = vector.load %arg2[%c2_211, %c0_212, %c0_213, %c0_214] : memref<3x3x8x72xbf16, #tpu.memory_space<vmem>>, vector<1x1x8x72xbf16>
    %412 = vector.shape_cast %411 : vector<1x1x8x72xbf16> to vector<8x72xbf16>
    %cst_215 = arith.constant dense<0.000000e+00> : vector<8x512xf32>
    %413 = tpu.matmul %412, %410, %cst_215 {dimension_numbers = #tpu.dot_dimension_numbers<[1], [0], [0], [1], [0, 0, 1, 1], [], []>} : vector<8x72xbf16>, vector<72x512xbf16>, vector<8x512xf32> -> vector<8x512xf32>
    %c2_216 = arith.constant 2 : index
    %c0_217 = arith.constant 0 : index
    %c0_218 = arith.constant 0 : index
    %c0_219 = arith.constant 0 : index
    %414 = vector.load %arg3[%c2_216, %c0_217, %c0_218, %c0_219] : memref<3x3x8x1xf32, #tpu.memory_space<vmem>>, vector<1x1x8x1xf32>
    %415 = vector.shape_cast %414 : vector<1x1x8x1xf32> to vector<8x1xf32>
    %c2_220 = arith.constant 2 : index
    %c0_221 = arith.constant 0 : index
    %c0_222 = arith.constant 0 : index
    %c0_223 = arith.constant 0 : index
    %416 = vector.load %arg4[%c2_220, %c0_221, %c0_222, %c0_223] : memref<3x3x8x1xf32, #tpu.memory_space<vmem>>, vector<1x1x8x1xf32>
    %417 = vector.shape_cast %416 : vector<1x1x8x1xf32> to vector<8x1xf32>
    %cst_224 = arith.constant dense<0.000000e+00> : vector<8xf32>
    %418 = vector.multi_reduction <add>, %413, %cst_224 [1] : vector<8x512xf32> to vector<8xf32>
    %419 = vector.shape_cast %418 : vector<8xf32> to vector<8x1xf32>
    %cst_225 = arith.constant 5.120000e+02 : f32
    %420 = vector.broadcast %cst_225 : f32 to vector<8x1xf32>
    %421 = arith.divf %419, %420 : vector<8x1xf32>
    %422 = arith.mulf %413, %413 : vector<8x512xf32>
    %cst_226 = arith.constant dense<0.000000e+00> : vector<8xf32>
    %423 = vector.multi_reduction <add>, %422, %cst_226 [1] : vector<8x512xf32> to vector<8xf32>
    %424 = vector.shape_cast %423 : vector<8xf32> to vector<8x1xf32>
    %cst_227 = arith.constant 5.120000e+02 : f32
    %425 = vector.broadcast %cst_227 : f32 to vector<8x1xf32>
    %426 = arith.divf %424, %425 : vector<8x1xf32>
    %427 = arith.mulf %421, %421 : vector<8x1xf32>
    %428 = arith.subf %426, %427 : vector<8x1xf32>
    %cst_228 = arith.constant 9.99999974E-6 : f32
    %429 = vector.broadcast %cst_228 : f32 to vector<8x1xf32>
    %430 = arith.addf %428, %429 : vector<8x1xf32>
    %431 = math.rsqrt %430 : vector<8x1xf32>
    %432 = arith.mulf %415, %431 : vector<8x1xf32>
    %433 = arith.mulf %421, %432 : vector<8x1xf32>
    %434 = arith.subf %417, %433 : vector<8x1xf32>
    %435 = vector.broadcast %432 : vector<8x1xf32> to vector<8x512xf32>
    %436 = arith.mulf %413, %435 : vector<8x512xf32>
    %437 = vector.broadcast %434 : vector<8x1xf32> to vector<8x512xf32>
    %438 = arith.addf %436, %437 : vector<8x512xf32>
    %cst_229 = arith.constant 0.00999999977 : f32
    %439 = vector.broadcast %cst_229 : f32 to vector<8x512xf32>
    %440 = arith.mulf %439, %438 : vector<8x512xf32>
    %441 = arith.maximumf %438, %440 : vector<8x512xf32>
    %442 = vector.extract_strided_slice %390 {offsets = [16, 0], sizes = [8, 512], strides = [1, 1]} : vector<32x512xf32> to vector<8x512xf32>
    %443 = arith.addf %442, %441 : vector<8x512xf32>
    %c17_i32_230 = arith.constant 17 : i32
    %444 = tpu.dynamic_rotate %443 by %c17_i32_230 dim 1 : vector<8x512xf32>, i32 -> vector<8x512xf32>
    %445 = arith.mulf %444, %1 : vector<8x512xf32>
    %c16_i32_231 = arith.constant 16 : i32
    %446 = tpu.dynamic_rotate %443 by %c16_i32_231 dim 1 : vector<8x512xf32>, i32 -> vector<8x512xf32>
    %447 = arith.mulf %446, %3 : vector<8x512xf32>
    %c15_i32_232 = arith.constant 15 : i32
    %448 = tpu.dynamic_rotate %443 by %c15_i32_232 dim 1 : vector<8x512xf32>, i32 -> vector<8x512xf32>
    %449 = arith.mulf %448, %5 : vector<8x512xf32>
    %c1_i32_233 = arith.constant 1 : i32
    %450 = tpu.dynamic_rotate %443 by %c1_i32_233 dim 1 : vector<8x512xf32>, i32 -> vector<8x512xf32>
    %451 = arith.mulf %450, %7 : vector<8x512xf32>
    %c511_i32_234 = arith.constant 511 : i32
    %452 = tpu.dynamic_rotate %443 by %c511_i32_234 dim 1 : vector<8x512xf32>, i32 -> vector<8x512xf32>
    %453 = arith.mulf %452, %9 : vector<8x512xf32>
    %c497_i32_235 = arith.constant 497 : i32
    %454 = tpu.dynamic_rotate %443 by %c497_i32_235 dim 1 : vector<8x512xf32>, i32 -> vector<8x512xf32>
    %455 = arith.mulf %454, %11 : vector<8x512xf32>
    %c496_i32_236 = arith.constant 496 : i32
    %456 = tpu.dynamic_rotate %443 by %c496_i32_236 dim 1 : vector<8x512xf32>, i32 -> vector<8x512xf32>
    %457 = arith.mulf %456, %13 : vector<8x512xf32>
    %c495_i32_237 = arith.constant 495 : i32
    %458 = tpu.dynamic_rotate %443 by %c495_i32_237 dim 1 : vector<8x512xf32>, i32 -> vector<8x512xf32>
    %459 = arith.mulf %458, %15 : vector<8x512xf32>
    %460 = tpu.concatenate %445, %447, %449, %451, %443, %453, %455, %457, %459 in 0 : vector<8x512xf32>, vector<8x512xf32>, vector<8x512xf32>, vector<8x512xf32>, vector<8x512xf32>, vector<8x512xf32>, vector<8x512xf32>, vector<8x512xf32>, vector<8x512xf32> -> vector<72x512xf32>
    %461 = arith.truncf %460 : vector<72x512xf32> to vector<72x512xbf16>
    %c2_238 = arith.constant 2 : index
    %c1_239 = arith.constant 1 : index
    %c0_240 = arith.constant 0 : index
    %c0_241 = arith.constant 0 : index
    %462 = vector.load %arg2[%c2_238, %c1_239, %c0_240, %c0_241] : memref<3x3x8x72xbf16, #tpu.memory_space<vmem>>, vector<1x1x8x72xbf16>
    %463 = vector.shape_cast %462 : vector<1x1x8x72xbf16> to vector<8x72xbf16>
    %cst_242 = arith.constant dense<0.000000e+00> : vector<8x512xf32>
    %464 = tpu.matmul %463, %461, %cst_242 {dimension_numbers = #tpu.dot_dimension_numbers<[1], [0], [0], [1], [0, 0, 1, 1], [], []>} : vector<8x72xbf16>, vector<72x512xbf16>, vector<8x512xf32> -> vector<8x512xf32>
    %c2_243 = arith.constant 2 : index
    %c1_244 = arith.constant 1 : index
    %c0_245 = arith.constant 0 : index
    %c0_246 = arith.constant 0 : index
    %465 = vector.load %arg3[%c2_243, %c1_244, %c0_245, %c0_246] : memref<3x3x8x1xf32, #tpu.memory_space<vmem>>, vector<1x1x8x1xf32>
    %466 = vector.shape_cast %465 : vector<1x1x8x1xf32> to vector<8x1xf32>
    %c2_247 = arith.constant 2 : index
    %c1_248 = arith.constant 1 : index
    %c0_249 = arith.constant 0 : index
    %c0_250 = arith.constant 0 : index
    %467 = vector.load %arg4[%c2_247, %c1_248, %c0_249, %c0_250] : memref<3x3x8x1xf32, #tpu.memory_space<vmem>>, vector<1x1x8x1xf32>
    %468 = vector.shape_cast %467 : vector<1x1x8x1xf32> to vector<8x1xf32>
    %cst_251 = arith.constant dense<0.000000e+00> : vector<8xf32>
    %469 = vector.multi_reduction <add>, %464, %cst_251 [1] : vector<8x512xf32> to vector<8xf32>
    %470 = vector.shape_cast %469 : vector<8xf32> to vector<8x1xf32>
    %cst_252 = arith.constant 5.120000e+02 : f32
    %471 = vector.broadcast %cst_252 : f32 to vector<8x1xf32>
    %472 = arith.divf %470, %471 : vector<8x1xf32>
    %473 = arith.mulf %464, %464 : vector<8x512xf32>
    %cst_253 = arith.constant dense<0.000000e+00> : vector<8xf32>
    %474 = vector.multi_reduction <add>, %473, %cst_253 [1] : vector<8x512xf32> to vector<8xf32>
    %475 = vector.shape_cast %474 : vector<8xf32> to vector<8x1xf32>
    %cst_254 = arith.constant 5.120000e+02 : f32
    %476 = vector.broadcast %cst_254 : f32 to vector<8x1xf32>
    %477 = arith.divf %475, %476 : vector<8x1xf32>
    %478 = arith.mulf %472, %472 : vector<8x1xf32>
    %479 = arith.subf %477, %478 : vector<8x1xf32>
    %cst_255 = arith.constant 9.99999974E-6 : f32
    %480 = vector.broadcast %cst_255 : f32 to vector<8x1xf32>
    %481 = arith.addf %479, %480 : vector<8x1xf32>
    %482 = math.rsqrt %481 : vector<8x1xf32>
    %483 = arith.mulf %466, %482 : vector<8x1xf32>
    %484 = arith.mulf %472, %483 : vector<8x1xf32>
    %485 = arith.subf %468, %484 : vector<8x1xf32>
    %486 = vector.broadcast %483 : vector<8x1xf32> to vector<8x512xf32>
    %487 = arith.mulf %464, %486 : vector<8x512xf32>
    %488 = vector.broadcast %485 : vector<8x1xf32> to vector<8x512xf32>
    %489 = arith.addf %487, %488 : vector<8x512xf32>
    %cst_256 = arith.constant 0.00999999977 : f32
    %490 = vector.broadcast %cst_256 : f32 to vector<8x512xf32>
    %491 = arith.mulf %490, %489 : vector<8x512xf32>
    %492 = arith.maximumf %489, %491 : vector<8x512xf32>
    %493 = vector.extract_strided_slice %390 {offsets = [24, 0], sizes = [8, 512], strides = [1, 1]} : vector<32x512xf32> to vector<8x512xf32>
    %494 = arith.addf %493, %492 : vector<8x512xf32>
    %c17_i32_257 = arith.constant 17 : i32
    %495 = tpu.dynamic_rotate %494 by %c17_i32_257 dim 1 : vector<8x512xf32>, i32 -> vector<8x512xf32>
    %496 = arith.mulf %495, %1 : vector<8x512xf32>
    %c16_i32_258 = arith.constant 16 : i32
    %497 = tpu.dynamic_rotate %494 by %c16_i32_258 dim 1 : vector<8x512xf32>, i32 -> vector<8x512xf32>
    %498 = arith.mulf %497, %3 : vector<8x512xf32>
    %c15_i32_259 = arith.constant 15 : i32
    %499 = tpu.dynamic_rotate %494 by %c15_i32_259 dim 1 : vector<8x512xf32>, i32 -> vector<8x512xf32>
    %500 = arith.mulf %499, %5 : vector<8x512xf32>
    %c1_i32_260 = arith.constant 1 : i32
    %501 = tpu.dynamic_rotate %494 by %c1_i32_260 dim 1 : vector<8x512xf32>, i32 -> vector<8x512xf32>
    %502 = arith.mulf %501, %7 : vector<8x512xf32>
    %c511_i32_261 = arith.constant 511 : i32
    %503 = tpu.dynamic_rotate %494 by %c511_i32_261 dim 1 : vector<8x512xf32>, i32 -> vector<8x512xf32>
    %504 = arith.mulf %503, %9 : vector<8x512xf32>
    %c497_i32_262 = arith.constant 497 : i32
    %505 = tpu.dynamic_rotate %494 by %c497_i32_262 dim 1 : vector<8x512xf32>, i32 -> vector<8x512xf32>
    %506 = arith.mulf %505, %11 : vector<8x512xf32>
    %c496_i32_263 = arith.constant 496 : i32
    %507 = tpu.dynamic_rotate %494 by %c496_i32_263 dim 1 : vector<8x512xf32>, i32 -> vector<8x512xf32>
    %508 = arith.mulf %507, %13 : vector<8x512xf32>
    %c495_i32_264 = arith.constant 495 : i32
    %509 = tpu.dynamic_rotate %494 by %c495_i32_264 dim 1 : vector<8x512xf32>, i32 -> vector<8x512xf32>
    %510 = arith.mulf %509, %15 : vector<8x512xf32>
    %511 = tpu.concatenate %496, %498, %500, %502, %494, %504, %506, %508, %510 in 0 : vector<8x512xf32>, vector<8x512xf32>, vector<8x512xf32>, vector<8x512xf32>, vector<8x512xf32>, vector<8x512xf32>, vector<8x512xf32>, vector<8x512xf32>, vector<8x512xf32> -> vector<72x512xf32>
    %512 = arith.truncf %511 : vector<72x512xf32> to vector<72x512xbf16>
    %c2_265 = arith.constant 2 : index
    %c2_266 = arith.constant 2 : index
    %c0_267 = arith.constant 0 : index
    %c0_268 = arith.constant 0 : index
    %513 = vector.load %arg2[%c2_265, %c2_266, %c0_267, %c0_268] : memref<3x3x8x72xbf16, #tpu.memory_space<vmem>>, vector<1x1x8x72xbf16>
    %514 = vector.shape_cast %513 : vector<1x1x8x72xbf16> to vector<8x72xbf16>
    %cst_269 = arith.constant dense<0.000000e+00> : vector<8x512xf32>
    %515 = tpu.matmul %514, %512, %cst_269 {dimension_numbers = #tpu.dot_dimension_numbers<[1], [0], [0], [1], [0, 0, 1, 1], [], []>} : vector<8x72xbf16>, vector<72x512xbf16>, vector<8x512xf32> -> vector<8x512xf32>
    %c2_270 = arith.constant 2 : index
    %c2_271 = arith.constant 2 : index
    %c0_272 = arith.constant 0 : index
    %c0_273 = arith.constant 0 : index
    %516 = vector.load %arg3[%c2_270, %c2_271, %c0_272, %c0_273] : memref<3x3x8x1xf32, #tpu.memory_space<vmem>>, vector<1x1x8x1xf32>
    %517 = vector.shape_cast %516 : vector<1x1x8x1xf32> to vector<8x1xf32>
    %c2_274 = arith.constant 2 : index
    %c2_275 = arith.constant 2 : index
    %c0_276 = arith.constant 0 : index
    %c0_277 = arith.constant 0 : index
    %518 = vector.load %arg4[%c2_274, %c2_275, %c0_276, %c0_277] : memref<3x3x8x1xf32, #tpu.memory_space<vmem>>, vector<1x1x8x1xf32>
    %519 = vector.shape_cast %518 : vector<1x1x8x1xf32> to vector<8x1xf32>
    %cst_278 = arith.constant dense<0.000000e+00> : vector<8xf32>
    %520 = vector.multi_reduction <add>, %515, %cst_278 [1] : vector<8x512xf32> to vector<8xf32>
    %521 = vector.shape_cast %520 : vector<8xf32> to vector<8x1xf32>
    %cst_279 = arith.constant 5.120000e+02 : f32
    %522 = vector.broadcast %cst_279 : f32 to vector<8x1xf32>
    %523 = arith.divf %521, %522 : vector<8x1xf32>
    %524 = arith.mulf %515, %515 : vector<8x512xf32>
    %cst_280 = arith.constant dense<0.000000e+00> : vector<8xf32>
    %525 = vector.multi_reduction <add>, %524, %cst_280 [1] : vector<8x512xf32> to vector<8xf32>
    %526 = vector.shape_cast %525 : vector<8xf32> to vector<8x1xf32>
    %cst_281 = arith.constant 5.120000e+02 : f32
    %527 = vector.broadcast %cst_281 : f32 to vector<8x1xf32>
    %528 = arith.divf %526, %527 : vector<8x1xf32>
    %529 = arith.mulf %523, %523 : vector<8x1xf32>
    %530 = arith.subf %528, %529 : vector<8x1xf32>
    %cst_282 = arith.constant 9.99999974E-6 : f32
    %531 = vector.broadcast %cst_282 : f32 to vector<8x1xf32>
    %532 = arith.addf %530, %531 : vector<8x1xf32>
    %533 = math.rsqrt %532 : vector<8x1xf32>
    %534 = arith.mulf %517, %533 : vector<8x1xf32>
    %535 = arith.mulf %523, %534 : vector<8x1xf32>
    %536 = arith.subf %519, %535 : vector<8x1xf32>
    %537 = vector.broadcast %534 : vector<8x1xf32> to vector<8x512xf32>
    %538 = arith.mulf %515, %537 : vector<8x512xf32>
    %539 = vector.broadcast %536 : vector<8x1xf32> to vector<8x512xf32>
    %540 = arith.addf %538, %539 : vector<8x512xf32>
    %cst_283 = arith.constant 0.00999999977 : f32
    %541 = vector.broadcast %cst_283 : f32 to vector<8x512xf32>
    %542 = arith.mulf %541, %540 : vector<8x512xf32>
    %543 = arith.maximumf %540, %542 : vector<8x512xf32>
    %544 = tpu.concatenate %391, %441, %492, %543 in 0 : vector<8x512xf32>, vector<8x512xf32>, vector<8x512xf32>, vector<8x512xf32> -> vector<32x512xf32>
    %545 = arith.truncf %544 : vector<32x512xf32> to vector<32x512xbf16>
    %c2_284 = arith.constant 2 : index
    %c0_285 = arith.constant 0 : index
    %c0_286 = arith.constant 0 : index
    %546 = vector.load %arg5[%c2_284, %c0_285, %c0_286] : memref<3x32x32xbf16, #tpu.memory_space<vmem>>, vector<1x32x32xbf16>
    %547 = vector.shape_cast %546 : vector<1x32x32xbf16> to vector<32x32xbf16>
    %cst_287 = arith.constant dense<0.000000e+00> : vector<32x512xf32>
    %548 = tpu.matmul %547, %545, %cst_287 {dimension_numbers = #tpu.dot_dimension_numbers<[1], [0], [0], [1], [0, 0, 1, 1], [], []>} : vector<32x32xbf16>, vector<32x512xbf16>, vector<32x512xf32> -> vector<32x512xf32>
    %c2_288 = arith.constant 2 : index
    %c0_289 = arith.constant 0 : index
    %c0_290 = arith.constant 0 : index
    %549 = vector.load %arg6[%c2_288, %c0_289, %c0_290] : memref<3x32x1xf32, #tpu.memory_space<vmem>>, vector<1x32x1xf32>
    %550 = vector.shape_cast %549 : vector<1x32x1xf32> to vector<32x1xf32>
    %c2_291 = arith.constant 2 : index
    %c0_292 = arith.constant 0 : index
    %c0_293 = arith.constant 0 : index
    %551 = vector.load %arg7[%c2_291, %c0_292, %c0_293] : memref<3x32x1xf32, #tpu.memory_space<vmem>>, vector<1x32x1xf32>
    %552 = vector.shape_cast %551 : vector<1x32x1xf32> to vector<32x1xf32>
    %cst_294 = arith.constant dense<0.000000e+00> : vector<32xf32>
    %553 = vector.multi_reduction <add>, %548, %cst_294 [1] : vector<32x512xf32> to vector<32xf32>
    %554 = vector.shape_cast %553 : vector<32xf32> to vector<32x1xf32>
    %cst_295 = arith.constant 5.120000e+02 : f32
    %555 = vector.broadcast %cst_295 : f32 to vector<32x1xf32>
    %556 = arith.divf %554, %555 : vector<32x1xf32>
    %557 = arith.mulf %548, %548 : vector<32x512xf32>
    %cst_296 = arith.constant dense<0.000000e+00> : vector<32xf32>
    %558 = vector.multi_reduction <add>, %557, %cst_296 [1] : vector<32x512xf32> to vector<32xf32>
    %559 = vector.shape_cast %558 : vector<32xf32> to vector<32x1xf32>
    %cst_297 = arith.constant 5.120000e+02 : f32
    %560 = vector.broadcast %cst_297 : f32 to vector<32x1xf32>
    %561 = arith.divf %559, %560 : vector<32x1xf32>
    %562 = arith.mulf %556, %556 : vector<32x1xf32>
    %563 = arith.subf %561, %562 : vector<32x1xf32>
    %cst_298 = arith.constant 9.99999974E-6 : f32
    %564 = vector.broadcast %cst_298 : f32 to vector<32x1xf32>
    %565 = arith.addf %563, %564 : vector<32x1xf32>
    %566 = math.rsqrt %565 : vector<32x1xf32>
    %567 = arith.mulf %550, %566 : vector<32x1xf32>
    %568 = arith.mulf %556, %567 : vector<32x1xf32>
    %569 = arith.subf %552, %568 : vector<32x1xf32>
    %570 = vector.broadcast %567 : vector<32x1xf32> to vector<32x512xf32>
    %571 = arith.mulf %548, %570 : vector<32x512xf32>
    %572 = vector.broadcast %569 : vector<32x1xf32> to vector<32x512xf32>
    %573 = arith.addf %571, %572 : vector<32x512xf32>
    %574 = arith.addf %573, %390 : vector<32x512xf32>
    %cst_299 = arith.constant 0.00999999977 : f32
    %575 = vector.broadcast %cst_299 : f32 to vector<32x512xf32>
    %576 = arith.mulf %575, %574 : vector<32x512xf32>
    %577 = arith.maximumf %574, %576 : vector<32x512xf32>
    %578 = tpu.concatenate %203, %390, %577 in 0 : vector<32x512xf32>, vector<32x512xf32>, vector<32x512xf32> -> vector<96x512xf32>
    %579 = arith.truncf %578 : vector<96x512xf32> to vector<96x512xbf16>
    %c0_300 = arith.constant 0 : index
    %c0_301 = arith.constant 0 : index
    %580 = vector.load %arg8[%c0_300, %c0_301] : memref<32x96xbf16, #tpu.memory_space<vmem>>, vector<32x96xbf16>
    %cst_302 = arith.constant dense<0.000000e+00> : vector<32x512xf32>
    %581 = tpu.matmul %580, %579, %cst_302 {dimension_numbers = #tpu.dot_dimension_numbers<[1], [0], [0], [1], [0, 0, 1, 1], [], []>} : vector<32x96xbf16>, vector<96x512xbf16>, vector<32x512xf32> -> vector<32x512xf32>
    %c0_303 = arith.constant 0 : index
    %c0_304 = arith.constant 0 : index
    %582 = vector.load %arg9[%c0_303, %c0_304] : memref<32x1xf32, #tpu.memory_space<vmem>>, vector<32x1xf32>
    %c0_305 = arith.constant 0 : index
    %c0_306 = arith.constant 0 : index
    %583 = vector.load %arg10[%c0_305, %c0_306] : memref<32x1xf32, #tpu.memory_space<vmem>>, vector<32x1xf32>
    %cst_307 = arith.constant dense<0.000000e+00> : vector<32xf32>
    %584 = vector.multi_reduction <add>, %581, %cst_307 [1] : vector<32x512xf32> to vector<32xf32>
    %585 = vector.shape_cast %584 : vector<32xf32> to vector<32x1xf32>
    %cst_308 = arith.constant 5.120000e+02 : f32
    %586 = vector.broadcast %cst_308 : f32 to vector<32x1xf32>
    %587 = arith.divf %585, %586 : vector<32x1xf32>
    %588 = arith.mulf %581, %581 : vector<32x512xf32>
    %cst_309 = arith.constant dense<0.000000e+00> : vector<32xf32>
    %589 = vector.multi_reduction <add>, %588, %cst_309 [1] : vector<32x512xf32> to vector<32xf32>
    %590 = vector.shape_cast %589 : vector<32xf32> to vector<32x1xf32>
    %cst_310 = arith.constant 5.120000e+02 : f32
    %591 = vector.broadcast %cst_310 : f32 to vector<32x1xf32>
    %592 = arith.divf %590, %591 : vector<32x1xf32>
    %593 = arith.mulf %587, %587 : vector<32x1xf32>
    %594 = arith.subf %592, %593 : vector<32x1xf32>
    %cst_311 = arith.constant 9.99999974E-6 : f32
    %595 = vector.broadcast %cst_311 : f32 to vector<32x1xf32>
    %596 = arith.addf %594, %595 : vector<32x1xf32>
    %597 = math.rsqrt %596 : vector<32x1xf32>
    %598 = arith.mulf %582, %597 : vector<32x1xf32>
    %599 = arith.mulf %587, %598 : vector<32x1xf32>
    %600 = arith.subf %583, %599 : vector<32x1xf32>
    %601 = vector.broadcast %598 : vector<32x1xf32> to vector<32x512xf32>
    %602 = arith.mulf %581, %601 : vector<32x512xf32>
    %603 = vector.broadcast %600 : vector<32x1xf32> to vector<32x512xf32>
    %604 = arith.addf %602, %603 : vector<32x512xf32>
    %605 = arith.addf %16, %604 : vector<32x512xf32>
    %cst_312 = arith.constant 0.00999999977 : f32
    %606 = vector.broadcast %cst_312 : f32 to vector<32x512xf32>
    %607 = arith.mulf %606, %605 : vector<32x512xf32>
    %608 = arith.maximumf %605, %607 : vector<32x512xf32>
    %c0_313 = arith.constant 0 : index
    %c0_314 = arith.constant 0 : index
    %609 = vector.load %arg11[%c0_313, %c0_314] : memref<32x512xf32, #tpu.memory_space<vmem>>, vector<32x512xf32>
    tpu.vector_store %arg11[%c0_313, %c0_314], %608 {strides = array<i32>} : memref<32x512xf32, #tpu.memory_space<vmem>>, vector<32x512xf32>,
    return
  }
}

</mosaic_0001>

<bundles_post_ra>
// kernel: tpu_custom_call.1
= control target key start
LH: loop header
LB: loop body
LE: loop exit
PB: predicated region body
PF: predicated region fallthrough
CT: control target
= control target key end

     0   :  { %16 = vsyncpa [#allocation3], 0  ;;  %s7721_s0 = inlined_call_operand.vmem [shape: f32[32,512], index: 0, kind: input, shape index: {}]   ;;  %s7722_s1 = inlined_call_operand.hbm [shape: f32[9,8,512], index: 1, kind: input, shape index: {}]   ;;  %s7723_s2 = inlined_call_operand.vmem [shape: bf16[3,3,8,72], index: 2, kind: input, shape index: {}]   ;;  %s7724_s3 = inlined_call_operand.vmem [shape: f32[3,3,8,1], index: 3, kind: input, shape index: {}]   ;;  %s7725_s4 = inlined_call_operand.vmem [shape: f32[3,3,8,1], index: 4, kind: input, shape index: {}]   ;;  %s7726_s5 = inlined_call_operand.vmem [shape: bf16[3,32,32], index: 5, kind: input, shape index: {}]   ;;  %s7727_s6 = inlined_call_operand.vmem [shape: f32[3,32,1], index: 6, kind: input, shape index: {}]   ;;  %s7728_s7 = inlined_call_operand.vmem [shape: f32[3,32,1], index: 7, kind: input, shape index: {}]   ;;  %s7729_s8 = inlined_call_operand.vmem [shape: bf16[32,96], index: 8, kind: input, shape index: {}]   ;;  %s7730_s9 = inlined_call_operand.vmem [shape: f32[32,1], index: 9, kind: input, shape index: {}]   ;;  %s7731_s10 = inlined_call_operand.vmem [shape: f32[32,1], index: 10, kind: input, shape index: {}]   ;;  %s7732_s11 = inlined_call_operand.hbm [shape: f32[32,512], index: 11, kind: output, shape index: {}]  }
   0x1   :  { %17 = vsyncpa [#allocation4], 0  ;;  %s24_s19 = sshll.u32 %s7722_s1, 4  ;;  %s4596_s20 = smov [#allocation2]   ;;  %s25_s19 = int_to_ptr.hbm [resolvable:$true] %s24_s19 }
   0x2   :  { %s26_s21 = sshll.u32 %s4596_s20, 4  ;;  %s4597_s22 = smov 512   ;;  %s27_s21 = int_to_ptr.vmem [resolvable:$true] %s26_s21 }
   0x3   :  { %s4598_s23 = smov 32  }
   0x4   :  { %32 = dma.hbm_to_vmem [thread:$0]  %s25_s19, 4608, %s27_s21, [#allocation3], %s4597_s22, %s4597_s22, %s4598_s23  }
   0x5   :  { %4592 = dma.done.wait [#allocation3], 4608  }
   0x6   :  { %4593 = vsyncadd [#allocation3], 4294962688  ;;  %v4679_v0 = vld [vmem:[%s7721_s0 + $0x30] sm:$0xff]  ;;  %v4684_v1 = vld [vmem:[%s7721_s0 + $0x20] sm:$0xff]  ;;  %s4599_s1 = smov 113   ;;  %s4600_s28 = smov 111   ;;  %v119_v6 = vlaneseq }
   0x7   :  { %202 = vrot.lane.b32.xlu2 %v4679_v0, %s4599_s1  ;;  %236 = vrot.lane.b32.xlu0 %v4679_v0, %s4600_s28  ;;  %v4695_v2 = vld [vmem:[%s7721_s0 + $0x38] sm:$0xff]  ;;  %v4700_v3 = vld [vmem:[%s7721_s0 + $0x28] sm:$0xff]  ;;  %s4601_s14 = smov 112   ;;  %s4602_s15 = smov 127   ;;  %v4767_v11 = vld [vmem:[#allocation2 + $0x110] sm:$0xff]  ;;  %vm274_vm1 = vcmask 1043456  }
   0x8   :  { %232 = vrot.lane.b32.xlu1 %v4684_v1, %s4600_s28  ;;  %s4603_s16 = smov 15   ;;  %s4604_s17 = smov 1   ;;  %v4764_v10 = vand.u32 127, %v119_v6  ;;  %v4769_v12 = vld [vmem:[#allocation2 + $0x118] sm:$0xff]  ;;  %v4771_v14 = vld [vmem:[#allocation2 + $0x100] sm:$0xff]  ;;  %v4773_v15 = vld [vmem:[#allocation2 + $0x108] sm:$0xff] }
   0x9   :  { %s4605_s18 = smov 17   ;;  %s4606_s19 = smov 16   ;;  %v4796_v36 = vld [vmem:[#allocation2 + $0xd0] sm:$0xff]  ;;  %v4810_v46 = vld [vmem:[#allocation2 + $0xd8] sm:$0xff]  ;;  %v4830_v62 = vld [vmem:[#allocation2 + $0xc0] sm:$0xff]  ;;  %vm7755_vm9 = vcmask 588800  }
   0xa   :  { %vm240_vm0 = vcmp.lt.s32.totalorder %v4764_v10, 111  ;;  %vm206_vm2 = vcmp.lt.s32.totalorder %v4764_v10, 113  ;;  %vm223_vm3 = vcmp.lt.s32.totalorder %v4764_v10, 112  ;;  %v4798_v37 = vld [vmem:[#allocation2 + $0xf0] sm:$0xff]  ;;  %vm189_vm4 = vcmp.lt.s32.totalorder %v4764_v10, 127  ;;  %v4812_v47 = vld [vmem:[#allocation2 + $0xf8] sm:$0xff] }
   0xb   :  { %v4814_v48 = vld [vmem:[#allocation2 + $0xb8] sm:$0xff]  ;;  %v4816_v50 = vld [vmem:[#allocation2 + $0xb0] sm:$0xff]  ;;  %v4832_v63 = vld [vmem:[#allocation2 + $0xc8] sm:$0xff]  ;;  %vm155_vm5 = vcmp.lt.s32.totalorder %v4764_v10, 15  ;;  %vm172_vm6 = vcmp.lt.s32.totalorder %v4764_v10, 1  ;;  %vm121_vm7 = vcmp.lt.s32.totalorder %v4764_v10, 17 }
   0xc   :  { %v4834_v6 = vld [vmem:[#allocation2 + $0xe0] sm:$0xff]  ;;  %vm138_vm8 = vcmp.lt.s32.totalorder %v4764_v10, 16 }
   0xf   :  { %204 = vrot.lane.b32.xlu2 %v4695_v2, %s4599_s1  ;;  %238 = vrot.lane.b32.xlu0 %v4695_v2, %s4600_s28 }
  0x10   :  { %234 = vrot.lane.b32.xlu1 %v4700_v3, %s4600_s28 }
  0x17   :  { %219 = vrot.lane.b32.xlu0 %v4679_v0, %s4601_s14  ;;  %198 = vrot.lane.b32.xlu2 %v4684_v1, %s4599_s1 }
  0x18   :  { %221 = vrot.lane.b32.xlu1 %v4695_v2, %s4601_s14 }
  0x1f   :  { %215 = vrot.lane.b32.xlu0 %v4684_v1, %s4601_s14  ;;  %187 = vrot.lane.b32.xlu2 %v4695_v2, %s4602_s15 }
  0x20   :  { %185 = vrot.lane.b32.xlu1 %v4679_v0, %s4602_s15 }
  0x27   :  { %200 = vrot.lane.b32.xlu0 %v4700_v3, %s4599_s1  ;;  %181 = vrot.lane.b32.xlu2 %v4684_v1, %s4602_s15 }
  0x28   :  { %217 = vrot.lane.b32.xlu1 %v4700_v3, %s4601_s14 }
  0x2f   :  { %149 = vrot.lane.b32.xlu0 %v4700_v3, %s4603_s16  ;;  %166 = vrot.lane.b32.xlu2 %v4700_v3, %s4604_s17 }
  0x30   :  { %151 = vrot.lane.b32.xlu1 %v4679_v0, %s4603_s16 }
  0x37   :  { %168 = vrot.lane.b32.xlu0 %v4679_v0, %s4604_s17  ;;  %153 = vrot.lane.b32.xlu2 %v4695_v2, %s4603_s16 }
  0x38   :  { %183 = vrot.lane.b32.xlu1 %v4700_v3, %s4602_s15 }
  0x3f   :  { %170 = vrot.lane.b32.xlu0 %v4695_v2, %s4604_s17  ;;  %115 = vrot.lane.b32.xlu2 %v4679_v0, %s4605_s18 }
  0x40   :  { %113 = vrot.lane.b32.xlu1 %v4700_v3, %s4605_s18 }
  0x47   :  { %132 = vrot.lane.b32.xlu0 %v4700_v3, %s4606_s19  ;;  %147 = vrot.lane.b32.xlu2 %v4684_v1, %s4603_s16 }
  0x48   :  { %134 = vrot.lane.b32.xlu1 %v4679_v0, %s4606_s19 }
  0x4f   :  { %164 = vrot.lane.b32.xlu0 %v4684_v1, %s4604_s17  ;;  %136 = vrot.lane.b32.xlu2 %v4695_v2, %s4606_s19 }
  0x50   :  { %117 = vrot.lane.b32.xlu1 %v4695_v2, %s4605_s18 }
  0x57   :  { %111 = vrot.lane.b32.xlu0 %v4684_v1, %s4605_s18 }
  0x58   :  { %130 = vrot.lane.b32.xlu1 %v4684_v1, %s4606_s19 }
  0x61   :  { %v4760_v4 = vpop.permute.xlu2 %202 }
  0x69   :  { %v205_v5 = vpop.permute.xlu2 %204 }
  0x6a   :  { %v207_v34 = vsel %vm206_vm2, %v4760_v4, %v205_v5 }
  0x6b   :  { %v213_v40 = vmul.f32 %v207_v34, %v4796_v36 }
  0x71   :  { %v4762_v8 = vpop.permute.xlu2 %198 }
  0x72   :  { %v210_v44 = vsel %vm206_vm2, %v205_v5, %v4762_v8 }
  0x73   :  { %v214_v54 = vmul.f32 %v210_v44, %v4810_v46 }
  0x79   :  { %v237_v7 = vpop.permute.xlu0 %236  ;;  %v188_v23 = vpop.permute.xlu2 %187 }
  0x7a   :  { %v233_v9 = vpop.permute.xlu1 %232 }
  0x81   :  { %v239_v13 = vpop.permute.xlu0 %238  ;;  %v182_v42 = vpop.permute.xlu2 %181 }
  0x82   :  { %v235_v16 = vpop.permute.xlu1 %234  ;;  %v241_v17 = vsel %vm240_vm0, %v237_v7, %v239_v13  ;;  %v244_v18 = vsel %vm240_vm0, %v239_v13, %v233_v9  ;;  %v193_v45 = vsel %vm189_vm4, %v188_v23, %v182_v42 }
  0x83   :  { %v243_v19 = vsel %vm240_vm0, %v233_v9, %v235_v16  ;;  %v242_v20 = vsel %vm240_vm0, %v235_v16, %v237_v7  ;;  %v247_v21 = vmul.f32 %v241_v17, %v4767_v11  ;;  %v248_v22 = vmul.f32 %v244_v18, %v4769_v12  ;;  %v4836_v7 = vld [vmem:[#allocation2 + $0xe8] sm:$0xff] }
  0x84   :  { %v245_v24 = vmul.f32 %v243_v19, %v4771_v14  ;;  %v246_v25 = vmul.f32 %v242_v20, %v4773_v15  ;;  %v197_v56 = vmul.f32 %v193_v45, %v4814_v48 }
  0x85   :  { %v267_v26 = vpack.c.bf16 %v247_v21, %v247_v21  ;;  %v268_v27 = vpack.c.bf16 %v248_v22, %v248_v22 }
  0x86   :  { %v265_v28 = vpack.c.bf16 %v245_v24, %v245_v24  ;;  %v266_v29 = vpack.c.bf16 %v246_v25, %v246_v25  ;;  %v260_v60 = vpack.c.bf16 %v197_v56, %v4695_v2  ;;  %v4856_v25 = vld [vmem:[#allocation2 + $0x50] sm:$0xff] }
  0x87   :  { %v282_v30 = vsel %vm274_vm1, %v267_v26, 0  ;;  %v285_v31 = vsel %vm274_vm1, %v268_v27, 0  ;;  %v4858_v26 = vld [vmem:[#allocation2 + $0x70] sm:$0xff] }
  0x88   :  { %v276_v32 = vsel %vm274_vm1, %v265_v28, 0  ;;  %v279_v33 = vsel %vm274_vm1, %v266_v29, 0  ;;  %316 = vmatpush.bf16.msra.mxu2 %v282_v30  ;;  %329 = vmatpush.bf16.msra.mxu3 %v285_v31  ;;  %v4860_v28 = vld [vmem:[#allocation2 + $0xa0] sm:$0xff]  ;;  %v4862_v29 = vld [vmem:[#allocation2 + $0xa8] sm:$0xff] }
  0x89   :  { %290 = vmatpush.bf16.msra.mxu0 %v276_v32  ;;  %303 = vmatpush.bf16.msra.mxu1 %v279_v33  ;;  %v220_v35 = vpop.permute.xlu0 %219  ;;  %v4828_v61 = vpop.permute.xlu2 %166 }
  0x8a   :  { %v222_v38 = vpop.permute.xlu1 %221 }
  0x8b   :  { %v224_v39 = vsel %vm223_vm3, %v220_v35, %v222_v38 }
  0x8c   :  { %v230_v41 = vmul.f32 %v224_v39, %v4798_v37 }
  0x8e   :  { %v263_v43 = vpack.c.bf16 %v230_v41, %v213_v40 }
  0x90   :  { %317 = vmatpush.bf16.msra.mxu2 %v263_v43 }
  0x91   :  { %v216_v49 = vpop.permute.xlu0 %215  ;;  %v154_v22 = vpop.permute.xlu2 %153 }
  0x92   :  { %v227_v51 = vsel %vm223_vm3, %v222_v38, %v216_v49  ;;  %v186_v52 = vpop.permute.xlu1 %185 }
  0x93   :  { %v190_v53 = vsel %vm189_vm4, %v186_v52, %v188_v23  ;;  %v231_v55 = vmul.f32 %v227_v51, %v4812_v47 }
  0x94   :  { %v196_v57 = vmul.f32 %v190_v53, %v4816_v50 }
  0x95   :  { %v264_v58 = vpack.c.bf16 %v231_v55, %v214_v54 }
  0x96   :  { %v259_v59 = vpack.c.bf16 %v196_v57, %v4679_v0 }
  0x97   :  { %330 = vmatpush.bf16.msra.mxu3 %v264_v58  ;;  %v4891_v58 = vld [vmem:[#allocation2 + $0x10] sm:$0xff] }
  0x98   :  { %318 = vmatpush.bf16.msra.mxu2 %v259_v59  ;;  %v4893_v59 = vld [vmem:[#allocation2 + $0x30] sm:$0xff] }
  0x99   :  { %v201_v5 = vpop.permute.xlu0 %200  ;;  %v116_v38 = vpop.permute.xlu2 %115 }
  0x9a   :  { %v208_v9 = vsel %vm206_vm2, %v201_v5, %v4760_v4  ;;  %v209_v0 = vsel %vm206_vm2, %v4762_v8, %v201_v5  ;;  %v218_v2 = vpop.permute.xlu1 %217 }
  0x9b   :  { %v225_v13 = vsel %vm223_vm3, %v218_v2, %v220_v35  ;;  %v226_v16 = vsel %vm223_vm3, %v216_v49, %v218_v2  ;;  %331 = vmatpush.bf16.msra.mxu3 %v260_v60  ;;  %v211_v17 = vmul.f32 %v209_v0, %v4830_v62  ;;  %v212_v18 = vmul.f32 %v208_v9, %v4832_v63  ;;  %v4881_v49 = vld [vmem:[#allocation2 + $0x78] sm:$0xff] }
  0x9c   :  { %v228_v19 = vmul.f32 %v226_v16, %v4834_v6  ;;  %v229_v4 = vmul.f32 %v225_v13, %v4836_v7 }
  0x9e   :  { %v261_v20 = vpack.c.bf16 %v228_v19, %v211_v17  ;;  %v262_v21 = vpack.c.bf16 %v229_v4, %v212_v18  ;;  %v4901_v17 = vld [vmem:[#allocation2 + $0x40] sm:$0xff]  ;;  %v4903_v18 = vld [vmem:[#allocation2 + $0x48] sm:$0xff] }
  0x9f   :  { %v269_v4 = vld [vmem:[%s7723_s2] sm:$0xf] }
  0xa0   :  { %291 = vmatpush.bf16.msra.mxu0 %v261_v20  ;;  %304 = vmatpush.bf16.msra.mxu1 %v262_v21  ;;  %v4910_v20 = vld [vmem:[#allocation2 + $0x60] sm:$0xff]  ;;  %v4912_v21 = vld [vmem:[#allocation2 + $0x68] sm:$0xff] }
  0xa1   :  { %v150_v8 = vpop.permute.xlu0 %149  ;;  %v148_v55 = vpop.permute.xlu2 %147 }
  0xa2   :  { %v152_v23 = vpop.permute.xlu1 %151  ;;  %v159_v16 = vsel %vm155_vm5, %v154_v22, %v148_v55  ;;  %v158_v19 = vsel %vm155_vm5, %v148_v55, %v150_v8 }
  0xa3   :  { %v157_v24 = vsel %vm155_vm5, %v150_v8, %v152_v23  ;;  %v156_v45 = vsel %vm155_vm5, %v152_v23, %v154_v22 }
  0xa4   :  { %v162_v34 = vmul.f32 %v157_v24, %v4856_v25  ;;  %v4916_v24 = vld [vmem:[#allocation2 + $0x18] sm:$0xff] }
  0xa9   :  { %v169_v27 = vpop.permute.xlu0 %168  ;;  %v137_v2 = vpop.permute.xlu2 %136 }
  0xaa   :  { %v174_v30 = vsel %vm172_vm6, %v4828_v61, %v169_v27  ;;  %v184_v31 = vpop.permute.xlu1 %183 }
  0xab   :  { %v191_v32 = vsel %vm189_vm4, %v184_v31, %v186_v52  ;;  %v192_v33 = vsel %vm189_vm4, %v182_v42, %v184_v31  ;;  %v179_v35 = vmul.f32 %v174_v30, %v4858_v26  ;;  %v4879_v42 = vld [vmem:[#allocation2 + $0x58] sm:$0xff] }
  0xac   :  { %v194_v39 = vmul.f32 %v192_v33, %v4860_v28  ;;  %v195_v40 = vmul.f32 %v191_v32, %v4862_v29  ;;  %v163_v54 = vmul.f32 %v156_v45, %v4879_v42  ;;  %v160_v32 = vmul.f32 %v159_v16, %v4901_v17  ;;  %v4934_v45 = vld [vmem:[#allocation2] sm:$0xff] }
  0xad   :  { %v255_v41 = vpack.c.bf16 %v179_v35, %v162_v34  ;;  %v161_v35 = vmul.f32 %v158_v19, %v4903_v18 }
  0xae   :  { %v257_v43 = vpack.c.bf16 %v194_v39, %v4684_v1  ;;  %v258_v44 = vpack.c.bf16 %v195_v40, %v4700_v3 }
  0xaf   :  { %319 = vmatpush.bf16.msra.mxu2 %v255_v41 }
  0xb0   :  { %292 = vmatpush.bf16.msra.mxu0 %v257_v43  ;;  %305 = vmatpush.bf16.msra.mxu1 %v258_v44 }
  0xb1   :  { %v171_v51 = vpop.permute.xlu0 %170 }
  0xb2   :  { %v173_v52 = vsel %vm172_vm6, %v169_v27, %v171_v51  ;;  %v114_v53 = vpop.permute.xlu1 %113  ;;  %v4918_v27 = vld [vmem:[#allocation2 + $0x38] sm:$0xff] }
  0xb3   :  { %v180_v1 = vmul.f32 %v173_v52, %v4881_v49  ;;  %v123_v56 = vsel %vm121_vm7, %v114_v53, %v116_v38  ;;  %v4938_v52 = vld [vmem:[#allocation2 + $0x20] sm:$0xff] }
  0xb4   :  { %v128_v9 = vmul.f32 %v123_v56, %v4891_v58 }
  0xb5   :  { %v256_v3 = vpack.c.bf16 %v180_v1, %v163_v54  ;;  %v4940_v54 = vld [vmem:[#allocation2 + $0x28] sm:$0xff] }
  0xb7   :  { %332 = vmatpush.bf16.msra.mxu3 %v256_v3 }
  0xb9   :  { %v133_v57 = vpop.permute.xlu0 %132 }
  0xba   :  { %v135_v60 = vpop.permute.xlu1 %134 }
  0xbb   :  { %v140_v5 = vsel %vm138_vm8, %v133_v57, %v135_v60  ;;  %v139_v22 = vsel %vm138_vm8, %v135_v60, %v137_v2 }
  0xbc   :  { %v145_v0 = vmul.f32 %v140_v5, %v4893_v59 }
  0xbe   :  { %v251_v13 = vpack.c.bf16 %v145_v0, %v128_v9 }
  0xc0   :  { %320 = vmatpush.bf16.msra.mxu2 %v251_v13 }
  0xc1   :  { %v165_v23 = vpop.permute.xlu0 %164 }
  0xc2   :  { %v175_v8 = vsel %vm172_vm6, %v165_v23, %v4828_v61  ;;  %v176_v30 = vsel %vm172_vm6, %v171_v51, %v165_v23  ;;  %v118_v31 = vpop.permute.xlu1 %117  ;;  %v146_v61 = vmul.f32 %v139_v22, %v4918_v27 }
  0xc3   :  { %v122_v33 = vsel %vm121_vm7, %v116_v38, %v118_v31  ;;  %4163 = vmatmul.msk.bf16.vlgmr.msra.gmra.mxu2 %vm7755_vm9, %v269_v4  ;;  %v177_v34 = vmul.f32 %v176_v30, %v4910_v20  ;;  %v178_v39 = vmul.f32 %v175_v8, %v4912_v21  ;;  %v4936_v38 = vld [vmem:[#allocation2 + $0x8] sm:$0xff] }
  0xc4   :  { %v129_v40 = vmul.f32 %v122_v33, %v4916_v24 }
  0xc5   :  { %v253_v41 = vpack.c.bf16 %v177_v34, %v160_v32  ;;  %v254_v43 = vpack.c.bf16 %v178_v39, %v161_v35 }
  0xc6   :  { %v252_v44 = vpack.c.bf16 %v146_v61, %v129_v40 }
  0xc7   :  { %293 = vmatpush.bf16.msra.mxu0 %v253_v41  ;;  %306 = vmatpush.bf16.msra.mxu1 %v254_v43 }
  0xc8   :  { %333 = vmatpush.bf16.msra.mxu3 %v252_v44 }
  0xc9   :  { %v112_v51 = vpop.permute.xlu0 %111 }
  0xca   :  { %v124_v1 = vsel %vm121_vm7, %v112_v51, %v114_v53  ;;  %v125_v3 = vsel %vm121_vm7, %v118_v31, %v112_v51  ;;  %v131_v55 = vpop.permute.xlu1 %130 }
  0xcb   :  { %v141_v56 = vsel %vm138_vm8, %v131_v55, %v133_v57  ;;  %v142_v60 = vsel %vm138_vm8, %v137_v2, %v131_v55  ;;  %4164 = vmatmul.msk.bf16.vlgmr.msra.gmra.mxu3 %vm7755_vm9, %v269_v4  ;;  %v126_v5 = vmul.f32 %v125_v3, %v4934_v45  ;;  %v127_v9 = vmul.f32 %v124_v1, %v4936_v38 }
  0xcc   :  { %v143_v0 = vmul.f32 %v142_v60, %v4938_v52  ;;  %v144_v53 = vmul.f32 %v141_v56, %v4940_v54  ;;  %v4608_v55 = vmov 0  }
  0xcd   :  { %4331 = vset.pattern.permute.xlu1 %v4608_v55  ;;  %4332 = vset.pattern.permute.xlu0 %v4608_v55 }
  0xce   :  { %v249_v13 = vpack.c.bf16 %v143_v0, %v126_v5  ;;  %v250_v16 = vpack.c.bf16 %v144_v53, %v127_v9  ;;  %4333 = vset.pattern.permute.xlu2 %v4608_v55 }
  0xd0   :  { %294 = vmatpush.bf16.msra.mxu0 %v249_v13  ;;  %307 = vmatpush.bf16.msra.mxu1 %v250_v16 }
  0xd3   :  { %4161 = vmatmul.msk.bf16.vlgmr.msra.gmra.mxu0 %vm7755_vm9, %v269_v4  ;;  %4162 = vmatmul.msk.bf16.vlgmr.msra.gmra.mxu1 %vm7755_vm9, %v269_v4  ;;  %v4607_v4 = vmov 512.0  }
  0xd4   :  { %4334 = vrcp.f32 %v4607_v4 }
  0xda   :  { %v4335_v51 = vpop.eup %4334 }
  0xdb   :  { %v347_v1 = vmul.f32 512.0, %v4335_v51  ;;  %vm351_vm10 = vweird.f32 %v4335_v51 }
  0xdd   :  { %v348_v3 = vsub.f32 1.0, %v347_v1 }
  0xdf   :  { %v349_v56 = vmul.f32 %v4335_v51, %v348_v3 }
  0xe1   :  { %v350_v60 = vadd.f32 %v4335_v51, %v349_v56 }
  0xe3   :  { %v4957_v5 = vsel %vm351_vm10, %v4335_v51, %v350_v60 }
  0xe4   :  { %7789 = vst [vmem:[#allocation8_spill] sm:$0xff] %v4957_v5 }
 0x146   :  { %v322_v57 = vpop.f32.mrf.mxu2 }
 0x147   :  { %v356_v8 = vmul.f32 %v322_v57, %v322_v57 }
 0x14e   :  { %v335_v2 = vpop.f32.mrf.mxu3  ;;  %v324_v19 = vpop.f32.mrf.mxu2 }
 0x14f   :  { %v357_v34 = vmul.f32 %v335_v2, %v335_v2 }
 0x150   :  { %v296_v22 = vpop.f32.mrf.mxu0  ;;  %v309_v23 = vpop.f32.mrf.mxu1 }
 0x151   :  { %v354_v30 = vmul.f32 %v296_v22, %v296_v22  ;;  %v341_v31 = vadd.f32 %v309_v23, %v296_v22  ;;  %v355_v32 = vmul.f32 %v309_v23, %v309_v23 }
 0x153   :  { %v342_v33 = vadd.f32 %v341_v31, %v322_v57  ;;  %v358_v35 = vadd.f32 %v355_v32, %v354_v30 }
 0x155   :  { %v343_v39 = vadd.f32 %v342_v33, %v335_v2  ;;  %v359_v40 = vadd.f32 %v358_v35, %v356_v8  ;;  %v339_v35 = vld [vmem:[%s7724_s3] sm:$0xff] }
 0x156   :  { %v337_v61 = vpop.f32.mrf.mxu3 }
 0x157   :  { %344 = vadd.xlane.f32.xlu2 %v343_v39  ;;  %v360_v41 = vadd.f32 %v359_v40, %v357_v34 }
 0x158   :  { %v298_v43 = vpop.f32.mrf.mxu0  ;;  %v311_v44 = vpop.f32.mrf.mxu1 }
 0x159   :  { %361 = vadd.xlane.f32.xlu0 %v360_v41  ;;  %v340_v43 = vld [vmem:[%s7725_s4] sm:$0xff] }
 0x1ca   :  { %v345_v9 = vpop.xlane.xlu2 %344 }
 0x1cb   :  { %v353_v0 = vmul.f32 %v4957_v5, %v345_v9 }
 0x1cc   :  { %v362_v53 = vpop.xlane.xlu0 %361 }
 0x1cd   :  { %v364_v13 = vmul.f32 %v353_v0, %v353_v0  ;;  %v363_v16 = vmul.f32 %v362_v53, %v4957_v5 }
 0x1cf   :  { %v365_v19 = vsub.f32 %v363_v16, %v364_v13 }
 0x1d1   :  { %v366_v8 = vadd.f32 1e-05, %v365_v19 }
 0x1d3   :  { %4336 = vrsqrt.f32 %v366_v8  ;;  %vm373_vm12 = vweird.f32 %v366_v8 }
 0x1d9   :  { %v4337_v30 = vpop.eup %4336 }
 0x1da   :  { %v368_v31 = vmul.f32 %v4337_v30, %v366_v8  ;;  %vm374_vm11 = vweird.f32 %v4337_v30  ;;  %v105_v8 = vld [vmem:[%s7721_s0 + $0x50] sm:$0xff] }
 0x1db   :  { %vm375_vm13 = vmor %vm373_vm12, %vm374_vm11 }
 0x1dc   :  { %v369_v32 = vmul.f32 %v4337_v30, %v368_v31 }
 0x1de   :  { %v370_v33 = vmul.f32 0.5, %v369_v32 }
 0x1e0   :  { %v371_v34 = vsub.f32 1.5, %v370_v33 }
 0x1e2   :  { %v372_v39 = vmul.f32 %v4337_v30, %v371_v34 }
 0x1e4   :  { %v376_v40 = vsel %vm375_vm13, %v4337_v30, %v372_v39  ;;  %v103_v39 = vld [vmem:[%s7721_s0 + $0x40] sm:$0xff] }
 0x1e5   :  { %v377_v61 = vmul.f32 %v376_v40, %v339_v35 }
 0x1e7   :  { %382 = vperm.xlu1 %4331, %v377_v61   ;;  %v378_v41 = vmul.f32 %v377_v61, %v353_v0  ;;  %v104_v0 = vld [vmem:[%s7721_s0 + $0x48] sm:$0xff] }
 0x1e9   :  { %v379_v44 = vsub.f32 %v340_v43, %v378_v41 }
 0x1ef   :  { %391 = vperm.xlu1 %4331, %v379_v44  }
 0x259   :  { %v383_v4 = vpop.permute.xlu1 %382 }
 0x25a   :  { %v386_v51 = vmul.f32 %v383_v4, %v309_v23  ;;  %v387_v1 = vmul.f32 %v383_v4, %v322_v57  ;;  %v388_v3 = vmul.f32 %v383_v4, %v335_v2  ;;  %v385_v56 = vmul.f32 %v383_v4, %v296_v22  ;;  %v106_v57 = vld [vmem:[%s7721_s0 + $0x58] sm:$0xff] }
 0x261   :  { %v392_v55 = vpop.permute.xlu1 %391 }
 0x262   :  { %v395_v60 = vadd.f32 %v392_v55, %v386_v51  ;;  %v396_v9 = vadd.f32 %v392_v55, %v387_v1  ;;  %v397_v53 = vadd.f32 %v392_v55, %v388_v3  ;;  %v394_v13 = vadd.f32 %v392_v55, %v385_v56 }
 0x264   :  { %v399_v16 = vmul.f32 0.01, %v395_v60  ;;  %v400_v19 = vmul.f32 0.01, %v396_v9  ;;  %v401_v30 = vmul.f32 0.01, %v397_v53 }
 0x265   :  { %v398_v31 = vmul.f32 0.01, %v394_v13 }
 0x266   :  { %v4976_v2 = vmax.f32 %v395_v60, %v399_v16  ;;  %v4978_v22 = vmax.f32 %v396_v9, %v400_v19  ;;  %v4980_v23 = vmax.f32 %v397_v53, %v401_v30 }
 0x267   :  { %v4997_v35 = vmax.f32 %v394_v13, %v398_v31 }
 0x268   :  { %v4983_v32 = vadd.f32 %v4976_v2, %v104_v0  ;;  %v4986_v33 = vadd.f32 %v4978_v22, %v105_v8  ;;  %v4989_v34 = vadd.f32 %v4980_v23, %v106_v57 }
 0x269   :  { %v5003_v40 = vadd.f32 %v4997_v35, %v103_v39 }
 0x26a   :  { %526 = vrot.lane.b32.xlu1 %v4986_v33, %s4600_s28  ;;  %524 = vrot.lane.b32.xlu2 %v4983_v32, %s4600_s28 }
 0x26b   :  { %496 = vrot.lane.b32.xlu0 %v4989_v34, %s4599_s1 }
 0x272   :  { %528 = vrot.lane.b32.xlu1 %v4989_v34, %s4600_s28  ;;  %490 = vrot.lane.b32.xlu2 %v5003_v40, %s4599_s1 }
 0x273   :  { %506 = vrot.lane.b32.xlu0 %v5003_v40, %s4601_s14 }
 0x27a   :  { %480 = vrot.lane.b32.xlu2 %v4989_v34, %s4602_s15  ;;  %522 = vrot.lane.b32.xlu1 %v5003_v40, %s4600_s28 }
 0x27b   :  { %492 = vrot.lane.b32.xlu0 %v4983_v32, %s4599_s1 }
 0x282   :  { %474 = vrot.lane.b32.xlu2 %v5003_v40, %s4602_s15  ;;  %494 = vrot.lane.b32.xlu1 %v4986_v33, %s4599_s1 }
 0x283   :  { %444 = vrot.lane.b32.xlu0 %v4983_v32, %s4603_s16 }
 0x28a   :  { %460 = vrot.lane.b32.xlu2 %v4983_v32, %s4604_s17  ;;  %510 = vrot.lane.b32.xlu1 %v4986_v33, %s4601_s14 }
 0x28b   :  { %462 = vrot.lane.b32.xlu0 %v4986_v33, %s4604_s17 }
 0x292   :  { %448 = vrot.lane.b32.xlu2 %v4989_v34, %s4603_s16  ;;  %512 = vrot.lane.b32.xlu1 %v4989_v34, %s4601_s14 }
 0x293   :  { %464 = vrot.lane.b32.xlu0 %v4989_v34, %s4604_s17 }
 0x29a   :  { %414 = vrot.lane.b32.xlu2 %v4986_v33, %s4605_s18  ;;  %478 = vrot.lane.b32.xlu1 %v4986_v33, %s4602_s15 }
 0x29b   :  { %428 = vrot.lane.b32.xlu0 %v4983_v32, %s4606_s19 }
 0x2a2   :  { %442 = vrot.lane.b32.xlu2 %v5003_v40, %s4603_s16  ;;  %508 = vrot.lane.b32.xlu1 %v4983_v32, %s4601_s14 }
 0x2a3   :  { %458 = vrot.lane.b32.xlu0 %v5003_v40, %s4604_s17 }
 0x2aa   :  { %432 = vrot.lane.b32.xlu2 %v4989_v34, %s4606_s19  ;;  %446 = vrot.lane.b32.xlu1 %v4986_v33, %s4603_s16 }
 0x2ab   :  { %410 = vrot.lane.b32.xlu0 %v5003_v40, %s4605_s18 }
 0x2b2   :  { %476 = vrot.lane.b32.xlu1 %v4983_v32, %s4602_s15 }
 0x2ba   :  { %412 = vrot.lane.b32.xlu1 %v4983_v32, %s4605_s18 }
 0x2c2   :  { %430 = vrot.lane.b32.xlu1 %v4986_v33, %s4606_s19 }
 0x2c4   :  { %v525_v61 = vpop.permute.xlu2 %524 }
 0x2ca   :  { %416 = vrot.lane.b32.xlu1 %v4989_v34, %s4605_s18 }
 0x2cc   :  { %v491_v9 = vpop.permute.xlu2 %490 }
 0x2d2   :  { %426 = vrot.lane.b32.xlu1 %v5003_v40, %s4606_s19 }
 0x2dc   :  { %v527_v41 = vpop.permute.xlu1 %526 }
 0x2dd   :  { %v497_v43 = vpop.permute.xlu0 %496  ;;  %v531_v44 = vsel %vm240_vm0, %v525_v61, %v527_v41 }
 0x2de   :  { %v535_v4 = vmul.f32 %v531_v44, %v4773_v15 }
 0x2e0   :  { %v555_v51 = vpack.c.bf16 %v535_v4, %v535_v4 }
 0x2e2   :  { %v567_v1 = vsel %vm274_vm1, %v555_v51, 0 }
 0x2e3   :  { %591 = vmatpush.bf16.msrb.mxu1 %v567_v1 }
 0x2e4   :  { %v529_v3 = vpop.permute.xlu1 %528 }
 0x2e5   :  { %v530_v55 = vsel %vm240_vm0, %v527_v41, %v529_v3  ;;  %v507_v56 = vpop.permute.xlu0 %506 }
 0x2e6   :  { %v536_v60 = vmul.f32 %v530_v55, %v4767_v11  ;;  %v481_v11 = vpop.permute.xlu2 %480 }
 0x2e8   :  { %v556_v53 = vpack.c.bf16 %v536_v60, %v536_v60 }
 0x2ea   :  { %v570_v13 = vsel %vm274_vm1, %v556_v53, 0 }
 0x2eb   :  { %604 = vmatpush.bf16.msrb.mxu2 %v570_v13 }
 0x2ec   :  { %v523_v16 = vpop.permute.xlu1 %522 }
 0x2ed   :  { %v532_v15 = vsel %vm240_vm0, %v523_v16, %v525_v61  ;;  %v533_v19 = vsel %vm240_vm0, %v529_v3, %v523_v16  ;;  %v493_v30 = vpop.permute.xlu0 %492 }
 0x2ee   :  { %v534_v0 = vmul.f32 %v532_v15, %v4771_v14  ;;  %v537_v8 = vmul.f32 %v533_v19, %v4769_v12  ;;  %v5081_v61 = vpop.permute.xlu2 %474  ;;  %v501_v14 = vsel %vm206_vm2, %v497_v43, %v491_v9 }
 0x2ef   :  { %v485_v55 = vsel %vm189_vm4, %v481_v11, %v5081_v61  ;;  %v505_v19 = vmul.f32 %v501_v14, %v4810_v46 }
 0x2f0   :  { %v554_v57 = vpack.c.bf16 %v534_v0, %v534_v0  ;;  %v557_v31 = vpack.c.bf16 %v537_v8, %v537_v8 }
 0x2f2   :  { %v564_v39 = vsel %vm274_vm1, %v554_v57, 0  ;;  %v573_v41 = vsel %vm274_vm1, %v557_v31, 0  ;;  %v489_v57 = vmul.f32 %v485_v55, %v4814_v48 }
 0x2f3   :  { %578 = vmatpush.bf16.msrb.mxu0 %v564_v39  ;;  %617 = vmatpush.bf16.msrb.mxu3 %v573_v41 }
 0x2f4   :  { %v495_v44 = vpop.permute.xlu1 %494  ;;  %v549_v39 = vpack.c.bf16 %v489_v57, %v4989_v34 }
 0x2f5   :  { %v5079_v4 = vpop.permute.xlu0 %444  ;;  %v498_v12 = vsel %vm206_vm2, %v495_v44, %v497_v43  ;;  %v499_v48 = vsel %vm206_vm2, %v493_v30, %v495_v44 }
 0x2f6   :  { %v461_v13 = vpop.permute.xlu2 %460  ;;  %v504_v16 = vmul.f32 %v498_v12, %v4796_v36 }
 0x2fc   :  { %v511_v51 = vpop.permute.xlu1 %510 }
 0x2fd   :  { %v463_v1 = vpop.permute.xlu0 %462 }
 0x2fe   :  { %v467_v44 = vsel %vm172_vm6, %v461_v13, %v463_v1 }
 0x304   :  { %v513_v3 = vpop.permute.xlu1 %512 }
 0x305   :  { %v514_v60 = vsel %vm223_vm3, %v511_v51, %v513_v3  ;;  %v517_v53 = vsel %vm223_vm3, %v513_v3, %v507_v56  ;;  %v465_v3 = vpop.permute.xlu0 %464 }
 0x306   :  { %v520_v15 = vmul.f32 %v514_v60, %v4798_v37  ;;  %v521_v43 = vmul.f32 %v517_v53, %v4812_v47  ;;  %v449_v37 = vpop.permute.xlu2 %448  ;;  %v500_v47 = vsel %vm206_vm2, %v491_v9, %v493_v30 }
 0x307   :  { %v502_v12 = vmul.f32 %v500_v47, %v4830_v62 }
 0x308   :  { %v552_v0 = vpack.c.bf16 %v520_v15, %v504_v16  ;;  %v553_v8 = vpack.c.bf16 %v521_v43, %v505_v19 }
 0x30a   :  { %605 = vmatpush.bf16.msrb.mxu2 %v552_v0  ;;  %618 = vmatpush.bf16.msrb.mxu3 %v553_v8 }
 0x30c   :  { %v479_v31 = vpop.permute.xlu1 %478 }
 0x30d   :  { %v482_v41 = vsel %vm189_vm4, %v479_v31, %v481_v11  ;;  %v5116_v60 = vpop.permute.xlu0 %428 }
 0x30e   :  { %619 = vmatpush.bf16.msrb.mxu3 %v549_v39  ;;  %v488_v36 = vmul.f32 %v482_v41, %v4816_v50  ;;  %v415_v30 = vpop.permute.xlu2 %414 }
 0x310   :  { %v548_v46 = vpack.c.bf16 %v488_v36, %v4986_v33  ;;  %v503_v33 = vmul.f32 %v499_v48, %v4832_v63 }
 0x312   :  { %606 = vmatpush.bf16.msrb.mxu2 %v548_v46 }
 0x314   :  { %v509_v14 = vpop.permute.xlu1 %508 }
 0x315   :  { %v515_v34 = vsel %vm223_vm3, %v509_v14, %v511_v51  ;;  %v516_v11 = vsel %vm223_vm3, %v507_v56, %v509_v14  ;;  %v466_v56 = vsel %vm172_vm6, %v463_v1, %v465_v3  ;;  %v472_v51 = vmul.f32 %v467_v44, %v4858_v26  ;;  %v459_v0 = vpop.permute.xlu0 %458 }
 0x316   :  { %v518_v50 = vmul.f32 %v516_v11, %v4834_v6  ;;  %v519_v55 = vmul.f32 %v515_v34, %v4836_v7  ;;  %v473_v15 = vmul.f32 %v466_v56, %v4881_v49  ;;  %v443_v1 = vpop.permute.xlu2 %442  ;;  %v468_v57 = vsel %vm172_vm6, %v459_v0, %v461_v13 }
 0x317   :  { %v469_v39 = vsel %vm172_vm6, %v465_v3, %v459_v0  ;;  %v452_v41 = vsel %vm155_vm5, %v443_v1, %v5079_v4  ;;  %v453_v13 = vsel %vm155_vm5, %v449_v37, %v443_v1  ;;  %v471_v46 = vmul.f32 %v468_v57, %v4912_v21 }
 0x318   :  { %v550_v9 = vpack.c.bf16 %v518_v50, %v502_v12  ;;  %v551_v53 = vpack.c.bf16 %v519_v55, %v503_v33 }
 0x31a   :  { %579 = vmatpush.bf16.msrb.mxu0 %v550_v9  ;;  %592 = vmatpush.bf16.msrb.mxu1 %v551_v53 }
 0x31c   :  { %v447_v62 = vpop.permute.xlu1 %446 }
 0x31d   :  { %v450_v6 = vsel %vm155_vm5, %v447_v62, %v449_v37  ;;  %v451_v63 = vsel %vm155_vm5, %v5079_v4, %v447_v62  ;;  %v411_v55 = vpop.permute.xlu0 %410 }
 0x31e   :  { %v456_v7 = vmul.f32 %v451_v63, %v4856_v25  ;;  %v457_v16 = vmul.f32 %v450_v6, %v4879_v42  ;;  %v433_v34 = vpop.permute.xlu2 %432 }
 0x320   :  { %v544_v19 = vpack.c.bf16 %v472_v51, %v456_v7  ;;  %v545_v43 = vpack.c.bf16 %v473_v15, %v457_v16 }
 0x322   :  { %607 = vmatpush.bf16.msrb.mxu2 %v544_v19  ;;  %620 = vmatpush.bf16.msrb.mxu3 %v545_v43 }
 0x324   :  { %v477_v8 = vpop.permute.xlu1 %476 }
 0x325   :  { %v483_v25 = vsel %vm189_vm4, %v477_v8, %v479_v31  ;;  %v484_v26 = vsel %vm189_vm4, %v5081_v61, %v477_v8  ;;  %v470_v31 = vmul.f32 %v469_v39, %v4910_v20 }
 0x326   :  { %v486_v42 = vmul.f32 %v484_v26, %v4860_v28  ;;  %v487_v49 = vmul.f32 %v483_v25, %v4862_v29  ;;  %v454_v28 = vmul.f32 %v453_v13, %v4901_v17  ;;  %v455_v29 = vmul.f32 %v452_v41, %v4903_v18  ;;  %v4165_v18 = vld [vmem:[%s7723_s2 + $0x4] sm:$0xf] }
 0x328   :  { %v546_v3 = vpack.c.bf16 %v486_v42, %v5003_v40  ;;  %v547_v36 = vpack.c.bf16 %v487_v49, %v4983_v32  ;;  %v542_v47 = vpack.c.bf16 %v470_v31, %v454_v28  ;;  %v543_v4 = vpack.c.bf16 %v471_v46, %v455_v29 }
 0x32a   :  { %580 = vmatpush.bf16.msrb.mxu0 %v546_v3  ;;  %593 = vmatpush.bf16.msrb.mxu1 %v547_v36 }
 0x32c   :  { %v413_v61 = vpop.permute.xlu1 %412 }
 0x32d   :  { %v419_v40 = vsel %vm121_vm7, %v413_v61, %v415_v30  ;;  %v420_v9 = vsel %vm121_vm7, %v411_v55, %v413_v61 }
 0x32e   :  { %581 = vmatpush.bf16.msrb.mxu0 %v542_v47  ;;  %594 = vmatpush.bf16.msrb.mxu1 %v543_v4  ;;  %v424_v48 = vmul.f32 %v419_v40, %v4891_v58  ;;  %v423_v62 = vmul.f32 %v420_v9, %v4936_v38  ;;  %v4170_v40 = vld [vmem:[%s7724_s3 + $0x8] sm:$0xff] }
 0x334   :  { %v431_v37 = vpop.permute.xlu1 %430 }
 0x335   :  { %v435_v32 = vsel %vm138_vm8, %v5116_v60, %v431_v37  ;;  %v434_v11 = vsel %vm138_vm8, %v431_v37, %v433_v34 }
 0x336   :  { %v440_v14 = vmul.f32 %v435_v32, %v4893_v59  ;;  %v441_v59 = vmul.f32 %v434_v11, %v4918_v27 }
 0x338   :  { %v540_v17 = vpack.c.bf16 %v440_v14, %v424_v48 }
 0x33a   :  { %608 = vmatpush.bf16.msrb.mxu2 %v540_v17  ;;  %v4171_v17 = vld [vmem:[%s7725_s4 + $0x8] sm:$0xff] }
 0x33c   :  { %v417_v12 = vpop.permute.xlu1 %416 }
 0x33d   :  { %v418_v50 = vsel %vm121_vm7, %v415_v30, %v417_v12  ;;  %4168 = vmatmul.msk.bf16.vlgmr.msrb.gmra.mxu2 %vm7755_vm9, %v4165_v18  ;;  %v421_v53 = vsel %vm121_vm7, %v417_v12, %v411_v55 }
 0x33e   :  { %v425_v58 = vmul.f32 %v418_v50, %v4916_v24  ;;  %v422_v24 = vmul.f32 %v421_v53, %v4934_v45 }
 0x340   :  { %v541_v33 = vpack.c.bf16 %v441_v59, %v425_v58 }
 0x342   :  { %621 = vmatpush.bf16.msrb.mxu3 %v541_v33 }
 0x344   :  { %v427_v44 = vpop.permute.xlu1 %426 }
 0x345   :  { %v436_v30 = vsel %vm138_vm8, %v427_v44, %v5116_v60  ;;  %v437_v56 = vsel %vm138_vm8, %v433_v34, %v427_v44  ;;  %4169 = vmatmul.msk.bf16.vlgmr.msrb.gmra.mxu3 %vm7755_vm9, %v4165_v18 }
 0x346   :  { %v438_v27 = vmul.f32 %v437_v56, %v4938_v52  ;;  %v439_v6 = vmul.f32 %v436_v30, %v4940_v54  ;;  %v108_v56 = vld [vmem:[%s7721_s0 + $0x68] sm:$0xff] }
 0x348   :  { %v538_v63 = vpack.c.bf16 %v438_v27, %v422_v24  ;;  %v539_v7 = vpack.c.bf16 %v439_v6, %v423_v62  ;;  %v109_v24 = vld [vmem:[%s7721_s0 + $0x70] sm:$0xff] }
 0x34a   :  { %582 = vmatpush.bf16.msrb.mxu0 %v538_v63  ;;  %595 = vmatpush.bf16.msrb.mxu1 %v539_v7 }
 0x34d   :  { %4166 = vmatmul.msk.bf16.vlgmr.msrb.gmra.mxu0 %vm7755_vm9, %v4165_v18  ;;  %4167 = vmatmul.msk.bf16.vlgmr.msrb.gmra.mxu1 %vm7755_vm9, %v4165_v18 }
 0x3c0   :  { %v610_v60 = vpop.f32.mrf.mxu2 }
 0x3c1   :  { %v639_v45 = vmul.f32 %v610_v60, %v610_v60 }
 0x3c8   :  { %v623_v51 = vpop.f32.mrf.mxu3  ;;  %v612_v16 = vpop.f32.mrf.mxu2 }
 0x3c9   :  { %v640_v1 = vmul.f32 %v623_v51, %v623_v51 }
 0x3ca   :  { %v584_v15 = vpop.f32.mrf.mxu0  ;;  %v597_v19 = vpop.f32.mrf.mxu1 }
 0x3cb   :  { %v637_v43 = vmul.f32 %v584_v15, %v584_v15  ;;  %v631_v52 = vadd.f32 %v597_v19, %v584_v15  ;;  %v638_v0 = vmul.f32 %v597_v19, %v597_v19 }
 0x3cd   :  { %v632_v38 = vadd.f32 %v631_v52, %v610_v60  ;;  %v641_v54 = vadd.f32 %v638_v0, %v637_v43 }
 0x3cf   :  { %v633_v8 = vadd.f32 %v632_v38, %v623_v51  ;;  %v642_v57 = vadd.f32 %v641_v54, %v639_v45  ;;  %v5294_v54 = vld [vmem:[#allocation2 + $0x108] sm:$0xff] }
 0x3d0   :  { %v625_v39 = vpop.f32.mrf.mxu3 }
 0x3d1   :  { %634 = vadd.xlane.f32.xlu2 %v633_v8  ;;  %v643_v25 = vadd.f32 %v642_v57, %v640_v1 }
 0x3d2   :  { %v586_v26 = vpop.f32.mrf.mxu0  ;;  %v599_v42 = vpop.f32.mrf.mxu1 }
 0x3d3   :  { %644 = vadd.xlane.f32.xlu0 %v643_v25  ;;  %v5300_v42 = vld [vmem:[#allocation2 + $0x110] sm:$0xff] }
 0x444   :  { %v635_v49 = vpop.xlane.xlu2 %634 }
 0x445   :  { %v636_v41 = vmul.f32 %v635_v49, %v4957_v5 }
 0x446   :  { %v645_v13 = vpop.xlane.xlu0 %644 }
 0x447   :  { %v647_v3 = vmul.f32 %v636_v41, %v636_v41  ;;  %v646_v36 = vmul.f32 %v645_v13, %v4957_v5 }
 0x449   :  { %v648_v31 = vsub.f32 %v646_v36, %v647_v3 }
 0x44b   :  { %v649_v46 = vadd.f32 1e-05, %v648_v31 }
 0x44d   :  { %4338 = vrsqrt.f32 %v649_v46  ;;  %vm656_vm15 = vweird.f32 %v649_v46 }
 0x453   :  { %v4339_v28 = vpop.eup %4338 }
 0x454   :  { %v651_v29 = vmul.f32 %v4339_v28, %v649_v46  ;;  %vm657_vm14 = vweird.f32 %v4339_v28 }
 0x455   :  { %vm658_vm10 = vmor %vm656_vm15, %vm657_vm14  ;;  %vm994_vm14 = vcmask 261120  }
 0x456   :  { %v652_v61 = vmul.f32 %v4339_v28, %v651_v29  ;;  %v5308_v29 = vld [vmem:[#allocation2 + $0x100] sm:$0xff] }
 0x458   :  { %v653_v47 = vmul.f32 0.5, %v652_v61 }
 0x45a   :  { %v654_v4 = vsub.f32 1.5, %v653_v47  ;;  %v5311_v47 = vld [vmem:[#allocation2 + $0x118] sm:$0xff] }
 0x45c   :  { %v655_v37 = vmul.f32 %v4339_v28, %v654_v4 }
 0x45e   :  { %v659_v32 = vsel %vm658_vm10, %v4339_v28, %v655_v37 }
 0x45f   :  { %v660_v48 = vmul.f32 %v4170_v40, %v659_v32 }
 0x461   :  { %665 = vperm.xlu1 %4331, %v660_v48   ;;  %v661_v14 = vmul.f32 %v660_v48, %v636_v41 }
 0x463   :  { %v662_v34 = vsub.f32 %v4171_v17, %v661_v14 }
 0x469   :  { %674 = vperm.xlu1 %4331, %v662_v34  }
 0x4d3   :  { %v666_v18 = vpop.permute.xlu1 %665 }
 0x4d4   :  { %v669_v11 = vmul.f32 %v666_v18, %v597_v19  ;;  %v670_v12 = vmul.f32 %v666_v18, %v610_v60  ;;  %v668_v58 = vmul.f32 %v666_v18, %v584_v15  ;;  %v671_v59 = vmul.f32 %v666_v18, %v623_v51  ;;  %v107_v15 = vld [vmem:[%s7721_s0 + $0x60] sm:$0xff]  ;;  %v110_v19 = vld [vmem:[%s7721_s0 + $0x78] sm:$0xff] }
 0x4db   :  { %v675_v50 = vpop.permute.xlu1 %674 }
 0x4dc   :  { %v678_v33 = vadd.f32 %v675_v50, %v669_v11  ;;  %v679_v55 = vadd.f32 %v675_v50, %v670_v12  ;;  %v677_v9 = vadd.f32 %v675_v50, %v668_v58  ;;  %v680_v53 = vadd.f32 %v675_v50, %v671_v59 }
 0x4de   :  { %v682_v44 = vmul.f32 0.01, %v678_v33  ;;  %v683_v30 = vmul.f32 0.01, %v679_v55  ;;  %v681_v6 = vmul.f32 0.01, %v677_v9 }
 0x4df   :  { %v684_v63 = vmul.f32 0.01, %v680_v53 }
 0x4e0   :  { %v5200_v27 = vmax.f32 %v678_v33, %v682_v44  ;;  %v5202_v62 = vmax.f32 %v679_v55, %v683_v30  ;;  %v5216_v51 = vmax.f32 %v677_v9, %v681_v6  ;;  %v5334_v30 = vld [vmem:[#allocation2 + $0xd0] sm:$0xff] }
 0x4e1   :  { %v5218_v16 = vmax.f32 %v680_v53, %v684_v63  ;;  %v5340_v63 = vld [vmem:[#allocation2 + $0xf0] sm:$0xff] }
 0x4e2   :  { %v5205_v7 = vadd.f32 %v5200_v27, %v108_v56  ;;  %v5208_v60 = vadd.f32 %v5202_v62, %v109_v24  ;;  %v5227_v45 = vadd.f32 %v5216_v51, %v107_v15  ;;  %v5337_v24 = vld [vmem:[#allocation2 + $0xd8] sm:$0xff] }
 0x4e3   :  { %v5230_v43 = vadd.f32 %v5218_v16, %v110_v19  ;;  %v5343_v19 = vld [vmem:[#allocation2 + $0xf8] sm:$0xff] }
 0x4e4   :  { %777 = vrot.lane.b32.xlu0 %v5208_v60, %s4599_s1  ;;  %809 = vrot.lane.b32.xlu1 %v5208_v60, %s4600_s28 }
 0x4e5   :  { %807 = vrot.lane.b32.xlu2 %v5205_v7, %s4600_s28 }
 0x4ec   :  { %811 = vrot.lane.b32.xlu1 %v5230_v43, %s4600_s28  ;;  %789 = vrot.lane.b32.xlu0 %v5227_v45, %s4601_s14 }
 0x4ed   :  { %773 = vrot.lane.b32.xlu2 %v5227_v45, %s4599_s1 }
 0x4f4   :  { %775 = vrot.lane.b32.xlu0 %v5205_v7, %s4599_s1  ;;  %805 = vrot.lane.b32.xlu1 %v5227_v45, %s4600_s28 }
 0x4f5   :  { %763 = vrot.lane.b32.xlu2 %v5230_v43, %s4602_s15 }
 0x4fc   :  { %727 = vrot.lane.b32.xlu0 %v5205_v7, %s4603_s16  ;;  %779 = vrot.lane.b32.xlu1 %v5230_v43, %s4599_s1 }
 0x4fd   :  { %757 = vrot.lane.b32.xlu2 %v5227_v45, %s4602_s15 }
 0x504   :  { %745 = vrot.lane.b32.xlu0 %v5208_v60, %s4604_s17  ;;  %793 = vrot.lane.b32.xlu1 %v5208_v60, %s4601_s14 }
 0x505   :  { %743 = vrot.lane.b32.xlu2 %v5205_v7, %s4604_s17 }
 0x50c   :  { %747 = vrot.lane.b32.xlu0 %v5230_v43, %s4604_s17  ;;  %795 = vrot.lane.b32.xlu1 %v5230_v43, %s4601_s14 }
 0x50d   :  { %731 = vrot.lane.b32.xlu2 %v5230_v43, %s4603_s16 }
 0x514   :  { %711 = vrot.lane.b32.xlu0 %v5205_v7, %s4606_s19  ;;  %761 = vrot.lane.b32.xlu1 %v5208_v60, %s4602_s15 }
 0x515   :  { %697 = vrot.lane.b32.xlu2 %v5208_v60, %s4605_s18 }
 0x51c   :  { %741 = vrot.lane.b32.xlu0 %v5227_v45, %s4604_s17  ;;  %791 = vrot.lane.b32.xlu1 %v5205_v7, %s4601_s14 }
 0x51d   :  { %725 = vrot.lane.b32.xlu2 %v5227_v45, %s4603_s16 }
 0x524   :  { %693 = vrot.lane.b32.xlu0 %v5227_v45, %s4605_s18  ;;  %729 = vrot.lane.b32.xlu1 %v5208_v60, %s4603_s16 }
 0x525   :  { %715 = vrot.lane.b32.xlu2 %v5230_v43, %s4606_s19 }
 0x52c   :  { %759 = vrot.lane.b32.xlu1 %v5205_v7, %s4602_s15 }
 0x534   :  { %695 = vrot.lane.b32.xlu1 %v5205_v7, %s4605_s18 }
 0x53c   :  { %713 = vrot.lane.b32.xlu1 %v5208_v60, %s4606_s19 }
 0x53f   :  { %v808_v52 = vpop.permute.xlu2 %807 }
 0x544   :  { %699 = vrot.lane.b32.xlu1 %v5230_v43, %s4605_s18 }
 0x547   :  { %v774_v13 = vpop.permute.xlu2 %773 }
 0x54c   :  { %709 = vrot.lane.b32.xlu1 %v5227_v45, %s4606_s19 }
 0x54f   :  { %v764_v48 = vpop.permute.xlu2 %763 }
 0x556   :  { %v5290_v0 = vpop.permute.xlu0 %777  ;;  %v810_v38 = vpop.permute.xlu1 %809 }
 0x557   :  { %v814_v1 = vsel %vm240_vm0, %v808_v52, %v810_v38  ;;  %v5318_v11 = vpop.permute.xlu2 %757 }
 0x558   :  { %v818_v8 = vmul.f32 %v5294_v54, %v814_v1  ;;  %v768_v55 = vsel %vm189_vm4, %v764_v48, %v5318_v11 }
 0x55a   :  { %v838_v57 = vpack.c.bf16 %v818_v8, %v818_v8 }
 0x55c   :  { %v850_v39 = vsel %vm274_vm1, %v838_v57, 0 }
 0x55d   :  { %874 = vmatpush.bf16.msra.mxu1 %v850_v39 }
 0x55e   :  { %v812_v25 = vpop.permute.xlu1 %811  ;;  %v790_v41 = vpop.permute.xlu0 %789 }
 0x55f   :  { %v813_v26 = vsel %vm240_vm0, %v810_v38, %v812_v25  ;;  %v5332_v44 = vpop.permute.xlu2 %743  ;;  %v5346_v38 = vld [vmem:[#allocation2 + $0xb8] sm:$0xff] }
 0x560   :  { %v819_v49 = vmul.f32 %v5300_v42, %v813_v26  ;;  %v772_v1 = vmul.f32 %v5346_v38, %v768_v55 }
 0x562   :  { %v839_v3 = vpack.c.bf16 %v819_v49, %v819_v49 }
 0x564   :  { %v853_v36 = vsel %vm274_vm1, %v839_v3, 0  ;;  %v5352_v3 = vld [vmem:[#allocation2 + $0xb0] sm:$0xff] }
 0x565   :  { %887 = vmatpush.bf16.msra.mxu2 %v853_v36 }
 0x566   :  { %v806_v31 = vpop.permute.xlu1 %805  ;;  %v776_v40 = vpop.permute.xlu0 %775 }
 0x567   :  { %v815_v46 = vsel %vm240_vm0, %v806_v31, %v808_v52  ;;  %v816_v28 = vsel %vm240_vm0, %v812_v25, %v806_v31  ;;  %v832_v25 = vpack.c.bf16 %v772_v1, %v5230_v43  ;;  %v732_v31 = vpop.permute.xlu2 %731  ;;  %v783_v43 = vsel %vm206_vm2, %v774_v13, %v776_v40  ;;  %v5395_v1 = vld [vmem:[#allocation2 + $0x50] sm:$0xff] }
 0x568   :  { %v817_v61 = vmul.f32 %v5308_v29, %v815_v46  ;;  %v820_v4 = vmul.f32 %v5311_v47, %v816_v28  ;;  %v782_v28 = vsel %vm206_vm2, %v776_v40, %v5290_v0 }
 0x56a   :  { %v837_v37 = vpack.c.bf16 %v817_v61, %v817_v61  ;;  %v840_v32 = vpack.c.bf16 %v820_v4, %v820_v4 }
 0x56c   :  { %v847_v14 = vsel %vm274_vm1, %v837_v37, 0  ;;  %v856_v17 = vsel %vm274_vm1, %v840_v32, 0  ;;  %v5365_v32 = vld [vmem:[#allocation2 + $0xc0] sm:$0xff] }
 0x56d   :  { %861 = vmatpush.bf16.msra.mxu0 %v847_v14  ;;  %900 = vmatpush.bf16.msra.mxu3 %v856_v17  ;;  %v5371_v17 = vld [vmem:[#allocation2 + $0xe0] sm:$0xff] }
 0x56e   :  { %v780_v34 = vpop.permute.xlu1 %779  ;;  %v5316_v18 = vpop.permute.xlu0 %727 }
 0x56f   :  { %v781_v50 = vsel %vm206_vm2, %v5290_v0, %v780_v34  ;;  %v784_v58 = vsel %vm206_vm2, %v780_v34, %v774_v13  ;;  %v5374_v13 = vld [vmem:[#allocation2 + $0xe8] sm:$0xff] }
 0x570   :  { %v787_v56 = vmul.f32 %v5334_v30, %v781_v50  ;;  %v788_v6 = vmul.f32 %v5337_v24, %v784_v58  ;;  %v698_v50 = vpop.permute.xlu2 %697 }
 0x576   :  { %v794_v12 = vpop.permute.xlu1 %793  ;;  %v746_v59 = vpop.permute.xlu0 %745 }
 0x577   :  { %v750_v58 = vsel %vm172_vm6, %v5332_v44, %v746_v59 }
 0x57e   :  { %v796_v33 = vpop.permute.xlu1 %795  ;;  %v748_v49 = vpop.permute.xlu0 %747 }
 0x57f   :  { %v797_v9 = vsel %vm223_vm3, %v794_v12, %v796_v33  ;;  %v800_v53 = vsel %vm223_vm3, %v796_v33, %v790_v41  ;;  %v749_v33 = vsel %vm172_vm6, %v746_v59, %v748_v49 }
 0x580   :  { %v803_v15 = vmul.f32 %v5340_v63, %v797_v9  ;;  %v804_v52 = vmul.f32 %v5343_v19, %v800_v53 }
 0x582   :  { %v835_v8 = vpack.c.bf16 %v803_v15, %v787_v56  ;;  %v836_v57 = vpack.c.bf16 %v804_v52, %v788_v6  ;;  %v5389_v56 = vld [vmem:[#allocation2 + $0x70] sm:$0xff]  ;;  %v5392_v15 = vld [vmem:[#allocation2 + $0x78] sm:$0xff] }
 0x583   :  { %v755_v6 = vmul.f32 %v5389_v56, %v750_v58  ;;  %v756_v52 = vmul.f32 %v5392_v15, %v749_v33  ;;  %v5426_v58 = vld [vmem:[#allocation2 + $0x40] sm:$0xff] }
 0x584   :  { %888 = vmatpush.bf16.msra.mxu2 %v835_v8  ;;  %901 = vmatpush.bf16.msra.mxu3 %v836_v57  ;;  %v5398_v8 = vld [vmem:[#allocation2 + $0x58] sm:$0xff] }
 0x586   :  { %v762_v39 = vpop.permute.xlu1 %761  ;;  %v5377_v34 = vpop.permute.xlu0 %711 }
 0x587   :  { %v765_v26 = vsel %vm189_vm4, %v762_v39, %v764_v48  ;;  %v785_v48 = vmul.f32 %v5365_v32, %v783_v43 }
 0x588   :  { %v771_v36 = vmul.f32 %v5352_v3, %v765_v26  ;;  %902 = vmatpush.bf16.msra.mxu3 %v832_v25 }
 0x58a   :  { %v831_v46 = vpack.c.bf16 %v771_v36, %v5208_v60  ;;  %v5368_v60 = vld [vmem:[#allocation2 + $0xc8] sm:$0xff] }
 0x58b   :  { %v786_v14 = vmul.f32 %v5368_v60, %v782_v28 }
 0x58c   :  { %889 = vmatpush.bf16.msra.mxu2 %v831_v46  ;;  %v726_v46 = vpop.permute.xlu2 %725 }
 0x58e   :  { %v792_v61 = vpop.permute.xlu1 %791  ;;  %v742_v36 = vpop.permute.xlu0 %741 }
 0x58f   :  { %v798_v4 = vsel %vm223_vm3, %v792_v61, %v794_v12  ;;  %v799_v37 = vsel %vm223_vm3, %v790_v41, %v792_v61  ;;  %v751_v43 = vsel %vm172_vm6, %v742_v36, %v5332_v44  ;;  %v752_v61 = vsel %vm172_vm6, %v748_v49, %v742_v36 }
 0x590   :  { %v801_v0 = vmul.f32 %v5371_v17, %v799_v37  ;;  %v802_v40 = vmul.f32 %v5374_v13, %v798_v4  ;;  %v735_v44 = vsel %vm155_vm5, %v726_v46, %v5316_v18  ;;  %v736_v49 = vsel %vm155_vm5, %v732_v31, %v726_v46 }
 0x591   :  { %v737_v33 = vmul.f32 %v5426_v58, %v736_v49 }
 0x592   :  { %v833_v12 = vpack.c.bf16 %v801_v0, %v785_v48  ;;  %v834_v41 = vpack.c.bf16 %v802_v40, %v786_v14  ;;  %v5411_v48 = vld [vmem:[#allocation2 + $0xa0] sm:$0xff]  ;;  %v5414_v0 = vld [vmem:[#allocation2 + $0xa8] sm:$0xff] }
 0x594   :  { %862 = vmatpush.bf16.msra.mxu0 %v833_v12  ;;  %875 = vmatpush.bf16.msra.mxu1 %v834_v41  ;;  %v754_v12 = vmul.f32 %v751_v43, %v4912_v21  ;;  %v5451_v43 = vld [vmem:[#allocation2 + $0x38] sm:$0xff] }
 0x596   :  { %v730_v55 = vpop.permute.xlu1 %729 }
 0x597   :  { %v733_v9 = vsel %vm155_vm5, %v730_v55, %v732_v31  ;;  %v734_v53 = vsel %vm155_vm5, %v5316_v18, %v730_v55  ;;  %v5429_v55 = vld [vmem:[#allocation2 + $0x48] sm:$0xff] }
 0x598   :  { %v739_v59 = vmul.f32 %v5395_v1, %v734_v53  ;;  %v740_v57 = vmul.f32 %v5398_v8, %v733_v9  ;;  %v738_v9 = vmul.f32 %v5429_v55, %v735_v44 }
 0x59a   :  { %v827_v25 = vpack.c.bf16 %v755_v6, %v739_v59  ;;  %v828_v26 = vpack.c.bf16 %v756_v52, %v740_v57  ;;  %v826_v53 = vpack.c.bf16 %v754_v12, %v738_v9  ;;  %v5440_v52 = vld [vmem:[#allocation2 + $0x30] sm:$0xff] }
 0x59c   :  { %890 = vmatpush.bf16.msra.mxu2 %v827_v25  ;;  %903 = vmatpush.bf16.msra.mxu3 %v828_v26  ;;  %v716_v25 = vpop.permute.xlu2 %715  ;;  %v4172_v26 = vld [vmem:[%s7723_s2 + $0x8] sm:$0xf] }
 0x59e   :  { %v760_v28 = vpop.permute.xlu1 %759 }
 0x59f   :  { %v766_v4 = vsel %vm189_vm4, %v760_v28, %v762_v39  ;;  %v767_v37 = vsel %vm189_vm4, %v5318_v11, %v760_v28  ;;  %v753_v39 = vmul.f32 %v752_v61, %v4910_v20 }
 0x5a0   :  { %v769_v14 = vmul.f32 %v5411_v48, %v767_v37  ;;  %v770_v40 = vmul.f32 %v5414_v0, %v766_v4  ;;  %v5454_v4 = vld [vmem:[#allocation2 + $0x18] sm:$0xff] }
 0x5a1   :  { %v825_v31 = vpack.c.bf16 %v753_v39, %v737_v33  ;;  %v5470_v33 = vld [vmem:[#allocation2] sm:$0xff] }
 0x5a2   :  { %v829_v11 = vpack.c.bf16 %v769_v14, %v5227_v45  ;;  %v830_v41 = vpack.c.bf16 %v770_v40, %v5205_v7  ;;  %v5437_v45 = vld [vmem:[#allocation2 + $0x10] sm:$0xff]  ;;  %v694_v40 = vpop.permute.xlu0 %693 }
 0x5a4   :  { %863 = vmatpush.bf16.msra.mxu0 %v829_v11  ;;  %876 = vmatpush.bf16.msra.mxu1 %v830_v41  ;;  %v5467_v11 = vld [vmem:[#allocation2 + $0x8] sm:$0xff] }
 0x5a6   :  { %v696_v18 = vpop.permute.xlu1 %695 }
 0x5a7   :  { %v702_v20 = vsel %vm121_vm7, %v696_v18, %v698_v50  ;;  %v703_v44 = vsel %vm121_vm7, %v694_v40, %v696_v18  ;;  %v5473_v18 = vld [vmem:[#allocation2 + $0x20] sm:$0xff] }
 0x5a8   :  { %864 = vmatpush.bf16.msra.mxu0 %v825_v31  ;;  %877 = vmatpush.bf16.msra.mxu1 %v826_v53  ;;  %v707_v6 = vmul.f32 %v5437_v45, %v702_v20  ;;  %v706_v41 = vmul.f32 %v5467_v11, %v703_v44  ;;  %v5476_v53 = vld [vmem:[#allocation2 + $0x28] sm:$0xff] }
 0x5a9   :  { %7790 = vst [vmem:[#allocation9_spill] sm:$0xff] %v5476_v53 }
 0x5ae   :  { %v714_v21 = vpop.permute.xlu1 %713 }
 0x5af   :  { %v718_v7 = vsel %vm138_vm8, %v5377_v34, %v714_v21  ;;  %v717_v36 = vsel %vm138_vm8, %v714_v21, %v716_v25 }
 0x5b0   :  { %v723_v59 = vmul.f32 %v5440_v52, %v718_v7  ;;  %v724_v61 = vmul.f32 %v5451_v43, %v717_v36 }
 0x5b2   :  { %v823_v57 = vpack.c.bf16 %v723_v59, %v707_v6 }
 0x5b4   :  { %891 = vmatpush.bf16.msra.mxu2 %v823_v57 }
 0x5b6   :  { %v700_v46 = vpop.permute.xlu1 %699 }
 0x5b7   :  { %v701_v28 = vsel %vm121_vm7, %v698_v50, %v700_v46  ;;  %4175 = vmatmul.msk.bf16.vlgmr.msra.gmra.mxu2 %vm7755_vm9, %v4172_v26  ;;  %v704_v49 = vsel %vm121_vm7, %v700_v46, %v694_v40 }
 0x5b8   :  { %v708_v37 = vmul.f32 %v5454_v4, %v701_v28  ;;  %v705_v9 = vmul.f32 %v5470_v33, %v704_v49 }
 0x5ba   :  { %v824_v14 = vpack.c.bf16 %v724_v61, %v708_v37 }
 0x5bc   :  { %904 = vmatpush.bf16.msra.mxu3 %v824_v14 }
 0x5be   :  { %v710_v50 = vpop.permute.xlu1 %709 }
 0x5bf   :  { %v719_v39 = vsel %vm138_vm8, %v710_v50, %v5377_v34  ;;  %v720_v12 = vsel %vm138_vm8, %v716_v25, %v710_v50  ;;  %4176 = vmatmul.msk.bf16.vlgmr.msra.gmra.mxu3 %vm7755_vm9, %v4172_v26 }
 0x5c0   :  { %v721_v31 = vmul.f32 %v5473_v18, %v720_v12  ;;  %v722_v34 = vmul.f32 %v5476_v53, %v719_v39 }
 0x5c2   :  { %v821_v20 = vpack.c.bf16 %v721_v31, %v705_v9  ;;  %v822_v21 = vpack.c.bf16 %v722_v34, %v706_v41 }
 0x5c4   :  { %865 = vmatpush.bf16.msra.mxu0 %v821_v20  ;;  %878 = vmatpush.bf16.msra.mxu1 %v822_v21 }
 0x5c7   :  { %4173 = vmatmul.msk.bf16.vlgmr.msra.gmra.mxu0 %vm7755_vm9, %v4172_v26  ;;  %4174 = vmatmul.msk.bf16.vlgmr.msra.gmra.mxu1 %vm7755_vm9, %v4172_v26 }
 0x63a   :  { %v893_v7 = vpop.f32.mrf.mxu2 }
 0x63b   :  { %v922_v36 = vmul.f32 %v893_v7, %v893_v7 }
 0x642   :  { %v906_v6 = vpop.f32.mrf.mxu3  ;;  %v895_v59 = vpop.f32.mrf.mxu2 }
 0x643   :  { %v923_v14 = vmul.f32 %v906_v6, %v906_v6 }
 0x644   :  { %v867_v57 = vpop.f32.mrf.mxu0  ;;  %v880_v25 = vpop.f32.mrf.mxu1 }
 0x645   :  { %v920_v46 = vmul.f32 %v867_v57, %v867_v57  ;;  %v914_v28 = vadd.f32 %v880_v25, %v867_v57  ;;  %v921_v61 = vmul.f32 %v880_v25, %v880_v25 }
 0x647   :  { %v915_v37 = vadd.f32 %v914_v28, %v893_v7  ;;  %v924_v40 = vadd.f32 %v921_v61, %v920_v46 }
 0x649   :  { %v916_v44 = vadd.f32 %v915_v37, %v906_v6  ;;  %v925_v49 = vadd.f32 %v924_v40, %v922_v36 }
 0x64a   :  { %v908_v50 = vpop.f32.mrf.mxu3 }
 0x64b   :  { %917 = vadd.xlane.f32.xlu2 %v916_v44  ;;  %v926_v39 = vadd.f32 %v925_v49, %v923_v14  ;;  %v4177_v14 = vld [vmem:[%s7724_s3 + $0x10] sm:$0xff] }
 0x64c   :  { %v869_v12 = vpop.f32.mrf.mxu0  ;;  %v882_v41 = vpop.f32.mrf.mxu1 }
 0x64d   :  { %927 = vadd.xlane.f32.xlu0 %v926_v39  ;;  %v4178_v39 = vld [vmem:[%s7725_s4 + $0x10] sm:$0xff] }
 0x6be   :  { %v918_v26 = vpop.xlane.xlu2 %917 }
 0x6bf   :  { %v919_v9 = vmul.f32 %v918_v26, %v4957_v5 }
 0x6c0   :  { %v928_v31 = vpop.xlane.xlu0 %927 }
 0x6c1   :  { %v930_v34 = vmul.f32 %v919_v9, %v919_v9  ;;  %v929_v20 = vmul.f32 %v928_v31, %v4957_v5 }
 0x6c3   :  { %v931_v21 = vsub.f32 %v929_v20, %v930_v34 }
 0x6c5   :  { %v932_v59 = vadd.f32 1e-05, %v931_v21 }
 0x6c7   :  { %4340 = vrsqrt.f32 %v932_v59  ;;  %vm939_vm12 = vweird.f32 %v932_v59 }
 0x6cd   :  { %v4341_v28 = vpop.eup %4340 }
 0x6ce   :  { %v934_v46 = vmul.f32 %v4341_v28, %v932_v59  ;;  %vm940_vm11 = vweird.f32 %v4341_v28 }
 0x6cf   :  { %vm941_vm13 = vmor %vm939_vm12, %vm940_vm11 }
 0x6d0   :  { %v935_v61 = vmul.f32 %v4341_v28, %v934_v46 }
 0x6d2   :  { %v936_v36 = vmul.f32 0.5, %v935_v61 }
 0x6d4   :  { %v937_v37 = vsub.f32 1.5, %v936_v36 }
 0x6d6   :  { %v938_v40 = vmul.f32 %v4341_v28, %v937_v37 }
 0x6d8   :  { %v942_v44 = vsel %vm941_vm13, %v4341_v28, %v938_v40 }
 0x6d9   :  { %v943_v49 = vmul.f32 %v4177_v14, %v942_v44 }
 0x6db   :  { %948 = vperm.xlu1 %4331, %v943_v49   ;;  %v944_v50 = vmul.f32 %v943_v49, %v919_v9 }
 0x6dd   :  { %v945_v12 = vsub.f32 %v4178_v39, %v944_v50  ;;  %v96_v39 = vld [vmem:[%s7721_s0 + $0x8] sm:$0xff] }
 0x6e3   :  { %957 = vperm.xlu1 %4331, %v945_v12  }
 0x74d   :  { %v949_v41 = vpop.permute.xlu1 %948 }
 0x74e   :  { %v951_v26 = vmul.f32 %v949_v41, %v867_v57  ;;  %v952_v31 = vmul.f32 %v949_v41, %v880_v25  ;;  %v953_v34 = vmul.f32 %v949_v41, %v893_v7  ;;  %v954_v20 = vmul.f32 %v949_v41, %v906_v6  ;;  %v95_v25 = vld [vmem:[%s7721_s0] sm:$0xff] }
 0x74f   :  { %v4309_v41 = vld [vmem:[%s7726_s5] sm:$0xff] }
 0x755   :  { %v958_v21 = vpop.permute.xlu1 %957 }
 0x756   :  { %v960_v46 = vadd.f32 %v958_v21, %v951_v26  ;;  %v961_v61 = vadd.f32 %v958_v21, %v952_v31  ;;  %v962_v59 = vadd.f32 %v958_v21, %v953_v34  ;;  %v963_v36 = vadd.f32 %v958_v21, %v954_v20 }
 0x758   :  { %v964_v28 = vmul.f32 0.01, %v960_v46  ;;  %v965_v37 = vmul.f32 0.01, %v961_v61  ;;  %v966_v14 = vmul.f32 0.01, %v962_v59 }
 0x759   :  { %v967_v9 = vmul.f32 0.01, %v963_v36 }
 0x75a   :  { %v968_v40 = vmax.f32 %v960_v46, %v964_v28  ;;  %v969_v44 = vmax.f32 %v961_v61, %v965_v37  ;;  %v970_v49 = vmax.f32 %v962_v59, %v966_v14 }
 0x75b   :  { %v971_v53 = vmax.f32 %v963_v36, %v967_v9 }
 0x75c   :  { %v976_v50 = vpack.c.bf16 %v968_v40, %v5216_v51  ;;  %v977_v57 = vpack.c.bf16 %v969_v44, %v5200_v27  ;;  %v978_v7 = vpack.c.bf16 %v970_v49, %v5202_v62  ;;  %v97_v51 = vld [vmem:[%s7721_s0 + $0x10] sm:$0xff]  ;;  %v98_v27 = vld [vmem:[%s7721_s0 + $0x18] sm:$0xff]  ;;  %v972_v62 = vpack.c.bf16 %v4997_v35, %v95_v25 }
 0x75d   :  { %v979_v6 = vpack.c.bf16 %v971_v53, %v5218_v16  ;;  %v973_v16 = vpack.c.bf16 %v4976_v2, %v96_v39  ;;  %v974_v53 = vpack.c.bf16 %v4978_v22, %v97_v51  ;;  %v975_v12 = vpack.c.bf16 %v4980_v23, %v98_v27 }
 0x75e   :  { %1007 = vmatpush.bf16.msrb.mxu0 %v976_v50  ;;  %1026 = vmatpush.bf16.msrb.mxu1 %v977_v57 }
 0x75f   :  { %1045 = vmatpush.bf16.msrb.mxu2 %v978_v7  ;;  %1064 = vmatpush.bf16.msrb.mxu3 %v979_v6 }
 0x762   :  { %1008 = vmatpush.bf16.msrb.mxu0 %v972_v62  ;;  %1027 = vmatpush.bf16.msrb.mxu1 %v973_v16 }
 0x763   :  { %1046 = vmatpush.bf16.msrb.mxu2 %v974_v53  ;;  %1065 = vmatpush.bf16.msrb.mxu3 %v975_v12  ;;  %v1078_v53 = vld [vmem:[%s7727_s6 + $0x8] sm:$0xff] }
 0x765   :  { %4187 = vmatmul.msk.bf16.vlgmr.msrb.gmra.mxu0 %vm994_vm14, %v4309_v41  ;;  %4189 = vmatmul.msk.bf16.vlgmr.msrb.gmra.mxu1 %vm994_vm14, %v4309_v41 }
 0x766   :  { %4191 = vmatmul.msk.bf16.vlgmr.msrb.gmra.mxu2 %vm994_vm14, %v4309_v41  ;;  %4193 = vmatmul.msk.bf16.vlgmr.msrb.gmra.mxu3 %vm994_vm14, %v4309_v41 }
 0x7e2   :  { %v5516_v2 = vpop.f32.mrf.mxu0  ;;  %v5518_v22 = vpop.f32.mrf.mxu1 }
 0x7e9   :  { %v5520_v23 = vpop.f32.mrf.mxu2  ;;  %v5522_v35 = vpop.f32.mrf.mxu3 }
 0x7ea   :  { %v1012_v26 = vpop.f32.mrf.mxu0  ;;  %v1031_v31 = vpop.f32.mrf.mxu1 }
 0x7eb   :  { %v1113_v34 = vmul.f32 %v1012_v26, %v1012_v26  ;;  %v1114_v20 = vmul.f32 %v1031_v31, %v1031_v31  ;;  %v1090_v21 = vadd.f32 %v1031_v31, %v1012_v26 }
 0x7ed   :  { %v1130_v28 = vadd.f32 %v1114_v20, %v1113_v34  ;;  %v1082_v20 = vld [vmem:[%s7728_s7 + $0x8] sm:$0xff] }
 0x7f1   :  { %v1050_v46 = vpop.f32.mrf.mxu2  ;;  %v1069_v61 = vpop.f32.mrf.mxu3 }
 0x7f2   :  { %v1091_v59 = vadd.f32 %v1090_v21, %v1050_v46  ;;  %v1115_v36 = vmul.f32 %v1050_v46, %v1050_v46  ;;  %v1116_v14 = vmul.f32 %v1069_v61, %v1069_v61 }
 0x7f4   :  { %v1092_v37 = vadd.f32 %v1091_v59, %v1069_v61  ;;  %v1131_v9 = vadd.f32 %v1130_v28, %v1115_v36  ;;  %v4310_v36 = vld [vmem:[%s7726_s5 + $0x8] sm:$0xff] }
 0x7f5   :  { %4192 = vmatmul.msk.bf16.gmra.mxu2 %vm994_vm14, %v4310_v36  ;;  %4194 = vmatmul.msk.bf16.gmra.mxu3 %vm994_vm14, %v4310_v36 }
 0x7f6   :  { %1093 = vadd.xlane.f32.xlu1 %v1092_v37  ;;  %v1132_v40 = vadd.f32 %v1131_v9, %v1116_v14  ;;  %4188 = vmatmul.msk.bf16.gmra.mxu0 %vm994_vm14, %v4310_v36 }
 0x7f7   :  { %4190 = vmatmul.msk.bf16.gmra.mxu1 %vm994_vm14, %v4310_v36 }
 0x7f8   :  { %1133 = vadd.xlane.f32.xlu2 %v1132_v40 }
 0x869   :  { %v1094_v44 = vpop.xlane.xlu1 %1093 }
 0x86a   :  { %v1106_v49 = vmul.f32 %v1094_v44, %v4957_v5 }
 0x86b   :  { %v1134_v50 = vpop.xlane.xlu2 %1133 }
 0x86c   :  { %v1150_v57 = vmul.f32 %v1106_v49, %v1106_v49  ;;  %v1146_v7 = vmul.f32 %v1134_v50, %v4957_v5 }
 0x86e   :  { %v1154_v6 = vsub.f32 %v1146_v7, %v1150_v57  ;;  %v4416_v7 = vld [vmem:[%s7721_s0 + $0x28] sm:$0xff] }
 0x870   :  { %v1158_v25 = vadd.f32 1e-05, %v1154_v6 }
 0x872   :  { %4342 = vrsqrt.f32 %v1158_v25  ;;  %vm1177_vm10 = vweird.f32 %v1158_v25 }
 0x873   :  { %v5625_v36 = vpop.f32.mrf.mxu0 }
 0x878   :  { %v4343_v39 = vpop.eup %4342 }
 0x879   :  { %v1172_v51 = vmul.f32 %v4343_v39, %v1158_v25  ;;  %vm1178_vm15 = vweird.f32 %v4343_v39  ;;  %v4417_v25 = vld [vmem:[%s7721_s0 + $0x30] sm:$0xff] }
 0x87a   :  { %vm1179_vm11 = vmor %vm1177_vm10, %vm1178_vm15 }
 0x87b   :  { %v1173_v27 = vmul.f32 %v4343_v39, %v1172_v51 }
 0x87d   :  { %v1174_v62 = vmul.f32 0.5, %v1173_v27 }
 0x87f   :  { %v1175_v16 = vsub.f32 1.5, %v1174_v62 }
 0x881   :  { %v1176_v12 = vmul.f32 %v4343_v39, %v1175_v16 }
 0x883   :  { %v1180_v41 = vsel %vm1179_vm11, %v4343_v39, %v1176_v12 }
 0x884   :  { %v1202_v34 = vmul.f32 %v1180_v41, %v1078_v53  ;;  %v4419_v53 = vld [vmem:[%s7721_s0 + $0x20] sm:$0xff] }
 0x886   :  { %1220 = vperm.xlu0 %4332, %v1202_v34   ;;  %v1206_v21 = vmul.f32 %v1202_v34, %v1106_v49 }
 0x888   :  { %v1210_v59 = vsub.f32 %v1082_v20, %v1206_v21 }
 0x88a   :  { %1256 = vperm.xlu2 %4333, %v1210_v59   ;;  %v5623_v59 = vpop.f32.mrf.mxu1 }
 0x8e4   :  { %v1257_v40 = vpop.permute.xlu2 %1256 }
 0x8f8   :  { %v1221_v28 = vpop.permute.xlu0 %1220 }
 0x8f9   :  { %v1238_v37 = vmul.f32 %v1221_v28, %v1031_v31  ;;  %v1239_v14 = vmul.f32 %v1221_v28, %v1050_v46  ;;  %v1240_v9 = vmul.f32 %v1221_v28, %v1069_v61  ;;  %v1237_v44 = vmul.f32 %v1221_v28, %v1012_v26  ;;  %v4418_v31 = vld [vmem:[%s7721_s0 + $0x38] sm:$0xff] }
 0x8fa   :  { %v1118_v28 = vmul.f32 %v5623_v59, %v5623_v59 }
 0x8fb   :  { %v1274_v49 = vadd.f32 %v1257_v40, %v1238_v37  ;;  %v1275_v50 = vadd.f32 %v1257_v40, %v1239_v14  ;;  %v1276_v57 = vadd.f32 %v1257_v40, %v1240_v9  ;;  %v1273_v61 = vadd.f32 %v1257_v40, %v1237_v44  ;;  %v5631_v9 = vpop.f32.mrf.mxu2 }
 0x8fc   :  { %v1117_v37 = vmul.f32 %v5625_v36, %v5625_v36 }
 0x8fd   :  { %v1290_v6 = vadd.f32 %v4416_v7, %v1274_v49  ;;  %v1291_v39 = vadd.f32 %v4417_v25, %v1275_v50  ;;  %v1292_v46 = vadd.f32 %v4418_v31, %v1276_v57  ;;  %v1289_v12 = vadd.f32 %v4419_v53, %v1273_v61  ;;  %v5638_v7 = vpop.f32.mrf.mxu3 }
 0x8fe   :  { %v1119_v49 = vmul.f32 %v5631_v9, %v5631_v9  ;;  %v1135_v50 = vadd.f32 %v1118_v28, %v1117_v37  ;;  %v1120_v25 = vmul.f32 %v5638_v7, %v5638_v7 }
 0x8ff   :  { %v1306_v26 = vmul.f32 0.01, %v1290_v6  ;;  %v1307_v51 = vmul.f32 0.01, %v1291_v39  ;;  %v1308_v27 = vmul.f32 0.01, %v1292_v46 }
 0x900   :  { %v1305_v34 = vmul.f32 0.01, %v1289_v12 }
 0x901   :  { %v5548_v62 = vmax.f32 %v1290_v6, %v1306_v26  ;;  %v5550_v16 = vmax.f32 %v1291_v39, %v1307_v51  ;;  %v5555_v41 = vmax.f32 %v1292_v46, %v1308_v27  ;;  %v1136_v39 = vadd.f32 %v1135_v50, %v1119_v49 }
 0x902   :  { %v5563_v20 = vmax.f32 %v1289_v12, %v1305_v34  ;;  %v1095_v46 = vadd.f32 %v5623_v59, %v5625_v36 }
 0x903   :  { %7791 = vst [vmem:[#allocation10_spill] sm:$0xff] %v5548_v62  ;;  %1449 = vrot.lane.b32.xlu1 %v5550_v16, %s4600_s28  ;;  %1447 = vrot.lane.b32.xlu0 %v5548_v62, %s4600_s28  ;;  %v1137_v61 = vadd.f32 %v1136_v39, %v1120_v25 }
 0x904   :  { %7792 = vst [vmem:[#allocation11_spill] sm:$0xff] %v5550_v16  ;;  %1451 = vrot.lane.b32.xlu2 %v5555_v41, %s4600_s28  ;;  %v1096_v51 = vadd.f32 %v1095_v46, %v5631_v9 }
 0x905   :  { %7793 = vst [vmem:[#allocation12_spill] sm:$0xff] %v5555_v41 }
 0x906   :  { %7794 = vst [vmem:[#allocation13_spill] sm:$0xff] %v5563_v20 }
 0x90b   :  { %1417 = vrot.lane.b32.xlu1 %v5550_v16, %s4599_s1  ;;  %1433 = vrot.lane.b32.xlu0 %v5550_v16, %s4601_s14 }
 0x90c   :  { %1445 = vrot.lane.b32.xlu2 %v5563_v20, %s4600_s28 }
 0x913   :  { %1435 = vrot.lane.b32.xlu1 %v5555_v41, %s4601_s14  ;;  %1429 = vrot.lane.b32.xlu0 %v5563_v20, %s4601_s14 }
 0x914   :  { %1419 = vrot.lane.b32.xlu2 %v5555_v41, %s4599_s1 }
 0x91b   :  { %1401 = vrot.lane.b32.xlu1 %v5550_v16, %s4602_s15  ;;  %1415 = vrot.lane.b32.xlu0 %v5548_v62, %s4599_s1 }
 0x91c   :  { %1413 = vrot.lane.b32.xlu2 %v5563_v20, %s4599_s1 }
 0x923   :  { %1431 = vrot.lane.b32.xlu1 %v5548_v62, %s4601_s14  ;;  %1367 = vrot.lane.b32.xlu0 %v5548_v62, %s4603_s16 }
 0x924   :  { %1403 = vrot.lane.b32.xlu2 %v5555_v41, %s4602_s15 }
 0x92b   :  { %1369 = vrot.lane.b32.xlu1 %v5550_v16, %s4603_s16  ;;  %1385 = vrot.lane.b32.xlu0 %v5550_v16, %s4604_s17 }
 0x92c   :  { %1397 = vrot.lane.b32.xlu2 %v5563_v20, %s4602_s15 }
 0x933   :  { %1399 = vrot.lane.b32.xlu1 %v5548_v62, %s4602_s15  ;;  %1387 = vrot.lane.b32.xlu0 %v5555_v41, %s4604_s17 }
 0x934   :  { %1383 = vrot.lane.b32.xlu2 %v5548_v62, %s4604_s17 }
 0x93b   :  { %1335 = vrot.lane.b32.xlu1 %v5548_v62, %s4605_s18  ;;  %1351 = vrot.lane.b32.xlu0 %v5548_v62, %s4606_s19 }
 0x93c   :  { %1371 = vrot.lane.b32.xlu2 %v5555_v41, %s4603_s16 }
 0x943   :  { %1353 = vrot.lane.b32.xlu1 %v5550_v16, %s4606_s19  ;;  %1381 = vrot.lane.b32.xlu0 %v5563_v20, %s4604_s17 }
 0x944   :  { %1337 = vrot.lane.b32.xlu2 %v5550_v16, %s4605_s18 }
 0x94b   :  { %1339 = vrot.lane.b32.xlu1 %v5555_v41, %s4605_s18  ;;  %1333 = vrot.lane.b32.xlu0 %v5563_v20, %s4605_s18 }
 0x94c   :  { %1365 = vrot.lane.b32.xlu2 %v5563_v20, %s4603_s16 }
 0x953   :  { %1349 = vrot.lane.b32.xlu1 %v5563_v20, %s4606_s19 }
 0x954   :  { %1355 = vrot.lane.b32.xlu2 %v5555_v41, %s4606_s19 }
 0x95e   :  { %v1452_v21 = vpop.permute.xlu2 %1451 }
 0x966   :  { %v1446_v14 = vpop.permute.xlu2 %1445 }
 0x967   :  { %v1456_v40 = vsel %vm240_vm0, %v1452_v21, %v1446_v14 }
 0x968   :  { %v1460_v44 = vmul.f32 %v5311_v47, %v1456_v40 }
 0x96a   :  { %v1480_v57 = vpack.c.bf16 %v1460_v44, %v1460_v44 }
 0x96c   :  { %v1496_v6 = vsel %vm274_vm1, %v1480_v57, 0  ;;  %v1097_v57 = vadd.f32 %v1096_v51, %v5638_v7 }
 0x96d   :  { %1540 = vmatpush.bf16.msra.mxu3 %v1496_v6 }
 0x96e   :  { %v1420_v31 = vpop.permute.xlu2 %1419 }
 0x975   :  { %v1450_v47 = vpop.permute.xlu1 %1449  ;;  %v1448_v26 = vpop.permute.xlu0 %1447  ;;  %1138 = vadd.xlane.f32.xlu0 %v1137_v61 }
 0x976   :  { %v1453_v27 = vsel %vm240_vm0, %v1450_v47, %v1452_v21  ;;  %v1454_v53 = vsel %vm240_vm0, %v1448_v26, %v1450_v47  ;;  %v1455_v12 = vsel %vm240_vm0, %v1446_v14, %v1448_v26  ;;  %v1414_v34 = vpop.permute.xlu2 %1413 }
 0x977   :  { %v1459_v28 = vmul.f32 %v5300_v42, %v1453_v27  ;;  %v1457_v37 = vmul.f32 %v5308_v29, %v1455_v12  ;;  %v1458_v40 = vmul.f32 %v5294_v54, %v1454_v53  ;;  %v1424_v54 = vsel %vm206_vm2, %v1420_v31, %v1414_v34 }
 0x978   :  { %v1428_v47 = vmul.f32 %v5337_v24, %v1424_v54 }
 0x979   :  { %v1479_v44 = vpack.c.bf16 %v1459_v28, %v1459_v28  ;;  %v1477_v49 = vpack.c.bf16 %v1457_v37, %v1457_v37  ;;  %v1478_v50 = vpack.c.bf16 %v1458_v40, %v1458_v40 }
 0x97b   :  { %v1487_v21 = vsel %vm274_vm1, %v1477_v49, 0  ;;  %v1490_v6 = vsel %vm274_vm1, %v1478_v50, 0  ;;  %v1493_v25 = vsel %vm274_vm1, %v1479_v44, 0 }
 0x97c   :  { %1501 = vmatpush.bf16.msra.mxu0 %v1487_v21  ;;  %1514 = vmatpush.bf16.msra.mxu1 %v1490_v6 }
 0x97d   :  { %1527 = vmatpush.bf16.msra.mxu2 %v1493_v25  ;;  %1098 = vadd.xlane.f32.xlu2 %v1097_v57  ;;  %v1418_v42 = vpop.permute.xlu1 %1417  ;;  %v1434_v14 = vpop.permute.xlu0 %1433 }
 0x97e   :  { %v1404_v29 = vpop.permute.xlu2 %1403  ;;  %v1421_v39 = vsel %vm206_vm2, %v1418_v42, %v1420_v31 }
 0x97f   :  { %v1427_v53 = vmul.f32 %v5334_v30, %v1421_v39 }
 0x985   :  { %v1436_v46 = vpop.permute.xlu1 %1435  ;;  %v1430_v61 = vpop.permute.xlu0 %1429 }
 0x986   :  { %v1437_v26 = vsel %vm223_vm3, %v1434_v14, %v1436_v46  ;;  %v1440_v51 = vsel %vm223_vm3, %v1436_v46, %v1430_v61  ;;  %v1398_v27 = vpop.permute.xlu2 %1397 }
 0x987   :  { %v1443_v12 = vmul.f32 %v5340_v63, %v1437_v26  ;;  %v1444_v28 = vmul.f32 %v5343_v19, %v1440_v51  ;;  %v1408_v31 = vsel %vm189_vm4, %v1404_v29, %v1398_v27 }
 0x988   :  { %v1412_v37 = vmul.f32 %v5346_v38, %v1408_v31 }
 0x989   :  { %v1475_v40 = vpack.c.bf16 %v1443_v12, %v1427_v53  ;;  %v1476_v24 = vpack.c.bf16 %v1444_v28, %v1428_v47 }
 0x98a   :  { %v1472_v50 = vpack.c.bf16 %v1412_v37, %v5555_v41 }
 0x98b   :  { %1528 = vmatpush.bf16.msra.mxu2 %v1475_v40  ;;  %1541 = vmatpush.bf16.msra.mxu3 %v1476_v24 }
 0x98d   :  { %v1402_v44 = vpop.permute.xlu1 %1401  ;;  %v1416_v49 = vpop.permute.xlu0 %1415 }
 0x98e   :  { %v1405_v30 = vsel %vm189_vm4, %v1402_v44, %v1404_v29  ;;  %v1384_v19 = vpop.permute.xlu2 %1383  ;;  %v1422_v38 = vsel %vm206_vm2, %v1416_v49, %v1418_v42  ;;  %v1423_v21 = vsel %vm206_vm2, %v1414_v34, %v1416_v49 }
 0x98f   :  { %v1411_v63 = vmul.f32 %v5352_v3, %v1405_v30  ;;  %1542 = vmatpush.bf16.msra.mxu3 %v1472_v50  ;;  %v1425_v3 = vmul.f32 %v5365_v32, %v1423_v21  ;;  %v1426_v39 = vmul.f32 %v5368_v60, %v1422_v38 }
 0x991   :  { %v1471_v57 = vpack.c.bf16 %v1411_v63, %v5550_v16 }
 0x993   :  { %1529 = vmatpush.bf16.msra.mxu2 %v1471_v57 }
 0x995   :  { %v1432_v6 = vpop.permute.xlu1 %1431  ;;  %v1368_v25 = vpop.permute.xlu0 %1367 }
 0x996   :  { %v1438_v54 = vsel %vm223_vm3, %v1432_v6, %v1434_v14  ;;  %v1439_v29 = vsel %vm223_vm3, %v1430_v61, %v1432_v6  ;;  %v1372_v51 = vpop.permute.xlu2 %1371 }
 0x997   :  { %v1441_v46 = vmul.f32 %v5371_v17, %v1439_v29  ;;  %v1442_v47 = vmul.f32 %v5374_v13, %v1438_v54 }
 0x999   :  { %v1473_v42 = vpack.c.bf16 %v1441_v46, %v1425_v3  ;;  %v1474_v26 = vpack.c.bf16 %v1442_v47, %v1426_v39  ;;  %v5727_v47 = vld [vmem:[#allocation2 + $0x60] sm:$0xff] }
 0x99b   :  { %1502 = vmatpush.bf16.msra.mxu0 %v1473_v42  ;;  %1515 = vmatpush.bf16.msra.mxu1 %v1474_v26  ;;  %v5730_v42 = vld [vmem:[#allocation2 + $0x68] sm:$0xff] }
 0x99d   :  { %v1370_v34 = vpop.permute.xlu1 %1369  ;;  %v1386_v53 = vpop.permute.xlu0 %1385 }
 0x99e   :  { %v1374_v14 = vsel %vm155_vm5, %v1368_v25, %v1370_v34  ;;  %v1390_v61 = vsel %vm172_vm6, %v1384_v19, %v1386_v53  ;;  %v1373_v13 = vsel %vm155_vm5, %v1370_v34, %v1372_v51  ;;  %v1338_v12 = vpop.permute.xlu2 %1337 }
 0x99f   :  { %v1379_v32 = vmul.f32 %v5395_v1, %v1374_v14  ;;  %v1395_v60 = vmul.f32 %v5389_v56, %v1390_v61  ;;  %v1380_v1 = vmul.f32 %v5398_v8, %v1373_v13 }
 0x9a1   :  { %v1467_v17 = vpack.c.bf16 %v1395_v60, %v1379_v32 }
 0x9a3   :  { %1530 = vmatpush.bf16.msra.mxu2 %v1467_v17 }
 0x9a5   :  { %v1400_v28 = vpop.permute.xlu1 %1399  ;;  %v1388_v31 = vpop.permute.xlu0 %1387 }
 0x9a6   :  { %v1406_v37 = vsel %vm189_vm4, %v1400_v28, %v1402_v44  ;;  %v1407_v40 = vsel %vm189_vm4, %v1398_v27, %v1400_v28  ;;  %v1389_v24 = vsel %vm172_vm6, %v1386_v53, %v1388_v31  ;;  %v1366_v38 = vpop.permute.xlu2 %1365 }
 0x9a7   :  { %v1409_v56 = vmul.f32 %v5411_v48, %v1407_v40  ;;  %v1410_v49 = vmul.f32 %v5414_v0, %v1406_v37  ;;  %v1396_v50 = vmul.f32 %v5392_v15, %v1389_v24  ;;  %v1375_v8 = vsel %vm155_vm5, %v1366_v38, %v1368_v25  ;;  %v7795_v24 = vld [vmem:[#allocation9_spill] sm:$0xff] }
 0x9a8   :  { %v1376_v48 = vsel %vm155_vm5, %v1372_v51, %v1366_v38  ;;  %v1378_v0 = vmul.f32 %v5429_v55, %v1375_v8 }
 0x9a9   :  { %v1469_v30 = vpack.c.bf16 %v1409_v56, %v5563_v20  ;;  %v1470_v63 = vpack.c.bf16 %v1410_v49, %v5548_v62  ;;  %v1468_v57 = vpack.c.bf16 %v1396_v50, %v1380_v1  ;;  %v1377_v54 = vmul.f32 %v5426_v58, %v1376_v48 }
 0x9ab   :  { %1503 = vmatpush.bf16.msra.mxu0 %v1469_v30  ;;  %1516 = vmatpush.bf16.msra.mxu1 %v1470_v63 }
 0x9ac   :  { %1543 = vmatpush.bf16.msra.mxu3 %v1468_v57 }
 0x9ad   :  { %v1336_v27 = vpop.permute.xlu1 %1335  ;;  %v1352_v44 = vpop.permute.xlu0 %1351 }
 0x9ae   :  { %v1342_v15 = vsel %vm121_vm7, %v1336_v27, %v1338_v12  ;;  %v1356_v53 = vpop.permute.xlu2 %1355 }
 0x9af   :  { %v1347_v39 = vmul.f32 %v5437_v45, %v1342_v15  ;;  %v4195_v45 = vld [vmem:[%s7723_s2 + $0xc] sm:$0xf]  ;;  %v1079_v15 = vld [vmem:[%s7727_s6 + $0x10] sm:$0xff] }
 0x9b5   :  { %v1354_v21 = vpop.permute.xlu1 %1353  ;;  %v1382_v6 = vpop.permute.xlu0 %1381 }
 0x9b6   :  { %v1358_v29 = vsel %vm138_vm8, %v1352_v44, %v1354_v21  ;;  %v1391_v3 = vsel %vm172_vm6, %v1382_v6, %v1384_v19  ;;  %v1392_v25 = vsel %vm172_vm6, %v1388_v31, %v1382_v6  ;;  %v1357_v19 = vsel %vm138_vm8, %v1354_v21, %v1356_v53 }
 0x9b7   :  { %v1363_v46 = vmul.f32 %v5440_v52, %v1358_v29  ;;  %v1393_v55 = vmul.f32 %v5727_v47, %v1392_v25  ;;  %v1394_v58 = vmul.f32 %v5730_v42, %v1391_v3  ;;  %v1364_v61 = vmul.f32 %v5451_v43, %v1357_v19  ;;  %v5765_v29 = vpop.f32.mrf.mxu3  ;;  %v5769_v25 = vpop.f32.mrf.mxu0 }
 0x9b9   :  { %v1465_v26 = vpack.c.bf16 %v1393_v55, %v1377_v54  ;;  %v1466_v51 = vpack.c.bf16 %v1394_v58, %v1378_v0  ;;  %v1463_v34 = vpack.c.bf16 %v1363_v46, %v1347_v39  ;;  %v5763_v54 = vpop.f32.mrf.mxu2  ;;  %v5771_v39 = vpop.f32.mrf.mxu1 }
 0x9bb   :  { %1504 = vmatpush.bf16.msra.mxu0 %v1465_v26  ;;  %1517 = vmatpush.bf16.msra.mxu1 %v1466_v51 }
 0x9bc   :  { %1531 = vmatpush.bf16.msra.mxu2 %v1463_v34 }
 0x9bd   :  { %v1340_v52 = vpop.permute.xlu1 %1339  ;;  %v1334_v60 = vpop.permute.xlu0 %1333 }
 0x9be   :  { %v1341_v14 = vsel %vm121_vm7, %v1338_v12, %v1340_v52  ;;  %v1343_v13 = vsel %vm121_vm7, %v1334_v60, %v1336_v27  ;;  %v1344_v28 = vsel %vm121_vm7, %v1340_v52, %v1334_v60 }
 0x9bf   :  { %v1348_v32 = vmul.f32 %v5454_v4, %v1341_v14  ;;  %4198 = vmatmul.msk.bf16.vlgmr.msra.gmra.mxu2 %vm7755_vm9, %v4195_v45  ;;  %v1345_v4 = vmul.f32 %v5470_v33, %v1344_v28  ;;  %v1346_v12 = vmul.f32 %v5467_v11, %v1343_v13 }
 0x9c1   :  { %v1464_v17 = vpack.c.bf16 %v1364_v61, %v1348_v32 }
 0x9c3   :  { %1544 = vmatpush.bf16.msra.mxu3 %v1464_v17 }
 0x9c5   :  { %v1350_v31 = vpop.permute.xlu1 %1349 }
 0x9c6   :  { %v1359_v37 = vsel %vm138_vm8, %v1350_v31, %v1352_v44  ;;  %v1360_v43 = vsel %vm138_vm8, %v1356_v53, %v1350_v31  ;;  %4199 = vmatmul.msk.bf16.vlgmr.msra.gmra.mxu3 %vm7755_vm9, %v4195_v45 }
 0x9c7   :  { %v1361_v40 = vmul.f32 %v5473_v18, %v1360_v43  ;;  %v1362_v1 = vmul.f32 %v7795_v24, %v1359_v37  ;;  %v1083_v37 = vld [vmem:[%s7728_s7 + $0x10] sm:$0xff] }
 0x9c9   :  { %v1461_v56 = vpack.c.bf16 %v1361_v40, %v1345_v4  ;;  %v1462_v49 = vpack.c.bf16 %v1362_v1, %v1346_v12 }
 0x9cb   :  { %1505 = vmatpush.bf16.msra.mxu0 %v1461_v56  ;;  %1518 = vmatpush.bf16.msra.mxu1 %v1462_v49 }
 0x9ce   :  { %4196 = vmatmul.msk.bf16.vlgmr.msra.gmra.mxu0 %vm7755_vm9, %v4195_v45  ;;  %4197 = vmatmul.msk.bf16.vlgmr.msra.gmra.mxu1 %vm7755_vm9, %v4195_v45 }
 0x9e8   :  { %v1139_v50 = vpop.xlane.xlu0 %1138 }
 0x9e9   :  { %v1147_v33 = vmul.f32 %v1139_v50, %v4957_v5 }
 0x9f0   :  { %v1099_v30 = vpop.xlane.xlu2 %1098 }
 0x9f1   :  { %v1107_v63 = vmul.f32 %v1099_v30, %v4957_v5 }
 0x9f3   :  { %v1151_v57 = vmul.f32 %v1107_v63, %v1107_v63 }
 0x9f5   :  { %v1155_v11 = vsub.f32 %v1147_v33, %v1151_v57 }
 0x9f7   :  { %v1159_v27 = vadd.f32 1e-05, %v1155_v11  ;;  %v4200_v11 = vld [vmem:[%s7724_s3 + $0x18] sm:$0xff] }
 0x9f9   :  { %4344 = vrsqrt.f32 %v1159_v27  ;;  %vm1187_vm12 = vweird.f32 %v1159_v27 }
 0x9ff   :  { %v4345_v18 = vpop.eup %4344 }
 0xa00   :  { %v1182_v44 = vmul.f32 %v4345_v18, %v1159_v27  ;;  %vm1188_vm13 = vweird.f32 %v4345_v18 }
 0xa01   :  { %vm1189_vm15 = vmor %vm1187_vm12, %vm1188_vm13 }
 0xa02   :  { %v1183_v38 = vmul.f32 %v4345_v18, %v1182_v44 }
 0xa04   :  { %v1184_v8 = vmul.f32 0.5, %v1183_v38  ;;  %v4201_v38 = vld [vmem:[%s7725_s4 + $0x18] sm:$0xff] }
 0xa06   :  { %v1185_v48 = vsub.f32 1.5, %v1184_v8 }
 0xa08   :  { %v1186_v0 = vmul.f32 %v4345_v18, %v1185_v48 }
 0xa0a   :  { %v1190_v21 = vsel %vm1189_vm15, %v4345_v18, %v1186_v0 }
 0xa0b   :  { %v1203_v6 = vmul.f32 %v1190_v21, %v1079_v15 }
 0xa0d   :  { %1225 = vperm.xlu0 %4332, %v1203_v6   ;;  %v1207_v31 = vmul.f32 %v1203_v6, %v1107_v63 }
 0xa0f   :  { %v1211_v43 = vsub.f32 %v1083_v37, %v1207_v31 }
 0xa42   :  { %v5767_v3 = vpop.f32.mrf.mxu2 }
 0xa43   :  { %v1562_v51 = vmul.f32 %v5767_v3, %v5767_v3 }
 0xa49   :  { %v5773_v46 = vpop.f32.mrf.mxu3 }
 0xa4a   :  { %v1535_v55 = vpop.f32.mrf.mxu2  ;;  %v1563_v52 = vmul.f32 %v5773_v46, %v5773_v46 }
 0xa4b   :  { %v1507_v58 = vpop.f32.mrf.mxu0  ;;  %v5775_v26 = vpop.f32.mrf.mxu1 }
 0xa4c   :  { %v1560_v34 = vmul.f32 %v1507_v58, %v1507_v58  ;;  %v1554_v53 = vadd.f32 %v5775_v26, %v1507_v58  ;;  %v1561_v19 = vmul.f32 %v5775_v26, %v5775_v26 }
 0xa4e   :  { %v1555_v45 = vadd.f32 %v1554_v53, %v5767_v3  ;;  %v1564_v14 = vadd.f32 %v1561_v19, %v1560_v34  ;;  %v4422_v19 = vld [vmem:[%s7721_s0 + $0x40] sm:$0xff] }
 0xa50   :  { %v1556_v61 = vadd.f32 %v1555_v45, %v5773_v46  ;;  %v1565_v32 = vadd.f32 %v1564_v14, %v1562_v51 }
 0xa51   :  { %v1548_v60 = vpop.f32.mrf.mxu3 }
 0xa52   :  { %1557 = vadd.xlane.f32.xlu1 %v1556_v61  ;;  %v1566_v17 = vadd.f32 %v1565_v32, %v1563_v52  ;;  %v4423_v52 = vld [vmem:[%s7721_s0 + $0x50] sm:$0xff] }
 0xa53   :  { %v1509_v13 = vpop.f32.mrf.mxu0  ;;  %v1522_v28 = vpop.f32.mrf.mxu1 }
 0xa54   :  { %1567 = vadd.xlane.f32.xlu2 %v1566_v17 }
 0xa6c   :  { %1261 = vperm.xlu2 %4333, %v1211_v43  }
 0xa7f   :  { %v1226_v15 = vpop.permute.xlu0 %1225 }
 0xa80   :  { %v1241_v21 = vmul.f32 %v1226_v15, %v5625_v36  ;;  %v1243_v6 = vmul.f32 %v1226_v15, %v5631_v9  ;;  %v1244_v55 = vmul.f32 %v1226_v15, %v5638_v7  ;;  %v1242_v36 = vmul.f32 %v1226_v15, %v5623_v59  ;;  %v4424_v9 = vld [vmem:[%s7721_s0 + $0x58] sm:$0xff] }
 0xac5   :  { %v1558_v4 = vpop.xlane.xlu1 %1557 }
 0xac6   :  { %v1559_v12 = vmul.f32 %v1558_v4, %v4957_v5 }
 0xac7   :  { %v1568_v40 = vpop.xlane.xlu2 %1567 }
 0xac8   :  { %v1570_v24 = vmul.f32 %v1559_v12, %v1559_v12  ;;  %v1569_v1 = vmul.f32 %v1568_v40, %v4957_v5 }
 0xaca   :  { %v1571_v56 = vsub.f32 %v1569_v1, %v1570_v24 }
 0xacc   :  { %v1572_v49 = vadd.f32 1e-05, %v1571_v56 }
 0xace   :  { %4346 = vrsqrt.f32 %v1572_v49  ;;  %vm1579_vm11 = vweird.f32 %v1572_v49 }
 0xacf   :  { %v1262_v0 = vpop.permute.xlu2 %1261 }
 0xad0   :  { %v1277_v51 = vadd.f32 %v1262_v0, %v1241_v21  ;;  %v1279_v34 = vadd.f32 %v1262_v0, %v1243_v6  ;;  %v1280_v53 = vadd.f32 %v1262_v0, %v1244_v55  ;;  %v1278_v13 = vadd.f32 %v1262_v0, %v1242_v36 }
 0xad1   :  { %v1100_v21 = vadd.f32 %v5771_v39, %v5769_v25  ;;  %v1121_v55 = vmul.f32 %v5769_v25, %v5769_v25 }
 0xad2   :  { %v1293_v45 = vadd.f32 %v4422_v19, %v1277_v51  ;;  %v1295_v14 = vadd.f32 %v4423_v52, %v1279_v34  ;;  %v1296_v7 = vadd.f32 %v4424_v9, %v1280_v53  ;;  %v1122_v51 = vmul.f32 %v5771_v39, %v5771_v39 }
 0xad3   :  { %v1101_v34 = vadd.f32 %v1100_v21, %v5763_v54  ;;  %v1123_v19 = vmul.f32 %v5763_v54, %v5763_v54 }
 0xad4   :  { %v4347_v50 = vpop.eup %4346  ;;  %v1309_v28 = vmul.f32 0.01, %v1293_v45  ;;  %v1311_v31 = vmul.f32 0.01, %v1295_v14  ;;  %v1312_v59 = vmul.f32 0.01, %v1296_v7  ;;  %v1140_v53 = vadd.f32 %v1122_v51, %v1121_v55 }
 0xad5   :  { %v1574_v30 = vmul.f32 %v4347_v50, %v1572_v49  ;;  %vm1580_vm10 = vweird.f32 %v4347_v50 }
 0xad6   :  { %vm1581_vm12 = vmor %vm1579_vm11, %vm1580_vm10 }
 0xad7   :  { %v1575_v33 = vmul.f32 %v4347_v50, %v1574_v30 }
 0xad9   :  { %v1576_v63 = vmul.f32 0.5, %v1575_v33  ;;  %v5824_v33 = vmax.f32 %v1296_v7, %v1312_v59  ;;  %v1124_v7 = vmul.f32 %v5765_v29, %v5765_v29 }
 0xadb   :  { %v1577_v57 = vsub.f32 1.5, %v1576_v63  ;;  %7800 = vst [vmem:[#allocation17_spill] sm:$0xff] %v5824_v33 }
 0xadd   :  { %v1578_v27 = vmul.f32 %v4347_v50, %v1577_v57 }
 0xadf   :  { %v1582_v18 = vsel %vm1581_vm12, %v4347_v50, %v1578_v27  ;;  %v5818_v50 = vmax.f32 %v1295_v14, %v1311_v31 }
 0xae0   :  { %v1583_v44 = vmul.f32 %v4200_v11, %v1582_v18 }
 0xae1   :  { %7797 = vst [vmem:[#allocation14_spill] sm:$0xff] %v5818_v50 }
 0xae2   :  { %1588 = vperm.xlu1 %4331, %v1583_v44   ;;  %v1584_v8 = vmul.f32 %v1583_v44, %v1559_v12 }
 0xae4   :  { %v1585_v48 = vsub.f32 %v4201_v38, %v1584_v8 }
 0xae6   :  { %1597 = vperm.xlu0 %4332, %v1585_v48  }
 0xb54   :  { %v1589_v61 = vpop.permute.xlu1 %1588 }
 0xb55   :  { %v1591_v32 = vmul.f32 %v1589_v61, %v1507_v58  ;;  %v1593_v60 = vmul.f32 %v1589_v61, %v5767_v3  ;;  %v1594_v17 = vmul.f32 %v1589_v61, %v5773_v46  ;;  %v1592_v43 = vmul.f32 %v1589_v61, %v5775_v26  ;;  %v4425_v58 = vld [vmem:[%s7721_s0 + $0x48] sm:$0xff] }
 0xb56   :  { %v1294_v3 = vadd.f32 %v4425_v58, %v1278_v13  ;;  %v5816_v46 = vmax.f32 %v1293_v45, %v1309_v28  ;;  %v1102_v45 = vadd.f32 %v1101_v34, %v5765_v29  ;;  %v1141_v28 = vadd.f32 %v1140_v53, %v1123_v19  ;;  %v5944_v58 = vld [vmem:[#allocation2 + $0x100] sm:$0xff] }
 0xb58   :  { %v1598_v37 = vpop.permute.xlu0 %1597  ;;  %7796 = vst [vmem:[#allocation9_spill] sm:$0xff] %v5816_v46  ;;  %v1310_v44 = vmul.f32 0.01, %v1294_v3 }
 0xb59   :  { %v1600_v4 = vadd.f32 %v1598_v37, %v1591_v32  ;;  %v1602_v12 = vadd.f32 %v1598_v37, %v1593_v60  ;;  %v1603_v40 = vadd.f32 %v1598_v37, %v1594_v17  ;;  %v1601_v24 = vadd.f32 %v1598_v37, %v1592_v43  ;;  %v5932_v32 = vld [vmem:[#allocation2 + $0x110] sm:$0xff]  ;;  %v5935_v17 = vld [vmem:[#allocation2 + $0x118] sm:$0xff] }
 0xb5a   :  { %v5848_v8 = vmax.f32 %v1294_v3, %v1310_v44 }
 0xb5b   :  { %v1604_v1 = vmul.f32 0.01, %v1600_v4  ;;  %v1606_v56 = vmul.f32 0.01, %v1602_v12  ;;  %v1607_v49 = vmul.f32 0.01, %v1603_v40 }
 0xb5c   :  { %v1605_v57 = vmul.f32 0.01, %v1601_v24  ;;  %7803 = vst [vmem:[#allocation20_spill] sm:$0xff] %v5848_v8 }
 0xb5d   :  { %v5820_v30 = vmax.f32 %v1600_v4, %v1604_v1  ;;  %v5822_v26 = vmax.f32 %v1602_v12, %v1606_v56  ;;  %v5826_v63 = vmax.f32 %v1603_v40, %v1607_v49  ;;  %v1142_v12 = vadd.f32 %v1141_v28, %v1124_v7  ;;  %v5947_v49 = vld [vmem:[#allocation2 + $0x108] sm:$0xff] }
 0xb5e   :  { %v5846_v38 = vmax.f32 %v1601_v24, %v1605_v57 }
 0xb5f   :  { %7798 = vst [vmem:[#allocation15_spill] sm:$0xff] %v5820_v30  ;;  %v5830_v11 = vadd.f32 %v5820_v30, %v5816_v46  ;;  %v5834_v27 = vadd.f32 %v5822_v26, %v5818_v50  ;;  %v5838_v18 = vadd.f32 %v5826_v63, %v5824_v33 }
 0xb60   :  { %7799 = vst [vmem:[#allocation16_spill] sm:$0xff] %v5822_v26  ;;  %v5852_v48 = vadd.f32 %v5846_v38, %v5848_v8  ;;  %v6066_v8 = vld [vmem:[#allocation2 + $0x18] sm:$0xff] }
 0xb61   :  { %7801 = vst [vmem:[#allocation18_spill] sm:$0xff] %v5826_v63  ;;  %1732 = vrot.lane.b32.xlu0 %v5834_v27, %s4600_s28  ;;  %1728 = vrot.lane.b32.xlu1 %v5830_v11, %s4600_s28 }
 0xb62   :  { %1734 = vrot.lane.b32.xlu2 %v5838_v18, %s4600_s28  ;;  %7802 = vst [vmem:[#allocation19_spill] sm:$0xff] %v5846_v38 }
 0xb69   :  { %1730 = vrot.lane.b32.xlu0 %v5852_v48, %s4600_s28  ;;  %1702 = vrot.lane.b32.xlu1 %v5838_v18, %s4599_s1 }
 0xb6a   :  { %1700 = vrot.lane.b32.xlu2 %v5834_v27, %s4599_s1 }
 0xb71   :  { %1716 = vrot.lane.b32.xlu0 %v5834_v27, %s4601_s14  ;;  %1696 = vrot.lane.b32.xlu1 %v5830_v11, %s4599_s1 }
 0xb72   :  { %1718 = vrot.lane.b32.xlu2 %v5838_v18, %s4601_s14 }
 0xb79   :  { %1712 = vrot.lane.b32.xlu0 %v5830_v11, %s4601_s14  ;;  %1686 = vrot.lane.b32.xlu1 %v5838_v18, %s4602_s15 }
 0xb7a   :  { %1684 = vrot.lane.b32.xlu2 %v5834_v27, %s4602_s15 }
 0xb81   :  { %1698 = vrot.lane.b32.xlu0 %v5852_v48, %s4599_s1  ;;  %1680 = vrot.lane.b32.xlu1 %v5830_v11, %s4602_s15 }
 0xb82   :  { %1714 = vrot.lane.b32.xlu2 %v5852_v48, %s4601_s14 }
 0xb89   :  { %1650 = vrot.lane.b32.xlu0 %v5852_v48, %s4603_s16  ;;  %1666 = vrot.lane.b32.xlu1 %v5852_v48, %s4604_s17 }
 0xb8a   :  { %1652 = vrot.lane.b32.xlu2 %v5834_v27, %s4603_s16 }
 0xb91   :  { %1668 = vrot.lane.b32.xlu0 %v5834_v27, %s4604_s17  ;;  %1654 = vrot.lane.b32.xlu1 %v5838_v18, %s4603_s16 }
 0xb92   :  { %1682 = vrot.lane.b32.xlu2 %v5852_v48, %s4602_s15 }
 0xb99   :  { %1670 = vrot.lane.b32.xlu0 %v5838_v18, %s4604_s17  ;;  %1620 = vrot.lane.b32.xlu1 %v5834_v27, %s4605_s18 }
 0xb9a   :  { %1618 = vrot.lane.b32.xlu2 %v5852_v48, %s4605_s18 }
 0xba1   :  { %1634 = vrot.lane.b32.xlu0 %v5852_v48, %s4606_s19  ;;  %1648 = vrot.lane.b32.xlu1 %v5830_v11, %s4603_s16 }
 0xba2   :  { %1636 = vrot.lane.b32.xlu2 %v5834_v27, %s4606_s19 }
 0xba9   :  { %1664 = vrot.lane.b32.xlu0 %v5830_v11, %s4604_s17  ;;  %1638 = vrot.lane.b32.xlu1 %v5838_v18, %s4606_s19 }
 0xbaa   :  { %1622 = vrot.lane.b32.xlu2 %v5838_v18, %s4605_s18 }
 0xbb1   :  { %1616 = vrot.lane.b32.xlu0 %v5830_v11, %s4605_s18 }
 0xbb2   :  { %1632 = vrot.lane.b32.xlu2 %v5830_v11, %s4606_s19 }
 0xbbc   :  { %v1735_v15 = vpop.permute.xlu2 %1734 }
 0xbc4   :  { %v5912_v0 = vpop.permute.xlu2 %1700 }
 0xbcc   :  { %v1719_v6 = vpop.permute.xlu2 %1718 }
 0xbd3   :  { %v1733_v52 = vpop.permute.xlu0 %1732  ;;  %v1729_v14 = vpop.permute.xlu1 %1728  ;;  %1103 = vadd.xlane.f32.xlu1 %v1102_v45  ;;  %v5957_v45 = vld [vmem:[#allocation2 + $0xd0] sm:$0xff] }
 0xbd4   :  { %v5924_v61 = vpop.permute.xlu2 %1684  ;;  %v1736_v36 = vsel %vm240_vm0, %v1733_v52, %v1735_v15  ;;  %v1739_v9 = vsel %vm240_vm0, %v1735_v15, %v1729_v14 }
 0xbd5   :  { %v1742_v60 = vmul.f32 %v5932_v32, %v1736_v36  ;;  %v1743_v13 = vmul.f32 %v5935_v17, %v1739_v9 }
 0xbd7   :  { %v1762_v31 = vpack.c.bf16 %v1742_v60, %v1742_v60  ;;  %v1763_v37 = vpack.c.bf16 %v1743_v13, %v1743_v13 }
 0xbd9   :  { %v1776_v43 = vsel %vm274_vm1, %v1762_v31, 0  ;;  %v1779_v4 = vsel %vm274_vm1, %v1763_v37, 0 }
 0xbda   :  { %1810 = vmatpush.bf16.msrb.mxu2 %v1776_v43  ;;  %1823 = vmatpush.bf16.msrb.mxu3 %v1779_v4  ;;  %v5972_v43 = vld [vmem:[#allocation2 + $0xd8] sm:$0xff] }
 0xbdb   :  { %v1731_v40 = vpop.permute.xlu0 %1730  ;;  %v1703_v59 = vpop.permute.xlu1 %1702  ;;  %1143 = vadd.xlane.f32.xlu0 %v1142_v12  ;;  %v5975_v12 = vld [vmem:[#allocation2 + $0xf8] sm:$0xff] }
 0xbdc   :  { %v1715_v24 = vpop.permute.xlu2 %1714  ;;  %v1737_v1 = vsel %vm240_vm0, %v1731_v40, %v1733_v52  ;;  %v1738_v56 = vsel %vm240_vm0, %v1729_v14, %v1731_v40  ;;  %v1704_v51 = vsel %vm206_vm2, %v5912_v0, %v1703_v59  ;;  %v5960_v14 = vld [vmem:[#allocation2 + $0xf0] sm:$0xff] }
 0xbdd   :  { %v1740_v3 = vmul.f32 %v5944_v58, %v1738_v56  ;;  %v1741_v57 = vmul.f32 %v5947_v49, %v1737_v1  ;;  %v1710_v52 = vmul.f32 %v5957_v45, %v1704_v51  ;;  %v5978_v1 = vld [vmem:[#allocation2 + $0xb0] sm:$0xff] }
 0xbdf   :  { %v1760_v44 = vpack.c.bf16 %v1740_v3, %v1740_v3  ;;  %v1761_v15 = vpack.c.bf16 %v1741_v57, %v1741_v57 }
 0xbe1   :  { %v1770_v21 = vsel %vm274_vm1, %v1760_v44, 0  ;;  %v1773_v55 = vsel %vm274_vm1, %v1761_v15, 0  ;;  %v5986_v15 = vld [vmem:[#allocation2 + $0xe8] sm:$0xff] }
 0xbe2   :  { %1784 = vmatpush.bf16.msrb.mxu0 %v1770_v21  ;;  %1797 = vmatpush.bf16.msrb.mxu1 %v1773_v55 }
 0xbe3   :  { %v1717_v34 = vpop.permute.xlu0 %1716  ;;  %v1697_v53 = vpop.permute.xlu1 %1696 }
 0xbe4   :  { %v1720_v19 = vsel %vm223_vm3, %v1717_v34, %v1719_v6  ;;  %v5963_v9 = vpop.permute.xlu2 %1652  ;;  %v1707_v60 = vsel %vm206_vm2, %v1703_v59, %v1697_v53 }
 0xbe5   :  { %v1726_v36 = vmul.f32 %v5960_v14, %v1720_v19  ;;  %v1711_v4 = vmul.f32 %v5972_v43, %v1707_v60 }
 0xbe7   :  { %v1758_v7 = vpack.c.bf16 %v1726_v36, %v1710_v52  ;;  %v6001_v36 = vld [vmem:[#allocation2 + $0xe0] sm:$0xff] }
 0xbe9   :  { %1811 = vmatpush.bf16.msrb.mxu2 %v1758_v7 }
 0xbeb   :  { %v1713_v13 = vpop.permute.xlu0 %1712  ;;  %v1687_v28 = vpop.permute.xlu1 %1686 }
 0xbec   :  { %v1723_v31 = vsel %vm223_vm3, %v1719_v6, %v1713_v13  ;;  %v1688_v37 = vsel %vm189_vm4, %v5924_v61, %v1687_v28  ;;  %v1721_v6 = vsel %vm223_vm3, %v1715_v24, %v1717_v34  ;;  %v1683_v57 = vpop.permute.xlu2 %1682  ;;  %v1722_v44 = vsel %vm223_vm3, %v1713_v13, %v1715_v24  ;;  %v6007_v13 = vld [vmem:[#allocation2 + $0xc8] sm:$0xff] }
 0xbed   :  { %v1727_v40 = vmul.f32 %v5975_v12, %v1723_v31  ;;  %v1694_v59 = vmul.f32 %v5978_v1, %v1688_v37  ;;  %v1725_v21 = vmul.f32 %v5986_v15, %v1721_v6  ;;  %v1689_v55 = vsel %vm189_vm4, %v1683_v57, %v5924_v61  ;;  %v6004_v61 = vld [vmem:[#allocation2 + $0xc0] sm:$0xff]  ;;  %v6010_v31 = vld [vmem:[#allocation2 + $0xb8] sm:$0xff]  ;;  %v6013_v37 = vld [vmem:[#allocation2 + $0xa8] sm:$0xff] }
 0xbee   :  { %v1724_v7 = vmul.f32 %v6001_v36, %v1722_v44 }
 0xbef   :  { %v1754_v56 = vpack.c.bf16 %v1694_v59, %v5834_v27  ;;  %v1759_v3 = vpack.c.bf16 %v1727_v40, %v1711_v4  ;;  %v6016_v4 = vld [vmem:[#allocation2 + $0xa0] sm:$0xff] }
 0xbf1   :  { %1812 = vmatpush.bf16.msrb.mxu2 %v1754_v56  ;;  %1824 = vmatpush.bf16.msrb.mxu3 %v1759_v3 }
 0xbf3   :  { %v1699_v51 = vpop.permute.xlu0 %1698  ;;  %v1681_v27 = vpop.permute.xlu1 %1680 }
 0xbf4   :  { %v1705_v34 = vsel %vm206_vm2, %v1699_v51, %v5912_v0  ;;  %v1706_v19 = vsel %vm206_vm2, %v1697_v53, %v1699_v51  ;;  %v1690_v24 = vsel %vm189_vm4, %v1681_v27, %v1683_v57  ;;  %v1691_v52 = vsel %vm189_vm4, %v1687_v28, %v1681_v27 }
 0xbf5   :  { %v1708_v60 = vmul.f32 %v6004_v61, %v1706_v19  ;;  %v1709_v0 = vmul.f32 %v6007_v13, %v1705_v34  ;;  %v1695_v53 = vmul.f32 %v6010_v31, %v1691_v52  ;;  %v1693_v28 = vmul.f32 %v6013_v37, %v1689_v55  ;;  %v6022_v55 = vpop.permute.xlu2 %1618  ;;  %v6029_v19 = vld [vmem:[#allocation2 + $0x50] sm:$0xff] }
 0xbf6   :  { %v1692_v40 = vmul.f32 %v6016_v4, %v1690_v24 }
 0xbf7   :  { %v1756_v59 = vpack.c.bf16 %v1724_v7, %v1708_v60  ;;  %v1757_v56 = vpack.c.bf16 %v1725_v21, %v1709_v0  ;;  %v1755_v3 = vpack.c.bf16 %v1695_v53, %v5838_v18  ;;  %v1753_v51 = vpack.c.bf16 %v1693_v28, %v5852_v48 }
 0xbf8   :  { %v1752_v44 = vpack.c.bf16 %v1692_v40, %v5830_v11  ;;  %v6032_v11 = vld [vmem:[#allocation2 + $0x70] sm:$0xff]  ;;  %v6040_v40 = vld [vmem:[#allocation2 + $0x58] sm:$0xff] }
 0xbf9   :  { %1785 = vmatpush.bf16.msrb.mxu0 %v1756_v59  ;;  %1798 = vmatpush.bf16.msrb.mxu1 %v1757_v56  ;;  %v6043_v56 = vld [vmem:[#allocation2 + $0x78] sm:$0xff] }
 0xbfa   :  { %1825 = vmatpush.bf16.msrb.mxu3 %v1755_v3 }
 0xbfb   :  { %v1651_v6 = vpop.permute.xlu0 %1650  ;;  %v1667_v57 = vpop.permute.xlu1 %1666 }
 0xbfc   :  { %v1657_v27 = vsel %vm155_vm5, %v1651_v6, %v5963_v9 }
 0xbfd   :  { %1786 = vmatpush.bf16.msrb.mxu0 %v1752_v44  ;;  %1799 = vmatpush.bf16.msrb.mxu1 %v1753_v51  ;;  %v1662_v24 = vmul.f32 %v6029_v19, %v1657_v27  ;;  %v1637_v28 = vpop.permute.xlu2 %1636 }
 0xc03   :  { %v1669_v21 = vpop.permute.xlu0 %1668  ;;  %v1655_v34 = vpop.permute.xlu1 %1654 }
 0xc04   :  { %v1673_v18 = vsel %vm172_vm6, %v1667_v57, %v1669_v21  ;;  %v1656_v7 = vsel %vm155_vm5, %v5963_v9, %v1655_v34 }
 0xc05   :  { %v1678_v48 = vmul.f32 %v6032_v11, %v1673_v18  ;;  %v1663_v59 = vmul.f32 %v6040_v40, %v1656_v7  ;;  %v6051_v18 = vld [vmem:[#allocation2 + $0x10] sm:$0xff]  ;;  %v1623_v7 = vpop.permute.xlu2 %1622 }
 0xc07   :  { %v1750_v52 = vpack.c.bf16 %v1678_v48, %v1662_v24  ;;  %v6054_v48 = vld [vmem:[#allocation2 + $0x30] sm:$0xff] }
 0xc09   :  { %1813 = vmatpush.bf16.msrb.mxu2 %v1750_v52 }
 0xc0b   :  { %v1671_v60 = vpop.permute.xlu0 %1670  ;;  %v1621_v0 = vpop.permute.xlu1 %1620 }
 0xc0c   :  { %v1672_v53 = vsel %vm172_vm6, %v1669_v21, %v1671_v60  ;;  %v1625_v9 = vsel %vm121_vm7, %v6022_v55, %v1621_v0 }
 0xc0d   :  { %v1679_v3 = vmul.f32 %v6043_v56, %v1672_v53  ;;  %v1630_v24 = vmul.f32 %v6051_v18, %v1625_v9 }
 0xc0f   :  { %v1751_v44 = vpack.c.bf16 %v1679_v3, %v1663_v59  ;;  %v1624_v59 = vsel %vm121_vm7, %v1621_v0, %v1623_v7 }
 0xc11   :  { %1826 = vmatpush.bf16.msrb.mxu3 %v1751_v44  ;;  %v4202_v44 = vld [vmem:[%s7723_s2 + $0x10] sm:$0xf] }
 0xc13   :  { %v1635_v51 = vpop.permute.xlu0 %1634  ;;  %v1649_v27 = vpop.permute.xlu1 %1648 }
 0xc14   :  { %v1641_v21 = vsel %vm138_vm8, %v1635_v51, %v1637_v28  ;;  %v1659_v3 = vsel %vm155_vm5, %v1655_v34, %v1649_v27  ;;  %v1658_v9 = vsel %vm155_vm5, %v1649_v27, %v1651_v6  ;;  %v6079_v6 = vld [vmem:[#allocation2 + $0x48] sm:$0xff] }
 0xc15   :  { %v1646_v52 = vmul.f32 %v6054_v48, %v1641_v21  ;;  %v1631_v21 = vmul.f32 %v6066_v8, %v1624_v59  ;;  %v1661_v27 = vmul.f32 %v6079_v6, %v1658_v9 }
 0xc17   :  { %v1746_v53 = vpack.c.bf16 %v1646_v52, %v1630_v24  ;;  %v6069_v52 = vld [vmem:[#allocation2 + $0x40] sm:$0xff] }
 0xc18   :  { %v1660_v0 = vmul.f32 %v6069_v52, %v1659_v3  ;;  %v6084_v3 = vld [vmem:[#allocation2 + $0x38] sm:$0xff] }
 0xc19   :  { %1814 = vmatpush.bf16.msrb.mxu2 %v1746_v53 }
 0xc1b   :  { %v1665_v33 = vpop.permute.xlu0 %1664  ;;  %v1639_v24 = vpop.permute.xlu1 %1638 }
 0xc1c   :  { %v1674_v34 = vsel %vm172_vm6, %v1665_v33, %v1667_v57  ;;  %v1675_v53 = vsel %vm172_vm6, %v1671_v60, %v1665_v33  ;;  %v1640_v50 = vsel %vm138_vm8, %v1637_v28, %v1639_v24  ;;  %4205 = vmatmul.msk.bf16.vlgmr.msrb.gmra.mxu2 %vm7755_vm9, %v4202_v44  ;;  %v1633_v60 = vpop.permute.xlu2 %1632 }
 0xc1d   :  { %v1676_v59 = vmul.f32 %v5727_v47, %v1675_v53  ;;  %v1677_v46 = vmul.f32 %v5730_v42, %v1674_v34  ;;  %v1647_v57 = vmul.f32 %v6084_v3, %v1640_v50  ;;  %v1642_v28 = vsel %vm138_vm8, %v1633_v60, %v1635_v51 }
 0xc1e   :  { %v1643_v9 = vsel %vm138_vm8, %v1639_v24, %v1633_v60 }
 0xc1f   :  { %v1748_v20 = vpack.c.bf16 %v1676_v59, %v1660_v0  ;;  %v1749_v41 = vpack.c.bf16 %v1677_v46, %v1661_v27  ;;  %v1747_v33 = vpack.c.bf16 %v1647_v57, %v1631_v21  ;;  %v6096_v46 = vld [vmem:[#allocation2 + $0x28] sm:$0xff]  ;;  %v6102_v21 = vld [vmem:[#allocation2] sm:$0xff] }
 0xc20   :  { %7804 = vst [vmem:[#allocation21_spill] sm:$0xff] %v6096_v46  ;;  %v6105_v0 = vld [vmem:[#allocation2 + $0x8] sm:$0xff] }
 0xc21   :  { %1787 = vmatpush.bf16.msrb.mxu0 %v1748_v20  ;;  %1800 = vmatpush.bf16.msrb.mxu1 %v1749_v41  ;;  %v1645_v20 = vmul.f32 %v6096_v46, %v1642_v28  ;;  %v6099_v41 = vld [vmem:[#allocation2 + $0x20] sm:$0xff] }
 0xc22   :  { %1827 = vmatpush.bf16.msrb.mxu3 %v1747_v33  ;;  %v1644_v51 = vmul.f32 %v6099_v41, %v1643_v9 }
 0xc23   :  { %v1617_v47 = vpop.permute.xlu0 %1616 }
 0xc24   :  { %v1626_v42 = vsel %vm121_vm7, %v1617_v47, %v6022_v55  ;;  %v1627_v50 = vsel %vm121_vm7, %v1623_v7, %v1617_v47 }
 0xc25   :  { %v1628_v24 = vmul.f32 %v6102_v21, %v1627_v50  ;;  %v1629_v34 = vmul.f32 %v6105_v0, %v1626_v42  ;;  %4206 = vmatmul.msk.bf16.vlgmr.msrb.gmra.mxu3 %vm7755_vm9, %v4202_v44 }
 0xc27   :  { %v1744_v55 = vpack.c.bf16 %v1644_v51, %v1628_v24  ;;  %v1745_v7 = vpack.c.bf16 %v1645_v20, %v1629_v34 }
 0xc29   :  { %1788 = vmatpush.bf16.msrb.mxu0 %v1744_v55  ;;  %1801 = vmatpush.bf16.msrb.mxu1 %v1745_v7  ;;  %v1084_v55 = vld [vmem:[%s7728_s7 + $0x18] sm:$0xff] }
 0xc2c   :  { %4203 = vmatmul.msk.bf16.vlgmr.msrb.gmra.mxu0 %vm7755_vm9, %v4202_v44  ;;  %4204 = vmatmul.msk.bf16.vlgmr.msrb.gmra.mxu1 %vm7755_vm9, %v4202_v44  ;;  %v1080_v44 = vld [vmem:[%s7727_s6 + $0x18] sm:$0xff] }
 0xc46   :  { %v1104_v53 = vpop.xlane.xlu1 %1103 }
 0xc47   :  { %v1108_v27 = vmul.f32 %v1104_v53, %v4957_v5 }
 0xc49   :  { %v1152_v57 = vmul.f32 %v1108_v27, %v1108_v27 }
 0xc4e   :  { %v1144_v59 = vpop.xlane.xlu0 %1143 }
 0xc4f   :  { %v1148_v33 = vmul.f32 %v1144_v59, %v4957_v5 }
 0xc51   :  { %v1156_v60 = vsub.f32 %v1148_v33, %v1152_v57 }
 0xc53   :  { %v1160_v28 = vadd.f32 1e-05, %v1156_v60 }
 0xc55   :  { %4348 = vrsqrt.f32 %v1160_v28  ;;  %vm1197_vm15 = vweird.f32 %v1160_v28 }
 0xc5b   :  { %v4349_v9 = vpop.eup %4348 }
 0xc5c   :  { %v1192_v47 = vmul.f32 %v4349_v9, %v1160_v28  ;;  %vm1198_vm13 = vweird.f32 %v4349_v9 }
 0xc5d   :  { %vm1199_vm10 = vmor %vm1197_vm15, %vm1198_vm13 }
 0xc5e   :  { %v1193_v42 = vmul.f32 %v4349_v9, %v1192_v47 }
 0xc60   :  { %v1194_v50 = vmul.f32 0.5, %v1193_v42 }
 0xc62   :  { %v1195_v20 = vsub.f32 1.5, %v1194_v50 }
 0xc64   :  { %v1196_v51 = vmul.f32 %v4349_v9, %v1195_v20 }
 0xc66   :  { %v1200_v24 = vsel %vm1199_vm10, %v4349_v9, %v1196_v51 }
 0xc67   :  { %v1204_v34 = vmul.f32 %v1200_v24, %v1080_v44 }
 0xc69   :  { %v1208_v7 = vmul.f32 %v1204_v34, %v1108_v27 }
 0xc6b   :  { %v1212_v53 = vsub.f32 %v1084_v55, %v1208_v7 }
 0xc6d   :  { %1266 = vperm.xlu0 %4332, %v1212_v53  }
 0xc9f   :  { %v6119_v59 = vpop.f32.mrf.mxu2 }
 0xca0   :  { %v1845_v47 = vmul.f32 %v6119_v59, %v6119_v59 }
 0xca7   :  { %v1818_v57 = vpop.f32.mrf.mxu2 }
 0xca8   :  { %v1829_v33 = vpop.f32.mrf.mxu3 }
 0xca9   :  { %v1790_v60 = vpop.f32.mrf.mxu0  ;;  %v6121_v28 = vpop.f32.mrf.mxu1  ;;  %v1846_v20 = vmul.f32 %v1829_v33, %v1829_v33 }
 0xcaa   :  { %v1843_v42 = vmul.f32 %v1790_v60, %v1790_v60  ;;  %v1837_v9 = vadd.f32 %v6121_v28, %v1790_v60  ;;  %v1844_v50 = vmul.f32 %v6121_v28, %v6121_v28 }
 0xcac   :  { %v1838_v27 = vadd.f32 %v1837_v9, %v6119_v59  ;;  %v1847_v51 = vadd.f32 %v1844_v50, %v1843_v42 }
 0xcae   :  { %v1839_v44 = vadd.f32 %v1838_v27, %v1829_v33  ;;  %v1848_v24 = vadd.f32 %v1847_v51, %v1845_v47 }
 0xcb0   :  { %v1831_v55 = vpop.f32.mrf.mxu3  ;;  %1840 = vadd.xlane.f32.xlu2 %v1839_v44  ;;  %v1849_v7 = vadd.f32 %v1848_v24, %v1846_v20 }
 0xcb1   :  { %v1792_v53 = vpop.f32.mrf.mxu0  ;;  %v1805_v57 = vpop.f32.mrf.mxu1 }
 0xcb2   :  { %1850 = vadd.xlane.f32.xlu1 %v1849_v7 }
 0xcc8   :  { %1230 = vperm.xlu2 %4333, %v1204_v34   ;;  %v4207_v34 = vld [vmem:[%s7724_s3 + $0x20] sm:$0xff] }
 0xcdf   :  { %v1267_v55 = vpop.permute.xlu0 %1266 }
 0xd23   :  { %v1841_v16 = vpop.xlane.xlu2 %1840 }
 0xd24   :  { %v1842_v62 = vmul.f32 %v1841_v16, %v4957_v5 }
 0xd25   :  { %v1851_v63 = vpop.xlane.xlu1 %1850 }
 0xd26   :  { %v1853_v26 = vmul.f32 %v1842_v62, %v1842_v62  ;;  %v1852_v38 = vmul.f32 %v1851_v63, %v4957_v5 }
 0xd28   :  { %v1854_v30 = vsub.f32 %v1852_v38, %v1853_v26 }
 0xd2a   :  { %v1855_v46 = vadd.f32 1e-05, %v1854_v30  ;;  %v4208_v30 = vld [vmem:[%s7725_s4 + $0x20] sm:$0xff] }
 0xd2b   :  { %v1231_v38 = vpop.permute.xlu2 %1230 }
 0xd2c   :  { %4350 = vrsqrt.f32 %v1855_v46  ;;  %vm1862_vm12 = vweird.f32 %v1855_v46  ;;  %v1245_v44 = vmul.f32 %v1231_v38, %v5769_v25  ;;  %v1248_v24 = vmul.f32 %v1231_v38, %v5765_v29 }
 0xd2e   :  { %v1281_v7 = vadd.f32 %v1267_v55, %v1245_v44  ;;  %v1284_v57 = vadd.f32 %v1267_v55, %v1248_v24 }
 0xd32   :  { %v4351_v42 = vpop.eup %4350 }
 0xd33   :  { %v1857_v9 = vmul.f32 %v4351_v42, %v1855_v46  ;;  %vm1863_vm11 = vweird.f32 %v4351_v42  ;;  %v1247_v46 = vmul.f32 %v1231_v38, %v5763_v54  ;;  %v4458_v54 = vld [vmem:[%s7721_s0 + $0x78] sm:$0xff] }
 0xd34   :  { %vm1864_vm13 = vmor %vm1862_vm12, %vm1863_vm11  ;;  %v1300_v29 = vadd.f32 %v4458_v54, %v1284_v57 }
 0xd35   :  { %v1858_v47 = vmul.f32 %v4351_v42, %v1857_v9  ;;  %v1283_v53 = vadd.f32 %v1267_v55, %v1247_v46  ;;  %v4456_v9 = vld [vmem:[%s7721_s0 + $0x60] sm:$0xff] }
 0xd36   :  { %v1316_v46 = vmul.f32 0.01, %v1300_v29 }
 0xd37   :  { %v1859_v50 = vmul.f32 0.5, %v1858_v47  ;;  %v4457_v47 = vld [vmem:[%s7721_s0 + $0x70] sm:$0xff] }
 0xd38   :  { %v1299_v25 = vadd.f32 %v4457_v47, %v1283_v53 }
 0xd39   :  { %v1860_v27 = vsub.f32 1.5, %v1859_v50 }
 0xd3b   :  { %v1861_v20 = vmul.f32 %v4351_v42, %v1860_v27 }
 0xd3d   :  { %v1865_v16 = vsel %vm1864_vm13, %v4351_v42, %v1861_v20  ;;  %v1246_v42 = vmul.f32 %v1231_v38, %v5771_v39 }
 0xd3e   :  { %v1866_v51 = vmul.f32 %v4207_v34, %v1865_v16 }
 0xd3f   :  { %v1282_v20 = vadd.f32 %v1267_v55, %v1246_v42 }
 0xd40   :  { %1871 = vperm.xlu1 %4331, %v1866_v51   ;;  %v1867_v26 = vmul.f32 %v1866_v51, %v1842_v62  ;;  %v1297_v62 = vadd.f32 %v4456_v9, %v1281_v7  ;;  %v1315_v51 = vmul.f32 0.01, %v1299_v25  ;;  %v6163_v9 = vmax.f32 %v1300_v29, %v1316_v46 }
 0xd42   :  { %v1868_v63 = vsub.f32 %v4208_v30, %v1867_v26  ;;  %v1313_v16 = vmul.f32 0.01, %v1297_v62  ;;  %v6157_v55 = vmax.f32 %v1299_v25, %v1315_v51  ;;  %7807 = vst [vmem:[#allocation24_spill] sm:$0xff] %v6163_v9 }
 0xd44   :  { %1880 = vperm.xlu0 %4332, %v1868_v63   ;;  %7806 = vst [vmem:[#allocation23_spill] sm:$0xff] %v6157_v55 }
 0xdb2   :  { %v1872_v50 = vpop.permute.xlu1 %1871 }
 0xdb3   :  { %v1874_v27 = vmul.f32 %v1872_v50, %v1790_v60  ;;  %v1876_v34 = vmul.f32 %v1872_v50, %v6119_v59  ;;  %v1877_v39 = vmul.f32 %v1872_v50, %v1829_v33  ;;  %v1875_v26 = vmul.f32 %v1872_v50, %v6121_v28  ;;  %v4459_v60 = vld [vmem:[%s7721_s0 + $0x68] sm:$0xff] }
 0xdb4   :  { %v1298_v57 = vadd.f32 %v4459_v60, %v1282_v20  ;;  %v6155_v33 = vmax.f32 %v1297_v62, %v1313_v16 }
 0xdb6   :  { %v1881_v30 = vpop.permute.xlu0 %1880  ;;  %7805 = vst [vmem:[#allocation22_spill] sm:$0xff] %v6155_v33  ;;  %v1314_v25 = vmul.f32 0.01, %v1298_v57 }
 0xdb7   :  { %v1883_v63 = vadd.f32 %v1881_v30, %v1874_v27  ;;  %v1885_v38 = vadd.f32 %v1881_v30, %v1876_v34  ;;  %v1886_v44 = vadd.f32 %v1881_v30, %v1877_v39  ;;  %v1884_v24 = vadd.f32 %v1881_v30, %v1875_v26 }
 0xdb8   :  { %v6187_v34 = vmax.f32 %v1298_v57, %v1314_v25 }
 0xdb9   :  { %v1887_v7 = vmul.f32 0.01, %v1883_v63  ;;  %v1889_v53 = vmul.f32 0.01, %v1885_v38  ;;  %v1890_v59 = vmul.f32 0.01, %v1886_v44 }
 0xdba   :  { %v1888_v50 = vmul.f32 0.01, %v1884_v24  ;;  %7808 = vst [vmem:[#allocation25_spill] sm:$0xff] %v6187_v34 }
 0xdbb   :  { %v6159_v42 = vmax.f32 %v1883_v63, %v1887_v7  ;;  %v6161_v28 = vmax.f32 %v1885_v38, %v1889_v53  ;;  %v6165_v47 = vmax.f32 %v1886_v44, %v1890_v59  ;;  %v1085_v44 = vadd.f32 %v5518_v22, %v5516_v2 }
 0xdbc   :  { %v6185_v29 = vmax.f32 %v1884_v24, %v1888_v50 }
 0xdbd   :  { %v6169_v54 = vadd.f32 %v6159_v42, %v6155_v33  ;;  %v6173_v27 = vadd.f32 %v6161_v28, %v6157_v55  ;;  %v6177_v62 = vadd.f32 %v6165_v47, %v6163_v9  ;;  %v1086_v7 = vadd.f32 %v1085_v44, %v5520_v23 }
 0xdbe   :  { %v6191_v39 = vadd.f32 %v6185_v29, %v6187_v34 }
 0xdbf   :  { %2015 = vrot.lane.b32.xlu2 %v6173_v27, %s4600_s28  ;;  %2011 = vrot.lane.b32.xlu0 %v6169_v54, %s4600_s28 }
 0xdc0   :  { %2017 = vrot.lane.b32.xlu1 %v6177_v62, %s4600_s28 }
 0xdc7   :  { %2013 = vrot.lane.b32.xlu2 %v6191_v39, %s4600_s28  ;;  %1985 = vrot.lane.b32.xlu0 %v6177_v62, %s4599_s1 }
 0xdc8   :  { %1983 = vrot.lane.b32.xlu1 %v6173_v27, %s4599_s1 }
 0xdcf   :  { %1999 = vrot.lane.b32.xlu2 %v6173_v27, %s4601_s14  ;;  %1979 = vrot.lane.b32.xlu0 %v6169_v54, %s4599_s1 }
 0xdd0   :  { %2001 = vrot.lane.b32.xlu1 %v6177_v62, %s4601_s14 }
 0xdd7   :  { %1995 = vrot.lane.b32.xlu2 %v6169_v54, %s4601_s14  ;;  %1969 = vrot.lane.b32.xlu0 %v6177_v62, %s4602_s15 }
 0xdd8   :  { %1967 = vrot.lane.b32.xlu1 %v6173_v27, %s4602_s15 }
 0xddf   :  { %1981 = vrot.lane.b32.xlu2 %v6191_v39, %s4599_s1  ;;  %1963 = vrot.lane.b32.xlu0 %v6169_v54, %s4602_s15 }
 0xde0   :  { %1997 = vrot.lane.b32.xlu1 %v6191_v39, %s4601_s14 }
 0xde7   :  { %1933 = vrot.lane.b32.xlu2 %v6191_v39, %s4603_s16  ;;  %1949 = vrot.lane.b32.xlu0 %v6191_v39, %s4604_s17 }
 0xde8   :  { %1935 = vrot.lane.b32.xlu1 %v6173_v27, %s4603_s16 }
 0xdef   :  { %1951 = vrot.lane.b32.xlu2 %v6173_v27, %s4604_s17  ;;  %1937 = vrot.lane.b32.xlu0 %v6177_v62, %s4603_s16 }
 0xdf0   :  { %1965 = vrot.lane.b32.xlu1 %v6191_v39, %s4602_s15 }
 0xdf7   :  { %1953 = vrot.lane.b32.xlu2 %v6177_v62, %s4604_s17  ;;  %1903 = vrot.lane.b32.xlu0 %v6173_v27, %s4605_s18 }
 0xdf8   :  { %1901 = vrot.lane.b32.xlu1 %v6191_v39, %s4605_s18 }
 0xdff   :  { %1917 = vrot.lane.b32.xlu2 %v6191_v39, %s4606_s19  ;;  %1931 = vrot.lane.b32.xlu0 %v6169_v54, %s4603_s16 }
 0xe00   :  { %1919 = vrot.lane.b32.xlu1 %v6173_v27, %s4606_s19 }
 0xe07   :  { %1947 = vrot.lane.b32.xlu2 %v6169_v54, %s4604_s17  ;;  %1921 = vrot.lane.b32.xlu0 %v6177_v62, %s4606_s19 }
 0xe08   :  { %1905 = vrot.lane.b32.xlu1 %v6177_v62, %s4605_s18 }
 0xe0f   :  { %1899 = vrot.lane.b32.xlu2 %v6169_v54, %s4605_s18 }
 0xe10   :  { %1915 = vrot.lane.b32.xlu1 %v6169_v54, %s4606_s19 }
 0xe19   :  { %v2016_v20 = vpop.permute.xlu2 %2015 }
 0xe21   :  { %v2014_v16 = vpop.permute.xlu2 %2013 }
 0xe22   :  { %v2020_v51 = vsel %vm240_vm0, %v2014_v16, %v2016_v20 }
 0xe23   :  { %v2024_v30 = vmul.f32 %v5947_v49, %v2020_v51 }
 0xe25   :  { %v2044_v26 = vpack.c.bf16 %v2024_v30, %v2024_v30  ;;  %v1087_v30 = vadd.f32 %v1086_v7, %v5522_v35 }
 0xe27   :  { %v2056_v63 = vsel %vm274_vm1, %v2044_v26, 0 }
 0xe28   :  { %2080 = vmatpush.bf16.msra.mxu1 %v2056_v63 }
 0xe29   :  { %v2000_v38 = vpop.permute.xlu2 %1999 }
 0xe31   :  { %v1996_v46 = vpop.permute.xlu2 %1995  ;;  %v2012_v24 = vpop.permute.xlu0 %2011 }
 0xe32   :  { %v2018_v53 = vpop.permute.xlu1 %2017  ;;  %v2021_v60 = vsel %vm240_vm0, %v2012_v24, %v2014_v16 }
 0xe33   :  { %v2019_v57 = vsel %vm240_vm0, %v2016_v20, %v2018_v53  ;;  %v2022_v49 = vsel %vm240_vm0, %v2018_v53, %v2012_v24  ;;  %v2023_v59 = vmul.f32 %v5944_v58, %v2021_v60 }
 0xe34   :  { %v2025_v50 = vmul.f32 %v5932_v32, %v2019_v57  ;;  %v2026_v25 = vmul.f32 %v5935_v17, %v2022_v49 }
 0xe35   :  { %v2043_v51 = vpack.c.bf16 %v2023_v59, %v2023_v59 }
 0xe36   :  { %v2045_v26 = vpack.c.bf16 %v2025_v50, %v2025_v50  ;;  %v2046_v63 = vpack.c.bf16 %v2026_v25, %v2026_v25 }
 0xe37   :  { %v2053_v44 = vsel %vm274_vm1, %v2043_v51, 0 }
 0xe38   :  { %v2059_v16 = vsel %vm274_vm1, %v2045_v26, 0  ;;  %1088 = vadd.xlane.f32.xlu2 %v1087_v30  ;;  %2067 = vmatpush.bf16.msra.mxu0 %v2053_v44  ;;  %v2062_v20 = vsel %vm274_vm1, %v2046_v63, 0 }
 0xe39   :  { %2093 = vmatpush.bf16.msra.mxu2 %v2059_v16  ;;  %2106 = vmatpush.bf16.msra.mxu3 %v2062_v20  ;;  %v1986_v58 = vpop.permute.xlu0 %1985  ;;  %v1982_v32 = vpop.permute.xlu2 %1981 }
 0xe3a   :  { %v1984_v24 = vpop.permute.xlu1 %1983 }
 0xe3b   :  { %v1987_v17 = vsel %vm206_vm2, %v1984_v24, %v1986_v58 }
 0xe3c   :  { %v1993_v50 = vmul.f32 %v5957_v45, %v1987_v17 }
 0xe41   :  { %v1980_v53 = vpop.permute.xlu0 %1979  ;;  %v6283_v30 = vpop.permute.xlu2 %1933 }
 0xe42   :  { %v2002_v7 = vpop.permute.xlu1 %2001  ;;  %v1990_v60 = vsel %vm206_vm2, %v1986_v58, %v1980_v53 }
 0xe43   :  { %v2003_v57 = vsel %vm223_vm3, %v2000_v38, %v2002_v7  ;;  %v2006_v49 = vsel %vm223_vm3, %v2002_v7, %v1996_v46  ;;  %v1994_v59 = vmul.f32 %v5972_v43, %v1990_v60 }
 0xe44   :  { %v2009_v25 = vmul.f32 %v5960_v14, %v2003_v57  ;;  %v2010_v51 = vmul.f32 %v5975_v12, %v2006_v49  ;;  %v1988_v14 = vsel %vm206_vm2, %v1982_v32, %v1984_v24  ;;  %v1989_v12 = vsel %vm206_vm2, %v1980_v53, %v1982_v32 }
 0xe45   :  { %v1992_v49 = vmul.f32 %v6007_v13, %v1988_v14  ;;  %v1991_v24 = vmul.f32 %v6004_v61, %v1989_v12 }
 0xe46   :  { %v2041_v26 = vpack.c.bf16 %v2009_v25, %v1993_v50  ;;  %v2042_v63 = vpack.c.bf16 %v2010_v51, %v1994_v59 }
 0xe48   :  { %2094 = vmatpush.bf16.msra.mxu2 %v2041_v26  ;;  %2107 = vmatpush.bf16.msra.mxu3 %v2042_v63 }
 0xe49   :  { %v1970_v44 = vpop.permute.xlu0 %1969  ;;  %v1952_v43 = vpop.permute.xlu2 %1951 }
 0xe4a   :  { %v1968_v16 = vpop.permute.xlu1 %1967 }
 0xe4b   :  { %v1971_v20 = vsel %vm189_vm4, %v1968_v16, %v1970_v44 }
 0xe4c   :  { %v1977_v58 = vmul.f32 %v5978_v1, %v1971_v20 }
 0xe4e   :  { %v2037_v45 = vpack.c.bf16 %v1977_v58, %v6173_v27 }
 0xe50   :  { %2095 = vmatpush.bf16.msra.mxu2 %v2037_v45 }
 0xe51   :  { %v1964_v17 = vpop.permute.xlu0 %1963  ;;  %v1954_v51 = vpop.permute.xlu2 %1953 }
 0xe52   :  { %v1998_v7 = vpop.permute.xlu1 %1997  ;;  %v1974_v60 = vsel %vm189_vm4, %v1970_v44, %v1964_v17 }
 0xe53   :  { %v2004_v57 = vsel %vm223_vm3, %v1998_v7, %v2000_v38  ;;  %v2005_v1 = vsel %vm223_vm3, %v1996_v46, %v1998_v7  ;;  %v1978_v27 = vmul.f32 %v6010_v31, %v1974_v60 }
 0xe54   :  { %v2007_v59 = vmul.f32 %v6001_v36, %v2005_v1  ;;  %v2008_v32 = vmul.f32 %v5986_v15, %v2004_v57 }
 0xe55   :  { %v2038_v53 = vpack.c.bf16 %v1978_v27, %v6177_v62  ;;  %v1955_v62 = vsel %vm172_vm6, %v1952_v43, %v1954_v51 }
 0xe56   :  { %v2039_v50 = vpack.c.bf16 %v2007_v59, %v1991_v24  ;;  %v2040_v25 = vpack.c.bf16 %v2008_v32, %v1992_v49  ;;  %v6340_v24 = vld [vmem:[#allocation2 + $0x68] sm:$0xff] }
 0xe57   :  { %2108 = vmatpush.bf16.msra.mxu3 %v2038_v53 }
 0xe58   :  { %2068 = vmatpush.bf16.msra.mxu0 %v2039_v50  ;;  %2081 = vmatpush.bf16.msra.mxu1 %v2040_v25 }
 0xe59   :  { %v1950_v38 = vpop.permute.xlu0 %1949  ;;  %v1918_v63 = vpop.permute.xlu2 %1917 }
 0xe5a   :  { %v1936_v46 = vpop.permute.xlu1 %1935  ;;  %v1956_v31 = vsel %vm172_vm6, %v1950_v38, %v1952_v43 }
 0xe5b   :  { %v1940_v61 = vsel %vm155_vm5, %v6283_v30, %v1936_v46  ;;  %v1961_v36 = vmul.f32 %v6032_v11, %v1956_v31  ;;  %v1962_v11 = vmul.f32 %v6043_v56, %v1955_v62  ;;  %v4209_v31 = vld [vmem:[%s7723_s2 + $0x14] sm:$0xf] }
 0xe5c   :  { %v1945_v15 = vmul.f32 %v6029_v19, %v1940_v61 }
 0xe5e   :  { %v2033_v13 = vpack.c.bf16 %v1961_v36, %v1945_v15 }
 0xe60   :  { %2096 = vmatpush.bf16.msra.mxu2 %v2033_v13 }
 0xe61   :  { %v1938_v26 = vpop.permute.xlu0 %1937  ;;  %v1948_v1 = vpop.permute.xlu2 %1947 }
 0xe62   :  { %v1966_v44 = vpop.permute.xlu1 %1965  ;;  %v1939_v20 = vsel %vm155_vm5, %v1936_v46, %v1938_v26  ;;  %v1958_v56 = vsel %vm172_vm6, %v1954_v51, %v1948_v1 }
 0xe63   :  { %v1972_v58 = vsel %vm189_vm4, %v1966_v44, %v1968_v16  ;;  %v1973_v45 = vsel %vm189_vm4, %v1964_v17, %v1966_v44  ;;  %v1946_v43 = vmul.f32 %v6040_v40, %v1939_v20 }
 0xe64   :  { %v1975_v19 = vmul.f32 %v6016_v4, %v1973_v45  ;;  %v1976_v14 = vmul.f32 %v6013_v37, %v1972_v58  ;;  %v1957_v4 = vsel %vm172_vm6, %v1948_v1, %v1950_v38 }
 0xe65   :  { %v2034_v60 = vpack.c.bf16 %v1962_v11, %v1946_v43  ;;  %v1960_v59 = vmul.f32 %v6340_v24, %v1957_v4  ;;  %v7809_v11 = vld [vmem:[#allocation21_spill] sm:$0xff] }
 0xe66   :  { %v2035_v12 = vpack.c.bf16 %v1975_v19, %v6169_v54  ;;  %v2036_v7 = vpack.c.bf16 %v1976_v14, %v6191_v39  ;;  %v6332_v54 = vld [vmem:[#allocation2 + $0x60] sm:$0xff] }
 0xe67   :  { %2109 = vmatpush.bf16.msra.mxu3 %v2034_v60  ;;  %v1959_v39 = vmul.f32 %v6332_v54, %v1958_v56 }
 0xe68   :  { %2069 = vmatpush.bf16.msra.mxu0 %v2035_v12  ;;  %2082 = vmatpush.bf16.msra.mxu1 %v2036_v7 }
 0xe69   :  { %v1904_v16 = vpop.permute.xlu0 %1903  ;;  %v1900_v15 = vpop.permute.xlu2 %1899 }
 0xe6a   :  { %v1902_v57 = vpop.permute.xlu1 %1901 }
 0xe6b   :  { %v1908_v37 = vsel %vm121_vm7, %v1902_v57, %v1904_v16  ;;  %v1909_v62 = vsel %vm121_vm7, %v1900_v15, %v1902_v57 }
 0xe6c   :  { %v1913_v25 = vmul.f32 %v6051_v18, %v1908_v37 }
 0xe71   :  { %v1932_v40 = vpop.permute.xlu0 %1931 }
 0xe72   :  { %v1920_v17 = vpop.permute.xlu1 %1919  ;;  %v1941_v27 = vsel %vm155_vm5, %v1932_v40, %v6283_v30  ;;  %v1942_v49 = vsel %vm155_vm5, %v1938_v26, %v1932_v40 }
 0xe73   :  { %v1924_v32 = vsel %vm138_vm8, %v1918_v63, %v1920_v17  ;;  %v1943_v53 = vmul.f32 %v6069_v52, %v1942_v49  ;;  %v1944_v50 = vmul.f32 %v6079_v6, %v1941_v27 }
 0xe74   :  { %v1929_v51 = vmul.f32 %v6054_v48, %v1924_v32 }
 0xe75   :  { %v2031_v38 = vpack.c.bf16 %v1959_v39, %v1943_v53  ;;  %v2032_v30 = vpack.c.bf16 %v1960_v59, %v1944_v50 }
 0xe76   :  { %v2029_v46 = vpack.c.bf16 %v1929_v51, %v1913_v25  ;;  %v1112_v51 = vmul.f32 %v5522_v35, %v5522_v35 }
 0xe77   :  { %2070 = vmatpush.bf16.msra.mxu0 %v2031_v38  ;;  %2083 = vmatpush.bf16.msra.mxu1 %v2032_v30 }
 0xe78   :  { %2097 = vmatpush.bf16.msra.mxu2 %v2029_v46 }
 0xe79   :  { %v1922_v61 = vpop.permute.xlu0 %1921 }
 0xe7a   :  { %v1906_v36 = vpop.permute.xlu1 %1905  ;;  %v1923_v52 = vsel %vm138_vm8, %v1920_v17, %v1922_v61  ;;  %v1111_v17 = vmul.f32 %v5520_v23, %v5520_v23 }
 0xe7b   :  { %v1907_v18 = vsel %vm121_vm7, %v1904_v16, %v1906_v36  ;;  %v1930_v48 = vmul.f32 %v6084_v3, %v1923_v52  ;;  %4212 = vmatmul.msk.bf16.vlgmr.msra.gmra.mxu2 %vm7755_vm9, %v4209_v31  ;;  %v1910_v26 = vsel %vm121_vm7, %v1906_v36, %v1900_v15 }
 0xe7c   :  { %v1914_v6 = vmul.f32 %v6066_v8, %v1907_v18  ;;  %v1912_v8 = vmul.f32 %v6105_v0, %v1909_v62  ;;  %v1911_v58 = vmul.f32 %v6102_v21, %v1910_v26  ;;  %v1109_v21 = vmul.f32 %v5516_v2, %v5516_v2 }
 0xe7e   :  { %v2030_v13 = vpack.c.bf16 %v1930_v48, %v1914_v6 }
 0xe80   :  { %2110 = vmatpush.bf16.msra.mxu3 %v2030_v13 }
 0xe82   :  { %v1916_v44 = vpop.permute.xlu1 %1915 }
 0xe83   :  { %v1925_v20 = vsel %vm138_vm8, %v1916_v44, %v1918_v63  ;;  %v1926_v3 = vsel %vm138_vm8, %v1922_v61, %v1916_v44  ;;  %4213 = vmatmul.msk.bf16.vlgmr.msra.gmra.mxu3 %vm7755_vm9, %v4209_v31 }
 0xe84   :  { %v1927_v45 = vmul.f32 %v6099_v41, %v1926_v3  ;;  %v1928_v19 = vmul.f32 %v7809_v11, %v1925_v20  ;;  %v1110_v41 = vmul.f32 %v5518_v22, %v5518_v22 }
 0xe86   :  { %v2027_v14 = vpack.c.bf16 %v1927_v45, %v1911_v58  ;;  %v2028_v43 = vpack.c.bf16 %v1928_v19, %v1912_v8  ;;  %v1125_v39 = vadd.f32 %v1110_v41, %v1109_v21 }
 0xe88   :  { %2071 = vmatpush.bf16.msra.mxu0 %v2027_v14  ;;  %2084 = vmatpush.bf16.msra.mxu1 %v2028_v43  ;;  %v1126_v25 = vadd.f32 %v1125_v39, %v1111_v17  ;;  %v4214_v43 = vld [vmem:[%s7724_s3 + $0x28] sm:$0xff] }
 0xe8a   :  { %v1127_v38 = vadd.f32 %v1126_v25, %v1112_v51 }
 0xe8b   :  { %4210 = vmatmul.msk.bf16.vlgmr.msra.gmra.mxu0 %vm7755_vm9, %v4209_v31  ;;  %4211 = vmatmul.msk.bf16.vlgmr.msra.gmra.mxu1 %vm7755_vm9, %v4209_v31 }
 0xeab   :  { %v1089_v31 = vpop.xlane.xlu2 %1088 }
 0xeac   :  { %v1105_v18 = vmul.f32 %v1089_v31, %v4957_v5 }
 0xeae   :  { %v1149_v13 = vmul.f32 %v1105_v18, %v1105_v18 }
 0xefe   :  { %v6374_v63 = vpop.f32.mrf.mxu2 }
 0xeff   :  { %v2128_v16 = vmul.f32 %v6374_v63, %v6374_v63 }
 0xf06   :  { %v6376_v12 = vpop.f32.mrf.mxu3  ;;  %v2101_v7 = vpop.f32.mrf.mxu2 }
 0xf07   :  { %v2129_v4 = vmul.f32 %v6376_v12, %v6376_v12 }
 0xf08   :  { %v6382_v0 = vpop.f32.mrf.mxu0  ;;  %v6384_v60 = vpop.f32.mrf.mxu1 }
 0xf09   :  { %v2126_v57 = vmul.f32 %v6382_v0, %v6382_v0  ;;  %v2120_v1 = vadd.f32 %v6384_v60, %v6382_v0  ;;  %v2127_v56 = vmul.f32 %v6384_v60, %v6384_v60 }
 0xf0b   :  { %v2121_v37 = vadd.f32 %v2120_v1, %v6374_v63  ;;  %v2130_v40 = vadd.f32 %v2127_v56, %v2126_v57  ;;  %v4215_v1 = vld [vmem:[%s7725_s4 + $0x28] sm:$0xff] }
 0xf0d   :  { %v2122_v27 = vadd.f32 %v2121_v37, %v6376_v12  ;;  %v2131_v49 = vadd.f32 %v2130_v40, %v2128_v16 }
 0xf0e   :  { %v2114_v59 = vpop.f32.mrf.mxu3 }
 0xf0f   :  { %2123 = vadd.xlane.f32.xlu0 %v2122_v27  ;;  %v2132_v32 = vadd.f32 %v2131_v49, %v2129_v4  ;;  %v1077_v4 = vld [vmem:[%s7727_s6] sm:$0xff] }
 0xf10   :  { %v2075_v53 = vpop.f32.mrf.mxu0  ;;  %v2088_v50 = vpop.f32.mrf.mxu1  ;;  %v1081_v27 = vld [vmem:[%s7728_s7] sm:$0xff] }
 0xf11   :  { %2133 = vadd.xlane.f32.xlu1 %v2132_v32 }
 0xf17   :  { %1128 = vadd.xlane.f32.xlu0 %v1127_v38 }
 0xf82   :  { %v2124_v30 = vpop.xlane.xlu0 %2123 }
 0xf83   :  { %v2125_v46 = vmul.f32 %v2124_v30, %v4957_v5 }
 0xf84   :  { %v2134_v61 = vpop.xlane.xlu1 %2133 }
 0xf85   :  { %v2136_v36 = vmul.f32 %v2125_v46, %v2125_v46  ;;  %v2135_v52 = vmul.f32 %v2134_v61, %v4957_v5 }
 0xf87   :  { %v2137_v48 = vsub.f32 %v2135_v52, %v2136_v36 }
 0xf89   :  { %v2138_v6 = vadd.f32 1e-05, %v2137_v48 }
 0xf8a   :  { %v1129_v15 = vpop.xlane.xlu0 %1128 }
 0xf8b   :  { %4352 = vrsqrt.f32 %v2138_v6  ;;  %v1145_v62 = vmul.f32 %v1129_v15, %v4957_v5  ;;  %vm2145_vm10 = vweird.f32 %v2138_v6 }
 0xf8d   :  { %v1153_v26 = vsub.f32 %v1145_v62, %v1149_v13 }
 0xf8f   :  { %v1157_v44 = vadd.f32 1e-05, %v1153_v26 }
 0xf91   :  { %v4353_v20 = vpop.eup %4352  ;;  %4354 = vrsqrt.f32 %v1157_v44  ;;  %vm1167_vm13 = vweird.f32 %v1157_v44 }
 0xf92   :  { %v2140_v3 = vmul.f32 %v4353_v20, %v2138_v6  ;;  %vm2146_vm15 = vweird.f32 %v4353_v20 }
 0xf93   :  { %vm2147_vm11 = vmor %vm2145_vm10, %vm2146_vm15 }
 0xf94   :  { %v2141_v8 = vmul.f32 %v4353_v20, %v2140_v3 }
 0xf96   :  { %v2142_v58 = vmul.f32 0.5, %v2141_v8 }
 0xf97   :  { %v4355_v45 = vpop.eup %4354 }
 0xf98   :  { %v2143_v11 = vsub.f32 1.5, %v2142_v58  ;;  %v1162_v19 = vmul.f32 %v4355_v45, %v1157_v44  ;;  %vm1168_vm12 = vweird.f32 %v4355_v45 }
 0xf99   :  { %vm1169_vm9 = vmor %vm1167_vm13, %vm1168_vm12 }
 0xf9a   :  { %v1163_v14 = vmul.f32 %v4355_v45, %v1162_v19  ;;  %v2144_v7 = vmul.f32 %v4353_v20, %v2143_v11 }
 0xf9c   :  { %v1164_v21 = vmul.f32 0.5, %v1163_v14  ;;  %v2148_v41 = vsel %vm2147_vm11, %v4353_v20, %v2144_v7  ;;  %v4464_v14 = vld [vmem:[%s7721_s0 + $0x10] sm:$0xff]  ;;  %v4465_v7 = vld [vmem:[%s7721_s0 + $0x18] sm:$0xff]  ;;  %vm7830_vm11 = vcmask 588800  }
 0xf9d   :  { %v2149_v16 = vmul.f32 %v4214_v43, %v2148_v41  ;;  %vm7831_vm12 = vmmov %vm7830_vm11 }
 0xf9e   :  { %v1165_v57 = vsub.f32 1.5, %v1164_v21  ;;  %vm7834_vm13 = vmmov %vm7830_vm11 }
 0xf9f   :  { %2154 = vperm.xlu2 %4333, %v2149_v16   ;;  %v2150_v56 = vmul.f32 %v2149_v16, %v2125_v46 }
 0xfa0   :  { %v1166_v37 = vmul.f32 %v4355_v45, %v1165_v57 }
 0xfa1   :  { %v2151_v40 = vsub.f32 %v4215_v1, %v2150_v56 }
 0xfa2   :  { %v1170_v39 = vsel %vm1169_vm9, %v4355_v45, %v1166_v37  ;;  %v7814_v37 = vld [vmem:[#allocation15_spill] sm:$0xff] }
 0xfa3   :  { %2163 = vperm.xlu0 %4332, %v2151_v40   ;;  %v1201_v17 = vmul.f32 %v1170_v39, %v1077_v4 }
 0xfa5   :  { %1215 = vperm.xlu1 %4331, %v1201_v17   ;;  %v1205_v49 = vmul.f32 %v1201_v17, %v1105_v18  ;;  %v7816_v17 = vld [vmem:[#allocation16_spill] sm:$0xff] }
 0xfa7   :  { %v1209_v59 = vsub.f32 %v1081_v27, %v1205_v49  ;;  %v7817_v49 = vld [vmem:[#allocation18_spill] sm:$0xff] }
 0xfa9   :  { %1251 = vperm.xlu2 %4333, %v1209_v59  }
 0xff9   :  { %v2155_v32 = vpop.permute.xlu2 %2154 }
 0xffa   :  { %v2157_v53 = vmul.f32 %v2155_v32, %v6382_v0  ;;  %v2158_v50 = vmul.f32 %v2155_v32, %v6384_v60  ;;  %v2159_v25 = vmul.f32 %v2155_v32, %v6374_v63  ;;  %v2160_v51 = vmul.f32 %v2155_v32, %v6376_v12  ;;  %v4311_v32 = vld [vmem:[%s7726_s5 + $0x10] sm:$0xff] }
0x1003   :  { %v1252_v15 = vpop.permute.xlu2 %1251 }
0x1015   :  { %v2164_v38 = vpop.permute.xlu0 %2163 }
0x1016   :  { %v2166_v30 = vadd.f32 %v2164_v38, %v2157_v53  ;;  %v2167_v46 = vadd.f32 %v2164_v38, %v2158_v50  ;;  %v2168_v31 = vadd.f32 %v2164_v38, %v2159_v25  ;;  %v2169_v61 = vadd.f32 %v2164_v38, %v2160_v51 }
0x1017   :  { %v1216_v36 = vpop.permute.xlu1 %1215 }
0x1018   :  { %v2170_v52 = vmul.f32 0.01, %v2166_v30  ;;  %v2171_v48 = vmul.f32 0.01, %v2167_v46  ;;  %v2172_v18 = vmul.f32 0.01, %v2168_v31  ;;  %v1233_v6 = vmul.f32 %v1216_v36, %v5516_v2 }
0x1019   :  { %v2173_v13 = vmul.f32 0.01, %v2169_v61  ;;  %v1234_v0 = vmul.f32 %v1216_v36, %v5518_v22  ;;  %v1235_v60 = vmul.f32 %v1216_v36, %v5520_v23  ;;  %v1236_v63 = vmul.f32 %v1216_v36, %v5522_v35  ;;  %v4462_v2 = vld [vmem:[%s7721_s0] sm:$0xff]  ;;  %v4463_v35 = vld [vmem:[%s7721_s0 + $0x8] sm:$0xff] }
0x101a   :  { %v1269_v12 = vadd.f32 %v1252_v15, %v1233_v6  ;;  %v2174_v62 = vmax.f32 %v2166_v30, %v2170_v52  ;;  %v2175_v26 = vmax.f32 %v2167_v46, %v2171_v48  ;;  %v2176_v44 = vmax.f32 %v2168_v31, %v2172_v18 }
0x101b   :  { %v1270_v20 = vadd.f32 %v1252_v15, %v1234_v0  ;;  %v1271_v3 = vadd.f32 %v1252_v15, %v1235_v60  ;;  %v1272_v8 = vadd.f32 %v1252_v15, %v1236_v63  ;;  %v2177_v58 = vmax.f32 %v2169_v61, %v2173_v13 }
0x101c   :  { %v1285_v45 = vadd.f32 %v4462_v2, %v1269_v12  ;;  %v2182_v11 = vpack.c.bf16 %v2174_v62, %v6159_v42  ;;  %v2183_v22 = vpack.c.bf16 %v2175_v26, %v6185_v29  ;;  %v2184_v23 = vpack.c.bf16 %v2176_v44, %v6161_v28 }
0x101d   :  { %v1286_v19 = vadd.f32 %v4463_v35, %v1270_v20  ;;  %v1287_v43 = vadd.f32 %v4464_v14, %v1271_v3  ;;  %v1288_v21 = vadd.f32 %v4465_v7, %v1272_v8  ;;  %v2185_v42 = vpack.c.bf16 %v2177_v58, %v6165_v47  ;;  %v7815_v47 = vld [vmem:[#allocation19_spill] sm:$0xff]  ;;  %v4237_v35 = vld [vmem:[%s7727_s6 + $0x28] sm:$0xff] }
0x101e   :  { %2213 = vmatpush.bf16.msrb.mxu0 %v2182_v11  ;;  %2232 = vmatpush.bf16.msrb.mxu1 %v2183_v22  ;;  %v1301_v28 = vmul.f32 0.01, %v1285_v45  ;;  %v4312_v3 = vld [vmem:[%s7726_s5 + $0x18] sm:$0xff]  ;;  %v4241_v7 = vld [vmem:[%s7728_s7 + $0x28] sm:$0xff] }
0x101f   :  { %2251 = vmatpush.bf16.msrb.mxu2 %v2184_v23  ;;  %2270 = vmatpush.bf16.msrb.mxu3 %v2185_v42  ;;  %v1302_v29 = vmul.f32 0.01, %v1286_v19  ;;  %v1303_v41 = vmul.f32 0.01, %v1287_v43  ;;  %v1304_v16 = vmul.f32 0.01, %v1288_v21 }
0x1020   :  { %v6442_v57 = vmax.f32 %v1285_v45, %v1301_v28 }
0x1021   :  { %v6444_v1 = vmax.f32 %v1286_v19, %v1302_v29  ;;  %v6446_v56 = vmax.f32 %v1287_v43, %v1303_v41  ;;  %v6448_v4 = vmax.f32 %v1288_v21, %v1304_v16 }
0x1022   :  { %7810 = vst [vmem:[#allocation21_spill] sm:$0xff] %v6442_v57  ;;  %v2178_v40 = vpack.c.bf16 %v7814_v37, %v6442_v57 }
0x1023   :  { %7811 = vst [vmem:[#allocation26_spill] sm:$0xff] %v6444_v1  ;;  %v2179_v39 = vpack.c.bf16 %v7815_v47, %v6444_v1  ;;  %v2180_v27 = vpack.c.bf16 %v7816_v17, %v6446_v56  ;;  %v2181_v59 = vpack.c.bf16 %v7817_v49, %v6448_v4 }
0x1024   :  { %7812 = vst [vmem:[#allocation27_spill] sm:$0xff] %v6446_v56  ;;  %2214 = vmatpush.bf16.msrb.mxu0 %v2178_v40 }
0x1025   :  { %7813 = vst [vmem:[#allocation28_spill] sm:$0xff] %v6448_v4  ;;  %2233 = vmatpush.bf16.msrb.mxu1 %v2179_v39  ;;  %2252 = vmatpush.bf16.msrb.mxu2 %v2180_v27  ;;  %v7822_v39 = vld [vmem:[#allocation10_spill] sm:$0xff]  ;;  %v7823_v27 = vld [vmem:[#allocation11_spill] sm:$0xff] }
0x1026   :  { %2271 = vmatpush.bf16.msrb.mxu3 %v2181_v59 }
0x1027   :  { %4228 = vmatmul.msk.bf16.vlgmr.msrb.gmra.mxu0 %vm994_vm14, %v4311_v32 }
0x1028   :  { %4230 = vmatmul.msk.bf16.vlgmr.msrb.gmra.mxu1 %vm994_vm14, %v4311_v32  ;;  %4232 = vmatmul.msk.bf16.vlgmr.msrb.gmra.mxu2 %vm994_vm14, %v4311_v32 }
0x1029   :  { %4234 = vmatmul.msk.bf16.vlgmr.msrb.gmra.mxu3 %vm994_vm14, %v4311_v32 }
0x1037   :  { %4229 = vmatmul.msk.bf16.gmra.mxu0 %vm994_vm14, %v4312_v3 }
0x1038   :  { %4233 = vmatmul.msk.bf16.gmra.mxu2 %vm994_vm14, %v4312_v3  ;;  %4231 = vmatmul.msk.bf16.gmra.mxu1 %vm994_vm14, %v4312_v3 }
0x1039   :  { %4235 = vmatmul.msk.bf16.gmra.mxu3 %vm994_vm14, %v4312_v3 }
0x10a4   :  { %v6465_v53 = vpop.f32.mrf.mxu0 }
0x10a5   :  { %7818 = vst [vmem:[#allocation15_spill] sm:$0xff] %v6465_v53  ;;  %v6467_v50 = vpop.f32.mrf.mxu1 }
0x10a6   :  { %7819 = vst [vmem:[#allocation19_spill] sm:$0xff] %v6467_v50 }
0x10ab   :  { %v6469_v25 = vpop.f32.mrf.mxu2 }
0x10ac   :  { %7820 = vst [vmem:[#allocation16_spill] sm:$0xff] %v6469_v25  ;;  %v6471_v51 = vpop.f32.mrf.mxu3  ;;  %v2218_v38 = vpop.f32.mrf.mxu0 }
0x10ad   :  { %7821 = vst [vmem:[#allocation18_spill] sm:$0xff] %v6471_v51  ;;  %v2237_v30 = vpop.f32.mrf.mxu1  ;;  %v2321_v46 = vmul.f32 %v2218_v38, %v2218_v38 }
0x10ae   :  { %v2322_v31 = vmul.f32 %v2237_v30, %v2237_v30  ;;  %v2298_v61 = vadd.f32 %v2237_v30, %v2218_v38 }
0x10b0   :  { %v2338_v52 = vadd.f32 %v2322_v31, %v2321_v46  ;;  %v7824_v46 = vld [vmem:[#allocation12_spill] sm:$0xff] }
0x10b3   :  { %v2256_v36 = vpop.f32.mrf.mxu2 }
0x10b4   :  { %v2299_v48 = vadd.f32 %v2298_v61, %v2256_v36  ;;  %v2323_v18 = vmul.f32 %v2256_v36, %v2256_v36  ;;  %v2275_v6 = vpop.f32.mrf.mxu3 }
0x10b5   :  { %v2324_v0 = vmul.f32 %v2275_v6, %v2275_v6 }
0x10b6   :  { %v2339_v15 = vadd.f32 %v2338_v52, %v2323_v18  ;;  %v2300_v13 = vadd.f32 %v2299_v48, %v2275_v6  ;;  %v7827_v18 = vld [vmem:[#allocation13_spill] sm:$0xff] }
0x10b8   :  { %2301 = vadd.xlane.f32.xlu0 %v2300_v13  ;;  %v2340_v60 = vadd.f32 %v2339_v15, %v2324_v0  ;;  %v6558_v0 = vpop.f32.mrf.mxu0 }
0x10ba   :  { %2341 = vadd.xlane.f32.xlu1 %v2340_v60  ;;  %v6560_v60 = vpop.f32.mrf.mxu1 }
0x112b   :  { %v2302_v63 = vpop.xlane.xlu0 %2301 }
0x112c   :  { %v2314_v12 = vmul.f32 %v2302_v63, %v4957_v5  ;;  %v2303_v63 = vadd.f32 %v6560_v60, %v6558_v0 }
0x112d   :  { %v2342_v62 = vpop.xlane.xlu1 %2341 }
0x112e   :  { %v2358_v26 = vmul.f32 %v2314_v12, %v2314_v12  ;;  %v2354_v44 = vmul.f32 %v2342_v62, %v4957_v5 }
0x1130   :  { %v2362_v20 = vsub.f32 %v2354_v44, %v2358_v26  ;;  %v6569_v44 = vpop.f32.mrf.mxu3 }
0x1132   :  { %v2366_v8 = vadd.f32 1e-05, %v2362_v20 }
0x1134   :  { %4356 = vrsqrt.f32 %v2366_v8  ;;  %vm2385_vm15 = vweird.f32 %v2366_v8 }
0x113a   :  { %v4357_v58 = vpop.eup %4356 }
0x113b   :  { %v2380_v2 = vmul.f32 %v4357_v58, %v2366_v8  ;;  %vm2386_vm9 = vweird.f32 %v4357_v58 }
0x113c   :  { %vm2387_vm10 = vmor %vm2385_vm15, %vm2386_vm9 }
0x113d   :  { %v2381_v45 = vmul.f32 %v4357_v58, %v2380_v2  ;;  %v2326_v2 = vmul.f32 %v6560_v60, %v6560_v60  ;;  %vm7835_vm9 = vmmov %vm7830_vm11 }
0x113f   :  { %v2382_v11 = vmul.f32 0.5, %v2381_v45  ;;  %v6580_v45 = vld [vmem:[#allocation2 + $0x110] sm:$0xff] }
0x1141   :  { %v2383_v22 = vsub.f32 1.5, %v2382_v11 }
0x1143   :  { %v2384_v23 = vmul.f32 %v4357_v58, %v2383_v22 }
0x1145   :  { %v2388_v19 = vsel %vm2387_vm10, %v4357_v58, %v2384_v23  ;;  %v2325_v58 = vmul.f32 %v6558_v0, %v6558_v0 }
0x1146   :  { %v2410_v14 = vmul.f32 %v4237_v35, %v2388_v19 }
0x1147   :  { %v2343_v23 = vadd.f32 %v2326_v2, %v2325_v58  ;;  %v6615_v2 = vld [vmem:[#allocation2 + $0xf0] sm:$0xff] }
0x1148   :  { %2428 = vperm.xlu2 %4333, %v2410_v14   ;;  %v2414_v43 = vmul.f32 %v2410_v14, %v2314_v12  ;;  %v6564_v12 = vpop.f32.mrf.mxu2 }
0x1149   :  { %v2304_v26 = vadd.f32 %v2303_v63, %v6564_v12  ;;  %v2327_v35 = vmul.f32 %v6564_v12, %v6564_v12 }
0x114a   :  { %v2418_v21 = vsub.f32 %v4241_v7, %v2414_v43 }
0x114b   :  { %v2305_v20 = vadd.f32 %v2304_v26, %v6569_v44  ;;  %v2344_v7 = vadd.f32 %v2343_v23, %v2327_v35 }
0x1150   :  { %2464 = vperm.xlu2 %4333, %v2418_v21   ;;  %v2328_v21 = vmul.f32 %v6569_v44, %v6569_v44 }
0x11a2   :  { %v2429_v42 = vpop.permute.xlu2 %2428 }
0x11a3   :  { %v2446_v28 = vmul.f32 %v2429_v42, %v2237_v30  ;;  %v2447_v29 = vmul.f32 %v2429_v42, %v2256_v36  ;;  %v2448_v16 = vmul.f32 %v2429_v42, %v2275_v6  ;;  %v2445_v48 = vmul.f32 %v2429_v42, %v2218_v38  ;;  %v6592_v42 = vld [vmem:[#allocation2 + $0x118] sm:$0xff] }
0x11aa   :  { %v2465_v41 = vpop.permute.xlu2 %2464 }
0x11ab   :  { %v2482_v37 = vadd.f32 %v2465_v41, %v2446_v28  ;;  %v2483_v40 = vadd.f32 %v2465_v41, %v2447_v29  ;;  %v2484_v47 = vadd.f32 %v2465_v41, %v2448_v16  ;;  %v2481_v30 = vadd.f32 %v2465_v41, %v2445_v48 }
0x11ac   :  { %v2345_v41 = vadd.f32 %v2344_v7, %v2328_v21  ;;  %v6624_v21 = vld [vmem:[#allocation2 + $0xd8] sm:$0xff] }
0x11ad   :  { %v2498_v17 = vadd.f32 %v2482_v37, %v7822_v39  ;;  %v2499_v49 = vadd.f32 %v2483_v40, %v7823_v27  ;;  %v2500_v31 = vadd.f32 %v2484_v47, %v7824_v46  ;;  %v2497_v6 = vadd.f32 %v2481_v30, %v7827_v18  ;;  %v6717_v18 = vld [vmem:[#allocation2 + $0x48] sm:$0xff] }
0x11af   :  { %v2514_v59 = vmul.f32 0.01, %v2498_v17  ;;  %v2515_v32 = vmul.f32 0.01, %v2499_v49  ;;  %v2516_v36 = vmul.f32 0.01, %v2500_v31 }
0x11b0   :  { %v2513_v38 = vmul.f32 0.01, %v2497_v6 }
0x11b1   :  { %v6491_v61 = vmax.f32 %v2498_v17, %v2514_v59  ;;  %v6493_v52 = vmax.f32 %v2499_v49, %v2515_v32  ;;  %v6502_v15 = vmax.f32 %v2500_v31, %v2516_v36  ;;  %v6600_v59 = vld [vmem:[#allocation2 + $0x100] sm:$0xff]  ;;  %v6603_v31 = vld [vmem:[#allocation2 + $0x108] sm:$0xff] }
0x11b2   :  { %v6510_v13 = vmax.f32 %v2497_v6, %v2513_v38 }
0x11b3   :  { %7825 = vst [vmem:[#allocation29_spill] sm:$0xff] %v6491_v61  ;;  %2625 = vrot.lane.b32.xlu1 %v6493_v52, %s4599_s1  ;;  %2657 = vrot.lane.b32.xlu2 %v6493_v52, %s4600_s28 }
0x11b4   :  { %7826 = vst [vmem:[#allocation30_spill] sm:$0xff] %v6493_v52  ;;  %2655 = vrot.lane.b32.xlu0 %v6491_v61, %s4600_s28 }
0x11b5   :  { %7828 = vst [vmem:[#allocation31_spill] sm:$0xff] %v6502_v15 }
0x11b6   :  { %7829 = vst [vmem:[#allocation32_spill] sm:$0xff] %v6510_v13 }
0x11bb   :  { %2611 = vrot.lane.b32.xlu1 %v6502_v15, %s4602_s15  ;;  %2659 = vrot.lane.b32.xlu2 %v6502_v15, %s4600_s28 }
0x11bc   :  { %2643 = vrot.lane.b32.xlu0 %v6502_v15, %s4601_s14 }
0x11c3   :  { %2605 = vrot.lane.b32.xlu1 %v6510_v13, %s4602_s15  ;;  %2653 = vrot.lane.b32.xlu2 %v6510_v13, %s4600_s28 }
0x11c4   :  { %2637 = vrot.lane.b32.xlu0 %v6510_v13, %s4601_s14 }
0x11cb   :  { %2591 = vrot.lane.b32.xlu1 %v6491_v61, %s4604_s17  ;;  %2627 = vrot.lane.b32.xlu2 %v6502_v15, %s4599_s1 }
0x11cc   :  { %2623 = vrot.lane.b32.xlu0 %v6491_v61, %s4599_s1 }
0x11d3   :  { %2579 = vrot.lane.b32.xlu1 %v6502_v15, %s4603_s16  ;;  %2641 = vrot.lane.b32.xlu2 %v6493_v52, %s4601_s14 }
0x11d4   :  { %2575 = vrot.lane.b32.xlu0 %v6491_v61, %s4603_s16 }
0x11db   :  { %2545 = vrot.lane.b32.xlu1 %v6493_v52, %s4605_s18  ;;  %2621 = vrot.lane.b32.xlu2 %v6510_v13, %s4599_s1 }
0x11dc   :  { %2593 = vrot.lane.b32.xlu0 %v6493_v52, %s4604_s17 }
0x11e3   :  { %2573 = vrot.lane.b32.xlu1 %v6510_v13, %s4603_s16  ;;  %2609 = vrot.lane.b32.xlu2 %v6493_v52, %s4602_s15 }
0x11e4   :  { %2595 = vrot.lane.b32.xlu0 %v6502_v15, %s4604_s17 }
0x11eb   :  { %2563 = vrot.lane.b32.xlu1 %v6502_v15, %s4606_s19  ;;  %2639 = vrot.lane.b32.xlu2 %v6491_v61, %s4601_s14 }
0x11ec   :  { %2559 = vrot.lane.b32.xlu0 %v6491_v61, %s4606_s19 }
0x11f3   :  { %2577 = vrot.lane.b32.xlu2 %v6493_v52, %s4603_s16 }
0x11f4   :  { %2589 = vrot.lane.b32.xlu0 %v6510_v13, %s4604_s17 }
0x11fb   :  { %2607 = vrot.lane.b32.xlu2 %v6491_v61, %s4602_s15 }
0x11fc   :  { %2541 = vrot.lane.b32.xlu0 %v6510_v13, %s4605_s18 }
0x1203   :  { %2543 = vrot.lane.b32.xlu2 %v6491_v61, %s4605_s18 }
0x120b   :  { %2561 = vrot.lane.b32.xlu2 %v6493_v52, %s4606_s19 }
0x120d   :  { %v2658_v62 = vpop.permute.xlu2 %2657 }
0x1213   :  { %2547 = vrot.lane.b32.xlu2 %v6502_v15, %s4605_s18 }
0x1215   :  { %v2660_v3 = vpop.permute.xlu2 %2659  ;;  %2306 = vadd.xlane.f32.xlu1 %v2305_v20 }
0x1216   :  { %v2661_v8 = vsel %vm240_vm0, %v2658_v62, %v2660_v3 }
0x1217   :  { %v2667_v11 = vmul.f32 %v6580_v45, %v2661_v8  ;;  %v6612_v8 = vld [vmem:[#allocation2 + $0xd0] sm:$0xff] }
0x1219   :  { %v2687_v22 = vpack.c.bf16 %v2667_v11, %v2667_v11 }
0x121b   :  { %2557 = vrot.lane.b32.xlu2 %v6510_v13, %s4606_s19  ;;  %v2701_v19 = vsel %vm274_vm1, %v2687_v22, 0 }
0x121c   :  { %2735 = vmatpush.bf16.msra.mxu2 %v2701_v19 }
0x121d   :  { %v2654_v14 = vpop.permute.xlu2 %2653 }
0x121e   :  { %v2664_v43 = vsel %vm240_vm0, %v2660_v3, %v2654_v14 }
0x121f   :  { %v2668_v28 = vmul.f32 %v6592_v42, %v2664_v43 }
0x1221   :  { %v2688_v29 = vpack.c.bf16 %v2668_v28, %v2668_v28 }
0x1223   :  { %v2704_v16 = vsel %vm274_vm1, %v2688_v29, 0  ;;  %v6627_v29 = vld [vmem:[#allocation2 + $0xf8] sm:$0xff] }
0x1224   :  { %2748 = vmatpush.bf16.msra.mxu3 %v2704_v16  ;;  %v6630_v16 = vld [vmem:[#allocation2 + $0xb8] sm:$0xff] }
0x1225   :  { %v2626_v37 = vpop.permute.xlu1 %2625  ;;  %v2628_v40 = vpop.permute.xlu2 %2627 }
0x1226   :  { %v2656_v47 = vpop.permute.xlu0 %2655  ;;  %2346 = vadd.xlane.f32.xlu0 %v2345_v41  ;;  %v2629_v63 = vsel %vm206_vm2, %v2626_v37, %v2628_v40 }
0x1227   :  { %v2662_v17 = vsel %vm240_vm0, %v2656_v47, %v2658_v62  ;;  %v2663_v49 = vsel %vm240_vm0, %v2654_v14, %v2656_v47  ;;  %v2635_v58 = vmul.f32 %v6612_v8, %v2629_v63 }
0x1228   :  { %v2665_v32 = vmul.f32 %v6600_v59, %v2663_v49  ;;  %v2666_v48 = vmul.f32 %v6603_v31, %v2662_v17 }
0x122a   :  { %v2685_v30 = vpack.c.bf16 %v2665_v32, %v2665_v32  ;;  %v2686_v36 = vpack.c.bf16 %v2666_v48, %v2666_v48 }
0x122c   :  { %v2695_v6 = vsel %vm274_vm1, %v2685_v30, 0  ;;  %v2698_v38 = vsel %vm274_vm1, %v2686_v36, 0  ;;  %v6636_v30 = vld [vmem:[#allocation2 + $0xb0] sm:$0xff] }
0x122d   :  { %2709 = vmatpush.bf16.msra.mxu0 %v2695_v6  ;;  %2722 = vmatpush.bf16.msra.mxu1 %v2698_v38  ;;  %v2612_v62 = vpop.permute.xlu1 %2611  ;;  %v2642_v26 = vpop.permute.xlu2 %2641 }
0x122e   :  { %v2644_v20 = vpop.permute.xlu0 %2643 }
0x122f   :  { %v2645_v3 = vsel %vm223_vm3, %v2642_v26, %v2644_v20 }
0x1230   :  { %v2651_v11 = vmul.f32 %v6615_v2, %v2645_v3 }
0x1232   :  { %v2683_v22 = vpack.c.bf16 %v2651_v11, %v2635_v58 }
0x1234   :  { %2736 = vmatpush.bf16.msra.mxu2 %v2683_v22  ;;  %v6650_v22 = vld [vmem:[#allocation2 + $0xc0] sm:$0xff] }
0x1235   :  { %v2606_v23 = vpop.permute.xlu1 %2605  ;;  %v2622_v35 = vpop.permute.xlu2 %2621 }
0x1236   :  { %v2638_v19 = vpop.permute.xlu0 %2637  ;;  %v2632_v14 = vsel %vm206_vm2, %v2628_v40, %v2622_v35  ;;  %v2616_v43 = vsel %vm189_vm4, %v2612_v62, %v2606_v23 }
0x1237   :  { %v2648_v7 = vsel %vm223_vm3, %v2644_v20, %v2638_v19  ;;  %v2636_v28 = vmul.f32 %v6624_v21, %v2632_v14  ;;  %v2620_v47 = vmul.f32 %v6630_v16, %v2616_v43  ;;  %v6653_v43 = vld [vmem:[#allocation2 + $0xc8] sm:$0xff] }
0x1238   :  { %v2652_v41 = vmul.f32 %v6627_v29, %v2648_v7 }
0x1239   :  { %v2680_v48 = vpack.c.bf16 %v2620_v47, %v6502_v15 }
0x123a   :  { %v2684_v17 = vpack.c.bf16 %v2652_v41, %v2636_v28  ;;  %v6659_v28 = vld [vmem:[#allocation2 + $0xe8] sm:$0xff] }
0x123c   :  { %2749 = vmatpush.bf16.msra.mxu3 %v2684_v17 }
0x123d   :  { %v2610_v40 = vpop.permute.xlu2 %2609  ;;  %v6640_v38 = vpop.permute.xlu1 %2591 }
0x123e   :  { %v2624_v49 = vpop.permute.xlu0 %2623  ;;  %v2613_v32 = vsel %vm189_vm4, %v2610_v40, %v2612_v62 }
0x123f   :  { %v2619_v36 = vmul.f32 %v6636_v30, %v2613_v32  ;;  %v2630_v63 = vsel %vm206_vm2, %v2624_v49, %v2626_v37  ;;  %v2631_v20 = vsel %vm206_vm2, %v2622_v35, %v2624_v49  ;;  %v6656_v37 = vld [vmem:[#allocation2 + $0xe0] sm:$0xff] }
0x1240   :  { %2750 = vmatpush.bf16.msra.mxu3 %v2680_v48  ;;  %v2633_v14 = vmul.f32 %v6650_v22, %v2631_v20  ;;  %v2634_v7 = vmul.f32 %v6653_v43, %v2630_v63  ;;  %v6670_v63 = vld [vmem:[#allocation2 + $0x70] sm:$0xff] }
0x1241   :  { %v2679_v6 = vpack.c.bf16 %v2619_v36, %v6493_v52  ;;  %v6667_v36 = vld [vmem:[#allocation2 + $0x50] sm:$0xff] }
0x1243   :  { %2737 = vmatpush.bf16.msra.mxu2 %v2679_v6 }
0x1245   :  { %v2640_v3 = vpop.permute.xlu2 %2639 }
0x1246   :  { %v2576_v62 = vpop.permute.xlu0 %2575  ;;  %v2646_v58 = vsel %vm223_vm3, %v2640_v3, %v2642_v26  ;;  %v2647_v11 = vsel %vm223_vm3, %v2638_v19, %v2640_v3  ;;  %v2580_v19 = vpop.permute.xlu1 %2579 }
0x1247   :  { %v2649_v35 = vmul.f32 %v6656_v37, %v2647_v11  ;;  %v2650_v41 = vmul.f32 %v6659_v28, %v2646_v58 }
0x1249   :  { %v2681_v26 = vpack.c.bf16 %v2649_v35, %v2633_v14  ;;  %v2682_v47 = vpack.c.bf16 %v2650_v41, %v2634_v7 }
0x124b   :  { %2710 = vmatpush.bf16.msra.mxu0 %v2681_v26  ;;  %2723 = vmatpush.bf16.msra.mxu1 %v2682_v47  ;;  %v6681_v47 = vld [vmem:[#allocation2 + $0xa0] sm:$0xff] }
0x124d   :  { %v2578_v17 = vpop.permute.xlu2 %2577 }
0x124e   :  { %v2594_v49 = vpop.permute.xlu0 %2593  ;;  %v2582_v32 = vsel %vm155_vm5, %v2576_v62, %v2578_v17  ;;  %v2581_v58 = vsel %vm155_vm5, %v2578_v17, %v2580_v19  ;;  %v2546_v41 = vpop.permute.xlu1 %2545 }
0x124f   :  { %v2598_v48 = vsel %vm172_vm6, %v6640_v38, %v2594_v49  ;;  %v2587_v6 = vmul.f32 %v6667_v36, %v2582_v32 }
0x1250   :  { %v2603_v20 = vmul.f32 %v6670_v63, %v2598_v48  ;;  %v6684_v48 = vld [vmem:[#allocation2 + $0x58] sm:$0xff] }
0x1251   :  { %v2588_v17 = vmul.f32 %v6684_v48, %v2581_v58 }
0x1252   :  { %v2675_v3 = vpack.c.bf16 %v2603_v20, %v2587_v6  ;;  %v6687_v6 = vld [vmem:[#allocation2 + $0x78] sm:$0xff] }
0x1254   :  { %2738 = vmatpush.bf16.msra.mxu2 %v2675_v3 }
0x1255   :  { %v2608_v11 = vpop.permute.xlu2 %2607 }
0x1256   :  { %v2596_v14 = vpop.permute.xlu0 %2595  ;;  %v2614_v7 = vsel %vm189_vm4, %v2608_v11, %v2610_v40  ;;  %v2615_v35 = vsel %vm189_vm4, %v2606_v23, %v2608_v11  ;;  %v6690_v40 = vld [vmem:[#allocation2 + $0xa8] sm:$0xff]  ;;  %v2574_v27 = vpop.permute.xlu1 %2573 }
0x1257   :  { %v2597_v26 = vsel %vm172_vm6, %v2594_v49, %v2596_v14  ;;  %v2617_v32 = vmul.f32 %v6681_v47, %v2615_v35  ;;  %v2618_v23 = vmul.f32 %v6690_v40, %v2614_v7  ;;  %v2584_v7 = vsel %vm155_vm5, %v2580_v19, %v2574_v27  ;;  %v6714_v19 = vld [vmem:[#allocation2 + $0x40] sm:$0xff] }
0x1258   :  { %v2604_v20 = vmul.f32 %v6687_v6, %v2597_v26  ;;  %v2583_v26 = vsel %vm155_vm5, %v2574_v27, %v2576_v62  ;;  %v6711_v62 = vld [vmem:[#allocation2 + $0x30] sm:$0xff] }
0x1259   :  { %v2677_v3 = vpack.c.bf16 %v2617_v32, %v6510_v13  ;;  %v2678_v49 = vpack.c.bf16 %v2618_v23, %v6491_v61  ;;  %v2586_v15 = vmul.f32 %v6717_v18, %v2583_v26 }
0x125a   :  { %v2676_v11 = vpack.c.bf16 %v2604_v20, %v2588_v17  ;;  %v6703_v20 = vld [vmem:[#allocation2 + $0x10] sm:$0xff] }
0x125b   :  { %2711 = vmatpush.bf16.msra.mxu0 %v2677_v3  ;;  %2724 = vmatpush.bf16.msra.mxu1 %v2678_v49 }
0x125c   :  { %2751 = vmatpush.bf16.msra.mxu3 %v2676_v11  ;;  %v2585_v11 = vmul.f32 %v6714_v19, %v2584_v7 }
0x125d   :  { %v2544_v35 = vpop.permute.xlu2 %2543 }
0x125e   :  { %v2560_v46 = vpop.permute.xlu0 %2559  ;;  %v2550_v58 = vsel %vm121_vm7, %v2544_v35, %v2546_v41 }
0x125f   :  { %v2555_v23 = vmul.f32 %v6703_v20, %v2550_v58 }
0x1265   :  { %v2562_v39 = vpop.permute.xlu2 %2561 }
0x1266   :  { %v2590_v32 = vpop.permute.xlu0 %2589  ;;  %v2566_v17 = vsel %vm138_vm8, %v2560_v46, %v2562_v39 }
0x1267   :  { %v2599_v3 = vsel %vm172_vm6, %v2590_v32, %v6640_v38  ;;  %v2600_v49 = vsel %vm172_vm6, %v2596_v14, %v2590_v32  ;;  %v2571_v27 = vmul.f32 %v6711_v62, %v2566_v17  ;;  %v2564_v14 = vpop.permute.xlu1 %2563  ;;  %v4244_v32 = vld [vmem:[%s7723_s2 + $0x18] sm:$0xf] }
0x1268   :  { %v2601_v58 = vmul.f32 %v6332_v54, %v2600_v49  ;;  %v2602_v52 = vmul.f32 %v6340_v24, %v2599_v3  ;;  %v2565_v7 = vsel %vm138_vm8, %v2562_v39, %v2564_v14  ;;  %v6730_v24 = vld [vmem:[#allocation2 + $0x38] sm:$0xff] }
0x1269   :  { %v2671_v38 = vpack.c.bf16 %v2571_v27, %v2555_v23  ;;  %v6745_v27 = vld [vmem:[#allocation2 + $0x8] sm:$0xff] }
0x126a   :  { %v2673_v61 = vpack.c.bf16 %v2601_v58, %v2585_v11  ;;  %v2674_v13 = vpack.c.bf16 %v2602_v52, %v2586_v15  ;;  %v2572_v52 = vmul.f32 %v6730_v24, %v2565_v7  ;;  %v6733_v15 = vld [vmem:[#allocation2 + $0x18] sm:$0xff]  ;;  %v6748_v58 = vld [vmem:[#allocation2] sm:$0xff] }
0x126b   :  { %2739 = vmatpush.bf16.msra.mxu2 %v2671_v38  ;;  %v6751_v38 = vld [vmem:[#allocation2 + $0x20] sm:$0xff] }
0x126c   :  { %2712 = vmatpush.bf16.msra.mxu0 %v2673_v61  ;;  %2725 = vmatpush.bf16.msra.mxu1 %v2674_v13  ;;  %7832 = vst [vmem:[#allocation33_spill] sm:$0xff] %v6751_v38 }
0x126d   :  { %v2548_v17 = vpop.permute.xlu2 %2547 }
0x126e   :  { %v2549_v54 = vsel %vm121_vm7, %v2546_v41, %v2548_v17  ;;  %4247 = vmatmul.msk.bf16.vlgmr.msra.gmra.mxu2 %vm7830_vm11, %v4244_v32  ;;  %v2542_v23 = vpop.permute.xlu0 %2541 }
0x126f   :  { %v2556_v26 = vmul.f32 %v6733_v15, %v2549_v54  ;;  %v2551_v39 = vsel %vm121_vm7, %v2542_v23, %v2544_v35  ;;  %v2552_v61 = vsel %vm121_vm7, %v2548_v17, %v2542_v23  ;;  %v6754_v17 = vld [vmem:[#allocation2 + $0x28] sm:$0xff] }
0x1270   :  { %v2554_v11 = vmul.f32 %v6745_v27, %v2551_v39  ;;  %v2553_v35 = vmul.f32 %v6748_v58, %v2552_v61  ;;  %7833 = vst [vmem:[#allocation34_spill] sm:$0xff] %v6754_v17 }
0x1271   :  { %v2672_v3 = vpack.c.bf16 %v2572_v52, %v2556_v26 }
0x1273   :  { %2752 = vmatpush.bf16.msra.mxu3 %v2672_v3 }
0x1275   :  { %v2558_v13 = vpop.permute.xlu2 %2557 }
0x1276   :  { %v2567_v41 = vsel %vm138_vm8, %v2558_v13, %v2560_v46  ;;  %v2568_v49 = vsel %vm138_vm8, %v2564_v14, %v2558_v13  ;;  %4248 = vmatmul.msk.bf16.vlgmr.msra.gmra.mxu3 %vm7831_vm12, %v4244_v32 }
0x1277   :  { %v2569_v7 = vmul.f32 %v6751_v38, %v2568_v49  ;;  %v2570_v46 = vmul.f32 %v6754_v17, %v2567_v41 }
0x1279   :  { %v2669_v54 = vpack.c.bf16 %v2569_v7, %v2553_v35  ;;  %v2670_v14 = vpack.c.bf16 %v2570_v46, %v2554_v11 }
0x127b   :  { %2713 = vmatpush.bf16.msra.mxu0 %v2669_v54  ;;  %2726 = vmatpush.bf16.msra.mxu1 %v2670_v14 }
0x127e   :  { %4245 = vmatmul.msk.bf16.vlgmr.msra.gmra.mxu0 %vm7834_vm13, %v4244_v32  ;;  %4246 = vmatmul.msk.bf16.vlgmr.msra.gmra.mxu1 %vm7835_vm9, %v4244_v32  ;;  %v4238_v32 = vld [vmem:[%s7727_s6 + $0x30] sm:$0xff] }
0x1288   :  { %v2307_v52 = vpop.xlane.xlu1 %2306 }
0x1289   :  { %v2315_v26 = vmul.f32 %v2307_v52, %v4957_v5  ;;  %v4242_v52 = vld [vmem:[%s7728_s7 + $0x30] sm:$0xff] }
0x128b   :  { %v2359_v23 = vmul.f32 %v2315_v26, %v2315_v26 }
0x1299   :  { %v2347_v3 = vpop.xlane.xlu0 %2346 }
0x129a   :  { %v2355_v39 = vmul.f32 %v2347_v3, %v4957_v5 }
0x129c   :  { %v2363_v61 = vsub.f32 %v2355_v39, %v2359_v23  ;;  %v6767_v39 = vpop.f32.mrf.mxu2 }
0x129e   :  { %v2367_v13 = vadd.f32 1e-05, %v2363_v61  ;;  %v6769_v61 = vpop.f32.mrf.mxu3 }
0x12a0   :  { %4358 = vrsqrt.f32 %v2367_v13  ;;  %vm2395_vm15 = vweird.f32 %v2367_v13 }
0x12a6   :  { %v4359_v49 = vpop.eup %4358 }
0x12a7   :  { %v2390_v41 = vmul.f32 %v4359_v49, %v2367_v13  ;;  %vm2396_vm10 = vweird.f32 %v4359_v49 }
0x12a8   :  { %vm2397_vm11 = vmor %vm2395_vm15, %vm2396_vm10  ;;  %vm7840_vm15 = vcmask 588800  }
0x12a9   :  { %v2391_v35 = vmul.f32 %v4359_v49, %v2390_v41  ;;  %v6771_v41 = vpop.f32.mrf.mxu0  ;;  %vm7841_vm10 = vmmov %vm7840_vm15 }
0x12ab   :  { %v2392_v11 = vmul.f32 0.5, %v2391_v35  ;;  %v6773_v35 = vpop.f32.mrf.mxu1 }
0x12ad   :  { %v2393_v7 = vsub.f32 1.5, %v2392_v11 }
0x12af   :  { %v2394_v46 = vmul.f32 %v4359_v49, %v2393_v7 }
0x12b1   :  { %v2398_v54 = vsel %vm2397_vm11, %v4359_v49, %v2394_v46  ;;  %vm7844_vm11 = vmmov %vm7841_vm10 }
0x12b2   :  { %v2411_v14 = vmul.f32 %v4238_v32, %v2398_v54 }
0x12b4   :  { %v2415_v23 = vmul.f32 %v2411_v14, %v2315_v26 }
0x12b6   :  { %v2419_v3 = vsub.f32 %v4242_v52, %v2415_v23 }
0x12b8   :  { %2469 = vperm.xlu0 %4332, %v2419_v3  }
0x12f1   :  { %v2741_v13 = vpop.f32.mrf.mxu2 }
0x12f2   :  { %v2770_v32 = vmul.f32 %v2741_v13, %v2741_v13 }
0x12f9   :  { %v2754_v11 = vpop.f32.mrf.mxu3  ;;  %v2743_v7 = vpop.f32.mrf.mxu2 }
0x12fa   :  { %v2771_v26 = vmul.f32 %v2754_v11, %v2754_v11 }
0x12fb   :  { %v2715_v49 = vpop.f32.mrf.mxu0  ;;  %v2728_v46 = vpop.f32.mrf.mxu1 }
0x12fc   :  { %v2768_v54 = vmul.f32 %v2715_v49, %v2715_v49  ;;  %v2762_v4 = vadd.f32 %v2728_v46, %v2715_v49  ;;  %v2769_v56 = vmul.f32 %v2728_v46, %v2728_v46 }
0x12fe   :  { %v2763_v52 = vadd.f32 %v2762_v4, %v2741_v13  ;;  %v2772_v23 = vadd.f32 %v2769_v56, %v2768_v54 }
0x1300   :  { %v2764_v3 = vadd.f32 %v2763_v52, %v2754_v11  ;;  %v2773_v1 = vadd.f32 %v2772_v23, %v2770_v32 }
0x1301   :  { %v2756_v57 = vpop.f32.mrf.mxu3 }
0x1302   :  { %2765 = vadd.xlane.f32.xlu2 %v2764_v3  ;;  %v2774_v51 = vadd.f32 %v2773_v1, %v2771_v26 }
0x1303   :  { %v2717_v25 = vpop.f32.mrf.mxu0  ;;  %v2730_v50 = vpop.f32.mrf.mxu1 }
0x1304   :  { %2775 = vadd.xlane.f32.xlu1 %v2774_v51  ;;  %v4249_v50 = vld [vmem:[%s7724_s3 + $0x30] sm:$0xff] }
0x131a   :  { %2433 = vperm.xlu2 %4333, %v2411_v14  }
0x132a   :  { %v2470_v26 = vpop.permute.xlu0 %2469 }
0x1375   :  { %v2766_v53 = vpop.xlane.xlu2 %2765 }
0x1376   :  { %v2767_v7 = vmul.f32 %v2766_v53, %v4957_v5 }
0x1377   :  { %v2776_v34 = vpop.xlane.xlu1 %2775 }
0x1378   :  { %v2778_v9 = vmul.f32 %v2767_v7, %v2767_v7  ;;  %v2777_v55 = vmul.f32 %v2776_v34, %v4957_v5 }
0x137a   :  { %v2779_v33 = vsub.f32 %v2777_v55, %v2778_v9 }
0x137c   :  { %v2780_v17 = vadd.f32 1e-05, %v2779_v33  ;;  %v4250_v33 = vld [vmem:[%s7725_s4 + $0x30] sm:$0xff] }
0x137d   :  { %v2434_v34 = vpop.permute.xlu2 %2433 }
0x137e   :  { %4360 = vrsqrt.f32 %v2780_v17  ;;  %vm2787_vm13 = vweird.f32 %v2780_v17  ;;  %v2449_v51 = vmul.f32 %v2434_v34, %v6558_v0  ;;  %v2452_v14 = vmul.f32 %v2434_v34, %v6569_v44 }
0x1380   :  { %v2485_v52 = vadd.f32 %v2470_v26, %v2449_v51  ;;  %v2488_v3 = vadd.f32 %v2470_v26, %v2452_v14 }
0x1384   :  { %v4361_v56 = vpop.eup %4360 }
0x1385   :  { %v2782_v4 = vmul.f32 %v4361_v56, %v2780_v17  ;;  %vm2788_vm12 = vweird.f32 %v4361_v56  ;;  %v2451_v17 = vmul.f32 %v2434_v34, %v6564_v12 }
0x1386   :  { %vm2789_vm9 = vmor %vm2787_vm13, %vm2788_vm12 }
0x1387   :  { %v2783_v32 = vmul.f32 %v4361_v56, %v2782_v4  ;;  %v2487_v23 = vadd.f32 %v2470_v26, %v2451_v17  ;;  %v7836_v4 = vld [vmem:[#allocation9_spill] sm:$0xff]  ;;  %vm7845_vm12 = vmmov %vm7841_vm10 }
0x1389   :  { %v2784_v57 = vmul.f32 0.5, %v2783_v32  ;;  %v2501_v32 = vadd.f32 %v2485_v52, %v7836_v4  ;;  %v7839_v4 = vld [vmem:[#allocation20_spill] sm:$0xff] }
0x138b   :  { %v2785_v54 = vsub.f32 1.5, %v2784_v57  ;;  %v7837_v57 = vld [vmem:[#allocation14_spill] sm:$0xff]  ;;  %v2517_v12 = vmul.f32 0.01, %v2501_v32 }
0x138d   :  { %v2786_v1 = vmul.f32 %v4361_v56, %v2785_v54  ;;  %v2503_v54 = vadd.f32 %v2487_v23, %v7837_v57  ;;  %v6791_v38 = vmax.f32 %v2501_v32, %v2517_v12 }
0x138f   :  { %v2790_v53 = vsel %vm2789_vm9, %v4361_v56, %v2786_v1  ;;  %v2450_v56 = vmul.f32 %v2434_v34, %v6560_v60  ;;  %v7838_v1 = vld [vmem:[#allocation17_spill] sm:$0xff] }
0x1390   :  { %v2791_v25 = vmul.f32 %v4249_v50, %v2790_v53  ;;  %v2504_v50 = vadd.f32 %v2488_v3, %v7838_v1 }
0x1392   :  { %2796 = vperm.xlu1 %4331, %v2791_v25   ;;  %v2792_v55 = vmul.f32 %v2791_v25, %v2767_v7  ;;  %v2520_v5 = vmul.f32 0.01, %v2504_v50 }
0x1394   :  { %v2793_v9 = vsub.f32 %v4250_v33, %v2792_v55  ;;  %v2486_v33 = vadd.f32 %v2470_v26, %v2450_v56  ;;  %v2519_v55 = vmul.f32 0.01, %v2503_v54  ;;  %v6799_v26 = vmax.f32 %v2504_v50, %v2520_v5 }
0x1396   :  { %2805 = vperm.xlu0 %4332, %v2793_v9   ;;  %v2502_v23 = vadd.f32 %v2486_v33, %v7839_v4 }
0x1404   :  { %v2797_v7 = vpop.permute.xlu1 %2796 }
0x1405   :  { %v2799_v53 = vmul.f32 %v2797_v7, %v2715_v49  ;;  %v2801_v25 = vmul.f32 %v2797_v7, %v2741_v13  ;;  %v2802_v0 = vmul.f32 %v2797_v7, %v2754_v11  ;;  %v2800_v9 = vmul.f32 %v2797_v7, %v2728_v46 }
0x1406   :  { %v6793_v49 = vmax.f32 %v2503_v54, %v2519_v55  ;;  %v2518_v54 = vmul.f32 0.01, %v2502_v23  ;;  %v2308_v55 = vadd.f32 %v6773_v35, %v6771_v41 }
0x1408   :  { %v2806_v44 = vpop.permute.xlu0 %2805 }
0x1409   :  { %v2808_v51 = vadd.f32 %v2806_v44, %v2799_v53  ;;  %v2810_v17 = vadd.f32 %v2806_v44, %v2801_v25  ;;  %v2811_v14 = vadd.f32 %v2806_v44, %v2802_v0  ;;  %v2809_v60 = vadd.f32 %v2806_v44, %v2800_v9 }
0x140b   :  { %v2812_v34 = vmul.f32 0.01, %v2808_v51  ;;  %v2814_v52 = vmul.f32 0.01, %v2810_v17  ;;  %v2815_v57 = vmul.f32 0.01, %v2811_v14 }
0x140c   :  { %v2813_v3 = vmul.f32 0.01, %v2809_v60 }
0x140d   :  { %v6795_v13 = vmax.f32 %v2808_v51, %v2812_v34  ;;  %v6797_v11 = vmax.f32 %v2810_v17, %v2814_v52  ;;  %v6801_v46 = vmax.f32 %v2811_v14, %v2815_v57  ;;  %v6823_v57 = vmax.f32 %v2502_v23, %v2518_v54 }
0x140e   :  { %v6821_v5 = vmax.f32 %v2809_v60, %v2813_v3  ;;  %v2329_v51 = vmul.f32 %v6771_v41, %v6771_v41  ;;  %v2330_v17 = vmul.f32 %v6773_v35, %v6773_v35  ;;  %v2309_v14 = vadd.f32 %v2308_v55, %v6767_v39 }
0x140f   :  { %v6805_v56 = vadd.f32 %v6795_v13, %v6791_v38  ;;  %v6809_v7 = vadd.f32 %v6797_v11, %v6793_v49  ;;  %v6813_v32 = vadd.f32 %v6801_v46, %v6799_v26  ;;  %v2332_v54 = vmul.f32 %v6769_v61, %v6769_v61 }
0x1410   :  { %v6827_v50 = vadd.f32 %v6821_v5, %v6823_v57  ;;  %v2348_v60 = vadd.f32 %v2330_v17, %v2329_v51  ;;  %v2310_v34 = vadd.f32 %v2309_v14, %v6769_v61 }
0x1411   :  { %2940 = vrot.lane.b32.xlu2 %v6809_v7, %s4600_s28  ;;  %2936 = vrot.lane.b32.xlu0 %v6805_v56, %s4600_s28 }
0x1412   :  { %2942 = vrot.lane.b32.xlu1 %v6813_v32, %s4600_s28 }
0x1419   :  { %2938 = vrot.lane.b32.xlu2 %v6827_v50, %s4600_s28  ;;  %2910 = vrot.lane.b32.xlu0 %v6813_v32, %s4599_s1 }
0x141a   :  { %2908 = vrot.lane.b32.xlu1 %v6809_v7, %s4599_s1 }
0x1421   :  { %2924 = vrot.lane.b32.xlu2 %v6809_v7, %s4601_s14  ;;  %2904 = vrot.lane.b32.xlu0 %v6805_v56, %s4599_s1 }
0x1422   :  { %2926 = vrot.lane.b32.xlu1 %v6813_v32, %s4601_s14 }
0x1429   :  { %2920 = vrot.lane.b32.xlu2 %v6805_v56, %s4601_s14  ;;  %2894 = vrot.lane.b32.xlu0 %v6813_v32, %s4602_s15 }
0x142a   :  { %2892 = vrot.lane.b32.xlu1 %v6809_v7, %s4602_s15 }
0x1431   :  { %2906 = vrot.lane.b32.xlu2 %v6827_v50, %s4599_s1  ;;  %2888 = vrot.lane.b32.xlu0 %v6805_v56, %s4602_s15 }
0x1432   :  { %2922 = vrot.lane.b32.xlu1 %v6827_v50, %s4601_s14 }
0x1439   :  { %2858 = vrot.lane.b32.xlu2 %v6827_v50, %s4603_s16  ;;  %2874 = vrot.lane.b32.xlu0 %v6827_v50, %s4604_s17 }
0x143a   :  { %2860 = vrot.lane.b32.xlu1 %v6809_v7, %s4603_s16 }
0x1441   :  { %2876 = vrot.lane.b32.xlu2 %v6809_v7, %s4604_s17  ;;  %2862 = vrot.lane.b32.xlu0 %v6813_v32, %s4603_s16 }
0x1442   :  { %2890 = vrot.lane.b32.xlu1 %v6827_v50, %s4602_s15 }
0x1449   :  { %2878 = vrot.lane.b32.xlu2 %v6813_v32, %s4604_s17  ;;  %2828 = vrot.lane.b32.xlu0 %v6809_v7, %s4605_s18 }
0x144a   :  { %2826 = vrot.lane.b32.xlu1 %v6827_v50, %s4605_s18 }
0x1451   :  { %2842 = vrot.lane.b32.xlu2 %v6827_v50, %s4606_s19  ;;  %2856 = vrot.lane.b32.xlu0 %v6805_v56, %s4603_s16 }
0x1452   :  { %2844 = vrot.lane.b32.xlu1 %v6809_v7, %s4606_s19 }
0x1459   :  { %2872 = vrot.lane.b32.xlu2 %v6805_v56, %s4604_s17  ;;  %2846 = vrot.lane.b32.xlu0 %v6813_v32, %s4606_s19 }
0x145a   :  { %2830 = vrot.lane.b32.xlu1 %v6813_v32, %s4605_s18 }
0x1461   :  { %2824 = vrot.lane.b32.xlu2 %v6805_v56, %s4605_s18 }
0x1462   :  { %2840 = vrot.lane.b32.xlu1 %v6805_v56, %s4606_s19 }
0x146b   :  { %v2941_v53 = vpop.permute.xlu2 %2940 }
0x1473   :  { %v2939_v25 = vpop.permute.xlu2 %2938 }
0x1474   :  { %v2945_v0 = vsel %vm240_vm0, %v2939_v25, %v2941_v53 }
0x1475   :  { %v2949_v33 = vmul.f32 %v6603_v31, %v2945_v0  ;;  %v2331_v31 = vmul.f32 %v6767_v39, %v6767_v39 }
0x1477   :  { %v2969_v12 = vpack.c.bf16 %v2949_v33, %v2949_v33  ;;  %v2349_v3 = vadd.f32 %v2348_v60, %v2331_v31 }
0x1479   :  { %v2981_v44 = vsel %vm274_vm1, %v2969_v12, 0 }
0x147a   :  { %3005 = vmatpush.bf16.msrb.mxu1 %v2981_v44 }
0x147b   :  { %v2925_v9 = vpop.permute.xlu2 %2924 }
0x1483   :  { %v2921_v52 = vpop.permute.xlu2 %2920  ;;  %v2937_v23 = vpop.permute.xlu0 %2936  ;;  %2311 = vadd.xlane.f32.xlu0 %v2310_v34  ;;  %v2350_v34 = vadd.f32 %v2349_v3, %v2332_v54 }
0x1484   :  { %v2943_v0 = vpop.permute.xlu1 %2942  ;;  %v2946_v33 = vsel %vm240_vm0, %v2937_v23, %v2939_v25 }
0x1485   :  { %v2944_v12 = vsel %vm240_vm0, %v2941_v53, %v2943_v0  ;;  %v2947_v55 = vsel %vm240_vm0, %v2943_v0, %v2937_v23  ;;  %v2948_v44 = vmul.f32 %v6600_v59, %v2946_v33 }
0x1486   :  { %v2950_v51 = vmul.f32 %v6580_v45, %v2944_v12  ;;  %v2951_v17 = vmul.f32 %v6592_v42, %v2947_v55 }
0x1487   :  { %v2968_v14 = vpack.c.bf16 %v2948_v44, %v2948_v44 }
0x1488   :  { %v2970_v60 = vpack.c.bf16 %v2950_v51, %v2950_v51  ;;  %v2971_v31 = vpack.c.bf16 %v2951_v17, %v2951_v17 }
0x1489   :  { %v2978_v1 = vsel %vm274_vm1, %v2968_v14, 0 }
0x148a   :  { %2992 = vmatpush.bf16.msrb.mxu0 %v2978_v1  ;;  %v2984_v25 = vsel %vm274_vm1, %v2970_v60, 0  ;;  %v2987_v53 = vsel %vm274_vm1, %v2971_v31, 0  ;;  %2351 = vadd.xlane.f32.xlu2 %v2350_v34 }
0x148b   :  { %3018 = vmatpush.bf16.msrb.mxu2 %v2984_v25  ;;  %3031 = vmatpush.bf16.msrb.mxu3 %v2987_v53  ;;  %v2911_v23 = vpop.permute.xlu0 %2910  ;;  %v2907_v0 = vpop.permute.xlu2 %2906 }
0x148c   :  { %v2909_v59 = vpop.permute.xlu1 %2908 }
0x148d   :  { %v2912_v45 = vsel %vm206_vm2, %v2909_v59, %v2911_v23 }
0x148e   :  { %v2918_v55 = vmul.f32 %v6612_v8, %v2912_v45 }
0x1493   :  { %v2905_v42 = vpop.permute.xlu0 %2904  ;;  %v6927_v17 = vpop.permute.xlu2 %2858 }
0x1494   :  { %v2927_v33 = vpop.permute.xlu1 %2926  ;;  %v2915_v3 = vsel %vm206_vm2, %v2911_v23, %v2905_v42 }
0x1495   :  { %v2928_v1 = vsel %vm223_vm3, %v2925_v9, %v2927_v33  ;;  %v2931_v54 = vsel %vm223_vm3, %v2927_v33, %v2921_v52  ;;  %v2919_v12 = vmul.f32 %v6624_v21, %v2915_v3 }
0x1496   :  { %v2934_v44 = vmul.f32 %v6615_v2, %v2928_v1  ;;  %v2935_v51 = vmul.f32 %v6627_v29, %v2931_v54  ;;  %v2913_v2 = vsel %vm206_vm2, %v2907_v0, %v2909_v59  ;;  %v2914_v29 = vsel %vm206_vm2, %v2905_v42, %v2907_v0 }
0x1497   :  { %v2917_v1 = vmul.f32 %v6653_v43, %v2913_v2  ;;  %v2916_v59 = vmul.f32 %v6650_v22, %v2914_v29 }
0x1498   :  { %v2966_v14 = vpack.c.bf16 %v2934_v44, %v2918_v55  ;;  %v2967_v60 = vpack.c.bf16 %v2935_v51, %v2919_v12 }
0x149a   :  { %3019 = vmatpush.bf16.msrb.mxu2 %v2966_v14  ;;  %3032 = vmatpush.bf16.msrb.mxu3 %v2967_v60 }
0x149b   :  { %v2895_v31 = vpop.permute.xlu0 %2894  ;;  %v2877_v21 = vpop.permute.xlu2 %2876 }
0x149c   :  { %v2893_v34 = vpop.permute.xlu1 %2892 }
0x149d   :  { %v2896_v25 = vsel %vm189_vm4, %v2893_v34, %v2895_v31 }
0x149e   :  { %v2902_v53 = vmul.f32 %v6636_v30, %v2896_v25 }
0x14a0   :  { %v2962_v8 = vpack.c.bf16 %v2902_v53, %v6809_v7 }
0x14a2   :  { %3020 = vmatpush.bf16.msrb.mxu2 %v2962_v8 }
0x14a3   :  { %v2889_v23 = vpop.permute.xlu0 %2888  ;;  %v2879_v44 = vpop.permute.xlu2 %2878 }
0x14a4   :  { %v2923_v45 = vpop.permute.xlu1 %2922  ;;  %v2899_v33 = vsel %vm189_vm4, %v2895_v31, %v2889_v23 }
0x14a5   :  { %v2929_v3 = vsel %vm223_vm3, %v2923_v45, %v2925_v9  ;;  %v2930_v30 = vsel %vm223_vm3, %v2921_v52, %v2923_v45  ;;  %v2903_v7 = vmul.f32 %v6630_v16, %v2899_v33 }
0x14a6   :  { %v2932_v54 = vmul.f32 %v6656_v37, %v2930_v30  ;;  %v2933_v0 = vmul.f32 %v6659_v28, %v2929_v3 }
0x14a7   :  { %v2963_v42 = vpack.c.bf16 %v2903_v7, %v6813_v32  ;;  %v2880_v32 = vsel %vm172_vm6, %v2877_v21, %v2879_v44 }
0x14a8   :  { %v2964_v12 = vpack.c.bf16 %v2932_v54, %v2916_v59  ;;  %v2965_v55 = vpack.c.bf16 %v2933_v0, %v2917_v1  ;;  %v6984_v1 = vld [vmem:[#allocation2 + $0x68] sm:$0xff] }
0x14a9   :  { %3033 = vmatpush.bf16.msrb.mxu3 %v2963_v42 }
0x14aa   :  { %2993 = vmatpush.bf16.msrb.mxu0 %v2964_v12  ;;  %3006 = vmatpush.bf16.msrb.mxu1 %v2965_v55 }
0x14ab   :  { %v2875_v9 = vpop.permute.xlu0 %2874  ;;  %v2843_v14 = vpop.permute.xlu2 %2842 }
0x14ac   :  { %v2861_v52 = vpop.permute.xlu1 %2860  ;;  %v2881_v16 = vsel %vm172_vm6, %v2875_v9, %v2877_v21 }
0x14ad   :  { %v2865_v22 = vsel %vm155_vm5, %v6927_v17, %v2861_v52  ;;  %v2886_v43 = vmul.f32 %v6670_v63, %v2881_v16  ;;  %v2887_v63 = vmul.f32 %v6687_v6, %v2880_v32 }
0x14ae   :  { %v2870_v37 = vmul.f32 %v6667_v36, %v2865_v22 }
0x14b0   :  { %v2958_v28 = vpack.c.bf16 %v2886_v43, %v2870_v37 }
0x14b2   :  { %3021 = vmatpush.bf16.msrb.mxu2 %v2958_v28 }
0x14b3   :  { %v2863_v51 = vpop.permute.xlu0 %2862  ;;  %v2873_v3 = vpop.permute.xlu2 %2872 }
0x14b4   :  { %v2891_v60 = vpop.permute.xlu1 %2890  ;;  %v2864_v31 = vsel %vm155_vm5, %v2861_v52, %v2863_v51  ;;  %v2883_v6 = vsel %vm172_vm6, %v2879_v44, %v2873_v3  ;;  %v4251_v52 = vld [vmem:[%s7723_s2 + $0x1c] sm:$0xf] }
0x14b5   :  { %v2897_v25 = vsel %vm189_vm4, %v2891_v60, %v2893_v34  ;;  %v2898_v53 = vsel %vm189_vm4, %v2889_v23, %v2891_v60  ;;  %v2871_v21 = vmul.f32 %v6684_v48, %v2864_v31 }
0x14b6   :  { %v2900_v36 = vmul.f32 %v6681_v47, %v2898_v53  ;;  %v2901_v8 = vmul.f32 %v6690_v40, %v2897_v25  ;;  %v2882_v47 = vsel %vm172_vm6, %v2873_v3, %v2875_v9  ;;  %v7842_v25 = vld [vmem:[#allocation33_spill] sm:$0xff] }
0x14b7   :  { %v2959_v45 = vpack.c.bf16 %v2887_v63, %v2871_v21  ;;  %v2885_v59 = vmul.f32 %v6984_v1, %v2882_v47  ;;  %v7843_v63 = vld [vmem:[#allocation34_spill] sm:$0xff] }
0x14b8   :  { %v2960_v2 = vpack.c.bf16 %v2900_v36, %v6805_v56  ;;  %v2961_v29 = vpack.c.bf16 %v2901_v8, %v6827_v50  ;;  %v6976_v56 = vld [vmem:[#allocation2 + $0x60] sm:$0xff] }
0x14b9   :  { %3034 = vmatpush.bf16.msrb.mxu3 %v2959_v45  ;;  %v2884_v50 = vmul.f32 %v6976_v56, %v2883_v6 }
0x14ba   :  { %2994 = vmatpush.bf16.msrb.mxu0 %v2960_v2  ;;  %3007 = vmatpush.bf16.msrb.mxu1 %v2961_v29  ;;  %v7846_v2 = vld [vmem:[#allocation8_spill] sm:$0xff] }
0x14bb   :  { %v2829_v34 = vpop.permute.xlu0 %2828  ;;  %v2825_v43 = vpop.permute.xlu2 %2824 }
0x14bc   :  { %v2827_v33 = vpop.permute.xlu1 %2826 }
0x14bd   :  { %v2833_v48 = vsel %vm121_vm7, %v2827_v33, %v2829_v34  ;;  %v2834_v28 = vsel %vm121_vm7, %v2825_v43, %v2827_v33 }
0x14be   :  { %v2838_v12 = vmul.f32 %v6703_v20, %v2833_v48 }
0x14c3   :  { %v2857_v40 = vpop.permute.xlu0 %2856 }
0x14c4   :  { %v2845_v23 = vpop.permute.xlu1 %2844  ;;  %v2866_v30 = vsel %vm155_vm5, %v2857_v40, %v6927_v17  ;;  %v2867_v7 = vsel %vm155_vm5, %v2863_v51, %v2857_v40 }
0x14c5   :  { %v2849_v54 = vsel %vm138_vm8, %v2843_v14, %v2845_v23  ;;  %v2868_v0 = vmul.f32 %v6714_v19, %v2867_v7  ;;  %v2869_v42 = vmul.f32 %v6717_v18, %v2866_v30 }
0x14c6   :  { %v2854_v55 = vmul.f32 %v6711_v62, %v2849_v54 }
0x14c7   :  { %v2956_v44 = vpack.c.bf16 %v2884_v50, %v2868_v0  ;;  %v2957_v17 = vpack.c.bf16 %v2885_v59, %v2869_v42 }
0x14c8   :  { %v2954_v9 = vpack.c.bf16 %v2854_v55, %v2838_v12 }
0x14c9   :  { %2995 = vmatpush.bf16.msrb.mxu0 %v2956_v44  ;;  %3008 = vmatpush.bf16.msrb.mxu1 %v2957_v17 }
0x14ca   :  { %3022 = vmatpush.bf16.msrb.mxu2 %v2954_v9 }
0x14cb   :  { %v2847_v16 = vpop.permute.xlu0 %2846 }
0x14cc   :  { %v2831_v22 = vpop.permute.xlu1 %2830  ;;  %v2848_v19 = vsel %vm138_vm8, %v2845_v23, %v2847_v16  ;;  %v4239_v23 = vld [vmem:[%s7727_s6 + $0x38] sm:$0xff] }
0x14cd   :  { %v2832_v18 = vsel %vm121_vm7, %v2829_v34, %v2831_v22  ;;  %v2855_v20 = vmul.f32 %v6730_v24, %v2848_v19  ;;  %4254 = vmatmul.msk.bf16.vlgmr.msrb.gmra.mxu2 %vm7840_vm15, %v4251_v52  ;;  %v2835_v32 = vsel %vm121_vm7, %v2831_v22, %v2825_v43 }
0x14ce   :  { %v2839_v62 = vmul.f32 %v6733_v15, %v2832_v18  ;;  %v2837_v15 = vmul.f32 %v6745_v27, %v2834_v28  ;;  %v2836_v31 = vmul.f32 %v6748_v58, %v2835_v32  ;;  %v4243_v32 = vld [vmem:[%s7728_s7 + $0x38] sm:$0xff] }
0x14d0   :  { %v2955_v37 = vpack.c.bf16 %v2855_v20, %v2839_v62 }
0x14d2   :  { %3035 = vmatpush.bf16.msrb.mxu3 %v2955_v37 }
0x14d4   :  { %v2841_v51 = vpop.permute.xlu1 %2840 }
0x14d5   :  { %v2850_v60 = vsel %vm138_vm8, %v2841_v51, %v2843_v14  ;;  %v2851_v24 = vsel %vm138_vm8, %v2847_v16, %v2841_v51  ;;  %4255 = vmatmul.msk.bf16.vlgmr.msrb.gmra.mxu3 %vm7841_vm10, %v4251_v52 }
0x14d6   :  { %v2852_v53 = vmul.f32 %v7842_v25, %v2851_v24  ;;  %v2853_v36 = vmul.f32 %v7843_v63, %v2850_v60 }
0x14d8   :  { %v2952_v8 = vpack.c.bf16 %v2852_v53, %v2836_v31  ;;  %v2953_v21 = vpack.c.bf16 %v2853_v36, %v2837_v15 }
0x14da   :  { %2996 = vmatpush.bf16.msrb.mxu0 %v2952_v8  ;;  %3009 = vmatpush.bf16.msrb.mxu1 %v2953_v21 }
0x14dd   :  { %4252 = vmatmul.msk.bf16.vlgmr.msrb.gmra.mxu0 %vm7844_vm11, %v4251_v52  ;;  %4253 = vmatmul.msk.bf16.vlgmr.msrb.gmra.mxu1 %vm7845_vm12, %v4251_v52 }
0x14f6   :  { %v2312_v14 = vpop.xlane.xlu0 %2311 }
0x14f7   :  { %v2316_v29 = vmul.f32 %v2312_v14, %v7846_v2 }
0x14f9   :  { %v2360_v34 = vmul.f32 %v2316_v29, %v2316_v29 }
0x14fd   :  { %v2352_v45 = vpop.xlane.xlu2 %2351 }
0x14fe   :  { %v2356_v27 = vmul.f32 %v2352_v45, %v7846_v2 }
0x1500   :  { %v2364_v58 = vsub.f32 %v2356_v27, %v2360_v34  ;;  %v4256_v34 = vld [vmem:[%s7724_s3 + $0x38] sm:$0xff] }
0x1502   :  { %v2368_v33 = vadd.f32 1e-05, %v2364_v58 }
0x1504   :  { %4362 = vrsqrt.f32 %v2368_v33  ;;  %vm2405_vm9 = vweird.f32 %v2368_v33 }
0x150a   :  { %v4363_v3 = vpop.eup %4362 }
0x150b   :  { %v2400_v6 = vmul.f32 %v4363_v3, %v2368_v33  ;;  %vm2406_vm13 = vweird.f32 %v4363_v3  ;;  %v4257_v33 = vld [vmem:[%s7725_s4 + $0x38] sm:$0xff] }
0x150c   :  { %vm2407_vm15 = vmor %vm2405_vm9, %vm2406_vm13 }
0x150d   :  { %v2401_v47 = vmul.f32 %v4363_v3, %v2400_v6 }
0x150f   :  { %v2402_v48 = vmul.f32 0.5, %v2401_v47 }
0x1511   :  { %v2403_v40 = vsub.f32 1.5, %v2402_v48 }
0x1513   :  { %v2404_v50 = vmul.f32 %v4363_v3, %v2403_v40 }
0x1515   :  { %v2408_v30 = vsel %vm2407_vm15, %v4363_v3, %v2404_v50 }
0x1516   :  { %v2412_v7 = vmul.f32 %v4239_v23, %v2408_v30 }
0x1518   :  { %2438 = vperm.xlu2 %4333, %v2412_v7   ;;  %v2416_v59 = vmul.f32 %v2412_v7, %v2316_v29 }
0x151a   :  { %v2420_v51 = vsub.f32 %v4243_v32, %v2416_v59 }
0x1550   :  { %v7023_v54 = vpop.f32.mrf.mxu2 }
0x1551   :  { %v3053_v44 = vmul.f32 %v7023_v54, %v7023_v54 }
0x1558   :  { %v7025_v0 = vpop.f32.mrf.mxu3  ;;  %v3026_v42 = vpop.f32.mrf.mxu2 }
0x1559   :  { %v3054_v16 = vmul.f32 %v7025_v0, %v7025_v0  ;;  %v7847_v42 = vld [vmem:[#allocation22_spill] sm:$0xff] }
0x155a   :  { %v2998_v12 = vpop.f32.mrf.mxu0  ;;  %v3011_v55 = vpop.f32.mrf.mxu1 }
0x155b   :  { %v3051_v17 = vmul.f32 %v2998_v12, %v2998_v12  ;;  %v3045_v9 = vadd.f32 %v3011_v55, %v2998_v12  ;;  %v3052_v52 = vmul.f32 %v3011_v55, %v3011_v55 }
0x155d   :  { %v3046_v22 = vadd.f32 %v3045_v9, %v7023_v54  ;;  %v3055_v19 = vadd.f32 %v3052_v52, %v3051_v17  ;;  %v7848_v17 = vld [vmem:[#allocation23_spill] sm:$0xff] }
0x155f   :  { %v3047_v18 = vadd.f32 %v3046_v22, %v7025_v0  ;;  %v3056_v20 = vadd.f32 %v3055_v19, %v3053_v44 }
0x1560   :  { %v3039_v62 = vpop.f32.mrf.mxu3 }
0x1561   :  { %3048 = vadd.xlane.f32.xlu1 %v3047_v18  ;;  %v3057_v43 = vadd.f32 %v3056_v20, %v3054_v16  ;;  %v7849_v16 = vld [vmem:[#allocation24_spill] sm:$0xff] }
0x1562   :  { %v3000_v37 = vpop.f32.mrf.mxu0  ;;  %v3013_v28 = vpop.f32.mrf.mxu1 }
0x1563   :  { %3058 = vadd.xlane.f32.xlu0 %v3057_v43 }
0x1572   :  { %v2439_v47 = vpop.permute.xlu2 %2438 }
0x1573   :  { %v2453_v40 = vmul.f32 %v2439_v47, %v6771_v41  ;;  %v2455_v50 = vmul.f32 %v2439_v47, %v6767_v39  ;;  %v2456_v23 = vmul.f32 %v2439_v47, %v6769_v61  ;;  %v2454_v52 = vmul.f32 %v2439_v47, %v6773_v35  ;;  %v7852_v47 = vld [vmem:[#allocation19_spill] sm:$0xff] }
0x157a   :  { %2474 = vperm.xlu1 %4331, %v2420_v51  }
0x15d4   :  { %v3049_v60 = vpop.xlane.xlu1 %3048 }
0x15d5   :  { %v3050_v24 = vmul.f32 %v3049_v60, %v7846_v2 }
0x15d6   :  { %v3059_v15 = vpop.xlane.xlu0 %3058 }
0x15d7   :  { %v3061_v31 = vmul.f32 %v3050_v24, %v3050_v24  ;;  %v3060_v25 = vmul.f32 %v3059_v15, %v7846_v2 }
0x15d9   :  { %v3062_v53 = vsub.f32 %v3060_v25, %v3061_v31  ;;  %v7850_v31 = vld [vmem:[#allocation25_spill] sm:$0xff] }
0x15db   :  { %v3063_v63 = vadd.f32 1e-05, %v3062_v53 }
0x15dd   :  { %4364 = vrsqrt.f32 %v3063_v63  ;;  %vm3070_vm11 = vweird.f32 %v3063_v63 }
0x15e3   :  { %v4365_v36 = vpop.eup %4364 }
0x15e4   :  { %v3065_v8 = vmul.f32 %v4365_v36, %v3063_v63  ;;  %vm3071_vm10 = vweird.f32 %v4365_v36 }
0x15e5   :  { %vm3072_vm12 = vmor %vm3070_vm11, %vm3071_vm10 }
0x15e6   :  { %v3066_v21 = vmul.f32 %v4365_v36, %v3065_v8 }
0x15e8   :  { %v3067_v14 = vmul.f32 0.5, %v3066_v21 }
0x15ea   :  { %v3068_v29 = vsub.f32 1.5, %v3067_v14 }
0x15ec   :  { %v3069_v45 = vmul.f32 %v4365_v36, %v3068_v29  ;;  %v2475_v48 = vpop.permute.xlu1 %2474 }
0x15ed   :  { %v2489_v30 = vadd.f32 %v2475_v48, %v2453_v40  ;;  %v2491_v7 = vadd.f32 %v2475_v48, %v2455_v50  ;;  %v2492_v59 = vadd.f32 %v2475_v48, %v2456_v23  ;;  %v2490_v62 = vadd.f32 %v2475_v48, %v2454_v52 }
0x15ee   :  { %v3073_v27 = vsel %vm3072_vm12, %v4365_v36, %v3069_v45 }
0x15ef   :  { %v3074_v58 = vmul.f32 %v4256_v34, %v3073_v27  ;;  %v2505_v44 = vadd.f32 %v2489_v30, %v7847_v42  ;;  %v2507_v9 = vadd.f32 %v2491_v7, %v7848_v17  ;;  %v2508_v22 = vadd.f32 %v2492_v59, %v7849_v16  ;;  %v7853_v59 = vld [vmem:[#allocation16_spill] sm:$0xff] }
0x15f0   :  { %v2506_v25 = vadd.f32 %v2490_v62, %v7850_v31 }
0x15f1   :  { %3079 = vperm.xlu0 %4332, %v3074_v58   ;;  %v3075_v3 = vmul.f32 %v3074_v58, %v3050_v24  ;;  %v2521_v61 = vmul.f32 0.01, %v2505_v44  ;;  %v2523_v37 = vmul.f32 0.01, %v2507_v9  ;;  %v2524_v60 = vmul.f32 0.01, %v2508_v22 }
0x15f2   :  { %v2522_v45 = vmul.f32 0.01, %v2506_v25 }
0x15f3   :  { %v3076_v6 = vsub.f32 %v4257_v33, %v3075_v3  ;;  %v7062_v63 = vmax.f32 %v2508_v22, %v2524_v60  ;;  %v4499_v22 = vld [vmem:[#allocation2 + $0x110] sm:$0xff] }
0x15f4   :  { %v7086_v27 = vmax.f32 %v2506_v25, %v2522_v45 }
0x15f5   :  { %3088 = vperm.xlu2 %4333, %v3076_v6   ;;  %v7851_v6 = vld [vmem:[#allocation15_spill] sm:$0xff] }
0x15f6   :  { %v2293_v48 = vadd.f32 %v7852_v47, %v7851_v6 }
0x164f   :  { %v3089_v43 = vpop.permute.xlu2 %3088 }
0x1663   :  { %v3080_v19 = vpop.permute.xlu0 %3079 }
0x1664   :  { %v3082_v18 = vmul.f32 %v3080_v19, %v2998_v12  ;;  %v3083_v20 = vmul.f32 %v3080_v19, %v3011_v55  ;;  %v3084_v41 = vmul.f32 %v3080_v19, %v7023_v54  ;;  %v3085_v39 = vmul.f32 %v3080_v19, %v7025_v0 }
0x1665   :  { %v7054_v12 = vmax.f32 %v2505_v44, %v2521_v61  ;;  %v7056_v55 = vmax.f32 %v2507_v9, %v2523_v37  ;;  %v2294_v44 = vadd.f32 %v2293_v48, %v7853_v59  ;;  %v4498_v9 = vld [vmem:[#allocation2 + $0x118] sm:$0xff] }
0x1666   :  { %v3091_v28 = vadd.f32 %v3089_v43, %v3082_v18  ;;  %v3093_v32 = vadd.f32 %v3089_v43, %v3084_v41  ;;  %v3094_v51 = vadd.f32 %v3089_v43, %v3085_v39  ;;  %v3092_v24 = vadd.f32 %v3089_v43, %v3083_v20  ;;  %v7854_v41 = vld [vmem:[#allocation18_spill] sm:$0xff] }
0x1667   :  { %v2295_v39 = vadd.f32 %v2294_v44, %v7854_v41  ;;  %v4503_v44 = vld [vmem:[#allocation2 + $0xf0] sm:$0xff] }
0x1668   :  { %v3095_v15 = vmul.f32 0.01, %v3091_v28  ;;  %v3097_v35 = vmul.f32 0.01, %v3093_v32  ;;  %v3098_v53 = vmul.f32 0.01, %v3094_v51 }
0x1669   :  { %v3096_v8 = vmul.f32 0.01, %v3092_v24 }
0x166a   :  { %v7058_v54 = vmax.f32 %v3091_v28, %v3095_v15  ;;  %v7060_v0 = vmax.f32 %v3093_v32, %v3097_v35  ;;  %v7064_v36 = vmax.f32 %v3094_v51, %v3098_v53  ;;  %v4500_v51 = vld [vmem:[#allocation2 + $0x100] sm:$0xff] }
0x166b   :  { %v7084_v34 = vmax.f32 %v3092_v24, %v3096_v8  ;;  %v4501_v24 = vld [vmem:[#allocation2 + $0x108] sm:$0xff] }
0x166c   :  { %v7068_v21 = vadd.f32 %v7058_v54, %v7054_v12  ;;  %v7072_v14 = vadd.f32 %v7060_v0, %v7056_v55  ;;  %v7076_v29 = vadd.f32 %v7064_v36, %v7062_v63 }
0x166d   :  { %v7090_v58 = vadd.f32 %v7084_v34, %v7086_v27 }
0x166e   :  { %3223 = vrot.lane.b32.xlu0 %v7072_v14, %s4600_s28  ;;  %3219 = vrot.lane.b32.xlu2 %v7068_v21, %s4600_s28 }
0x166f   :  { %3225 = vrot.lane.b32.xlu1 %v7076_v29, %s4600_s28 }
0x1676   :  { %3221 = vrot.lane.b32.xlu0 %v7090_v58, %s4600_s28  ;;  %3193 = vrot.lane.b32.xlu2 %v7076_v29, %s4599_s1 }
0x1677   :  { %3191 = vrot.lane.b32.xlu1 %v7072_v14, %s4599_s1 }
0x167e   :  { %3207 = vrot.lane.b32.xlu0 %v7072_v14, %s4601_s14  ;;  %3187 = vrot.lane.b32.xlu2 %v7068_v21, %s4599_s1 }
0x167f   :  { %3209 = vrot.lane.b32.xlu1 %v7076_v29, %s4601_s14 }
0x1686   :  { %3203 = vrot.lane.b32.xlu0 %v7068_v21, %s4601_s14  ;;  %3177 = vrot.lane.b32.xlu2 %v7076_v29, %s4602_s15 }
0x1687   :  { %3175 = vrot.lane.b32.xlu1 %v7072_v14, %s4602_s15 }
0x168e   :  { %3189 = vrot.lane.b32.xlu0 %v7090_v58, %s4599_s1  ;;  %3171 = vrot.lane.b32.xlu2 %v7068_v21, %s4602_s15 }
0x168f   :  { %3205 = vrot.lane.b32.xlu1 %v7090_v58, %s4601_s14 }
0x1696   :  { %3141 = vrot.lane.b32.xlu0 %v7090_v58, %s4603_s16  ;;  %3157 = vrot.lane.b32.xlu2 %v7090_v58, %s4604_s17 }
0x1697   :  { %3143 = vrot.lane.b32.xlu1 %v7072_v14, %s4603_s16 }
0x169e   :  { %3159 = vrot.lane.b32.xlu0 %v7072_v14, %s4604_s17  ;;  %3145 = vrot.lane.b32.xlu2 %v7076_v29, %s4603_s16 }
0x169f   :  { %3173 = vrot.lane.b32.xlu1 %v7090_v58, %s4602_s15 }
0x16a6   :  { %3161 = vrot.lane.b32.xlu0 %v7076_v29, %s4604_s17  ;;  %3111 = vrot.lane.b32.xlu2 %v7072_v14, %s4605_s18 }
0x16a7   :  { %3109 = vrot.lane.b32.xlu1 %v7090_v58, %s4605_s18 }
0x16ae   :  { %3125 = vrot.lane.b32.xlu0 %v7090_v58, %s4606_s19  ;;  %3139 = vrot.lane.b32.xlu2 %v7068_v21, %s4603_s16 }
0x16af   :  { %3127 = vrot.lane.b32.xlu1 %v7072_v14, %s4606_s19 }
0x16b6   :  { %3155 = vrot.lane.b32.xlu0 %v7068_v21, %s4604_s17  ;;  %3129 = vrot.lane.b32.xlu2 %v7076_v29, %s4606_s19  ;;  %s4609_s17 = smov [#allocation5]  }
0x16b7   :  { %3113 = vrot.lane.b32.xlu1 %v7076_v29, %s4605_s18 }
0x16be   :  { %3107 = vrot.lane.b32.xlu0 %v7068_v21, %s4605_s18  ;;  %s4146_s18 = sshll.u32 %s4609_s17, 4  ;;  %s4147_s18 = int_to_ptr.vmem [resolvable:$true] %s4146_s18 }
0x16bf   :  { %3123 = vrot.lane.b32.xlu1 %v7068_v21, %s4606_s19 }
0x16c8   :  { %v3220_v33 = vpop.permute.xlu2 %3219 }
0x16d0   :  { %v3194_v3 = vpop.permute.xlu2 %3193 }
0x16d8   :  { %v7152_v50 = vpop.permute.xlu2 %3187 }
0x16e0   :  { %v3224_v40 = vpop.permute.xlu0 %3223  ;;  %v3178_v35 = vpop.permute.xlu2 %3177 }
0x16e1   :  { %v3226_v23 = vpop.permute.xlu1 %3225 }
0x16e2   :  { %v3230_v30 = vsel %vm240_vm0, %v3226_v23, %v3220_v33  ;;  %v3227_v7 = vsel %vm240_vm0, %v3224_v40, %v3226_v23 }
0x16e3   :  { %v3234_v52 = vmul.f32 %v4498_v9, %v3230_v30  ;;  %v3233_v19 = vmul.f32 %v4499_v22, %v3227_v7  ;;  %v4502_v30 = vld [vmem:[#allocation2 + $0xd0] sm:$0xff] }
0x16e5   :  { %v3254_v18 = vpack.c.bf16 %v3234_v52, %v3234_v52  ;;  %v3253_v20 = vpack.c.bf16 %v3233_v19, %v3233_v19  ;;  %v3198_v19 = vsel %vm206_vm2, %v3194_v3, %v7152_v50 }
0x16e7   :  { %v3267_v62 = vsel %vm274_vm1, %v3253_v20, 0  ;;  %v3270_v61 = vsel %vm274_vm1, %v3254_v18, 0 }
0x16e8   :  { %3301 = vmatpush.bf16.msra.mxu2 %v3267_v62  ;;  %3314 = vmatpush.bf16.msra.mxu3 %v3270_v61  ;;  %v3222_v43 = vpop.permute.xlu0 %3221  ;;  %v3172_v52 = vpop.permute.xlu2 %3171  ;;  %v4504_v61 = vld [vmem:[#allocation2 + $0xd8] sm:$0xff] }
0x16e9   :  { %v3192_v37 = vpop.permute.xlu1 %3191  ;;  %v3228_v28 = vsel %vm240_vm0, %v3222_v43, %v3224_v40  ;;  %v3229_v32 = vsel %vm240_vm0, %v3220_v33, %v3222_v43  ;;  %2296 = vadd.xlane.f32.xlu0 %v2295_v39  ;;  %v3182_v20 = vsel %vm189_vm4, %v3178_v35, %v3172_v52  ;;  %v3202_v43 = vmul.f32 %v4504_v61, %v3198_v19 }
0x16ea   :  { %v3231_v60 = vmul.f32 %v4500_v51, %v3229_v32  ;;  %v3232_v15 = vmul.f32 %v4501_v24, %v3228_v28  ;;  %v3195_v48 = vsel %vm206_vm2, %v3192_v37, %v3194_v3  ;;  %v4505_v32 = vld [vmem:[#allocation2 + $0xf8] sm:$0xff]  ;;  %vm7855_vm0 = vcmask 588800  }
0x16eb   :  { %v3201_v7 = vmul.f32 %v4502_v30, %v3195_v48 }
0x16ec   :  { %v3251_v25 = vpack.c.bf16 %v3231_v60, %v3231_v60  ;;  %v3252_v53 = vpack.c.bf16 %v3232_v15, %v3232_v15  ;;  %v4506_v60 = vld [vmem:[#allocation2 + $0xb0] sm:$0xff]  ;;  %v4507_v15 = vld [vmem:[#allocation2 + $0xb8] sm:$0xff] }
0x16ed   :  { %v3186_v3 = vmul.f32 %v4507_v15, %v3182_v20  ;;  %v4511_v20 = vld [vmem:[#allocation2 + $0xe8] sm:$0xff] }
0x16ee   :  { %v3261_v8 = vsel %vm274_vm1, %v3251_v25, 0  ;;  %v3264_v45 = vsel %vm274_vm1, %v3252_v53, 0  ;;  %vm7856_vm1 = vmmov %vm7855_vm0 }
0x16ef   :  { %3275 = vmatpush.bf16.msra.mxu0 %v3261_v8  ;;  %3288 = vmatpush.bf16.msra.mxu1 %v3264_v45  ;;  %v3246_v48 = vpack.c.bf16 %v3186_v3, %v7076_v29  ;;  %v4510_v29 = vld [vmem:[#allocation2 + $0xe0] sm:$0xff] }
0x16f0   :  { %v3208_v40 = vpop.permute.xlu0 %3207  ;;  %v7182_v8 = vpop.permute.xlu2 %3157 }
0x16f1   :  { %v3210_v23 = vpop.permute.xlu1 %3209 }
0x16f2   :  { %v3211_v33 = vsel %vm223_vm3, %v3208_v40, %v3210_v23 }
0x16f3   :  { %v3217_v9 = vmul.f32 %v4503_v44, %v3211_v33 }
0x16f5   :  { %v3249_v22 = vpack.c.bf16 %v3217_v9, %v3201_v7  ;;  %v4508_v7 = vld [vmem:[#allocation2 + $0xc0] sm:$0xff]  ;;  %v4509_v9 = vld [vmem:[#allocation2 + $0xc8] sm:$0xff] }
0x16f7   :  { %3302 = vmatpush.bf16.msra.mxu2 %v3249_v22 }
0x16f8   :  { %v3204_v18 = vpop.permute.xlu0 %3203 }
0x16f9   :  { %v3176_v39 = vpop.permute.xlu1 %3175  ;;  %v3214_v62 = vsel %vm223_vm3, %v3210_v23, %v3204_v18 }
0x16fa   :  { %v3179_v28 = vsel %vm189_vm4, %v3176_v39, %v3178_v35  ;;  %v3218_v51 = vmul.f32 %v4505_v32, %v3214_v62 }
0x16fb   :  { %v3185_v24 = vmul.f32 %v4506_v60, %v3179_v28  ;;  %v4512_v60 = vld [vmem:[#allocation2 + $0x50] sm:$0xff] }
0x16fc   :  { %v3250_v25 = vpack.c.bf16 %v3218_v51, %v3202_v43  ;;  %v3146_v43 = vpop.permute.xlu2 %3145 }
0x16fd   :  { %v3245_v53 = vpack.c.bf16 %v3185_v24, %v7072_v14 }
0x16fe   :  { %3315 = vmatpush.bf16.msra.mxu3 %v3250_v25  ;;  %v4513_v25 = vld [vmem:[#allocation2 + $0x70] sm:$0xff] }
0x16ff   :  { %3303 = vmatpush.bf16.msra.mxu2 %v3245_v53 }
0x1700   :  { %v3190_v45 = vpop.permute.xlu0 %3189 }
0x1701   :  { %v3206_v23 = vpop.permute.xlu1 %3205  ;;  %v3196_v35 = vsel %vm206_vm2, %v3190_v45, %v3192_v37  ;;  %v3197_v33 = vsel %vm206_vm2, %v7152_v50, %v3190_v45  ;;  %vm7857_vm2 = vmmov %vm7855_vm0 }
0x1702   :  { %v3212_v30 = vsel %vm223_vm3, %v3206_v23, %v3208_v40  ;;  %v3213_v14 = vsel %vm223_vm3, %v3204_v18, %v3206_v23  ;;  %v3199_v44 = vmul.f32 %v4508_v7, %v3197_v33  ;;  %v3200_v22 = vmul.f32 %v4509_v9, %v3196_v35  ;;  %3316 = vmatpush.bf16.msra.mxu3 %v3246_v48  ;;  %v4514_v48 = vld [vmem:[#allocation2 + $0xa0] sm:$0xff]  ;;  %v4515_v35 = vld [vmem:[#allocation2 + $0xa8] sm:$0xff]  ;;  %vm7858_vm3 = vmmov %vm7855_vm0 }
0x1703   :  { %v3215_v19 = vmul.f32 %v4510_v29, %v3213_v14  ;;  %v3216_v62 = vmul.f32 %v4511_v20, %v3212_v30 }
0x1704   :  { %v3112_v45 = vpop.permute.xlu2 %3111 }
0x1705   :  { %v3247_v37 = vpack.c.bf16 %v3215_v19, %v3199_v44  ;;  %v3248_v61 = vpack.c.bf16 %v3216_v62, %v3200_v22  ;;  %v4516_v22 = vld [vmem:[#allocation2 + $0x58] sm:$0xff] }
0x1706   :  { %v4517_v19 = vld [vmem:[#allocation2 + $0x78] sm:$0xff] }
0x1707   :  { %3276 = vmatpush.bf16.msra.mxu0 %v3247_v37  ;;  %3289 = vmatpush.bf16.msra.mxu1 %v3248_v61 }
0x1708   :  { %v3142_v50 = vpop.permute.xlu0 %3141 }
0x1709   :  { %v3144_v28 = vpop.permute.xlu1 %3143 }
0x170a   :  { %v3148_v40 = vsel %vm155_vm5, %v3142_v50, %v3144_v28  ;;  %v3147_v44 = vsel %vm155_vm5, %v3144_v28, %v3146_v43 }
0x170b   :  { %v3153_v24 = vmul.f32 %v4512_v60, %v3148_v40  ;;  %v3154_v29 = vmul.f32 %v4516_v22, %v3147_v44  ;;  %v4518_v40 = vld [vmem:[#allocation2 + $0x10] sm:$0xff]  ;;  %v4522_v22 = vld [vmem:[#allocation2 + $0x38] sm:$0xff] }
0x170c   :  { %v3140_v37 = vpop.permute.xlu2 %3139 }
0x1710   :  { %v3160_v18 = vpop.permute.xlu0 %3159 }
0x1711   :  { %v3174_v32 = vpop.permute.xlu1 %3173  ;;  %v3164_v51 = vsel %vm172_vm6, %v7182_v8, %v3160_v18 }
0x1712   :  { %v3180_v15 = vsel %vm189_vm4, %v3174_v32, %v3176_v39  ;;  %v3181_v3 = vsel %vm189_vm4, %v3172_v52, %v3174_v32  ;;  %v3169_v53 = vmul.f32 %v4513_v25, %v3164_v51  ;;  %v4519_v51 = vld [vmem:[#allocation2 + $0x30] sm:$0xff]  ;;  %v4258_v25 = vld [vmem:[%s7723_s2 + $0x20] sm:$0xf] }
0x1713   :  { %v3183_v23 = vmul.f32 %v4514_v48, %v3181_v3  ;;  %v3184_v33 = vmul.f32 %v4515_v35, %v3180_v15  ;;  %v3149_v15 = vsel %vm155_vm5, %v3140_v37, %v3142_v50 }
0x1714   :  { %v3241_v30 = vpack.c.bf16 %v3169_v53, %v3153_v24  ;;  %v3150_v24 = vsel %vm155_vm5, %v3146_v43, %v3140_v37  ;;  %v3130_v3 = vpop.permute.xlu2 %3129 }
0x1715   :  { %v3243_v14 = vpack.c.bf16 %v3183_v23, %v7068_v21  ;;  %v3244_v7 = vpack.c.bf16 %v3184_v33, %v7090_v58  ;;  %v4520_v23 = vld [vmem:[#allocation2 + $0x40] sm:$0xff] }
0x1716   :  { %3304 = vmatpush.bf16.msra.mxu2 %v3241_v30  ;;  %v3151_v35 = vmul.f32 %v4520_v23, %v3150_v24  ;;  %v4521_v30 = vld [vmem:[#allocation2 + $0x48] sm:$0xff]  ;;  %v2318_v23 = vmul.f32 %v7852_v47, %v7852_v47 }
0x1717   :  { %3277 = vmatpush.bf16.msra.mxu0 %v3243_v14  ;;  %3290 = vmatpush.bf16.msra.mxu1 %v3244_v7  ;;  %v3152_v14 = vmul.f32 %v4521_v30, %v3149_v15  ;;  %v4527_v24 = vld [vmem:[#allocation2 + $0x28] sm:$0xff] }
0x1718   :  { %v3162_v39 = vpop.permute.xlu0 %3161 }
0x1719   :  { %v3110_v52 = vpop.permute.xlu1 %3109  ;;  %v3163_v9 = vsel %vm172_vm6, %v3160_v18, %v3162_v39 }
0x171a   :  { %v3170_v20 = vmul.f32 %v4517_v19, %v3163_v9  ;;  %v3116_v21 = vsel %vm121_vm7, %v3110_v52, %v3112_v45  ;;  %v4523_v19 = vld [vmem:[#allocation2 + $0x18] sm:$0xff] }
0x171b   :  { %v3121_v32 = vmul.f32 %v4518_v40, %v3116_v21 }
0x171c   :  { %v3242_v62 = vpack.c.bf16 %v3170_v20, %v3154_v29 }
0x171e   :  { %3317 = vmatpush.bf16.msra.mxu3 %v3242_v62 }
0x1720   :  { %v3126_v58 = vpop.permute.xlu0 %3125 }
0x1721   :  { %v3128_v61 = vpop.permute.xlu1 %3127 }
0x1722   :  { %v3132_v28 = vsel %vm138_vm8, %v3126_v58, %v3128_v61  ;;  %v3131_v53 = vsel %vm138_vm8, %v3128_v61, %v3130_v3 }
0x1723   :  { %v3137_v60 = vmul.f32 %v4519_v51, %v3132_v28  ;;  %v3138_v29 = vmul.f32 %v4522_v22, %v3131_v53  ;;  %v4524_v28 = vld [vmem:[#allocation2] sm:$0xff]  ;;  %v2319_v22 = vmul.f32 %v7853_v59, %v7853_v59 }
0x1725   :  { %v3237_v18 = vpack.c.bf16 %v3137_v60, %v3121_v32  ;;  %v4525_v32 = vld [vmem:[#allocation2 + $0x8] sm:$0xff]  ;;  %v4526_v60 = vld [vmem:[#allocation2 + $0x20] sm:$0xff] }
0x1727   :  { %3305 = vmatpush.bf16.msra.mxu2 %v3237_v18 }
0x1728   :  { %v3156_v48 = vpop.permute.xlu0 %3155 }
0x1729   :  { %v3114_v33 = vpop.permute.xlu1 %3113  ;;  %v3165_v43 = vsel %vm172_vm6, %v3156_v48, %v7182_v8  ;;  %v3166_v50 = vsel %vm172_vm6, %v3162_v39, %v3156_v48  ;;  %v2317_v48 = vmul.f32 %v7851_v6, %v7851_v6 }
0x172a   :  { %v3115_v7 = vsel %vm121_vm7, %v3112_v45, %v3114_v33  ;;  %v3167_v44 = vmul.f32 %v6976_v56, %v3166_v50  ;;  %v3168_v9 = vmul.f32 %v6984_v1, %v3165_v43  ;;  %4261 = vmatmul.msk.bf16.vlgmr.msra.gmra.mxu2 %vm7855_vm0, %v4258_v25 }
0x172b   :  { %v3122_v20 = vmul.f32 %v4523_v19, %v3115_v7 }
0x172c   :  { %v3239_v62 = vpack.c.bf16 %v3167_v44, %v3151_v35  ;;  %v3240_v8 = vpack.c.bf16 %v3168_v9, %v3152_v14  ;;  %v2333_v9 = vadd.f32 %v2318_v23, %v2317_v48 }
0x172d   :  { %v3238_v37 = vpack.c.bf16 %v3138_v29, %v3122_v20 }
0x172e   :  { %3278 = vmatpush.bf16.msra.mxu0 %v3239_v62  ;;  %3291 = vmatpush.bf16.msra.mxu1 %v3240_v8 }
0x172f   :  { %3318 = vmatpush.bf16.msra.mxu3 %v3238_v37 }
0x1730   :  { %v3108_v39 = vpop.permute.xlu0 %3107 }
0x1731   :  { %v3124_v21 = vpop.permute.xlu1 %3123  ;;  %v3117_v45 = vsel %vm121_vm7, %v3108_v39, %v3110_v52  ;;  %v3118_v56 = vsel %vm121_vm7, %v3114_v33, %v3108_v39  ;;  %v2334_v39 = vadd.f32 %v2333_v9, %v2319_v22  ;;  %v4263_v9 = vld [vmem:[%s7724_s3 + $0x40] sm:$0xff]  ;;  %s4148_s3 = sshll.u32 %s7732_s11, 4  ;;  %s4149_s3 = int_to_ptr.hbm [resolvable:$true] %s4148_s3 }
0x1732   :  { %v3133_v1 = vsel %vm138_vm8, %v3124_v21, %v3126_v58  ;;  %v3134_v61 = vsel %vm138_vm8, %v3130_v3, %v3124_v21  ;;  %v3119_v40 = vmul.f32 %v4524_v28, %v3118_v56  ;;  %v3120_v51 = vmul.f32 %v4525_v32, %v3117_v45  ;;  %4262 = vmatmul.msk.bf16.vlgmr.msra.gmra.mxu3 %vm7856_vm1, %v4258_v25 }
0x1733   :  { %v3135_v18 = vmul.f32 %v4526_v60, %v3134_v61  ;;  %v3136_v15 = vmul.f32 %v4527_v24, %v3133_v1  ;;  %v2320_v21 = vmul.f32 %v7854_v41, %v7854_v41 }
0x1735   :  { %v3235_v52 = vpack.c.bf16 %v3135_v18, %v3119_v40  ;;  %v3236_v53 = vpack.c.bf16 %v3136_v15, %v3120_v51  ;;  %v2335_v45 = vadd.f32 %v2334_v39, %v2320_v21  ;;  %v4236_v39 = vld [vmem:[%s7727_s6 + $0x20] sm:$0xff] }
0x1737   :  { %3279 = vmatpush.bf16.msra.mxu0 %v3235_v52  ;;  %3292 = vmatpush.bf16.msra.mxu1 %v3236_v53 }
0x173a   :  { %4259 = vmatmul.msk.bf16.vlgmr.msra.gmra.mxu0 %vm7857_vm2, %v4258_v25  ;;  %4260 = vmatmul.msk.bf16.vlgmr.msra.gmra.mxu1 %vm7858_vm3, %v4258_v25 }
0x175c   :  { %v2297_v61 = vpop.xlane.xlu0 %2296 }
0x175d   :  { %v2313_v51 = vmul.f32 %v2297_v61, %v7846_v2  ;;  %v4240_v61 = vld [vmem:[%s7728_s7 + $0x20] sm:$0xff] }
0x175f   :  { %v2357_v15 = vmul.f32 %v2313_v51, %v2313_v51 }
0x17ad   :  { %v7243_v10 = vpop.f32.mrf.mxu2 }
0x17ae   :  { %v3336_v43 = vmul.f32 %v7243_v10, %v7243_v10 }
0x17b5   :  { %v7245_v58 = vpop.f32.mrf.mxu3  ;;  %v3309_v3 = vpop.f32.mrf.mxu2 }
0x17b6   :  { %v3337_v14 = vmul.f32 %v7245_v58, %v7245_v58 }
0x17b7   :  { %v7251_v35 = vpop.f32.mrf.mxu0  ;;  %v7253_v33 = vpop.f32.mrf.mxu1 }
0x17b8   :  { %v3334_v25 = vmul.f32 %v7251_v35, %v7251_v35  ;;  %v3328_v50 = vadd.f32 %v7253_v33, %v7251_v35  ;;  %v3335_v30 = vmul.f32 %v7253_v33, %v7253_v33 }
0x17ba   :  { %v3329_v7 = vadd.f32 %v3328_v50, %v7243_v10  ;;  %v3338_v44 = vadd.f32 %v3335_v30, %v3334_v25 }
0x17bc   :  { %v3330_v29 = vadd.f32 %v3329_v7, %v7245_v58  ;;  %v3339_v19 = vadd.f32 %v3338_v44, %v3336_v43 }
0x17bd   :  { %v3322_v20 = vpop.f32.mrf.mxu3 }
0x17be   :  { %3331 = vadd.xlane.f32.xlu2 %v3330_v29  ;;  %v3340_v62 = vadd.f32 %v3339_v19, %v3337_v14 }
0x17bf   :  { %v3283_v8 = vpop.f32.mrf.mxu0  ;;  %v3296_v37 = vpop.f32.mrf.mxu1 }
0x17c0   :  { %3341 = vadd.xlane.f32.xlu1 %v3340_v62  ;;  %v4264_v62 = vld [vmem:[%s7725_s4 + $0x40] sm:$0xff] }
0x17c6   :  { %2336 = vadd.xlane.f32.xlu2 %v2335_v45 }
0x1831   :  { %v3332_v56 = vpop.xlane.xlu2 %3331 }
0x1832   :  { %v3333_v1 = vmul.f32 %v3332_v56, %v7846_v2 }
0x1833   :  { %v3342_v28 = vpop.xlane.xlu1 %3341 }
0x1834   :  { %v3344_v40 = vmul.f32 %v3333_v1, %v3333_v1  ;;  %v3343_v32 = vmul.f32 %v3342_v28, %v7846_v2 }
0x1836   :  { %v3345_v60 = vsub.f32 %v3343_v32, %v3344_v40 }
0x1838   :  { %v3346_v18 = vadd.f32 1e-05, %v3345_v60 }
0x1839   :  { %v2337_v24 = vpop.xlane.xlu2 %2336 }
0x183a   :  { %4366 = vrsqrt.f32 %v3346_v18  ;;  %v2353_v52 = vmul.f32 %v2337_v24, %v7846_v2  ;;  %vm3353_vm5 = vweird.f32 %v3346_v18 }
0x183c   :  { %v2361_v53 = vsub.f32 %v2353_v52, %v2357_v15 }
0x183e   :  { %v2365_v3 = vadd.f32 1e-05, %v2361_v53 }
0x1840   :  { %v4367_v48 = vpop.eup %4366  ;;  %4368 = vrsqrt.f32 %v2365_v3  ;;  %vm2375_vm8 = vweird.f32 %v2365_v3 }
0x1841   :  { %v3348_v23 = vmul.f32 %v4367_v48, %v3346_v18  ;;  %vm3354_vm4 = vweird.f32 %v4367_v48 }
0x1842   :  { %vm3355_vm6 = vmor %vm3353_vm5, %vm3354_vm4 }
0x1843   :  { %v3349_v43 = vmul.f32 %v4367_v48, %v3348_v23 }
0x1845   :  { %v3350_v25 = vmul.f32 0.5, %v3349_v43 }
0x1846   :  { %v4369_v50 = vpop.eup %4368 }
0x1847   :  { %v3351_v30 = vsub.f32 1.5, %v3350_v25  ;;  %v2370_v14 = vmul.f32 %v4369_v50, %v2365_v3  ;;  %vm2376_vm7 = vweird.f32 %v4369_v50 }
0x1848   :  { %vm2377_vm13 = vmor %vm2375_vm8, %vm2376_vm7 }
0x1849   :  { %v3352_v7 = vmul.f32 %v4367_v48, %v3351_v30  ;;  %v2371_v44 = vmul.f32 %v4369_v50, %v2370_v14 }
0x184b   :  { %v2372_v22 = vmul.f32 0.5, %v2371_v44  ;;  %v3356_v29 = vsel %vm3355_vm6, %v4367_v48, %v3352_v7  ;;  %vm3787_vm6 = vcmask 785408  }
0x184c   :  { %v3357_v19 = vmul.f32 %v4263_v9, %v3356_v29 }
0x184d   :  { %v2373_v20 = vsub.f32 1.5, %v2372_v22 }
0x184e   :  { %3362 = vperm.xlu0 %4332, %v3357_v19   ;;  %v3358_v8 = vmul.f32 %v3357_v19, %v3333_v1 }
0x184f   :  { %v2374_v37 = vmul.f32 %v4369_v50, %v2373_v20 }
0x1850   :  { %v3359_v21 = vsub.f32 %v4264_v62, %v3358_v8 }
0x1851   :  { %v2378_v45 = vsel %vm2377_vm13, %v4369_v50, %v2374_v37 }
0x1852   :  { %3371 = vperm.xlu2 %4333, %v3359_v21   ;;  %v2409_v56 = vmul.f32 %v4236_v39, %v2378_v45 }
0x1854   :  { %2423 = vperm.xlu1 %4331, %v2409_v56   ;;  %v2413_v28 = vmul.f32 %v2409_v56, %v2313_v51  ;;  %v7862_v56 = vld [vmem:[#allocation28_spill] sm:$0xff] }
0x1856   :  { %v2417_v40 = vsub.f32 %v4240_v61, %v2413_v28 }
0x1858   :  { %2459 = vperm.xlu0 %4332, %v2417_v40  }
0x18ac   :  { %v3372_v15 = vpop.permute.xlu2 %3371 }
0x18c0   :  { %v3363_v1 = vpop.permute.xlu0 %3362 }
0x18c1   :  { %v3365_v32 = vmul.f32 %v3363_v1, %v7251_v35  ;;  %v3366_v60 = vmul.f32 %v3363_v1, %v7253_v33  ;;  %v3367_v18 = vmul.f32 %v3363_v1, %v7243_v10  ;;  %v3368_v24 = vmul.f32 %v3363_v1, %v7245_v58 }
0x18c3   :  { %v3374_v52 = vadd.f32 %v3372_v15, %v3365_v32  ;;  %v3375_v53 = vadd.f32 %v3372_v15, %v3366_v60  ;;  %v3376_v3 = vadd.f32 %v3372_v15, %v3367_v18  ;;  %v3377_v48 = vadd.f32 %v3372_v15, %v3368_v24 }
0x18c5   :  { %v3378_v23 = vmul.f32 0.01, %v3374_v52  ;;  %v3379_v43 = vmul.f32 0.01, %v3375_v53  ;;  %v3380_v25 = vmul.f32 0.01, %v3376_v3 }
0x18c6   :  { %v3381_v51 = vmul.f32 0.01, %v3377_v48  ;;  %v2424_v50 = vpop.permute.xlu1 %2423 }
0x18c7   :  { %v3382_v30 = vmax.f32 %v3374_v52, %v3378_v23  ;;  %v3383_v14 = vmax.f32 %v3375_v53, %v3379_v43  ;;  %v3384_v7 = vmax.f32 %v3376_v3, %v3380_v25  ;;  %v2441_v33 = vmul.f32 %v2424_v50, %v7851_v6  ;;  %v7859_v6 = vld [vmem:[#allocation21_spill] sm:$0xff]  ;;  %v4313_v52 = vld [vmem:[%s7726_s5 + $0x20] sm:$0xff] }
0x18c8   :  { %v3385_v35 = vmax.f32 %v3377_v48, %v3381_v51  ;;  %v2442_v10 = vmul.f32 %v2424_v50, %v7852_v47  ;;  %v2443_v58 = vmul.f32 %v2424_v50, %v7853_v59  ;;  %v2444_v44 = vmul.f32 %v2424_v50, %v7854_v41  ;;  %v7860_v59 = vld [vmem:[#allocation26_spill] sm:$0xff]  ;;  %v7861_v41 = vld [vmem:[#allocation27_spill] sm:$0xff] }
0x18c9   :  { %v3390_v22 = vpack.c.bf16 %v3382_v30, %v7058_v54  ;;  %v3391_v29 = vpack.c.bf16 %v3383_v14, %v7084_v34  ;;  %v3392_v19 = vpack.c.bf16 %v3384_v7, %v7060_v0 }
0x18ca   :  { %v2460_v9 = vpop.permute.xlu0 %2459  ;;  %v3393_v20 = vpack.c.bf16 %v3385_v35, %v7064_v36 }
0x18cb   :  { %v2477_v62 = vadd.f32 %v2460_v9, %v2441_v33  ;;  %v2478_v8 = vadd.f32 %v2460_v9, %v2442_v10  ;;  %v2479_v37 = vadd.f32 %v2460_v9, %v2443_v58  ;;  %v2480_v39 = vadd.f32 %v2460_v9, %v2444_v44  ;;  %3421 = vmatpush.bf16.msrb.mxu0 %v3390_v22 }
0x18cc   :  { %3440 = vmatpush.bf16.msrb.mxu1 %v3391_v29  ;;  %3459 = vmatpush.bf16.msrb.mxu2 %v3392_v19 }
0x18cd   :  { %v2493_v47 = vadd.f32 %v2477_v62, %v7859_v6  ;;  %v2494_v21 = vadd.f32 %v2478_v8, %v7860_v59  ;;  %v2495_v45 = vadd.f32 %v2479_v37, %v7861_v41  ;;  %v2496_v54 = vadd.f32 %v2480_v39, %v7862_v56  ;;  %3478 = vmatpush.bf16.msrb.mxu3 %v3393_v20 }
0x18cf   :  { %v2509_v34 = vmul.f32 0.01, %v2493_v47  ;;  %v2510_v0 = vmul.f32 0.01, %v2494_v21  ;;  %v2511_v61 = vmul.f32 0.01, %v2495_v45 }
0x18d0   :  { %v2512_v36 = vmul.f32 0.01, %v2496_v54 }
0x18d1   :  { %v7303_v28 = vmax.f32 %v2493_v47, %v2509_v34  ;;  %v7305_v40 = vmax.f32 %v2494_v21, %v2510_v0  ;;  %v7307_v1 = vmax.f32 %v2495_v45, %v2511_v61 }
0x18d2   :  { %v7309_v32 = vmax.f32 %v2496_v54, %v2512_v36 }
0x18d3   :  { %v3386_v60 = vpack.c.bf16 %v6795_v13, %v7303_v28  ;;  %v3387_v18 = vpack.c.bf16 %v6821_v5, %v7305_v40  ;;  %v3388_v24 = vpack.c.bf16 %v6797_v11, %v7307_v1  ;;  %v4314_v13 = vld [vmem:[%s7726_s5 + $0x28] sm:$0xff] }
0x18d4   :  { %v3389_v15 = vpack.c.bf16 %v6801_v46, %v7309_v32 }
0x18d5   :  { %3422 = vmatpush.bf16.msrb.mxu0 %v3386_v60  ;;  %3441 = vmatpush.bf16.msrb.mxu1 %v3387_v18 }
0x18d6   :  { %3460 = vmatpush.bf16.msrb.mxu2 %v3388_v24  ;;  %3479 = vmatpush.bf16.msrb.mxu3 %v3389_v15 }
0x18d8   :  { %4277 = vmatmul.msk.bf16.vlgmr.msrb.gmra.mxu0 %vm994_vm14, %v4313_v52  ;;  %4279 = vmatmul.msk.bf16.vlgmr.msrb.gmra.mxu1 %vm994_vm14, %v4313_v52 }
0x18d9   :  { %4281 = vmatmul.msk.bf16.vlgmr.msrb.gmra.mxu2 %vm994_vm14, %v4313_v52  ;;  %4283 = vmatmul.msk.bf16.vlgmr.msrb.gmra.mxu3 %vm994_vm14, %v4313_v52 }
0x18e8   :  { %4278 = vmatmul.msk.bf16.gmra.mxu0 %vm994_vm14, %v4314_v13  ;;  %4280 = vmatmul.msk.bf16.gmra.mxu1 %vm994_vm14, %v4314_v13 }
0x18e9   :  { %4282 = vmatmul.msk.bf16.gmra.mxu2 %vm994_vm14, %v4314_v13  ;;  %4284 = vmatmul.msk.bf16.gmra.mxu3 %vm994_vm14, %v4314_v13 }
0x1955   :  { %v7333_v11 = vpop.f32.mrf.mxu0  ;;  %v7335_v46 = vpop.f32.mrf.mxu1 }
0x1956   :  { %v3501_v5 = vadd.f32 %v7335_v46, %v7333_v11  ;;  %v3525_v54 = vmul.f32 %v7333_v11, %v7333_v11  ;;  %v3526_v34 = vmul.f32 %v7335_v46, %v7335_v46 }
0x195c   :  { %v7339_v53 = vpop.f32.mrf.mxu2  ;;  %v7341_v3 = vpop.f32.mrf.mxu3 }
0x195d   :  { %v3502_v48 = vadd.f32 %v3501_v5, %v7339_v53  ;;  %v7344_v23 = vpop.f32.mrf.mxu0  ;;  %v7346_v43 = vpop.f32.mrf.mxu1 }
0x195e   :  { %v3506_v21 = vadd.f32 %v7346_v43, %v7344_v23  ;;  %v3529_v0 = vmul.f32 %v7344_v23, %v7344_v23  ;;  %v3530_v61 = vmul.f32 %v7346_v43, %v7346_v43 }
0x195f   :  { %v3503_v25 = vadd.f32 %v3502_v48, %v7341_v3 }
0x1961   :  { %3504 = vadd.xlane.f32.xlu1 %v3503_v25 }
0x1964   :  { %v7349_v51 = vpop.f32.mrf.mxu2  ;;  %v7351_v50 = vpop.f32.mrf.mxu3 }
0x1965   :  { %v7353_v30 = vpop.f32.mrf.mxu0  ;;  %v7355_v14 = vpop.f32.mrf.mxu1  ;;  %v3507_v18 = vadd.f32 %v3506_v21, %v7349_v51  ;;  %v3531_v13 = vmul.f32 %v7349_v51, %v7349_v51 }
0x1966   :  { %v3533_v7 = vmul.f32 %v7353_v30, %v7353_v30  ;;  %v3534_v35 = vmul.f32 %v7355_v14, %v7355_v14  ;;  %v3511_v33 = vadd.f32 %v7355_v14, %v7353_v30 }
0x1968   :  { %v3551_v10 = vadd.f32 %v3534_v35, %v3533_v7  ;;  %v3541_v7 = vadd.f32 %v3526_v34, %v3525_v54  ;;  %v3527_v35 = vmul.f32 %v7339_v53, %v7339_v53 }
0x196c   :  { %v7363_v58 = vpop.f32.mrf.mxu2  ;;  %v7365_v44 = vpop.f32.mrf.mxu3 }
0x196d   :  { %v3512_v9 = vadd.f32 %v3511_v33, %v7363_v58  ;;  %v3535_v22 = vmul.f32 %v7363_v58, %v7363_v58  ;;  %v3536_v29 = vmul.f32 %v7365_v44, %v7365_v44  ;;  %v7372_v19 = vpop.f32.mrf.mxu0  ;;  %v7374_v20 = vpop.f32.mrf.mxu1  ;;  %v3546_v33 = vadd.f32 %v3530_v61, %v3529_v0 }
0x196e   :  { %v3537_v37 = vmul.f32 %v7372_v19, %v7372_v19  ;;  %v3538_v39 = vmul.f32 %v7374_v20, %v7374_v20  ;;  %v3516_v45 = vadd.f32 %v7374_v20, %v7372_v19 }
0x196f   :  { %v3552_v62 = vadd.f32 %v3551_v10, %v3535_v22  ;;  %v3513_v8 = vadd.f32 %v3512_v9, %v7365_v44  ;;  %v3508_v10 = vadd.f32 %v3507_v18, %v7351_v50  ;;  %v3547_v22 = vadd.f32 %v3546_v33, %v3531_v13 }
0x1970   :  { %v3556_v24 = vadd.f32 %v3538_v39, %v3537_v37 }
0x1971   :  { %3514 = vadd.xlane.f32.xlu0 %v3513_v8  ;;  %v3553_v47 = vadd.f32 %v3552_v62, %v3536_v29  ;;  %v3542_v29 = vadd.f32 %v3541_v7, %v3527_v35  ;;  %v3528_v62 = vmul.f32 %v7341_v3, %v7341_v3  ;;  %v3532_v8 = vmul.f32 %v7351_v50, %v7351_v50 }
0x1973   :  { %3554 = vadd.xlane.f32.xlu2 %v3553_v47  ;;  %v3548_v37 = vadd.f32 %v3547_v22, %v3532_v8  ;;  %v3543_v39 = vadd.f32 %v3542_v29, %v3528_v62 }
0x1974   :  { %v7393_v36 = vpop.f32.mrf.mxu2  ;;  %v7395_v60 = vpop.f32.mrf.mxu3 }
0x1975   :  { %v3517_v15 = vadd.f32 %v3516_v45, %v7393_v36  ;;  %v3539_v52 = vmul.f32 %v7393_v36, %v7393_v36  ;;  %v3540_v25 = vmul.f32 %v7395_v60, %v7395_v60 }
0x1977   :  { %v3557_v5 = vadd.f32 %v3556_v24, %v3539_v52  ;;  %v3518_v48 = vadd.f32 %v3517_v15, %v7395_v60 }
0x1979   :  { %3519 = vadd.xlane.f32.xlu1 %v3518_v48  ;;  %v3558_v9 = vadd.f32 %v3557_v5, %v3540_v25 }
0x197b   :  { %3509 = vadd.xlane.f32.xlu2 %v3508_v10  ;;  %3559 = vadd.xlane.f32.xlu0 %v3558_v9 }
0x1981   :  { %3549 = vadd.xlane.f32.xlu1 %v3548_v37 }
0x1983   :  { %3544 = vadd.xlane.f32.xlu0 %v3543_v39 }
0x19d4   :  { %v3505_v47 = vpop.xlane.xlu1 %3504 }
0x19d5   :  { %v7421_v33 = vmul.f32 %v3505_v47, %v7846_v2 }
0x19d7   :  { %v3565_v39 = vmul.f32 %v7421_v33, %v7421_v33 }
0x19e4   :  { %v3515_v21 = vpop.xlane.xlu0 %3514 }
0x19e5   :  { %v3523_v45 = vmul.f32 %v3515_v21, %v7846_v2 }
0x19e6   :  { %v3555_v54 = vpop.xlane.xlu2 %3554 }
0x19e7   :  { %v3567_v34 = vmul.f32 %v3523_v45, %v3523_v45  ;;  %v3563_v0 = vmul.f32 %v3555_v54, %v7846_v2 }
0x19e9   :  { %v3571_v61 = vsub.f32 %v3563_v0, %v3567_v34 }
0x19eb   :  { %v3575_v18 = vadd.f32 1e-05, %v3571_v61 }
0x19ec   :  { %v3520_v24 = vpop.xlane.xlu1 %3519 }
0x19ed   :  { %4370 = vrsqrt.f32 %v3575_v18  ;;  %v3524_v15 = vmul.f32 %v3520_v24, %v7846_v2  ;;  %vm3603_vm9 = vweird.f32 %v3575_v18 }
0x19ee   :  { %v3510_v52 = vpop.xlane.xlu2 %3509  ;;  %v3560_v13 = vpop.xlane.xlu0 %3559 }
0x19ef   :  { %v3568_v5 = vmul.f32 %v3524_v15, %v3524_v15  ;;  %v3564_v48 = vmul.f32 %v3560_v13, %v7846_v2  ;;  %v7418_v25 = vmul.f32 %v3510_v52, %v7846_v2 }
0x19f1   :  { %v3572_v7 = vsub.f32 %v3564_v48, %v3568_v5  ;;  %v3566_v29 = vmul.f32 %v7418_v25, %v7418_v25  ;;  %v4287_v48 = vld [vmem:[%s7727_s6 + $0x50] sm:$0xff] }
0x19f3   :  { %v4371_v35 = vpop.eup %4370  ;;  %v3576_v10 = vadd.f32 1e-05, %v3572_v7 }
0x19f4   :  { %v3598_v9 = vmul.f32 %v4371_v35, %v3575_v18  ;;  %v3550_v22 = vpop.xlane.xlu1 %3549  ;;  %vm3604_vm14 = vweird.f32 %v4371_v35 }
0x19f5   :  { %4372 = vrsqrt.f32 %v3576_v10  ;;  %v3562_v62 = vmul.f32 %v3550_v22, %v7846_v2  ;;  %vm3605_vm15 = vmor %vm3603_vm9, %vm3604_vm14  ;;  %vm3613_vm11 = vweird.f32 %v3576_v10 }
0x19f6   :  { %v3599_v8 = vmul.f32 %v4371_v35, %v3598_v9  ;;  %v3545_v37 = vpop.xlane.xlu0 %3544 }
0x19f7   :  { %v3570_v21 = vsub.f32 %v3562_v62, %v3566_v29  ;;  %v3561_v54 = vmul.f32 %v3545_v37, %v7846_v2  ;;  %v4291_v62 = vld [vmem:[%s7728_s7 + $0x50] sm:$0xff] }
0x19f8   :  { %v3600_v34 = vmul.f32 0.5, %v3599_v8 }
0x19f9   :  { %v3574_v47 = vadd.f32 1e-05, %v3570_v21  ;;  %v3569_v0 = vsub.f32 %v3561_v54, %v3565_v39 }
0x19fa   :  { %v3601_v61 = vsub.f32 1.5, %v3600_v34 }
0x19fb   :  { %v4373_v24 = vpop.eup %4372  ;;  %4374 = vrsqrt.f32 %v3574_v47  ;;  %v3573_v52 = vadd.f32 1e-05, %v3569_v0  ;;  %vm3593_vm4 = vweird.f32 %v3574_v47 }
0x19fc   :  { %v3602_v13 = vmul.f32 %v4371_v35, %v3601_v61  ;;  %v3608_v5 = vmul.f32 %v4373_v24, %v3576_v10  ;;  %vm3614_vm10 = vweird.f32 %v4373_v24 }
0x19fd   :  { %4376 = vrsqrt.f32 %v3573_v52  ;;  %vm3615_vm12 = vmor %vm3613_vm11, %vm3614_vm10  ;;  %vm3583_vm2 = vweird.f32 %v3573_v52 }
0x19fe   :  { %v3609_v7 = vmul.f32 %v4373_v24, %v3608_v5  ;;  %v3606_v9 = vsel %vm3605_vm15, %v4371_v35, %v3602_v13  ;;  %v4288_v35 = vld [vmem:[%s7727_s6 + $0x58] sm:$0xff] }
0x19ff   :  { %v3619_v22 = vmul.f32 %v4287_v48, %v3606_v9 }
0x1a00   :  { %v3610_v29 = vmul.f32 0.5, %v3609_v7 }
0x1a01   :  { %v4375_v8 = vpop.eup %4374  ;;  %3641 = vperm.xlu2 %4333, %v3619_v22   ;;  %v3623_v37 = vmul.f32 %v3619_v22, %v3523_v45  ;;  %v4292_v22 = vld [vmem:[%s7728_s7 + $0x58] sm:$0xff] }
0x1a02   :  { %v3611_v39 = vsub.f32 1.5, %v3610_v29  ;;  %v3588_v18 = vmul.f32 %v4375_v8, %v3574_v47  ;;  %vm3594_vm1 = vweird.f32 %v4375_v8 }
0x1a03   :  { %v4377_v21 = vpop.eup %4376  ;;  %v3627_v54 = vsub.f32 %v4291_v62, %v3623_v37  ;;  %vm3595_vm5 = vmor %vm3593_vm4, %vm3594_vm1 }
0x1a04   :  { %v3612_v34 = vmul.f32 %v4373_v24, %v3611_v39  ;;  %v3589_v0 = vmul.f32 %v4375_v8, %v3588_v18  ;;  %v3578_v61 = vmul.f32 %v4377_v21, %v3573_v52  ;;  %vm3584_vm0 = vweird.f32 %v4377_v21 }
0x1a05   :  { %3677 = vperm.xlu1 %4331, %v3627_v54   ;;  %vm3585_vm3 = vmor %vm3583_vm2, %vm3584_vm0 }
0x1a06   :  { %v3616_v13 = vsel %vm3615_vm12, %v4373_v24, %v3612_v34  ;;  %v3590_v5 = vmul.f32 0.5, %v3589_v0  ;;  %v3579_v48 = vmul.f32 %v4377_v21, %v3578_v61  ;;  %v4285_v24 = vld [vmem:[%s7727_s6 + $0x40] sm:$0xff]  ;;  %v4286_v34 = vld [vmem:[%s7727_s6 + $0x48] sm:$0xff] }
0x1a07   :  { %v3620_v7 = vmul.f32 %v4288_v35, %v3616_v13 }
0x1a08   :  { %v3591_v45 = vsub.f32 1.5, %v3590_v5  ;;  %v3580_v9 = vmul.f32 0.5, %v3579_v48 }
0x1a09   :  { %v3624_v29 = vmul.f32 %v3620_v7, %v3524_v15  ;;  %v4289_v15 = vld [vmem:[%s7728_s7 + $0x40] sm:$0xff] }
0x1a0a   :  { %v3581_v10 = vsub.f32 1.5, %v3580_v9  ;;  %v3592_v37 = vmul.f32 %v4375_v8, %v3591_v45 }
0x1a0b   :  { %v3628_v62 = vsub.f32 %v4292_v22, %v3624_v29 }
0x1a0c   :  { %v3582_v39 = vmul.f32 %v4377_v21, %v3581_v10  ;;  %v3596_v0 = vsel %vm3595_vm5, %v4375_v8, %v3592_v37 }
0x1a0d   :  { %3682 = vperm.xlu2 %4333, %v3628_v62   ;;  %v3618_v35 = vmul.f32 %v4286_v34, %v3596_v0 }
0x1a0e   :  { %v3586_v18 = vsel %vm3585_vm3, %v4377_v21, %v3582_v39  ;;  %v4290_v21 = vld [vmem:[%s7728_s7 + $0x48] sm:$0xff] }
0x1a0f   :  { %v3617_v54 = vmul.f32 %v4285_v24, %v3586_v18  ;;  %v3622_v47 = vmul.f32 %v3618_v35, %v7418_v25 }
0x1a11   :  { %3631 = vperm.xlu0 %4332, %v3617_v54   ;;  %v3621_v52 = vmul.f32 %v3617_v54, %v7421_v33  ;;  %v3626_v13 = vsub.f32 %v4290_v21, %v3622_v47 }
0x1a13   :  { %v3625_v61 = vsub.f32 %v4289_v15, %v3621_v52 }
0x1a15   :  { %3667 = vperm.xlu1 %4331, %v3625_v61   ;;  %3636 = vperm.xlu2 %4333, %v3618_v35  }
0x1a19   :  { %3646 = vperm.xlu0 %4332, %v3620_v7  }
0x1a21   :  { %3672 = vperm.xlu0 %4332, %v3626_v13  }
0x1a5b   :  { %v3642_v5 = vpop.permute.xlu2 %3641 }
0x1a5c   :  { %v3657_v8 = vmul.f32 %v3642_v5, %v7353_v30  ;;  %v3658_v33 = vmul.f32 %v3642_v5, %v7355_v14  ;;  %v3659_v9 = vmul.f32 %v3642_v5, %v7363_v58  ;;  %v3660_v25 = vmul.f32 %v3642_v5, %v7365_v44 }
0x1a67   :  { %v3683_v48 = vpop.permute.xlu2 %3682 }
0x1a6f   :  { %v3637_v62 = vpop.permute.xlu2 %3636 }
0x1a70   :  { %v3653_v0 = vmul.f32 %v3637_v62, %v7344_v23  ;;  %v3654_v52 = vmul.f32 %v3637_v62, %v7346_v43  ;;  %v3655_v61 = vmul.f32 %v3637_v62, %v7349_v51 }
0x1a77   :  { %v3678_v45 = vpop.permute.xlu1 %3677 }
0x1a78   :  { %v3693_v22 = vadd.f32 %v3678_v45, %v3657_v8  ;;  %v3694_v7 = vadd.f32 %v3678_v45, %v3658_v33  ;;  %v3695_v10 = vadd.f32 %v3678_v45, %v3659_v9  ;;  %v3696_v37 = vadd.f32 %v3678_v45, %v3660_v25 }
0x1a7a   :  { %v7460_v39 = vadd.f32 %v3693_v22, %v6791_v38  ;;  %v3710_v14 = vadd.f32 %v3694_v7, %v6823_v57  ;;  %v3711_v58 = vadd.f32 %v3695_v10, %v6793_v49 }
0x1a7c   :  { %v3726_v23 = vmul.f32 0.01, %v3710_v14  ;;  %v3727_v45 = vmul.f32 0.01, %v3711_v58 }
0x1a83   :  { %v3632_v29 = vpop.permute.xlu0 %3631 }
0x1a84   :  { %v3649_v24 = vmul.f32 %v3632_v29, %v7333_v11  ;;  %v3650_v18 = vmul.f32 %v3632_v29, %v7335_v46  ;;  %v3651_v54 = vmul.f32 %v3632_v29, %v7339_v53  ;;  %v3652_v15 = vmul.f32 %v3632_v29, %v7341_v3 }
0x1a85   :  { %v3712_v11 = vadd.f32 %v3696_v37, %v6799_v26  ;;  %v3725_v46 = vmul.f32 0.01, %v7460_v39  ;;  %v3656_v29 = vmul.f32 %v3637_v62, %v7351_v50 }
0x1a87   :  { %v3668_v30 = vpop.permute.xlu1 %3667  ;;  %v3728_v7 = vmul.f32 0.01, %v3712_v11  ;;  %v3741_v37 = vmax.f32 %v7460_v39, %v3725_v46 }
0x1a88   :  { %v3685_v34 = vadd.f32 %v3668_v30, %v3649_v24  ;;  %v3686_v44 = vadd.f32 %v3668_v30, %v3650_v18  ;;  %v3687_v35 = vadd.f32 %v3668_v30, %v3651_v54  ;;  %v3688_v47 = vadd.f32 %v3668_v30, %v3652_v15 }
0x1a89   :  { %v3742_v24 = vmax.f32 %v3710_v14, %v3726_v23  ;;  %v3743_v54 = vmax.f32 %v3711_v58, %v3727_v45  ;;  %v7863_v14 = vld [vmem:[#allocation32_spill] sm:$0xff]  ;;  %v7864_v23 = vld [vmem:[#allocation29_spill] sm:$0xff]  ;;  %v7866_v58 = vld [vmem:[#allocation31_spill] sm:$0xff] }
0x1a8a   :  { %v3701_v43 = vadd.f32 %v3685_v34, %v7303_v28  ;;  %v3702_v51 = vadd.f32 %v3686_v44, %v7305_v40  ;;  %v3744_v44 = vmax.f32 %v3712_v11, %v3728_v7 }
0x1a8b   :  { %v3647_v21 = vpop.permute.xlu0 %3646 }
0x1a8c   :  { %v3661_v13 = vmul.f32 %v3647_v21, %v7372_v19  ;;  %v3662_v53 = vmul.f32 %v3647_v21, %v7374_v20  ;;  %v3663_v3 = vmul.f32 %v3647_v21, %v7393_v36  ;;  %v3664_v5 = vmul.f32 %v3647_v21, %v7395_v60 }
0x1a8d   :  { %v3703_v19 = vadd.f32 %v3687_v35, %v7307_v1  ;;  %v3704_v20 = vadd.f32 %v3688_v47, %v7309_v32  ;;  %v3717_v18 = vmul.f32 0.01, %v3701_v43 }
0x1a8e   :  { %v3697_v8 = vadd.f32 %v3683_v48, %v3661_v13  ;;  %v3698_v33 = vadd.f32 %v3683_v48, %v3662_v53  ;;  %v3699_v9 = vadd.f32 %v3683_v48, %v3663_v3  ;;  %v3700_v22 = vadd.f32 %v3683_v48, %v3664_v5 }
0x1a8f   :  { %v3718_v48 = vmul.f32 0.01, %v3702_v51  ;;  %v3719_v35 = vmul.f32 0.01, %v3703_v19  ;;  %v3720_v47 = vmul.f32 0.01, %v3704_v20 }
0x1a90   :  { %v3713_v36 = vadd.f32 %v3697_v8, %v7054_v12  ;;  %v3714_v60 = vadd.f32 %v3698_v33, %v7086_v27  ;;  %v3715_v10 = vadd.f32 %v3699_v9, %v7056_v55  ;;  %v3716_v25 = vadd.f32 %v3700_v22, %v7062_v63  ;;  %v7865_v22 = vld [vmem:[#allocation30_spill] sm:$0xff] }
0x1a92   :  { %v3729_v30 = vmul.f32 0.01, %v3713_v36  ;;  %v3730_v50 = vmul.f32 0.01, %v3714_v60  ;;  %v3731_v62 = vmul.f32 0.01, %v3715_v10 }
0x1a93   :  { %v3673_v15 = vpop.permute.xlu0 %3672  ;;  %v3732_v34 = vmul.f32 0.01, %v3716_v25 }
0x1a94   :  { %v3689_v21 = vadd.f32 %v3673_v15, %v3653_v0  ;;  %v3690_v13 = vadd.f32 %v3673_v15, %v3654_v52  ;;  %v3691_v53 = vadd.f32 %v3673_v15, %v3655_v61  ;;  %v3692_v3 = vadd.f32 %v3673_v15, %v3656_v29 }
0x1a95   :  { %v3745_v5 = vmax.f32 %v3713_v36, %v3729_v30  ;;  %v3746_v8 = vmax.f32 %v3714_v60, %v3730_v50  ;;  %v3747_v33 = vmax.f32 %v3715_v10, %v3731_v62  ;;  %v3748_v39 = vmax.f32 %v3716_v25, %v3732_v34 }
0x1a96   :  { %v3705_v46 = vadd.f32 %v3689_v21, %v7863_v14  ;;  %v3706_v9 = vadd.f32 %v3690_v13, %v7864_v23  ;;  %v3707_v2 = vadd.f32 %v3691_v53, %v7865_v22  ;;  %v3708_v45 = vadd.f32 %v3692_v3, %v7866_v58 }
0x1a97   :  { %v3769_v56 = vpack.c.bf16 %v3745_v5, %v3741_v37  ;;  %v3770_v11 = vpack.c.bf16 %v3746_v8, %v3742_v24  ;;  %v3771_v7 = vpack.c.bf16 %v3747_v33, %v3743_v54  ;;  %v3772_v41 = vpack.c.bf16 %v3748_v39, %v3744_v44 }
0x1a98   :  { %v3721_v0 = vmul.f32 0.01, %v3705_v46  ;;  %v3722_v52 = vmul.f32 0.01, %v3706_v9  ;;  %v3723_v61 = vmul.f32 0.01, %v3707_v2  ;;  %v3733_v29 = vmax.f32 %v3701_v43, %v3717_v18 }
0x1a99   :  { %3796 = vmatpush.bf16.msra.mxu0 %v3769_v56  ;;  %3815 = vmatpush.bf16.msra.mxu1 %v3770_v11  ;;  %v3734_v36 = vmax.f32 %v3702_v51, %v3718_v48  ;;  %v3735_v60 = vmax.f32 %v3703_v19, %v3719_v35  ;;  %v3724_v10 = vmul.f32 0.01, %v3708_v45  ;;  %v3736_v62 = vmax.f32 %v3704_v20, %v3720_v47  ;;  %v7873_v18 = vld [vmem:[#allocation11_spill] sm:$0xff] }
0x1a9a   :  { %3834 = vmatpush.bf16.msra.mxu2 %v3771_v7  ;;  %3853 = vmatpush.bf16.msra.mxu3 %v3772_v41  ;;  %v3737_v25 = vmax.f32 %v3705_v46, %v3721_v0  ;;  %v3738_v30 = vmax.f32 %v3706_v9, %v3722_v52  ;;  %v3739_v50 = vmax.f32 %v3707_v2, %v3723_v61 }
0x1a9b   :  { %v3740_v15 = vmax.f32 %v3708_v45, %v3724_v10  ;;  %v3761_v56 = vpack.c.bf16 %v7054_v12, %v6791_v38  ;;  %v3762_v43 = vpack.c.bf16 %v7086_v27, %v6823_v57  ;;  %v3763_v41 = vpack.c.bf16 %v7056_v55, %v6793_v49  ;;  %v7867_v49 = vld [vmem:[#allocation9_spill] sm:$0xff]  ;;  %v7868_v55 = vld [vmem:[#allocation14_spill] sm:$0xff] }
0x1a9c   :  { %v3765_v37 = vpack.c.bf16 %v3737_v25, %v3733_v29  ;;  %v3766_v24 = vpack.c.bf16 %v3738_v30, %v3734_v36  ;;  %v3767_v54 = vpack.c.bf16 %v3739_v50, %v3735_v60  ;;  %v3764_v2 = vpack.c.bf16 %v7062_v63, %v6799_v26  ;;  %v7869_v27 = vld [vmem:[#allocation17_spill] sm:$0xff] }
0x1a9d   :  { %v3768_v34 = vpack.c.bf16 %v3740_v15, %v3736_v62  ;;  %v3757_v51 = vpack.c.bf16 %v7863_v14, %v7303_v28  ;;  %v3758_v19 = vpack.c.bf16 %v7864_v23, %v7305_v40  ;;  %v3759_v38 = vpack.c.bf16 %v7865_v22, %v7307_v1  ;;  %v7870_v40 = vld [vmem:[#allocation13_spill] sm:$0xff] }
0x1a9e   :  { %3797 = vmatpush.bf16.msra.mxu0 %v3765_v37  ;;  %3816 = vmatpush.bf16.msra.mxu1 %v3766_v24  ;;  %v3760_v57 = vpack.c.bf16 %v7866_v58, %v7309_v32  ;;  %v3753_v26 = vpack.c.bf16 %v7847_v42, %v7867_v49  ;;  %v3754_v12 = vpack.c.bf16 %v7850_v31, %v7839_v4  ;;  %v7871_v32 = vld [vmem:[#allocation10_spill] sm:$0xff]  ;;  %v7872_v42 = vld [vmem:[#allocation27_spill] sm:$0xff]  ;;  %v7874_v4 = vld [vmem:[#allocation28_spill] sm:$0xff] }
0x1a9f   :  { %3835 = vmatpush.bf16.msra.mxu2 %v3767_v54  ;;  %3854 = vmatpush.bf16.msra.mxu3 %v3768_v34  ;;  %v3755_v63 = vpack.c.bf16 %v7848_v17, %v7868_v55  ;;  %v3756_v28 = vpack.c.bf16 %v7849_v16, %v7869_v27  ;;  %v3749_v1 = vpack.c.bf16 %v7870_v40, %v7859_v6  ;;  %v7875_v31 = vld [vmem:[#allocation12_spill] sm:$0xff]  ;;  %v4316_v16 = vld [vmem:[%s7729_s8 + $0x8] sm:$0xff] }
0x1aa0   :  { %v3750_v20 = vpack.c.bf16 %v7871_v32, %v7860_v59  ;;  %v3751_v48 = vpack.c.bf16 %v7873_v18, %v7872_v42  ;;  %v3752_v44 = vpack.c.bf16 %v7875_v31, %v7874_v4  ;;  %v4315_v17 = vld [vmem:[%s7729_s8] sm:$0xff] }
0x1aa1   :  { %v7876_v18 = vld [vmem:[#allocation8_spill] sm:$0xff] }
0x1aa2   :  { %3798 = vmatpush.bf16.msra.mxu0 %v3761_v56  ;;  %3817 = vmatpush.bf16.msra.mxu1 %v3762_v43 }
0x1aa3   :  { %3836 = vmatpush.bf16.msra.mxu2 %v3763_v41  ;;  %3855 = vmatpush.bf16.msra.mxu3 %v3764_v2 }
0x1aa6   :  { %3799 = vmatpush.bf16.msra.mxu0 %v3757_v51  ;;  %3818 = vmatpush.bf16.msra.mxu1 %v3758_v19 }
0x1aa7   :  { %3837 = vmatpush.bf16.msra.mxu2 %v3759_v38  ;;  %3856 = vmatpush.bf16.msra.mxu3 %v3760_v57 }
0x1aaa   :  { %3800 = vmatpush.bf16.msra.mxu0 %v3753_v26  ;;  %3819 = vmatpush.bf16.msra.mxu1 %v3754_v12 }
0x1aab   :  { %3838 = vmatpush.bf16.msra.mxu2 %v3755_v63  ;;  %3857 = vmatpush.bf16.msra.mxu3 %v3756_v28 }
0x1aae   :  { %3801 = vmatpush.bf16.msra.mxu0 %v3749_v1  ;;  %3820 = vmatpush.bf16.msra.mxu1 %v3750_v20 }
0x1aaf   :  { %3839 = vmatpush.bf16.msra.mxu2 %v3751_v48  ;;  %3858 = vmatpush.bf16.msra.mxu3 %v3752_v44 }
0x1ab1   :  { %4301 = vmatmul.msk.bf16.vlgmr.msra.gmra.mxu0 %vm3787_vm6, %v4315_v17  ;;  %4303 = vmatmul.msk.bf16.vlgmr.msra.gmra.mxu1 %vm3787_vm6, %v4315_v17 }
0x1ab2   :  { %4305 = vmatmul.msk.bf16.vlgmr.msra.gmra.mxu2 %vm3787_vm6, %v4315_v17  ;;  %4307 = vmatmul.msk.bf16.vlgmr.msra.gmra.mxu3 %vm3787_vm6, %v4315_v17 }
0x1ac1   :  { %4302 = vmatmul.msk.bf16.gmra.mxu0 %vm3787_vm6, %v4316_v16  ;;  %4304 = vmatmul.msk.bf16.gmra.mxu1 %vm3787_vm6, %v4316_v16 }
0x1ac2   :  { %4306 = vmatmul.msk.bf16.gmra.mxu2 %vm3787_vm6, %v4316_v16  ;;  %4308 = vmatmul.msk.bf16.gmra.mxu3 %vm3787_vm6, %v4316_v16 }
0x1b2e   :  { %v7529_v6 = vpop.f32.mrf.mxu0  ;;  %v7531_v59 = vpop.f32.mrf.mxu1 }
0x1b2f   :  { %v3902_v35 = vmul.f32 %v7529_v6, %v7529_v6  ;;  %v3903_v47 = vmul.f32 %v7531_v59, %v7531_v59  ;;  %v3878_v21 = vadd.f32 %v7531_v59, %v7529_v6 }
0x1b31   :  { %v3918_v13 = vadd.f32 %v3903_v47, %v3902_v35 }
0x1b35   :  { %v7539_v53 = vpop.f32.mrf.mxu2  ;;  %v7541_v3 = vpop.f32.mrf.mxu3 }
0x1b36   :  { %v3879_v5 = vadd.f32 %v3878_v21, %v7539_v53  ;;  %v3904_v8 = vmul.f32 %v7539_v53, %v7539_v53  ;;  %v3905_v33 = vmul.f32 %v7541_v3, %v7541_v3  ;;  %v7548_v39 = vpop.f32.mrf.mxu0  ;;  %v7550_v14 = vpop.f32.mrf.mxu1 }
0x1b37   :  { %v3883_v22 = vadd.f32 %v7550_v14, %v7548_v39  ;;  %v3906_v29 = vmul.f32 %v7548_v39, %v7548_v39  ;;  %v3907_v36 = vmul.f32 %v7550_v14, %v7550_v14 }
0x1b38   :  { %v3919_v46 = vadd.f32 %v3918_v13, %v3904_v8  ;;  %v3880_v23 = vadd.f32 %v3879_v5, %v7541_v3 }
0x1b39   :  { %v3923_v37 = vadd.f32 %v3907_v36, %v3906_v29 }
0x1b3a   :  { %3881 = vadd.xlane.f32.xlu2 %v3880_v23  ;;  %v3920_v9 = vadd.f32 %v3919_v46, %v3905_v33 }
0x1b3c   :  { %3921 = vadd.xlane.f32.xlu1 %v3920_v9 }
0x1b3d   :  { %v7555_v58 = vpop.f32.mrf.mxu2  ;;  %v7557_v45 = vpop.f32.mrf.mxu3 }
0x1b3e   :  { %v3884_v11 = vadd.f32 %v3883_v22, %v7555_v58  ;;  %v7560_v7 = vpop.f32.mrf.mxu0  ;;  %v7562_v0 = vpop.f32.mrf.mxu1  ;;  %v3908_v30 = vmul.f32 %v7555_v58, %v7555_v58  ;;  %v3909_v2 = vmul.f32 %v7557_v45, %v7557_v45 }
0x1b3f   :  { %v3888_v61 = vadd.f32 %v7562_v0, %v7560_v7  ;;  %v3910_v56 = vmul.f32 %v7560_v7, %v7560_v7  ;;  %v3911_v43 = vmul.f32 %v7562_v0, %v7562_v0 }
0x1b40   :  { %v3885_v52 = vadd.f32 %v3884_v11, %v7557_v45  ;;  %v3924_v34 = vadd.f32 %v3923_v37, %v3908_v30  ;;  %v3870_v11 = vld [vmem:[%s7730_s9] sm:$0xff] }
0x1b41   :  { %v3928_v26 = vadd.f32 %v3911_v43, %v3910_v56 }
0x1b42   :  { %v3925_v12 = vadd.f32 %v3924_v34, %v3909_v2 }
0x1b44   :  { %3886 = vadd.xlane.f32.xlu1 %v3885_v52 }
0x1b45   :  { %v7571_v60 = vpop.f32.mrf.mxu2  ;;  %v7573_v10 = vpop.f32.mrf.mxu3 }
0x1b46   :  { %v3889_v25 = vadd.f32 %v3888_v61, %v7571_v60  ;;  %v7578_v50 = vpop.f32.mrf.mxu0  ;;  %v7580_v62 = vpop.f32.mrf.mxu1  ;;  %v3912_v55 = vmul.f32 %v7571_v60, %v7571_v60  ;;  %v3913_v32 = vmul.f32 %v7573_v10, %v7573_v10 }
0x1b47   :  { %v3914_v24 = vmul.f32 %v7578_v50, %v7578_v50  ;;  %v3915_v54 = vmul.f32 %v7580_v62, %v7580_v62  ;;  %v3893_v41 = vadd.f32 %v7580_v62, %v7578_v50 }
0x1b48   :  { %v3890_v15 = vadd.f32 %v3889_v25, %v7573_v10  ;;  %v3929_v1 = vadd.f32 %v3928_v26, %v3912_v55 }
0x1b49   :  { %v3933_v38 = vadd.f32 %v3915_v54, %v3914_v24  ;;  %v3874_v54 = vld [vmem:[%s7731_s10] sm:$0xff] }
0x1b4a   :  { %3891 = vadd.xlane.f32.xlu0 %v3890_v15  ;;  %v3930_v20 = vadd.f32 %v3929_v1, %v3913_v32 }
0x1b4d   :  { %v7595_v51 = vpop.f32.mrf.mxu2  ;;  %v7597_v19 = vpop.f32.mrf.mxu3 }
0x1b4e   :  { %v3894_v57 = vadd.f32 %v3893_v41, %v7595_v51  ;;  %v3916_v49 = vmul.f32 %v7595_v51, %v7595_v51  ;;  %v3917_v28 = vmul.f32 %v7597_v19, %v7597_v19 }
0x1b50   :  { %v3934_v63 = vadd.f32 %v3933_v38, %v3916_v49  ;;  %v3895_v27 = vadd.f32 %v3894_v57, %v7597_v19 }
0x1b52   :  { %v3935_v40 = vadd.f32 %v3934_v63, %v3917_v28  ;;  %3926 = vadd.xlane.f32.xlu0 %v3925_v12  ;;  %3896 = vadd.xlane.f32.xlu2 %v3895_v27 }
0x1b54   :  { %3936 = vadd.xlane.f32.xlu1 %v3935_v40 }
0x1b5a   :  { %3931 = vadd.xlane.f32.xlu2 %v3930_v20 }
0x1bad   :  { %v3882_v42 = vpop.xlane.xlu2 %3881 }
0x1bae   :  { %v3898_v48 = vmul.f32 %v3882_v42, %v7876_v18 }
0x1baf   :  { %v3922_v4 = vpop.xlane.xlu1 %3921 }
0x1bb0   :  { %v3942_v31 = vmul.f32 %v3898_v48, %v3898_v48  ;;  %v3938_v44 = vmul.f32 %v3922_v4, %v7876_v18 }
0x1bb2   :  { %v3946_v17 = vsub.f32 %v3938_v44, %v3942_v31 }
0x1bb4   :  { %v3950_v16 = vadd.f32 1e-05, %v3946_v17  ;;  %v3871_v17 = vld [vmem:[%s7730_s9 + $0x8] sm:$0xff] }
0x1bb6   :  { %4378 = vrsqrt.f32 %v3950_v16  ;;  %vm3960_vm8 = vweird.f32 %v3950_v16 }
0x1bb7   :  { %v3887_v5 = vpop.xlane.xlu1 %3886 }
0x1bb8   :  { %v7612_v33 = vmul.f32 %v3887_v5, %v7876_v18 }
0x1bba   :  { %v3943_v52 = vmul.f32 %v7612_v33, %v7612_v33 }
0x1bbc   :  { %v4379_v35 = vpop.eup %4378 }
0x1bbd   :  { %v3955_v47 = vmul.f32 %v4379_v35, %v3950_v16  ;;  %v3892_v21 = vpop.xlane.xlu0 %3891  ;;  %vm3961_vm7 = vweird.f32 %v4379_v35 }
0x1bbe   :  { %vm3962_vm13 = vmor %vm3960_vm8, %vm3961_vm7  ;;  %v7626_v34 = vmul.f32 %v3892_v21, %v7876_v18  ;;  %v3873_v21 = vld [vmem:[%s7730_s9 + $0x18] sm:$0xff] }
0x1bbf   :  { %v3956_v13 = vmul.f32 %v4379_v35, %v3955_v47 }
0x1bc0   :  { %v3944_v49 = vmul.f32 %v7626_v34, %v7626_v34 }
0x1bc1   :  { %v3957_v8 = vmul.f32 0.5, %v3956_v13 }
0x1bc3   :  { %v3958_v46 = vsub.f32 1.5, %v3957_v8 }
0x1bc5   :  { %v3959_v23 = vmul.f32 %v4379_v35, %v3958_v46  ;;  %v3927_v9 = vpop.xlane.xlu0 %3926  ;;  %v3897_v22 = vpop.xlane.xlu2 %3896 }
0x1bc6   :  { %v3939_v61 = vmul.f32 %v3927_v9, %v7876_v18  ;;  %v3901_v29 = vmul.f32 %v3897_v22, %v7876_v18 }
0x1bc7   :  { %v3937_v36 = vpop.xlane.xlu1 %3936  ;;  %v3963_v25 = vsel %vm3962_vm13, %v4379_v35, %v3959_v23 }
0x1bc8   :  { %v3947_v30 = vsub.f32 %v3939_v61, %v3943_v52  ;;  %v3945_v15 = vmul.f32 %v3901_v29, %v3901_v29  ;;  %v3941_v37 = vmul.f32 %v3937_v36, %v7876_v18  ;;  %v3994_v24 = vmul.f32 %v3963_v25, %v3870_v11  ;;  %v3877_v11 = vld [vmem:[%s7731_s10 + $0x18] sm:$0xff]  ;;  %v3872_v52 = vld [vmem:[%s7730_s9 + $0x10] sm:$0xff]  ;;  %v3875_v25 = vld [vmem:[%s7731_s10 + $0x8] sm:$0xff] }
0x1bca   :  { %v3951_v56 = vadd.f32 1e-05, %v3947_v30  ;;  %v3949_v43 = vsub.f32 %v3941_v37, %v3945_v15  ;;  %4008 = vperm.xlu0 %4332, %v3994_v24   ;;  %v3998_v41 = vmul.f32 %v3994_v24, %v3898_v48  ;;  %v3876_v24 = vld [vmem:[%s7731_s10 + $0x10] sm:$0xff] }
0x1bcc   :  { %4380 = vrsqrt.f32 %v3951_v56  ;;  %v3953_v2 = vadd.f32 1e-05, %v3949_v43  ;;  %v4002_v38 = vsub.f32 %v3874_v54, %v3998_v41  ;;  %vm3970_vm9 = vweird.f32 %v3951_v56 }
0x1bcd   :  { %v3932_v57 = vpop.xlane.xlu2 %3931 }
0x1bce   :  { %4382 = vrsqrt.f32 %v3953_v2  ;;  %v3940_v26 = vmul.f32 %v3932_v57, %v7876_v18  ;;  %4044 = vperm.xlu2 %4333, %v4002_v38   ;;  %vm3990_vm11 = vweird.f32 %v3953_v2 }
0x1bd0   :  { %v3948_v12 = vsub.f32 %v3940_v26, %v3944_v49 }
0x1bd2   :  { %v4381_v55 = vpop.eup %4380  ;;  %v3952_v63 = vadd.f32 1e-05, %v3948_v12  ;;  %v4528_v12 = vld [vmem:[%s7721_s0] sm:$0xff] }
0x1bd3   :  { %v3965_v27 = vmul.f32 %v4381_v55, %v3951_v56  ;;  %vm3971_vm14 = vweird.f32 %v4381_v55 }
0x1bd4   :  { %v4383_v28 = vpop.eup %4382  ;;  %4384 = vrsqrt.f32 %v3952_v63  ;;  %vm3972_vm10 = vmor %vm3970_vm9, %vm3971_vm14  ;;  %vm3980_vm1 = vweird.f32 %v3952_v63 }
0x1bd5   :  { %v3966_v40 = vmul.f32 %v4381_v55, %v3965_v27  ;;  %v3985_v1 = vmul.f32 %v4383_v28, %v3953_v2  ;;  %vm3991_vm15 = vweird.f32 %v4383_v28 }
0x1bd6   :  { %vm3992_vm12 = vmor %vm3990_vm11, %vm3991_vm15 }
0x1bd7   :  { %v3967_v32 = vmul.f32 0.5, %v3966_v40  ;;  %v3986_v20 = vmul.f32 %v4383_v28, %v3985_v1 }
0x1bd9   :  { %v3968_v42 = vsub.f32 1.5, %v3967_v32  ;;  %v3987_v48 = vmul.f32 0.5, %v3986_v20 }
0x1bda   :  { %v4385_v4 = vpop.eup %4384 }
0x1bdb   :  { %v3969_v31 = vmul.f32 %v4381_v55, %v3968_v42  ;;  %v3988_v44 = vsub.f32 1.5, %v3987_v48  ;;  %v3975_v18 = vmul.f32 %v4385_v4, %v3952_v63  ;;  %vm3981_vm0 = vweird.f32 %v4385_v4 }
0x1bdc   :  { %vm3982_vm2 = vmor %vm3980_vm1, %vm3981_vm0 }
0x1bdd   :  { %v3989_v16 = vmul.f32 %v4383_v28, %v3988_v44  ;;  %v3976_v35 = vmul.f32 %v4385_v4, %v3975_v18  ;;  %v3973_v47 = vsel %vm3972_vm10, %v4381_v55, %v3969_v31 }
0x1bde   :  { %v3995_v13 = vmul.f32 %v3973_v47, %v3871_v17 }
0x1bdf   :  { %v3977_v5 = vmul.f32 0.5, %v3976_v35  ;;  %v3993_v8 = vsel %vm3992_vm12, %v4383_v28, %v3989_v16 }
0x1be0   :  { %4013 = vperm.xlu2 %4333, %v3995_v13   ;;  %v3997_v46 = vmul.f32 %v3993_v8, %v3873_v21  ;;  %v3999_v61 = vmul.f32 %v3995_v13, %v7612_v33 }
0x1be1   :  { %v3978_v23 = vsub.f32 1.5, %v3977_v5 }
0x1be2   :  { %4023 = vperm.xlu0 %4332, %v3997_v46   ;;  %v4001_v9 = vmul.f32 %v3997_v46, %v3901_v29  ;;  %v4003_v15 = vsub.f32 %v3875_v25, %v3999_v61  ;;  %v4532_v46 = vld [vmem:[%s7721_s0 + $0x60] sm:$0xff] }
0x1be3   :  { %v3979_v22 = vmul.f32 %v4385_v4, %v3978_v23 }
0x1be4   :  { %v4005_v30 = vsub.f32 %v3877_v11, %v4001_v9 }
0x1be5   :  { %v3983_v36 = vsel %vm3982_vm2, %v4385_v4, %v3979_v22 }
0x1be6   :  { %v3996_v29 = vmul.f32 %v3983_v36, %v3872_v52 }
0x1be8   :  { %4059 = vperm.xlu2 %4333, %v4005_v30   ;;  %4018 = vperm.xlu1 %4331, %v3996_v29   ;;  %v4000_v37 = vmul.f32 %v3996_v29, %v7626_v34 }
0x1bea   :  { %4049 = vperm.xlu0 %4332, %v4003_v15   ;;  %v4004_v54 = vsub.f32 %v3876_v24, %v4000_v37 }
0x1bf0   :  { %4054 = vperm.xlu1 %4331, %v4004_v54  }
0x1c28   :  { %v4045_v38 = vpop.permute.xlu2 %4044 }
0x1c3a   :  { %v4014_v31 = vpop.permute.xlu2 %4013 }
0x1c3b   :  { %v4030_v25 = vmul.f32 %v4014_v31, %v7548_v39  ;;  %v4031_v15 = vmul.f32 %v4014_v31, %v7550_v14  ;;  %v4032_v37 = vmul.f32 %v4014_v31, %v7555_v58  ;;  %v4033_v24 = vmul.f32 %v4014_v31, %v7557_v45  ;;  %v4536_v39 = vld [vmem:[%s7721_s0 + $0x20] sm:$0xff]  ;;  %v4537_v14 = vld [vmem:[%s7721_s0 + $0x28] sm:$0xff]  ;;  %v4538_v45 = vld [vmem:[%s7721_s0 + $0x30] sm:$0xff] }
0x1c3c   :  { %v4009_v33 = vpop.permute.xlu0 %4008 }
0x1c3d   :  { %v4026_v56 = vmul.f32 %v4009_v33, %v7529_v6  ;;  %v4027_v43 = vmul.f32 %v4009_v33, %v7531_v59  ;;  %v4028_v41 = vmul.f32 %v4009_v33, %v7539_v53  ;;  %v4029_v2 = vmul.f32 %v4009_v33, %v7541_v3  ;;  %v4529_v6 = vld [vmem:[%s7721_s0 + $0x8] sm:$0xff]  ;;  %v4530_v59 = vld [vmem:[%s7721_s0 + $0x10] sm:$0xff]  ;;  %v4531_v3 = vld [vmem:[%s7721_s0 + $0x18] sm:$0xff] }
0x1c3f   :  { %v4062_v57 = vadd.f32 %v4045_v38, %v4026_v56  ;;  %v4063_v49 = vadd.f32 %v4045_v38, %v4027_v43  ;;  %v4064_v26 = vadd.f32 %v4045_v38, %v4028_v41  ;;  %v4065_v34 = vadd.f32 %v4045_v38, %v4029_v2 }
0x1c41   :  { %v4078_v55 = vadd.f32 %v4528_v12, %v4062_v57  ;;  %v4079_v63 = vadd.f32 %v4529_v6, %v4063_v49  ;;  %v4080_v53 = vadd.f32 %v4530_v59, %v4064_v26  ;;  %v4081_v27 = vadd.f32 %v4531_v3, %v4065_v34  ;;  %v4539_v34 = vld [vmem:[%s7721_s0 + $0x38] sm:$0xff] }
0x1c42   :  { %v4060_v47 = vpop.permute.xlu2 %4059 }
0x1c43   :  { %v4094_v28 = vmul.f32 0.01, %v4078_v55  ;;  %v4095_v40 = vmul.f32 0.01, %v4079_v63  ;;  %v4096_v1 = vmul.f32 0.01, %v4080_v53 }
0x1c44   :  { %v4097_v32 = vmul.f32 0.01, %v4081_v27 }
0x1c45   :  { %v4110_v20 = vmax.f32 %v4078_v55, %v4094_v28  ;;  %v4111_v42 = vmax.f32 %v4079_v63, %v4095_v40  ;;  %v4112_v48 = vmax.f32 %v4080_v53, %v4096_v1 }
0x1c46   :  { %v4113_v4 = vmax.f32 %v4081_v27, %v4097_v32 }
0x1c47   :  { %4126 = vst [vmem:[#allocation5] sm:$0xff] %v4110_v20 }
0x1c48   :  { %4127 = vst [vmem:[#allocation5 + $0x8] sm:$0xff] %v4111_v42 }
0x1c49   :  { %4128 = vst [vmem:[#allocation5 + $0x10] sm:$0xff] %v4112_v48 }
0x1c4a   :  { %4129 = vst [vmem:[#allocation5 + $0x18] sm:$0xff] %v4113_v4 }
0x1c54   :  { %v4024_v44 = vpop.permute.xlu0 %4023 }
0x1c55   :  { %v4038_v18 = vmul.f32 %v4024_v44, %v7578_v50  ;;  %v4039_v17 = vmul.f32 %v4024_v44, %v7580_v62  ;;  %v4040_v16 = vmul.f32 %v4024_v44, %v7595_v51  ;;  %v4041_v35 = vmul.f32 %v4024_v44, %v7597_v19  ;;  %v4533_v50 = vld [vmem:[%s7721_s0 + $0x68] sm:$0xff]  ;;  %v4534_v62 = vld [vmem:[%s7721_s0 + $0x70] sm:$0xff]  ;;  %v4535_v19 = vld [vmem:[%s7721_s0 + $0x78] sm:$0xff] }
0x1c57   :  { %v4074_v21 = vadd.f32 %v4060_v47, %v4038_v18  ;;  %v4075_v13 = vadd.f32 %v4060_v47, %v4039_v17  ;;  %v4076_v5 = vadd.f32 %v4060_v47, %v4040_v16  ;;  %v4077_v8 = vadd.f32 %v4060_v47, %v4041_v35  ;;  %v4542_v18 = vld [vmem:[%s7721_s0 + $0x50] sm:$0xff]  ;;  %v4543_v16 = vld [vmem:[%s7721_s0 + $0x58] sm:$0xff] }
0x1c59   :  { %v4090_v23 = vadd.f32 %v4532_v46, %v4074_v21  ;;  %v4091_v9 = vadd.f32 %v4533_v50, %v4075_v13  ;;  %v4092_v51 = vadd.f32 %v4534_v62, %v4076_v5  ;;  %v4093_v22 = vadd.f32 %v4535_v19, %v4077_v8 }
0x1c5a   :  { %v4019_v11 = vpop.permute.xlu1 %4018 }
0x1c5b   :  { %v4106_v52 = vmul.f32 0.01, %v4090_v23  ;;  %v4107_v61 = vmul.f32 0.01, %v4091_v9  ;;  %v4108_v36 = vmul.f32 0.01, %v4092_v51  ;;  %v4034_v6 = vmul.f32 %v4019_v11, %v7560_v7 }
0x1c5c   :  { %v4109_v30 = vmul.f32 0.01, %v4093_v22  ;;  %v4050_v29 = vpop.permute.xlu0 %4049  ;;  %v4035_v63 = vmul.f32 %v4019_v11, %v7562_v0  ;;  %v4036_v3 = vmul.f32 %v4019_v11, %v7571_v60  ;;  %v4037_v27 = vmul.f32 %v4019_v11, %v7573_v10  ;;  %v4540_v7 = vld [vmem:[%s7721_s0 + $0x40] sm:$0xff]  ;;  %v4541_v60 = vld [vmem:[%s7721_s0 + $0x48] sm:$0xff] }
0x1c5d   :  { %v4122_v54 = vmax.f32 %v4090_v23, %v4106_v52  ;;  %v4123_v33 = vmax.f32 %v4091_v9, %v4107_v61  ;;  %v4124_v56 = vmax.f32 %v4092_v51, %v4108_v36  ;;  %v4066_v43 = vadd.f32 %v4050_v29, %v4030_v25 }
0x1c5e   :  { %v4125_v41 = vmax.f32 %v4093_v22, %v4109_v30  ;;  %v4067_v2 = vadd.f32 %v4050_v29, %v4031_v15  ;;  %v4068_v38 = vadd.f32 %v4050_v29, %v4032_v37  ;;  %v4069_v57 = vadd.f32 %v4050_v29, %v4033_v24 }
0x1c5f   :  { %4138 = vst [vmem:[#allocation5 + $0x60] sm:$0xff] %v4122_v54  ;;  %v4082_v49 = vadd.f32 %v4536_v39, %v4066_v43 }
0x1c60   :  { %4139 = vst [vmem:[#allocation5 + $0x68] sm:$0xff] %v4123_v33  ;;  %v4083_v58 = vadd.f32 %v4537_v14, %v4067_v2  ;;  %v4084_v26 = vadd.f32 %v4538_v45, %v4068_v38  ;;  %v4085_v12 = vadd.f32 %v4539_v34, %v4069_v57 }
0x1c61   :  { %4140 = vst [vmem:[#allocation5 + $0x70] sm:$0xff] %v4124_v56  ;;  %v4098_v55 = vmul.f32 0.01, %v4082_v49 }
0x1c62   :  { %4141 = vst [vmem:[#allocation5 + $0x78] sm:$0xff] %v4125_v41  ;;  %v4099_v59 = vmul.f32 0.01, %v4083_v58  ;;  %v4100_v53 = vmul.f32 0.01, %v4084_v26  ;;  %v4055_v28 = vpop.permute.xlu1 %4054 }
0x1c63   :  { %v4101_v40 = vmul.f32 0.01, %v4085_v12  ;;  %v4114_v1 = vmax.f32 %v4082_v49, %v4098_v55  ;;  %v4070_v32 = vadd.f32 %v4055_v28, %v4034_v6  ;;  %v4071_v20 = vadd.f32 %v4055_v28, %v4035_v63 }
0x1c64   :  { %v4115_v42 = vmax.f32 %v4083_v58, %v4099_v59  ;;  %v4116_v48 = vmax.f32 %v4084_v26, %v4100_v53  ;;  %v4072_v4 = vadd.f32 %v4055_v28, %v4036_v3  ;;  %v4073_v31 = vadd.f32 %v4055_v28, %v4037_v27 }
0x1c65   :  { %v4117_v44 = vmax.f32 %v4085_v12, %v4101_v40  ;;  %4130 = vst [vmem:[#allocation5 + $0x20] sm:$0xff] %v4114_v1  ;;  %v4086_v0 = vadd.f32 %v4540_v7, %v4070_v32  ;;  %v4087_v10 = vadd.f32 %v4541_v60, %v4071_v20 }
0x1c66   :  { %4131 = vst [vmem:[#allocation5 + $0x28] sm:$0xff] %v4115_v42  ;;  %v4088_v17 = vadd.f32 %v4542_v18, %v4072_v4  ;;  %v4089_v35 = vadd.f32 %v4543_v16, %v4073_v31 }
0x1c67   :  { %4132 = vst [vmem:[#allocation5 + $0x30] sm:$0xff] %v4116_v48  ;;  %v4102_v47 = vmul.f32 0.01, %v4086_v0  ;;  %v4103_v21 = vmul.f32 0.01, %v4087_v10 }
0x1c68   :  { %4133 = vst [vmem:[#allocation5 + $0x38] sm:$0xff] %v4117_v44  ;;  %v4104_v13 = vmul.f32 0.01, %v4088_v17  ;;  %v4105_v5 = vmul.f32 0.01, %v4089_v35 }
0x1c69   :  { %v4118_v8 = vmax.f32 %v4086_v0, %v4102_v47  ;;  %v4119_v46 = vmax.f32 %v4087_v10, %v4103_v21 }
0x1c6a   :  { %v4120_v23 = vmax.f32 %v4088_v17, %v4104_v13  ;;  %v4121_v50 = vmax.f32 %v4089_v35, %v4105_v5 }
0x1c6b   :  { %4134 = vst [vmem:[#allocation5 + $0x40] sm:$0xff] %v4118_v8 }
0x1c6c   :  { %4135 = vst [vmem:[#allocation5 + $0x48] sm:$0xff] %v4119_v46 }
0x1c6d   :  { %4136 = vst [vmem:[#allocation5 + $0x50] sm:$0xff] %v4120_v23 }
0x1c6e   :  { %4137 = vst [vmem:[#allocation5 + $0x58] sm:$0xff] %v4121_v50 }
0x1c6f   :  { %4154 = dma.vmem_to_hbm [thread:$0]  %s4147_s18, 2048, %s4149_s3, [#allocation4], %s4597_s22, %s4597_s22, %s4598_s23  }
0x1c70   :  { %4594 = dma.done.wait [#allocation4], 2048  }
0x1c71   :  { %4595 = vsyncadd [#allocation4], 4294965248 }
0x1c72   :  { %4159 = vsyncpa [#allocation3], 1 }
0x1c73   :  { %4160 = vsyncpa [#allocation4], 1 }

</bundles_post_ra>
